<compile_context>
chip_gen: v7x
topology: tpu7x:2x2x1
jax: 0.10.0
libtpu: 0.0.40
codegen_flags: <defaults>
</compile_context>

<pallas_src>
import functools

import numpy as np
import jax
import jax.numpy as jnp
from jax.experimental import pallas as pl
from jax.experimental.pallas import tpu as pltpu


# ---------------------------------------------------------------------------
# Model configuration (matches the PyTorch module defaults)
# ---------------------------------------------------------------------------
INPUT_CLASSES_LIST = [6, 3, 43, 44, 64, 2506]
EMBEDDING_DIM = 16
OUTPUT_DIM = 11
HIDDEN_DIM = 32
NUM_FEATURES = len(INPUT_CLASSES_LIST)
IN_DIM = NUM_FEATURES * EMBEDDING_DIM          # 96

LANE = 128
F_PAD = LANE                                   # concat-embedding dim 96 -> 128
H_PAD = LANE                                   # hidden dim 32 -> 128
O_PAD = LANE                                   # output dim 11 -> 128 (lane-dense store)

CLASS_OFFSETS = tuple(int(v) for v in np.cumsum([0] + INPUT_CLASSES_LIST[:-1]))
TOTAL_CLASSES = int(sum(INPUT_CLASSES_LIST))   # 2666
LANE_ALIGN = LANE


def _round_up(n, m):
    return ((n + m - 1) // m) * m


C_PAD = _round_up(TOTAL_CLASSES, LANE_ALIGN)   # 2688 (one-hot / table row dim)

TB_MAX = 256   # keeps the (tb, C_PAD) one-hot intermediates comfortably inside VMEM


# ---------------------------------------------------------------------------
# Pallas kernel: fused gather(one-hot MXU) -> Linear -> ReLU -> Linear
# ---------------------------------------------------------------------------
def mlp_fused_kernel(idx_ref, tbl_ref, w1_ref, b1_ref, w2_ref, b2_ref, o_ref):
    # idx_ref: (tb, 6) int32       tbl_ref: (C_PAD, 128) f32   (combined embedding table)
    # w1_ref : (128, 128) f32      b1_ref : (1, 128) f32
    # w2_ref : (128, 128) f32      b2_ref : (1, 128) f32       o_ref: (tb, 128) f32
    tb = idx_ref.shape[0]
    idx = idx_ref[...]                                              # (tb, 6) int32

    # Build the summed one-hot selector over the combined class axis.
    col = jax.lax.broadcasted_iota(jnp.int32, (tb, C_PAD), 1)       # class id per lane
    hit = None
    for i in range(NUM_FEATURES):
        tgt = idx[:, i:i + 1] + CLASS_OFFSETS[i]                    # (tb, 1) int32
        m = col == tgt
        hit = m if hit is None else jnp.logical_or(hit, m)
    onehot = hit.astype(jnp.float32)                                # exact 0.0 / 1.0

    # Gather + concat as one MXU matmul.  HIGHEST precision => bit-exact row selection
    # (one-hot weights make every multi-pass term exact).
    x_emb = jnp.dot(onehot, tbl_ref[...],
                    precision=jax.lax.Precision.HIGHEST,
                    preferred_element_type=jnp.float32)             # (tb, 128), cols 96.. are 0

    # MLP: Linear -> ReLU -> Linear (default matmul precision, same as the XLA reference).
    h = jnp.dot(x_emb, w1_ref[...], preferred_element_type=jnp.float32)
    h = jnp.maximum(h + b1_ref[...], 0.0)
    o_ref[...] = (
        jnp.dot(h, w2_ref[...], preferred_element_type=jnp.float32) + b2_ref[...]
    )


def mlp_fused_pallas(x_idx, tbl, w1p, b1p, w2p, b2p, tb):
    """x_idx: (Bp, 6) int32 with Bp a multiple of tb; tb a multiple of 8."""
    Bp = x_idx.shape[0]
    grid = (Bp // tb,)

    flops = 2 * Bp * (C_PAD * F_PAD + F_PAD * H_PAD + H_PAD * O_PAD)
    bytes_accessed = (
        Bp * NUM_FEATURES * 4 + Bp * O_PAD * 4
        + (C_PAD * F_PAD + F_PAD * H_PAD + H_PAD + H_PAD * O_PAD + O_PAD) * 4
    )

    return pl.pallas_call(
        mlp_fused_kernel,
        out_shape=jax.ShapeDtypeStruct((Bp, O_PAD), jnp.float32),
        grid=grid,
        in_specs=[
            pl.BlockSpec((tb, NUM_FEATURES), lambda i: (i, 0)),  # indices: 24 B/row, pipelined
            pl.BlockSpec((C_PAD, F_PAD), lambda i: (0, 0)),      # fused table: VMEM-resident
            pl.BlockSpec((F_PAD, H_PAD), lambda i: (0, 0)),      # W1: VMEM-resident
            pl.BlockSpec((1, H_PAD), lambda i: (0, 0)),          # b1
            pl.BlockSpec((H_PAD, O_PAD), lambda i: (0, 0)),      # W2
            pl.BlockSpec((1, O_PAD), lambda i: (0, 0)),          # b2
        ],
        out_specs=pl.BlockSpec((tb, O_PAD), lambda i: (i, 0)),   # lane-dense unmasked vst
        compiler_params=pltpu.CompilerParams(
            dimension_semantics=("parallel",),        # shard batch tiles across TCs on v7x
            vmem_limit_bytes=32 * 1024 * 1024,        # v5e default is 16 MiB; be explicit
        ),
        cost_estimate=pl.CostEstimate(
            flops=flops, transcendentals=0, bytes_accessed=bytes_accessed),
    )(x_idx, tbl, w1p, b1p, w2p, b2p)


# ---------------------------------------------------------------------------
# Parameter setup (PyTorch-equivalent init) + packing into fused/padded layouts
# ---------------------------------------------------------------------------
def init_params(key):
    keys = jax.random.split(key, NUM_FEATURES + 4)
    # nn.Embedding default init: N(0, 1)
    emb_tables = [
        jax.random.normal(keys[i], (n, EMBEDDING_DIM), dtype=jnp.float32)
        for i, n in enumerate(INPUT_CLASSES_LIST)
    ]
    # nn.Linear default init: U(-1/sqrt(fan_in), 1/sqrt(fan_in)); stored (in, out)
    lim1 = float(1.0 / np.sqrt(IN_DIM))
    w1 = jax.random.uniform(keys[NUM_FEATURES + 0], (IN_DIM, HIDDEN_DIM),
                            minval=-lim1, maxval=lim1, dtype=jnp.float32)
    b1 = jax.random.uniform(keys[NUM_FEATURES + 1], (HIDDEN_DIM,),
                            minval=-lim1, maxval=lim1, dtype=jnp.float32)
    lim2 = float(1.0 / np.sqrt(HIDDEN_DIM))
    w2 = jax.random.uniform(keys[NUM_FEATURES + 2], (HIDDEN_DIM, OUTPUT_DIM),
                            minval=-lim2, maxval=lim2, dtype=jnp.float32)
    b2 = jax.random.uniform(keys[NUM_FEATURES + 3], (OUTPUT_DIM,),
                            minval=-lim2, maxval=lim2, dtype=jnp.float32)
    return emb_tables, (w1, b1, w2, b2)


def pack_fused_params(emb_tables, params):
    """Pack the 6 tables into one block-diagonal (C_PAD, 128) table and zero-pad the MLP."""
    w1, b1, w2, b2 = params
    tbl = jnp.zeros((C_PAD, F_PAD), jnp.float32)
    for i, t in enumerate(emb_tables):
        r0 = CLASS_OFFSETS[i]
        c0 = i * EMBEDDING_DIM
        tbl = tbl.at[r0:r0 + t.shape[0], c0:c0 + EMBEDDING_DIM].set(t)
    w1p = jnp.zeros((F_PAD, H_PAD), jnp.float32).at[:IN_DIM, :HIDDEN_DIM].set(w1)
    b1p = jnp.zeros((1, H_PAD), jnp.float32).at[0, :HIDDEN_DIM].set(b1)
    w2p = jnp.zeros((H_PAD, O_PAD), jnp.float32).at[:HIDDEN_DIM, :OUTPUT_DIM].set(w2)
    b2p = jnp.zeros((1, O_PAD), jnp.float32).at[0, :OUTPUT_DIM].set(b2)
    return tbl, w1p, b1p, w2p, b2p


# ---------------------------------------------------------------------------
# Forward pass
# ---------------------------------------------------------------------------
@functools.partial(jax.jit, static_argnames=("tb",))
def _mlp_forward_jit(x, tbl, w1p, b1p, w2p, b2p, tb):
    x = x.astype(jnp.int32)
    B = x.shape[0]
    Bp = _round_up(B, tb)
    # Only the tiny (B, 6) int32 index slab is padded (24 B/row); padded rows use index 0,
    # which is a valid class, so padded outputs are finite garbage that gets sliced off.
    x_pad = jnp.pad(x, ((0, Bp - B), (0, 0)))
    out = mlp_fused_pallas(x_pad, tbl, w1p, b1p, w2p, b2p, tb)      # (Bp, 128)
    # Kept only to preserve the module's (B, 11) contract; a fused consumer should take the
    # padded lane-dense slab and slice lazily (review item #8).
    return out[:B, :OUTPUT_DIM]


def _pick_tb(B):
    bp8 = _round_up(max(B, 1), 8)
    if bp8 <= 16:
        return bp8                      # tiny batch: single small tile
    # >=2 grid steps so v7x can shard the parallel batch axis across both TensorCores,
    # capped at TB_MAX so one-hot intermediates stay well inside VMEM.
    return min(TB_MAX, _round_up(pl.cdiv(bp8, 2), 8))


def mlp_forward(x, fused_params, tb=None):
    if tb is None:
        tb = _pick_tb(x.shape[0])
    tbl, w1p, b1p, w2p, b2p = fused_params
    return _mlp_forward_jit(x, tbl, w1p, b1p, w2p, b2p, tb)


def mlp_reference(x, emb_tables, params):
    x = x.astype(jnp.int32)
    embeddings = [
        jnp.take(emb_tables[i], x[:, i], axis=0) for i in range(NUM_FEATURES)
    ]
    x_emb = jnp.concatenate(embeddings, axis=-1)
    w1, b1, w2, b2 = params
    h = jnp.maximum(x_emb @ w1 + b1, 0.0)
    return h @ w2 + b2


# ---------------------------------------------------------------------------
# Self-test
# ---------------------------------------------------------------------------
if __name__ == "__main__":
    key = jax.random.PRNGKey(0)
    pkey, _ = jax.random.split(key)

    emb_tables, params = init_params(pkey)
    fused_params = pack_fused_params(emb_tables, params)

    def make_x(seed, batch):
        ks = jax.random.split(jax.random.PRNGKey(seed), NUM_FEATURES)
        cols = [
            jax.random.randint(ks[i], (batch,), 0, INPUT_CLASSES_LIST[i], dtype=jnp.int32)
            for i in range(NUM_FEATURES)
        ]
        return jnp.stack(cols, axis=1)            # (batch, 6) int32

    # --- Test 1: small batch (B=2), single tile ---
    x1 = make_x(0, 2)
    out1 = jax.block_until_ready(mlp_forward(x1, fused_params))
    ref1 = mlp_reference(x1, emb_tables, params)
    assert out1.shape == (2, OUTPUT_DIM), out1.shape
    assert jnp.allclose(out1, ref1, atol=1e-5, rtol=1e-5), "mismatch vs reference (B=2)"

    # --- Test 2: multi-step grid path (B=48 -> tb=24, 2 pipelined grid steps) ---
    x2 = make_x(1, 48)
    out2 = jax.block_until_ready(mlp_forward(x2, fused_params))
    ref2 = mlp_reference(x2, emb_tables, params)
    assert out2.shape == (48, OUTPUT_DIM), out2.shape
    assert jnp.allclose(out2, ref2, atol=1e-5, rtol=1e-5), "mismatch vs reference (B=48)"

    # --- Test 3: larger batch with ragged tail (B=600 -> tb=256, grid=3, padded rows) ---
    x3 = make_x(2, 600)
    out3 = jax.block_until_ready(mlp_forward(x3, fused_params))
    ref3 = mlp_reference(x3, emb_tables, params)
    assert out3.shape == (600, OUTPUT_DIM), out3.shape
    assert jnp.allclose(out3, ref3, atol=1e-5, rtol=1e-5), "mismatch vs reference (B=600)"

    print("KERNEL_OK")
</pallas_src>

<mosaic_0001>
module attributes {stable_mosaic.version = 11 : i64} {
  func.func @mlp_fused_kernel(%arg0: i32, %arg1: memref<8x6xi32, #tpu.memory_space<vmem>>, %arg2: memref<2688x128xf32, #tpu.memory_space<vmem>>, %arg3: memref<128x128xf32, #tpu.memory_space<vmem>>, %arg4: memref<1x128xf32, #tpu.memory_space<vmem>>, %arg5: memref<128x128xf32, #tpu.memory_space<vmem>>, %arg6: memref<1x128xf32, #tpu.memory_space<vmem>>, %arg7: memref<8x128xf32, #tpu.memory_space<vmem>>) attributes {dimension_semantics = [#tpu.dimension_semantics<parallel>], iteration_bounds = array<i64: 1>, scalar_prefetch = 0 : i64, scratch_operands = 0 : i64, tpu.core_type = #tpu.core_type<tc>, window_params = [{transform_indices = @transform_0, window_bounds = array<i64: 8, 6>}, {pipeline_mode = #tpu.pipeline_mode<synchronous>, transform_indices = @transform_1, window_bounds = array<i64: 2688, 128>}, {pipeline_mode = #tpu.pipeline_mode<synchronous>, transform_indices = @transform_2, window_bounds = array<i64: 128, 128>}, {pipeline_mode = #tpu.pipeline_mode<synchronous>, transform_indices = @transform_3, window_bounds = array<i64: 1, 128>}, {pipeline_mode = #tpu.pipeline_mode<synchronous>, transform_indices = @transform_4, window_bounds = array<i64: 128, 128>}, {pipeline_mode = #tpu.pipeline_mode<synchronous>, transform_indices = @transform_5, window_bounds = array<i64: 1, 128>}, {transform_indices = @transform_6, window_bounds = array<i64: 8, 128>}]} {
    %c0 = arith.constant 0 : index
    %c0_0 = arith.constant 0 : index
    %0 = vector.load %arg1[%c0, %c0_0] : memref<8x6xi32, #tpu.memory_space<vmem>>, vector<8x6xi32>
    %1 = tpu.iota {dimensions = array<i32: 1>} : vector<8x2688xi32>
    %2 = vector.extract_strided_slice %0 {offsets = [0, 0], sizes = [8, 1], strides = [1, 1]} : vector<8x6xi32> to vector<8x1xi32>
    %c0_i32 = arith.constant 0 : i32
    %3 = vector.broadcast %c0_i32 : i32 to vector<8x1xi32>
    %4 = arith.addi %2, %3 : vector<8x1xi32>
    %5 = vector.broadcast %4 : vector<8x1xi32> to vector<8x2688xi32>
    %6 = arith.cmpi eq, %1, %5 : vector<8x2688xi32>
    %7 = vector.extract_strided_slice %0 {offsets = [0, 1], sizes = [8, 1], strides = [1, 1]} : vector<8x6xi32> to vector<8x1xi32>
    %c6_i32 = arith.constant 6 : i32
    %8 = vector.broadcast %c6_i32 : i32 to vector<8x1xi32>
    %9 = arith.addi %7, %8 : vector<8x1xi32>
    %10 = vector.broadcast %9 : vector<8x1xi32> to vector<8x2688xi32>
    %11 = arith.cmpi eq, %1, %10 : vector<8x2688xi32>
    %12 = arith.ori %6, %11 : vector<8x2688xi1>
    %13 = vector.extract_strided_slice %0 {offsets = [0, 2], sizes = [8, 1], strides = [1, 1]} : vector<8x6xi32> to vector<8x1xi32>
    %c9_i32 = arith.constant 9 : i32
    %14 = vector.broadcast %c9_i32 : i32 to vector<8x1xi32>
    %15 = arith.addi %13, %14 : vector<8x1xi32>
    %16 = vector.broadcast %15 : vector<8x1xi32> to vector<8x2688xi32>
    %17 = arith.cmpi eq, %1, %16 : vector<8x2688xi32>
    %18 = arith.ori %12, %17 : vector<8x2688xi1>
    %19 = vector.extract_strided_slice %0 {offsets = [0, 3], sizes = [8, 1], strides = [1, 1]} : vector<8x6xi32> to vector<8x1xi32>
    %c52_i32 = arith.constant 52 : i32
    %20 = vector.broadcast %c52_i32 : i32 to vector<8x1xi32>
    %21 = arith.addi %19, %20 : vector<8x1xi32>
    %22 = vector.broadcast %21 : vector<8x1xi32> to vector<8x2688xi32>
    %23 = arith.cmpi eq, %1, %22 : vector<8x2688xi32>
    %24 = arith.ori %18, %23 : vector<8x2688xi1>
    %25 = vector.extract_strided_slice %0 {offsets = [0, 4], sizes = [8, 1], strides = [1, 1]} : vector<8x6xi32> to vector<8x1xi32>
    %c96_i32 = arith.constant 96 : i32
    %26 = vector.broadcast %c96_i32 : i32 to vector<8x1xi32>
    %27 = arith.addi %25, %26 : vector<8x1xi32>
    %28 = vector.broadcast %27 : vector<8x1xi32> to vector<8x2688xi32>
    %29 = arith.cmpi eq, %1, %28 : vector<8x2688xi32>
    %30 = arith.ori %24, %29 : vector<8x2688xi1>
    %31 = vector.extract_strided_slice %0 {offsets = [0, 5], sizes = [8, 1], strides = [1, 1]} : vector<8x6xi32> to vector<8x1xi32>
    %c160_i32 = arith.constant 160 : i32
    %32 = vector.broadcast %c160_i32 : i32 to vector<8x1xi32>
    %33 = arith.addi %31, %32 : vector<8x1xi32>
    %34 = vector.broadcast %33 : vector<8x1xi32> to vector<8x2688xi32>
    %35 = arith.cmpi eq, %1, %34 : vector<8x2688xi32>
    %36 = arith.ori %30, %35 : vector<8x2688xi1>
    %37 = arith.extui %36 : vector<8x2688xi1> to vector<8x2688xi32>
    %38 = arith.sitofp %37 : vector<8x2688xi32> to vector<8x2688xf32>
    %c0_1 = arith.constant 0 : index
    %c0_2 = arith.constant 0 : index
    %39 = vector.load %arg2[%c0_1, %c0_2] : memref<2688x128xf32, #tpu.memory_space<vmem>>, vector<2688x128xf32>
    %cst = arith.constant dense<0.000000e+00> : vector<8x128xf32>
    %40 = tpu.matmul %38, %39, %cst {dimension_numbers = #tpu.dot_dimension_numbers<[1], [0], [0], [1], [0, 0, 1, 1], [], []>, precision = #tpu.contract_precision<fp32>} : vector<8x2688xf32>, vector<2688x128xf32>, vector<8x128xf32> -> vector<8x128xf32>
    %c0_3 = arith.constant 0 : index
    %c0_4 = arith.constant 0 : index
    %41 = vector.load %arg3[%c0_3, %c0_4] : memref<128x128xf32, #tpu.memory_space<vmem>>, vector<128x128xf32>
    %cst_5 = arith.constant dense<0.000000e+00> : vector<8x128xf32>
    %42 = tpu.matmul %40, %41, %cst_5 {dimension_numbers = #tpu.dot_dimension_numbers<[1], [0], [0], [1], [0, 0, 1, 1], [], []>} : vector<8x128xf32>, vector<128x128xf32>, vector<8x128xf32> -> vector<8x128xf32>
    %c0_6 = arith.constant 0 : index
    %c0_7 = arith.constant 0 : index
    %43 = vector.load %arg4[%c0_6, %c0_7] : memref<1x128xf32, #tpu.memory_space<vmem>>, vector<1x128xf32>
    %44 = vector.broadcast %43 : vector<1x128xf32> to vector<8x128xf32>
    %45 = arith.addf %42, %44 : vector<8x128xf32>
    %cst_8 = arith.constant 0.000000e+00 : f32
    %46 = vector.broadcast %cst_8 : f32 to vector<8x128xf32>
    %47 = arith.maximumf %45, %46 : vector<8x128xf32>
    %c0_9 = arith.constant 0 : index
    %c0_10 = arith.constant 0 : index
    %48 = vector.load %arg5[%c0_9, %c0_10] : memref<128x128xf32, #tpu.memory_space<vmem>>, vector<128x128xf32>
    %cst_11 = arith.constant dense<0.000000e+00> : vector<8x128xf32>
    %49 = tpu.matmul %47, %48, %cst_11 {dimension_numbers = #tpu.dot_dimension_numbers<[1], [0], [0], [1], [0, 0, 1, 1], [], []>} : vector<8x128xf32>, vector<128x128xf32>, vector<8x128xf32> -> vector<8x128xf32>
    %c0_12 = arith.constant 0 : index
    %c0_13 = arith.constant 0 : index
    %50 = vector.load %arg6[%c0_12, %c0_13] : memref<1x128xf32, #tpu.memory_space<vmem>>, vector<1x128xf32>
    %51 = vector.broadcast %50 : vector<1x128xf32> to vector<8x128xf32>
    %52 = arith.addf %49, %51 : vector<8x128xf32>
    %c0_14 = arith.constant 0 : index
    %c0_15 = arith.constant 0 : index
    %53 = vector.load %arg7[%c0_14, %c0_15] : memref<8x128xf32, #tpu.memory_space<vmem>>, vector<8x128xf32>
    tpu.vector_store %arg7[%c0_14, %c0_15], %52 {strides = array<i32>} : memref<8x128xf32, #tpu.memory_space<vmem>>, vector<8x128xf32>,
    return
  }
  func.func @transform_0(%arg0: i32) -> (i32, i32) {
    %c0_i32 = arith.constant 0 : i32
    %c0_i32_0 = arith.constant 0 : i32
    return %arg0, %c0_i32 : i32, i32
  }
  func.func @transform_1(%arg0: i32) -> (i32, i32) {
    %c0_i32 = arith.constant 0 : i32
    %c0_i32_0 = arith.constant 0 : i32
    %c0_i32_1 = arith.constant 0 : i32
    return %c0_i32, %c0_i32_0 : i32, i32
  }
  func.func @transform_2(%arg0: i32) -> (i32, i32) {
    %c0_i32 = arith.constant 0 : i32
    %c0_i32_0 = arith.constant 0 : i32
    %c0_i32_1 = arith.constant 0 : i32
    return %c0_i32, %c0_i32_0 : i32, i32
  }
  func.func @transform_3(%arg0: i32) -> (i32, i32) {
    %c0_i32 = arith.constant 0 : i32
    %c0_i32_0 = arith.constant 0 : i32
    %c0_i32_1 = arith.constant 0 : i32
    return %c0_i32, %c0_i32_0 : i32, i32
  }
  func.func @transform_4(%arg0: i32) -> (i32, i32) {
    %c0_i32 = arith.constant 0 : i32
    %c0_i32_0 = arith.constant 0 : i32
    %c0_i32_1 = arith.constant 0 : i32
    return %c0_i32, %c0_i32_0 : i32, i32
  }
  func.func @transform_5(%arg0: i32) -> (i32, i32) {
    %c0_i32 = arith.constant 0 : i32
    %c0_i32_0 = arith.constant 0 : i32
    %c0_i32_1 = arith.constant 0 : i32
    return %c0_i32, %c0_i32_0 : i32, i32
  }
  func.func @transform_6(%arg0: i32) -> (i32, i32) {
    %c0_i32 = arith.constant 0 : i32
    %c0_i32_0 = arith.constant 0 : i32
    return %arg0, %c0_i32 : i32, i32
  }
}

</mosaic_0001>

<bundles_post_ra>
// kernel: _mlp_forward_jit.1
= control target key start
LH: loop header
LB: loop body
LE: loop exit
PB: predicated region body
PF: predicated region fallthrough
CT: control target
= control target key end

     0   :  { %11 = vsyncpa [#allocation3], 0  ;;  %s22479_s0 = inlined_call_operand.vmem [shape: s32[8,6], index: 0, kind: input, shape index: {}]   ;;  %s22480_s1 = inlined_call_operand.hbm [shape: f32[2688,128], index: 1, kind: input, shape index: {}]   ;;  %s22481_s2 = inlined_call_operand.hbm [shape: f32[128,128], index: 2, kind: input, shape index: {}]   ;;  %s22482_s3 = inlined_call_operand.hbm [shape: f32[1,128], index: 3, kind: input, shape index: {}]   ;;  %s22483_s4 = inlined_call_operand.hbm [shape: f32[128,128], index: 4, kind: input, shape index: {}]   ;;  %s22484_s5 = inlined_call_operand.hbm [shape: f32[1,128], index: 5, kind: input, shape index: {}]   ;;  %s22485_s6 = inlined_call_operand.vmem [shape: f32[8,128], index: 6, kind: output, shape index: {}]  }
   0x1   :  { %12 = vsyncpa [#allocation5], 0 }
   0x2   :  { %13 = vsyncpa [#allocation8], 0  ;;  %s14998_s21 = smov [#allocation4]   ;;  %s14999_s23 = smov [#allocation7]  }
   0x3   :  { %s33_s22 = sshll.u32 %s14998_s21, 4  ;;  %s55_s24 = sshll.u32 %s14999_s23, 4  ;;  %s34_s22 = int_to_ptr.vmem [resolvable:$true] %s33_s22  ;;  %s15049_s24 = int_to_ptr.vmem [resolvable:$true] %s55_s24 }
   0x4   :  { %s14882_s27 = scalar_lea.hbm %s22481_s2, 2048 }
   0x5   :  { %p14883_p0 = scmp.ne.s32.totalorder %s22481_s2, %s14882_s27  ;;  %p14886_p1 = scmp.lt.u32.totalorder %s14882_s27, %s22481_s2 }
   0x7   :  { %p14888_p2 = pnand %p14886_p1, %p14883_p0 }
   0x9   :  { %14891 = shalt.err (!%p14888_p2)
}
   0xa   :  { %s14892_s8 = scalar_lea.vmem %s34_s22, 2048  ;;  %p14897_p4 = scmp.lt.s32.totalorder %s34_s22, %s34_s22 }
   0xb   :  { %p14893_p3 = scmp.ne.s32.totalorder %s34_s22, %s14892_s8  ;;  %p14898_p5 = scmp.lt.s32.totalorder %s14892_s8, %s14892_s8 }
   0xd   :  { %p14899_p6 = por %p14898_p5, %p14897_p4 }
   0xf   :  { %p14900_p7 = pnand %p14899_p6, %p14893_p3 }
  0x11   :  { %14903 = shalt.err (!%p14900_p7)
}
  0x12   :  { %s15000_s9 = smov 128   ;;  %s15001_s10 = smov 8  }
  0x13   :  { %39 = dma.hbm_to_vmem [thread:$0]  %s22481_s2, 2048, %s34_s22, [#allocation5], %s15000_s9, %s15000_s9, %s15001_s10  }
  0x14   :  { %s14904_s15 = scalar_lea.hbm %s22483_s4, 2048 }
  0x15   :  { %p14905_p8 = scmp.ne.s32.totalorder %s22483_s4, %s14904_s15  ;;  %p14908_p9 = scmp.lt.u32.totalorder %s14904_s15, %s22483_s4 }
  0x17   :  { %p14910_p10 = pnand %p14908_p9, %p14905_p8 }
  0x19   :  { %14913 = shalt.err (!%p14910_p10)
}
  0x1a   :  { %s14914_s20 = scalar_lea.vmem %s15049_s24, 2048  ;;  %p14919_p12 = scmp.lt.s32.totalorder %s15049_s24, %s15049_s24 }
  0x1b   :  { %p14915_p11 = scmp.ne.s32.totalorder %s15049_s24, %s14914_s20  ;;  %p14920_p13 = scmp.lt.s32.totalorder %s14914_s20, %s14914_s20 }
  0x1d   :  { %p14921_p0 = por %p14920_p13, %p14919_p12 }
  0x1f   :  { %p14922_p1 = pnand %p14921_p0, %p14915_p11 }
  0x21   :  { %14925 = shalt.err (!%p14922_p1)
}
  0x22   :  { %61 = dma.hbm_to_vmem [thread:$0]  %s22483_s4, 2048, %s15049_s24, [#allocation8], %s15000_s9, %s15000_s9, %s15001_s10  }
  0x23   :  { %s15002_s22 = smov [#allocation2]   ;;  %s15003_s25 = smov [#allocation6]  }
  0x24   :  { %s21_s23 = sshll.u32 %s15002_s22, 4  ;;  %s46_s26 = sshll.u32 %s15003_s25, 4  ;;  %s22_s23 = int_to_ptr.vmem [resolvable:$true] %s21_s23  ;;  %s47_s26 = int_to_ptr.vmem [resolvable:$true] %s46_s26 }
  0x25   :  { %s14926_s29 = scalar_lea.hbm %s22480_s1, 43008 }
  0x26   :  { %p14927_p2 = scmp.ne.s32.totalorder %s22480_s1, %s14926_s29  ;;  %p14930_p3 = scmp.lt.u32.totalorder %s14926_s29, %s22480_s1 }
  0x28   :  { %p14932_p4 = pnand %p14930_p3, %p14927_p2 }
  0x2a   :  { %14935 = shalt.err (!%p14932_p4)
}
  0x2b   :  { %s14936_s4 = scalar_lea.vmem %s22_s23, 43008  ;;  %p14941_p6 = scmp.lt.s32.totalorder %s22_s23, %s22_s23 }
  0x2c   :  { %p14937_p5 = scmp.ne.s32.totalorder %s22_s23, %s14936_s4  ;;  %p14942_p7 = scmp.lt.s32.totalorder %s14936_s4, %s14936_s4 }
  0x2e   :  { %p14943_p8 = por %p14942_p7, %p14941_p6 }
  0x30   :  { %p14944_p9 = pnand %p14943_p8, %p14937_p5 }
  0x32   :  { %14947 = shalt.err (!%p14944_p9)
}
  0x33   :  { %27 = dma.hbm_to_vmem [thread:$0]  %s22480_s1, 43008, %s22_s23, [#allocation3], %s15000_s9, %s15000_s9, %s15001_s10  }
  0x34   :  { %s14948_s15 = scalar_lea.hbm %s22482_s3, 16 }
  0x35   :  { %p14949_p10 = scmp.ne.s32.totalorder %s22482_s3, %s14948_s15  ;;  %p14952_p11 = scmp.lt.u32.totalorder %s14948_s15, %s22482_s3 }
  0x37   :  { %p14954_p12 = pnand %p14952_p11, %p14949_p10 }
  0x39   :  { %14957 = shalt.err (!%p14954_p12)
}
  0x3a   :  { %s14958_s20 = scalar_lea.vmem %s47_s26, 16  ;;  %s14962_s2 = scalar_lea.vmem %s47_s26, 32 }
  0x3b   :  { %p14959_p13 = scmp.ne.s32.totalorder %s47_s26, %s14958_s20  ;;  %p14963_p0 = scmp.lt.s32.totalorder %s47_s26, %s47_s26 }
  0x3c   :  { %p14964_p1 = scmp.lt.s32.totalorder %s14962_s2, %s14958_s20 }
  0x3e   :  { %p14965_p2 = por %p14964_p1, %p14963_p0 }
  0x40   :  { %p14966_p3 = pnand %p14965_p2, %p14959_p13 }
  0x42   :  { %14969 = shalt.err (!%p14966_p3)
}
  0x43   :  { %49 = dma.hbm_to_vmem [thread:$0]  %s22482_s3, 16, %s47_s26, [#allocation5]  }
  0x44   :  { %s15004_s10 = smov [#allocation9]   ;;  %s14970_s25 = scalar_lea.hbm %s22484_s5, 16 }
  0x45   :  { %s68_s21 = sshll.u32 %s15004_s10, 4  ;;  %p14971_p4 = scmp.ne.s32.totalorder %s22484_s5, %s14970_s25  ;;  %s69_s21 = int_to_ptr.vmem [resolvable:$true] %s68_s21 }
  0x46   :  { %p14974_p5 = scmp.lt.u32.totalorder %s14970_s25, %s22484_s5 }
  0x48   :  { %p14976_p6 = pnand %p14974_p5, %p14971_p4 }
  0x4a   :  { %14979 = shalt.err (!%p14976_p6)
}
  0x4b   :  { %s14980_s7 = scalar_lea.vmem %s69_s21, 16  ;;  %s14984_s3 = scalar_lea.vmem %s69_s21, 32 }
  0x4c   :  { %p14981_p7 = scmp.ne.s32.totalorder %s69_s21, %s14980_s7  ;;  %p14985_p8 = scmp.lt.s32.totalorder %s69_s21, %s69_s21 }
  0x4d   :  { %p14986_p9 = scmp.lt.s32.totalorder %s14984_s3, %s14980_s7 }
  0x4f   :  { %p14987_p10 = por %p14986_p9, %p14985_p8 }
  0x51   :  { %p14988_p11 = pnand %p14987_p10, %p14981_p7 }
  0x53   :  { %14991 = shalt.err (!%p14988_p11)
}
  0x54   :  { %71 = dma.hbm_to_vmem [thread:$0]  %s22484_s5, 16, %s69_s21, [#allocation8]  }
  0x55   :  { %14992 = dma.done.wait [#allocation3], 43008  }
  0x56   :  { %14993 = vsyncadd [#allocation3], 4294924288 }
  0x57   :  { %14994 = dma.done.wait [#allocation5], 2064  }
  0x58   :  { %14995 = vsyncadd [#allocation5], 4294965232 }
  0x59   :  { %14996 = dma.done.wait [#allocation8], 2064  }
  0x5a   :  { %14997 = vsyncadd [#allocation8], 4294965232  ;;  %v15005_v0 = vmov 0   ;;  %v15006_v1 = vmov 2   ;;  %v87_v2 = vld [vmem:[%s22479_s0] sm:$0xff]  ;;  %v423_v4 = vld [vmem:[#allocation2 + $0x88] sm:$0xff] }
  0x5b   :  { %14876 = vset.pattern.permute.xlu0 %v15005_v0  ;;  %14878 = vset.pattern.permute.xlu1 %v15006_v1  ;;  %v422_v3 = vld [vmem:[#allocation2 + $0x80] sm:$0xff]  ;;  %v180_v5 = vadd.s32 9, %v87_v2  ;;  %v134_v6 = vadd.s32 6, %v87_v2  ;;  %v407_v8 = vld [vmem:[#allocation2 + $0x8] sm:$0xff]  ;;  %v226_v9 = vadd.s32 52, %v87_v2  ;;  %v794_v11 = vand.u32 4294901760, %v423_v4 }
  0x5c   :  { %111 = vperm.xlu0 %14876, %v87_v2   ;;  %v406_v7 = vld [vmem:[#allocation2] sm:$0xff]  ;;  %v791_v10 = vand.u32 4294901760, %v422_v3  ;;  %v15128_v13 = vld [vmem:[#allocation2 + $0x90] sm:$0xff]  ;;  %v15130_v14 = vld [vmem:[#allocation2 + $0x98] sm:$0xff]  ;;  %v318_v15 = vadd.s32 160, %v87_v2  ;;  %v746_v16 = vand.u32 4294901760, %v407_v8 }
  0x5d   :  { %v743_v12 = vand.u32 4294901760, %v406_v7  ;;  %182 = vperm.xlu1 %14878, %v180_v5   ;;  %v797_v17 = vand.u32 4294901760, %v15128_v13  ;;  %v800_v18 = vand.u32 4294901760, %v15130_v14  ;;  %v15134_v19 = vld [vmem:[#allocation2 + $0x10] sm:$0xff]  ;;  %v15136_v20 = vld [vmem:[#allocation2 + $0x18] sm:$0xff]  ;;  %v15140_v22 = vsub.f32 %v423_v4, %v794_v11  ;;  %v426_v40 = vld [vmem:[#allocation2 + $0xa0] sm:$0xff] }
  0x5e   :  { %v15138_v21 = vsub.f32 %v422_v3, %v791_v10  ;;  %v749_v24 = vand.u32 4294901760, %v15134_v19  ;;  %v15007_v25 = vmov 1   ;;  %v15145_v26 = vsub.f32 %v407_v8, %v746_v16  ;;  %v427_v45 = vld [vmem:[#allocation2 + $0xa8] sm:$0xff]  ;;  %v410_v48 = vld [vmem:[#allocation2 + $0x20] sm:$0xff]  ;;  %v15184_v52 = vld [vmem:[#allocation2 + $0xb0] sm:$0xff] }
  0x5f   :  { %23687 = vst [vmem:[#allocation14_spill] sm:$0xff] %v15140_v22  ;;  %v15142_v23 = vsub.f32 %v406_v7, %v743_v12  ;;  %v15148_v27 = vsub.f32 %v15128_v13, %v797_v17  ;;  %v15151_v28 = vsub.f32 %v15130_v14, %v800_v18  ;;  %v752_v29 = vand.u32 4294901760, %v15136_v20  ;;  %v411_v49 = vld [vmem:[#allocation2 + $0x28] sm:$0xff]  ;;  %v429_v57 = vld [vmem:[#allocation2 + $0xb8] sm:$0xff]  ;;  %v15195_v61 = vld [vmem:[#allocation2 + $0x30] sm:$0xff] }
  0x60   :  { %23686 = vst [vmem:[#allocation13_spill] sm:$0xff] %v15138_v21  ;;  %14877 = vset.pattern.permute.xlu0 %v15007_v25  ;;  %23689 = vst [vmem:[#allocation16_spill] sm:$0xff] %v15145_v26  ;;  %v22499_v30 = vand.u32 4294901760, %v15138_v21  ;;  %v22498_v31 = vand.u32 4294901760, %v15140_v22  ;;  %v15160_v33 = vsub.f32 %v15134_v19, %v749_v24  ;;  %v15008_v34 = vmov 3   ;;  %v413_v1 = vld [vmem:[#allocation2 + $0x38] sm:$0xff] }
  0x61   :  { %23688 = vst [vmem:[#allocation15_spill] sm:$0xff] %v15142_v23  ;;  %136 = vperm.xlu0 %14877, %v134_v6   ;;  %v22497_v32 = vand.u32 4294901760, %v15142_v23  ;;  %14879 = vset.pattern.permute.xlu1 %v15008_v34  ;;  %v22496_v35 = vand.u32 4294901760, %v15145_v26  ;;  %v22493_v36 = vand.u32 4294901760, %v15148_v27  ;;  %v22492_v37 = vand.u32 4294901760, %v15151_v28  ;;  %v430_v14 = vld [vmem:[#allocation2 + $0xc0] sm:$0xff] }
  0x62   :  { %v15166_v38 = vsub.f32 %v15136_v20, %v752_v29  ;;  %228 = vperm.xlu1 %14879, %v226_v9   ;;  %v12865_v39 = vpack.c.bf16 %v22498_v31, %v22499_v30  ;;  %v272_v41 = vadd.s32 96, %v87_v2  ;;  %v22495_v44 = vand.u32 4294901760, %v15160_v33  ;;  %v437_v31 = vld [vmem:[#allocation2 + $0xf8] sm:$0xff] }
  0x63   :  { %v12867_v42 = vpack.c.bf16 %v22496_v35, %v22497_v32  ;;  %v12869_v43 = vpack.c.bf16 %v22492_v37, %v22493_v36  ;;  %v15009_v46 = vmov 5   ;;  %v15182_v50 = vpack.c.bf16 %v794_v11, %v791_v10 }
  0x64   :  { %12866 = vmatprep.subr.bf16.mxu0 %v12865_v39  ;;  %v22494_v47 = vand.u32 4294901760, %v15166_v38  ;;  %v803_v51 = vand.u32 4294901760, %v426_v40  ;;  %v15010_v53 = vmov 4   ;;  %v806_v55 = vand.u32 4294901760, %v427_v45 }
  0x65   :  { %14881 = vset.pattern.permute.xlu0 %v15009_v46  ;;  %12868 = vmatpush3.bf16.msra.mxu0 %v12867_v42  ;;  %23690 = vst [vmem:[#allocation17_spill] sm:$0xff] %v15182_v50  ;;  %v15190_v56 = vpack.c.bf16 %v746_v16, %v743_v12  ;;  %v755_v59 = vand.u32 4294901760, %v410_v48  ;;  %v758_v60 = vand.u32 4294901760, %v411_v49  ;;  %v15200_v63 = vpack.c.bf16 %v800_v18, %v797_v17  ;;  %v414_v42 = vld [vmem:[#allocation2 + $0x40] sm:$0xff] }
  0x66   :  { %320 = vperm.xlu0 %14881, %v318_v15   ;;  %14880 = vset.pattern.permute.xlu1 %v15010_v53  ;;  %v12871_v54 = vpack.c.bf16 %v22494_v47, %v22495_v44  ;;  %v15193_v58 = vsub.f32 %v426_v40, %v803_v51  ;;  %v15197_v62 = vsub.f32 %v427_v45, %v806_v55  ;;  %v809_v0 = vand.u32 4294901760, %v15184_v52  ;;  %v431_v15 = vld [vmem:[#allocation2 + $0xc8] sm:$0xff]  ;;  %v15244_v45 = vld [vmem:[#allocation2 + $0xd0] sm:$0xff] }
  0x67   :  { %12870 = vmatprep.subr.bf16.mxu0 %v12869_v43  ;;  %23691 = vst [vmem:[#allocation18_spill] sm:$0xff] %v15190_v56  ;;  %274 = vperm.xlu1 %14880, %v272_v41   ;;  %23692 = vst [vmem:[#allocation19_spill] sm:$0xff] %v15200_v63  ;;  %v15204_v3 = vsub.f32 %v410_v48, %v755_v59  ;;  %v15206_v4 = vsub.f32 %v411_v49, %v758_v60  ;;  %v812_v5 = vand.u32 4294901760, %v429_v57  ;;  %v415_v43 = vld [vmem:[#allocation2 + $0x48] sm:$0xff] }
  0x68   :  { %12738 = vmatprep.subr.bf16.mxu1 %v15182_v50  ;;  %v22491_v2 = vand.u32 4294901760, %v15193_v58  ;;  %v22488_v6 = vand.u32 4294901760, %v15197_v62  ;;  %v15211_v7 = vsub.f32 %v15184_v52, %v809_v0  ;;  %v15215_v8 = vpack.c.bf16 %v752_v29, %v749_v24 }
  0x69   :  { %12740 = vmatpush3.bf16.msra.mxu1 %v15190_v56  ;;  %12872 = vmatpush3.bf16.msra.mxu0 %v12871_v54  ;;  %v761_v9 = vand.u32 4294901760, %v15195_v61  ;;  %v885_v10 = vand.u32 4294901760, %v15204_v3  ;;  %v892_v11 = vand.u32 4294901760, %v15206_v4  ;;  %v15220_v12 = vsub.f32 %v429_v57, %v812_v5  ;;  %v433_v54 = vld [vmem:[#allocation2 + $0xd8] sm:$0xff]  ;;  %v455_v56 = vld [vmem:[#allocation2 + $0x188] sm:$0xff] }
  0x6a   :  { %12742 = vmatprep.subr.bf16.mxu1 %v15200_v63  ;;  %23693 = vst [vmem:[#allocation20_spill] sm:$0xff] %v15211_v7  ;;  %23694 = vst [vmem:[#allocation21_spill] sm:$0xff] %v15215_v8  ;;  %v764_v13 = vand.u32 4294901760, %v413_v1  ;;  %v12873_v16 = vpack.c.bf16 %v22488_v6, %v22491_v2  ;;  %v22487_v17 = vand.u32 4294901760, %v15211_v7  ;;  %v15231_v19 = vpack.c.bf16 %v806_v55, %v803_v51 }
  0x6b   :  { %v15229_v18 = vsub.f32 %v15195_v61, %v761_v9  ;;  %v15234_v20 = vsub.f32 %v15204_v3, %v885_v10  ;;  %v15237_v24 = vsub.f32 %v15206_v4, %v892_v11  ;;  %v12875_v25 = vpack.c.bf16 %v892_v11, %v885_v10 }
  0x6c   :  { %23696 = vst [vmem:[#allocation23_spill] sm:$0xff] %v15231_v19  ;;  %v22486_v29 = vand.u32 4294901760, %v15220_v12  ;;  %12874 = vmatprep.subr.bf16.mxu0 %v12873_v16  ;;  %v15241_v39 = vsub.f32 %v413_v1, %v764_v13  ;;  %v815_v40 = vand.u32 4294901760, %v430_v14  ;;  %v818_v41 = vand.u32 4294901760, %v431_v15 }
  0x6d   :  { %12744 = vmatpush3.bf16.msra.mxu1 %v15215_v8  ;;  %23695 = vst [vmem:[#allocation22_spill] sm:$0xff] %v15229_v18  ;;  %v899_v34 = vand.u32 4294901760, %v15229_v18  ;;  %12876 = vmatpush3.bf16.msra.mxu0 %v12875_v25  ;;  %v15250_v48 = vpack.c.bf16 %v758_v60, %v755_v59  ;;  %v767_v55 = vand.u32 4294901760, %v414_v42  ;;  %v770_v57 = vand.u32 4294901760, %v415_v43  ;;  %v15264_v60 = vld [vmem:[#allocation2 + $0x50] sm:$0xff] }
  0x6e   :  { %23697 = vst [vmem:[#allocation24_spill] sm:$0xff] %v15241_v39  ;;  %12746 = vmatprep.subr.bf16.mxu1 %v15231_v19  ;;  %v12877_v46 = vpack.c.bf16 %v22486_v29, %v22487_v17  ;;  %v906_v51 = vand.u32 4294901760, %v15241_v39  ;;  %v15256_v52 = vsub.f32 %v430_v14, %v815_v40  ;;  %v15258_v53 = vsub.f32 %v431_v15, %v818_v41  ;;  %v434_v17 = vld [vmem:[#allocation2 + $0xe0] sm:$0xff] }
  0x6f   :  { %23698 = vst [vmem:[#allocation25_spill] sm:$0xff] %v15250_v48  ;;  %v15253_v49 = vsub.f32 %v15229_v18, %v899_v34  ;;  %v15261_v61 = vpack.c.bf16 %v812_v5, %v809_v0  ;;  %v821_v59 = vand.u32 4294901760, %v15244_v45  ;;  %v15271_v15 = vsub.f32 %v414_v42, %v767_v55  ;;  %v417_v5 = vld [vmem:[#allocation2 + $0x58] sm:$0xff] }
  0x70   :  { %23699 = vst [vmem:[#allocation26_spill] sm:$0xff] %v15256_v52  ;;  %23700 = vst [vmem:[#allocation27_spill] sm:$0xff] %v15258_v53  ;;  %12878 = vmatprep.subr.bf16.mxu0 %v12877_v46  ;;  %v15267_v1 = vsub.f32 %v15241_v39, %v906_v51  ;;  %v12879_v10 = vpack.c.bf16 %v906_v51, %v899_v34  ;;  %v22490_v11 = vand.u32 4294901760, %v15256_v52  ;;  %v22489_v14 = vand.u32 4294901760, %v15258_v53 }
  0x71   :  { %12748 = vmatpush3.bf16.msra.mxu1 %v15250_v48  ;;  %23701 = vst [vmem:[#allocation28_spill] sm:$0xff] %v15261_v61  ;;  %23702 = vst [vmem:[#allocation29_spill] sm:$0xff] %v15271_v15  ;;  %v15273_v16 = vsub.f32 %v415_v43, %v770_v57  ;;  %v824_v0 = vand.u32 4294901760, %v433_v54  ;;  %v15277_v25 = vsub.f32 %v15244_v45, %v821_v59  ;;  %v773_v34 = vand.u32 4294901760, %v15264_v60 }
  0x72   :  { %12750 = vmatprep.subr.bf16.mxu1 %v15261_v61  ;;  %12880 = vmatpush3.bf16.msra.mxu0 %v12879_v10  ;;  %v15279_v46 = vpack.c.bf16 %v764_v13, %v761_v9  ;;  %v12881_v42 = vpack.c.bf16 %v22489_v14, %v22490_v11  ;;  %v913_v43 = vand.u32 4294901760, %v15271_v15  ;;  %v435_v10 = vld [vmem:[#allocation2 + $0xe8] sm:$0xff]  ;;  %v776_v9 = vand.u32 4294901760, %v417_v5 }
  0x73   :  { %23703 = vst [vmem:[#allocation30_spill] sm:$0xff] %v15273_v16  ;;  %23704 = vst [vmem:[#allocation31_spill] sm:$0xff] %v15277_v25  ;;  %v920_v51 = vand.u32 4294901760, %v15273_v16  ;;  %v15288_v29 = vsub.f32 %v433_v54, %v824_v0  ;;  %v22503_v45 = vand.u32 4294901760, %v15277_v25  ;;  %v15293_v13 = vsub.f32 %v15264_v60, %v773_v34 }
  0x74   :  { %23705 = vst [vmem:[#allocation32_spill] sm:$0xff] %v15279_v46  ;;  %v15295_v6 = vpack.c.bf16 %v818_v41, %v815_v40  ;;  %12882 = vmatprep.subr.bf16.mxu0 %v12881_v42  ;;  %v15298_v14 = vsub.f32 %v15271_v15, %v913_v43  ;;  %v15305_v36 = vsub.f32 %v417_v5, %v776_v9  ;;  %v827_v60 = vand.u32 4294901760, %v434_v17  ;;  %v418_v40 = vld [vmem:[#allocation2 + $0x60] sm:$0xff]  ;;  %v419_v41 = vld [vmem:[#allocation2 + $0x68] sm:$0xff]  ;;  %v15308_v42 = vld [vmem:[#allocation2 + $0xf0] sm:$0xff] }
  0x75   :  { %23706 = vst [vmem:[#allocation33_spill] sm:$0xff] %v15288_v29  ;;  %12752 = vmatpush3.bf16.msra.mxu1 %v15279_v46  ;;  %23707 = vst [vmem:[#allocation34_spill] sm:$0xff] %v15293_v13  ;;  %v15301_v11 = vsub.f32 %v15273_v16, %v920_v51  ;;  %v12883_v54 = vpack.c.bf16 %v920_v51, %v913_v43  ;;  %v22502_v2 = vand.u32 4294901760, %v15288_v29  ;;  %v927_v37 = vand.u32 4294901760, %v15293_v13  ;;  %v15689_v15 = vld [vmem:[#allocation2 + $0x1c0] sm:$0xff] }
  0x76   :  { %23708 = vst [vmem:[#allocation35_spill] sm:$0xff] %v15295_v6  ;;  %23709 = vst [vmem:[#allocation36_spill] sm:$0xff] %v15305_v36  ;;  %12754 = vmatprep.subr.bf16.mxu1 %v15295_v6  ;;  %v830_v47 = vand.u32 4294901760, %v435_v10  ;;  %v15314_v51 = vpack.c.bf16 %v770_v57, %v767_v55  ;;  %v934_v5 = vand.u32 4294901760, %v15305_v36  ;;  %v15320_v35 = vsub.f32 %v434_v17, %v827_v60  ;;  %v420_v57 = vld [vmem:[#allocation2 + $0x70] sm:$0xff] }
  0x77   :  { %12884 = vmatpush3.bf16.msra.mxu0 %v12883_v54  ;;  %v12885_v43 = vpack.c.bf16 %v22502_v2, %v22503_v45  ;;  %v15317_v44 = vsub.f32 %v15293_v13, %v927_v37  ;;  %v779_v54 = vand.u32 4294901760, %v418_v40  ;;  %v782_v30 = vand.u32 4294901760, %v419_v41 }
  0x78   :  { %23710 = vst [vmem:[#allocation37_spill] sm:$0xff] %v15314_v51  ;;  %23711 = vst [vmem:[#allocation38_spill] sm:$0xff] %v15320_v35  ;;  %v15322_v32 = vsub.f32 %v435_v10, %v830_v47  ;;  %v15325_v6 = vpack.c.bf16 %v824_v0, %v821_v59  ;;  %v833_v55 = vand.u32 4294901760, %v15308_v42  ;;  %v23714_v2 = vand.u32 4294901760, %v15138_v21  ;;  %v421_v0 = vld [vmem:[#allocation2 + $0x78] sm:$0xff] }
  0x79   :  { %12886 = vmatprep.subr.bf16.mxu0 %v12885_v43  ;;  %12756 = vmatpush3.bf16.msra.mxu1 %v15314_v51  ;;  %v15332_v17 = vsub.f32 %v15305_v36, %v934_v5  ;;  %v12887_v10 = vpack.c.bf16 %v934_v5, %v927_v37  ;;  %v22521_v46 = vand.u32 4294901760, %v15320_v35  ;;  %v15336_v51 = vsub.f32 %v418_v40, %v779_v54 }
  0x7a   :  { %23712 = vst [vmem:[#allocation39_spill] sm:$0xff] %v15322_v32  ;;  %23713 = vst [vmem:[#allocation40_spill] sm:$0xff] %v15325_v6  ;;  %v970_v45 = vsub.f32 %v15138_v21, %v23714_v2  ;;  %v22520_v43 = vand.u32 4294901760, %v15322_v32  ;;  %v15338_v61 = vsub.f32 %v419_v41, %v782_v30  ;;  %12758 = vmatprep.subr.bf16.mxu1 %v15325_v6  ;;  %v836_v59 = vand.u32 4294901760, %v437_v31 }
  0x7b   :  { %23715 = vst [vmem:[#allocation41_spill] sm:$0xff] %v15336_v51  ;;  %v23717_v48 = vand.u32 4294901760, %v15140_v22  ;;  %12888 = vmatpush3.bf16.msra.mxu0 %v12887_v10  ;;  %v15345_v19 = vsub.f32 %v15308_v42, %v833_v55  ;;  %v15347_v37 = vpack.c.bf16 %v776_v9, %v773_v34  ;;  %v785_v5 = vand.u32 4294901760, %v420_v57  ;;  %v454_v9 = vld [vmem:[#allocation2 + $0x180] sm:$0xff] }
  0x7c   :  { %23716 = vst [vmem:[#allocation42_spill] sm:$0xff] %v15338_v61  ;;  %v12889_v40 = vpack.c.bf16 %v22520_v43, %v22521_v46  ;;  %v941_v41 = vand.u32 4294901760, %v15336_v51  ;;  %v948_v6 = vand.u32 4294901760, %v15338_v61  ;;  %v15355_v8 = vsub.f32 %v437_v31, %v836_v59 }
  0x7d   :  { %v977_v2 = vsub.f32 %v15140_v22, %v23717_v48  ;;  %23718 = vst [vmem:[#allocation43_spill] sm:$0xff] %v15345_v19  ;;  %23719 = vst [vmem:[#allocation44_spill] sm:$0xff] %v15347_v37  ;;  %12760 = vmatpush3.bf16.msra.mxu1 %v15347_v37  ;;  %v788_v42 = vand.u32 4294901760, %v421_v0  ;;  %v15359_v10 = vsub.f32 %v420_v57, %v785_v5  ;;  %v23723_v48 = vand.u32 4294901760, %v15142_v23 }
  0x7e   :  { %23720 = vst [vmem:[#allocation45_spill] sm:$0xff] %v15355_v8  ;;  %v15361_v34 = vpack.c.bf16 %v830_v47, %v827_v60  ;;  %12890 = vmatprep.subr.bf16.mxu0 %v12889_v40  ;;  %v15364_v63 = vsub.f32 %v15336_v51, %v941_v41  ;;  %v15367_v43 = vsub.f32 %v15338_v61, %v948_v6  ;;  %v22534_v31 = vand.u32 4294901760, %v15355_v8 }
  0x7f   :  { %23721 = vst [vmem:[#allocation46_spill] sm:$0xff] %v15359_v10  ;;  %v12891_v46 = vpack.c.bf16 %v948_v6, %v941_v41  ;;  %v858_v37 = vsub.f32 %v15142_v23, %v23723_v48  ;;  %v955_v57 = vand.u32 4294901760, %v15359_v10  ;;  %v15374_v47 = vsub.f32 %v421_v0, %v788_v42 }
  0x80   :  { %23722 = vst [vmem:[#allocation47_spill] sm:$0xff] %v15361_v34  ;;  %12762 = vmatprep.subr.bf16.mxu1 %v15361_v34  ;;  %v971_v60 = vand.u32 4294901760, %v970_v45  ;;  %v23725_v40 = vand.u32 4294901760, %v15145_v26  ;;  %v23726_v6 = vand.u32 4294901760, %v15345_v19  ;;  %v1653_v22 = vand.u32 4294901760, %v454_v9 }
  0x81   :  { %23724 = vst [vmem:[#allocation48_spill] sm:$0xff] %v15374_v47  ;;  %12892 = vmatpush3.bf16.msra.mxu0 %v12891_v46  ;;  %v15385_v48 = vsub.f32 %v15359_v10, %v955_v57  ;;  %v962_v0 = vand.u32 4294901760, %v15374_v47  ;;  %v1656_v23 = vand.u32 4294901760, %v455_v56  ;;  %v15388_v21 = vpack.c.bf16 %v782_v30, %v779_v54 }
  0x82   :  { %v865_v50 = vsub.f32 %v15145_v26, %v23725_v40  ;;  %v12893_v41 = vpack.c.bf16 %v22534_v31, %v23726_v6  ;;  %v978_v45 = vand.u32 4294901760, %v977_v2  ;;  %v23728_v34 = vand.u32 4294901760, %v15160_v33 }
  0x83   :  { %23727 = vst [vmem:[#allocation49_spill] sm:$0xff] %v15388_v21  ;;  %v15393_v46 = vsub.f32 %v454_v9, %v1653_v22  ;;  %v15395_v26 = vpack.c.bf16 %v836_v59, %v833_v55  ;;  %v23730_v6 = vand.u32 4294901760, %v15166_v38  ;;  %v15401_v10 = vsub.f32 %v15374_v47, %v962_v0  ;;  %12764 = vmatpush3.bf16.msra.mxu1 %v15388_v21  ;;  %v15576_v47 = vld [vmem:[#allocation2 + $0x118] sm:$0xff]  ;;  %v15657_v21 = vld [vmem:[#allocation2 + $0x130] sm:$0xff] }
  0x84   :  { %v872_v40 = vsub.f32 %v15160_v33, %v23728_v34  ;;  %12894 = vmatprep.subr.bf16.mxu0 %v12893_v41  ;;  %v12895_v61 = vpack.c.bf16 %v962_v0, %v955_v57  ;;  %v15403_v30 = vpack.c.bf16 %v1656_v23, %v1653_v22  ;;  %v15406_v54 = vsub.f32 %v455_v56, %v1656_v23 }
  0x85   :  { %23729 = vst [vmem:[#allocation50_spill] sm:$0xff] %v15395_v26  ;;  %v879_v31 = vsub.f32 %v15166_v38, %v23730_v6  ;;  %12766 = vmatprep.subr.bf16.mxu1 %v15395_v26  ;;  %v859_v2 = vand.u32 4294901760, %v858_v37  ;;  %v866_v34 = vand.u32 4294901760, %v865_v50  ;;  %v15409_v55 = vpack.c.bf16 %v788_v42, %v785_v5  ;;  %v15630_v26 = vld [vmem:[#allocation2 + $0x120] sm:$0xff] }
  0x86   :  { %23731 = vst [vmem:[#allocation51_spill] sm:$0xff] %v15403_v30  ;;  %12896 = vmatpush3.bf16.msra.mxu0 %v12895_v61  ;;  %v12769_v59 = vpack.c.bf16 %v978_v45, %v971_v60  ;;  %v873_v9 = vand.u32 4294901760, %v872_v40  ;;  %v23733_v23 = vand.u32 4294901760, %v15148_v27  ;;  %v23734_v37 = vand.u32 4294901760, %v15151_v28 }
  0x87   :  { %23732 = vst [vmem:[#allocation52_spill] sm:$0xff] %v15409_v55  ;;  %12930 = vmatprep.subr.bf16.mxu0 %v15403_v30  ;;  %v880_v41 = vand.u32 4294901760, %v879_v31  ;;  %12768 = vmatpush3.bf16.msra.mxu1 %v15409_v55  ;;  %v15413_v22 = vpack.c.bf16 %v866_v34, %v859_v2  ;;  %v887_v61 = vand.u32 4294901760, %v15234_v20  ;;  %v894_v5 = vand.u32 4294901760, %v15237_v24  ;;  %v15565_v30 = vld [vmem:[#allocation2 + $0x110] sm:$0xff] }
  0x88   :  { %12770 = vmatprep.subr.bf16.mxu1 %v12769_v59  ;;  %v984_v56 = vsub.f32 %v15148_v27, %v23733_v23  ;;  %v991_v50 = vsub.f32 %v15151_v28, %v23734_v37  ;;  %v23735_v60 = vand.u32 4294901760, %v15193_v58  ;;  %v23736_v45 = vand.u32 4294901760, %v15197_v62 }
  0x89   :  { %v15423_v42 = vpack.c.bf16 %v880_v41, %v873_v9  ;;  %v901_v6 = vand.u32 4294901760, %v15253_v49  ;;  %v908_v2 = vand.u32 4294901760, %v15267_v1  ;;  %v15435_v20 = vpack.c.bf16 %v894_v5, %v887_v61 }
  0x8a   :  { %v985_v31 = vand.u32 4294901760, %v984_v56  ;;  %v992_v57 = vand.u32 4294901760, %v991_v50  ;;  %v998_v0 = vsub.f32 %v15193_v58, %v23735_v60  ;;  %v1005_v40 = vsub.f32 %v15197_v62, %v23736_v45 }
  0x8b   :  { %v23737_v41 = vand.u32 4294901760, %v15211_v7  ;;  %v23738_v56 = vand.u32 4294901760, %v15220_v12  ;;  %v915_v49 = vand.u32 4294901760, %v15298_v14  ;;  %v922_v1 = vand.u32 4294901760, %v15301_v11 }
  0x8c   :  { %v15433_v34 = vpack.c.bf16 %v992_v57, %v985_v31  ;;  %v999_v24 = vand.u32 4294901760, %v998_v0  ;;  %v1006_v59 = vand.u32 4294901760, %v1005_v40  ;;  %v15447_v50 = vpack.c.bf16 %v908_v2, %v901_v6 }
  0x8d   :  { %v1012_v23 = vsub.f32 %v15211_v7, %v23737_v41  ;;  %v1019_v37 = vsub.f32 %v15220_v12, %v23738_v56  ;;  %v23739_v57 = vand.u32 4294901760, %v15256_v52  ;;  %v23740_v0 = vand.u32 4294901760, %v15258_v53 }
  0x8e   :  { %v15437_v9 = vpack.c.bf16 %v1006_v59, %v999_v24  ;;  %v929_v40 = vand.u32 4294901760, %v15317_v44  ;;  %v936_v14 = vand.u32 4294901760, %v15332_v17  ;;  %v15459_v24 = vpack.c.bf16 %v922_v1, %v915_v49 }
  0x8f   :  { %v1013_v61 = vand.u32 4294901760, %v1012_v23  ;;  %v1020_v5 = vand.u32 4294901760, %v1019_v37  ;;  %v1026_v60 = vsub.f32 %v15256_v52, %v23739_v57  ;;  %v1033_v45 = vsub.f32 %v15258_v53, %v23740_v0 }
  0x90   :  { %v23741_v59 = vand.u32 4294901760, %v15277_v25  ;;  %v23742_v23 = vand.u32 4294901760, %v15288_v29  ;;  %v943_v37 = vand.u32 4294901760, %v15364_v63  ;;  %v950_v44 = vand.u32 4294901760, %v15367_v43 }
  0x91   :  { %v15449_v31 = vpack.c.bf16 %v1020_v5, %v1013_v61  ;;  %v1027_v11 = vand.u32 4294901760, %v1026_v60  ;;  %v1034_v6 = vand.u32 4294901760, %v1033_v45  ;;  %v15471_v61 = vpack.c.bf16 %v936_v14, %v929_v40 }
  0x92   :  { %v1040_v41 = vsub.f32 %v15277_v25, %v23741_v59  ;;  %v1047_v56 = vsub.f32 %v15288_v29, %v23742_v23  ;;  %v957_v1 = vand.u32 4294901760, %v15385_v48  ;;  %v964_v5 = vand.u32 4294901760, %v15401_v10 }
  0x93   :  { %v15461_v2 = vpack.c.bf16 %v1034_v6, %v1027_v11  ;;  %v23743_v60 = vand.u32 4294901760, %v15320_v35  ;;  %v23744_v45 = vand.u32 4294901760, %v15322_v32  ;;  %v15483_v11 = vpack.c.bf16 %v950_v44, %v943_v37  ;;  %v15585_v37 = vld [vmem:[#allocation2 + $0x1a8] sm:$0xff] }
  0x94   :  { %v1041_v17 = vand.u32 4294901760, %v1040_v41  ;;  %v1048_v49 = vand.u32 4294901760, %v1047_v56  ;;  %v23745_v14 = vand.u32 4294901760, %v15345_v19  ;;  %v23746_v10 = vand.u32 4294901760, %v15355_v8 }
  0x95   :  { %v1054_v0 = vsub.f32 %v15320_v35, %v23743_v60  ;;  %v1061_v63 = vsub.f32 %v15322_v32, %v23744_v45  ;;  %v15493_v41 = vpack.c.bf16 %v964_v5, %v957_v1  ;;  %v15553_v1 = vld [vmem:[#allocation2 + $0x190] sm:$0xff]  ;;  %v15555_v60 = vld [vmem:[#allocation2 + $0x198] sm:$0xff]  ;;  %v22556_v35 = vmov 0.0  }
  0x96   :  { %v15475_v57 = vpack.c.bf16 %v1048_v49, %v1041_v17  ;;  %v1068_v48 = vsub.f32 %v15345_v19, %v23745_v14  ;;  %v1075_v6 = vsub.f32 %v15355_v8, %v23746_v10  ;;  %v15540_v10 = vld [vmem:[#allocation2 + $0x108] sm:$0xff]  ;;  %v15578_v19 = vld [vmem:[#allocation2 + $0x1a0] sm:$0xff]  ;;  %v23765_v32 = vand.u32 4294901760, %v15553_v1  ;;  %v15687_v8 = vld [vmem:[#allocation2 + $0x138] sm:$0xff] }
  0x97   :  { %v1055_v43 = vand.u32 4294901760, %v1054_v0  ;;  %v1062_v40 = vand.u32 4294901760, %v1061_v63  ;;  %v23766_v13 = vand.u32 4294901760, %v15555_v60  ;;  %v23771_v25 = vand.u32 4294901760, %v15576_v47 }
  0x98   :  { %v1069_v23 = vand.u32 4294901760, %v1068_v48  ;;  %v1076_v56 = vand.u32 4294901760, %v1075_v6  ;;  %v88_v6 = vlaneseq  ;;  %v23774_v52 = vand.u32 4294901760, %v15578_v19 }
  0x99   :  { %v15491_v59 = vpack.c.bf16 %v1062_v40, %v1055_v43  ;;  %v15616_v36 = vpack.c.bf16 %v23766_v13, %v23765_v32  ;;  %v15632_v32 = vld [vmem:[#allocation2 + $0x128] sm:$0xff]  ;;  %v15644_v43 = vld [vmem:[#allocation2 + $0x1b0] sm:$0xff]  ;;  %v23775_v53 = vand.u32 4294901760, %v15585_v37 }
  0x9a   :  { %v15495_v17 = vpack.c.bf16 %v1076_v56, %v1069_v23  ;;  %v15521_v23 = vand.u32 127, %v88_v6  ;;  %v15538_v6 = vld [vmem:[#allocation2 + $0x100] sm:$0xff] }
  0x9b   :  { %v22555_v44 = vand.u32 4294901760, %v15538_v6  ;;  %23767 = vst [vmem:[#allocation62_spill] sm:$0xff] %v15616_v36 }
  0x9c   :  { %23749 = vst [vmem:[#allocation53_spill] sm:$0xff] %v15521_v23  ;;  %v90_v45 = vadd.s32 128, %v15521_v23  ;;  %v15543_v14 = vadd.s32 384, %v15521_v23  ;;  %v15635_v13 = vadd.s32 256, %v15521_v23 }
  0xdb   :  { %v15523_v56 = vpop.permute.xlu0 %111 }
  0xdc   :  { %23750 = vst [vmem:[#allocation54_spill] sm:$0xff] %v15523_v56  ;;  %v15525_v0 = vpop.permute.xlu1 %182  ;;  %vm114_vm0 = vcmp.eq.s32.totalorder %v90_v45, %v15523_v56  ;;  %vm113_vm8 = vcmp.eq.s32.totalorder %v15521_v23, %v15523_v56 }
  0xdd   :  { %23751 = vst [vmem:[#allocation55_spill] sm:$0xff] %v15525_v0  ;;  %vm185_vm3 = vcmp.eq.s32.totalorder %v90_v45, %v15525_v0  ;;  %vm184_vm11 = vcmp.eq.s32.totalorder %v15521_v23, %v15525_v0 }
  0xe0   :  { %v15528_v5 = vpop.permute.xlu0 %136 }
  0xe1   :  { %23752 = vst [vmem:[#allocation56_spill] sm:$0xff] %v15528_v5  ;;  %vm139_vm1 = vcmp.eq.s32.totalorder %v90_v45, %v15528_v5  ;;  %v15532_v40 = vpop.permute.xlu1 %228  ;;  %vm138_vm4 = vcmp.eq.s32.totalorder %v15521_v23, %v15528_v5  ;;  %vm141_vm12 = vcmp.eq.s32.totalorder %v15543_v14, %v15528_v5 }
  0xe2   :  { %23753 = vst [vmem:[#allocation57_spill] sm:$0xff] %v15532_v40  ;;  %vm160_vm2 = vmor %vm114_vm0, %vm139_vm1  ;;  %vm231_vm6 = vcmp.eq.s32.totalorder %v90_v45, %v15532_v40  ;;  %vm230_vm9 = vcmp.eq.s32.totalorder %v15521_v23, %v15532_v40  ;;  %vm116_vm0 = vcmp.eq.s32.totalorder %v15543_v14, %v15523_v56 }
  0xe3   :  { %vm206_vm5 = vmor %vm160_vm2, %vm185_vm3 }
  0xe4   :  { %vm15545_vm7 = vmor %vm206_vm5, %vm231_vm6 }
  0xe5   :  { %v15557_v49 = vpop.permute.xlu0 %320  ;;  %vm159_vm10 = vmor %vm113_vm8, %vm138_vm4  ;;  %vm233_vm8 = vcmp.eq.s32.totalorder %v15543_v14, %v15532_v40 }
  0xe6   :  { %23756 = vst [vmem:[#allocation58_spill] sm:$0xff] %v15557_v49  ;;  %vm205_vm13 = vmor %vm159_vm10, %vm184_vm11  ;;  %v15567_v55 = vpop.permute.xlu1 %274  ;;  %vm323_vm14 = vcmp.eq.s32.totalorder %v90_v45, %v15557_v49  ;;  %vm322_vm5 = vcmp.eq.s32.totalorder %v15521_v23, %v15557_v49  ;;  %vm187_vm10 = vcmp.eq.s32.totalorder %v15543_v14, %v15525_v0 }
  0xe7   :  { %23757 = vst [vmem:[#allocation59_spill] sm:$0xff] %v15567_v55  ;;  %vm15570_vm15 = vmor %vm205_vm13, %vm230_vm9  ;;  %vm277_vm1 = vcmp.eq.s32.totalorder %v90_v45, %v15567_v55  ;;  %vm276_vm2 = vcmp.eq.s32.totalorder %v15521_v23, %v15567_v55  ;;  %v23762_v45 = vand.u32 4294901760, %v15540_v10  ;;  %vm279_vm11 = vcmp.eq.s32.totalorder %v15543_v14, %v15567_v55 }
  0xe8   :  { %vm15590_vm3 = vmor %vm116_vm0, %vm141_vm12  ;;  %vm325_vm13 = vcmp.eq.s32.totalorder %v15543_v14, %v15557_v49  ;;  %v23770_v23 = vand.u32 4294901760, %v15565_v30  ;;  %v15699_v14 = vld [vmem:[#allocation2 + $0x1c8] sm:$0xff] }
  0xe9   :  { %vm298_vm4 = vmor %vm15545_vm7, %vm277_vm1  ;;  %v15602_v48 = vpack.c.bf16 %v23762_v45, %v22555_v44 }
  0xea   :  { %vm344_vm6 = vmor %vm298_vm4, %vm323_vm14  ;;  %v15666_v29 = vpack.c.bf16 %v23771_v25, %v23770_v23  ;;  %v15681_v25 = vpack.c.bf16 %v23775_v53, %v23774_v52  ;;  %vm186_vm4 = vcmp.eq.s32.totalorder %v15635_v13, %v15525_v0  ;;  %v23781_v53 = vand.u32 4294901760, %v15630_v26  ;;  %v15774_v0 = vld [vmem:[#allocation2 + $0x150] sm:$0xff] }
  0xeb   :  { %23763 = vst [vmem:[#allocation60_spill] sm:$0xff] %v15602_v48  ;;  %v15608_v63 = vsel %vm344_vm6, 1.0, %v22556_v35  ;;  %vm297_vm7 = vmor %vm15570_vm15, %vm276_vm2  ;;  %vm140_vm15 = vcmp.eq.s32.totalorder %v15635_v13, %v15528_v5  ;;  %vm115_vm2 = vcmp.eq.s32.totalorder %v15635_v13, %v15523_v56  ;;  %v23782_v52 = vand.u32 4294901760, %v15632_v32 }
  0xec   :  { %23764 = vst [vmem:[#allocation61_spill] sm:$0xff] %v15608_v63  ;;  %1493 = vmatprep.mubr.f32.mxu0 %v15608_v63  ;;  %vm343_vm9 = vmor %vm297_vm7, %vm322_vm5  ;;  %v15624_v44 = vsub.f32 %v15608_v63, %v15608_v63  ;;  %vm232_vm6 = vcmp.eq.s32.totalorder %v15635_v13, %v15532_v40  ;;  %vm278_vm7 = vcmp.eq.s32.totalorder %v15635_v13, %v15567_v55  ;;  %v23793_v5 = vand.u32 4294901760, %v15699_v14  ;;  %v15776_v55 = vld [vmem:[#allocation2 + $0x158] sm:$0xff] }
  0xed   :  { %v15638_v45 = vsel %vm343_vm9, 1.0, %v22556_v35  ;;  %vm208_vm12 = vmor %vm15590_vm3, %vm187_vm10  ;;  %v15655_v35 = vld [vmem:[#allocation2 + $0x1b8] sm:$0xff]  ;;  %23772 = vst [vmem:[#allocation65_spill] sm:$0xff] %v15666_v29  ;;  %v15718_v18 = vpack.c.bf16 %v23782_v52, %v23781_v53  ;;  %v15731_v53 = vld [vmem:[#allocation2 + $0x140] sm:$0xff]  ;;  %v23789_v52 = vand.u32 4294901760, %v15657_v21  ;;  %vm324_vm10 = vcmp.eq.s32.totalorder %v15635_v13, %v15557_v49 }
  0xee   :  { %23768 = vst [vmem:[#allocation63_spill] sm:$0xff] %v15638_v45  ;;  %v15648_v51 = vsub.f32 %v15638_v45, %v15638_v45  ;;  %1495 = vmatmul.mubr.f32.vlgmr.msra.gmra.mrb[0].mxu0 %v15638_v45  ;;  %vm254_vm14 = vmor %vm208_vm12, %vm233_vm8  ;;  %v23773_v16 = vand.u32 4294901760, %v15624_v44  ;;  %v15779_v13 = vld [vmem:[#allocation2 + $0x1e0] sm:$0xff] }
  0xef   :  { %12932 = vmatpush3.bf16.msra.mxu0 %v15602_v48  ;;  %vm300_vm0 = vmor %vm254_vm14, %vm279_vm11  ;;  %23776 = vst [vmem:[#allocation66_spill] sm:$0xff] %v15681_v25 }
  0xf0   :  { %23769 = vst [vmem:[#allocation64_spill] sm:$0xff] %v15648_v51  ;;  %12934 = vmatprep.subr.bf16.mxu0 %v15616_v36  ;;  %v841_v48 = vsub.f32 %v15624_v44, %v23773_v16  ;;  %vm346_vm1 = vmor %vm300_vm0, %vm325_vm13  ;;  %v23777_v16 = vmov 0.0   ;;  %v23780_v56 = vand.u32 4294901760, %v15648_v51 }
  0xf1   :  { %v15694_v36 = vsel %vm346_vm1, 1.0, %v23777_v16  ;;  %vm161_vm3 = vmor %vm115_vm2, %vm140_vm15  ;;  %23783 = vst [vmem:[#allocation69_spill] sm:$0xff] %v15718_v18 }
  0xf2   :  { %23778 = vst [vmem:[#allocation67_spill] sm:$0xff] %v15694_v36  ;;  %v842_v23 = vand.u32 4294901760, %v841_v48  ;;  %v15706_v39 = vsub.f32 %v15694_v36, %v15694_v36  ;;  %v847_v7 = vsub.f32 %v15648_v51, %v23780_v56  ;;  %vm15722_vm5 = vmor %vm161_vm3, %vm186_vm4  ;;  %v15733_v48 = vld [vmem:[#allocation2 + $0x148] sm:$0xff]  ;;  %v23786_v36 = vand.u32 4294901760, %v15644_v43 }
  0xf3   :  { %12936 = vmatpush3.bf16.msra.mxu0 %v15666_v29  ;;  %v23787_v51 = vand.u32 4294901760, %v15655_v35  ;;  %vm253_vm8 = vmor %vm15722_vm5, %vm232_vm6 }
  0xf4   :  { %23779 = vst [vmem:[#allocation68_spill] sm:$0xff] %v15706_v39  ;;  %843 = vmatprep.mubr.f32.mxu1 %v842_v23  ;;  %12938 = vmatprep.subr.bf16.mxu0 %v15681_v25  ;;  %v22591_v56 = vand.u32 4294901760, %v15706_v39  ;;  %v848_v29 = vand.u32 4294901760, %v847_v7  ;;  %v15743_v23 = vld [vmem:[#allocation2 + $0x1d0] sm:$0xff]  ;;  %v15745_v25 = vld [vmem:[#allocation2 + $0x1d8] sm:$0xff]  ;;  %vm299_vm9 = vmor %vm253_vm8, %vm278_vm7 }
  0xf5   :  { %v15741_v40 = vpack.c.bf16 %v23787_v51, %v23786_v36  ;;  %v23790_v36 = vand.u32 4294901760, %v15687_v8  ;;  %vm345_vm11 = vmor %vm299_vm9, %vm324_vm10 }
  0xf6   :  { %v1703_v7 = vsub.f32 %v15706_v39, %v22591_v56  ;;  %849 = vmatmul.mubr.f32.vlgmr.msra.gmra.mrb[0].mxu1 %v848_v29 }
  0xf7   :  { %23788 = vst [vmem:[#allocation70_spill] sm:$0xff] %v15741_v40  ;;  %12772 = vmatpush3.bf16.msra.mxu1 %v15413_v22  ;;  %12940 = vmatpush3.bf16.msra.mxu0 %v15718_v18  ;;  %v15758_v51 = vpack.c.bf16 %v23790_v36, %v23789_v52  ;;  %v23792_v22 = vand.u32 4294901760, %v15689_v15  ;;  %v15807_v36 = vld [vmem:[#allocation2 + $0x1f0] sm:$0xff]  ;;  %v15809_v52 = vld [vmem:[#allocation2 + $0x1f8] sm:$0xff] }
  0xf8   :  { %v1704_v29 = vand.u32 4294901760, %v1703_v7  ;;  %1079 = vmatprep.mubr.f32.mxu1 %v15608_v63  ;;  %12774 = vmatprep.subr.bf16.mxu1 %v15433_v34  ;;  %v15781_v7 = vld [vmem:[#allocation2 + $0x1e8] sm:$0xff]  ;;  %v23795_v34 = vand.u32 4294901760, %v15731_v53  ;;  %v23805_v63 = vand.u32 4294901760, %v15779_v13 }
  0xf9   :  { %23791 = vst [vmem:[#allocation71_spill] sm:$0xff] %v15758_v51  ;;  %v15770_v56 = vpack.c.bf16 %v23793_v5, %v23792_v22  ;;  %12942 = vmatprep.subr.bf16.mxu0 %v15741_v40  ;;  %v23796_v22 = vand.u32 4294901760, %v15733_v48 }
  0xfa   :  { %1705 = vmatprep.mubr.f32.mxu0 %v1704_v29  ;;  %v23798_v29 = vand.u32 4294901760, %v15743_v23 }
  0xfb   :  { %23794 = vst [vmem:[#allocation72_spill] sm:$0xff] %v15770_v56  ;;  %12776 = vmatpush3.bf16.msra.mxu1 %v15423_v42  ;;  %12944 = vmatpush3.bf16.msra.mxu0 %v15758_v51  ;;  %v15789_v5 = vpack.c.bf16 %v23796_v22, %v23795_v34  ;;  %v23799_v42 = vand.u32 4294901760, %v15745_v25  ;;  %v15803_v34 = vld [vmem:[#allocation2 + $0x160] sm:$0xff]  ;;  %v15805_v22 = vld [vmem:[#allocation2 + $0x168] sm:$0xff] }
  0xfc   :  { %12778 = vmatprep.subr.bf16.mxu1 %v15437_v9  ;;  %12946 = vmatprep.subr.bf16.mxu0 %v15770_v56  ;;  %v15812_v9 = vsel %vm345_vm11, 1.0, %v23777_v16  ;;  %v22612_v51 = vand.u32 4294901760, %v15803_v34 }
  0xfd   :  { %23797 = vst [vmem:[#allocation73_spill] sm:$0xff] %v15789_v5  ;;  %v15799_v40 = vpack.c.bf16 %v23799_v42, %v23798_v29  ;;  %23801 = vst [vmem:[#allocation75_spill] sm:$0xff] %v15812_v9  ;;  %v23802_v29 = vand.u32 4294901760, %v15774_v0  ;;  %v23803_v42 = vand.u32 4294901760, %v15776_v55  ;;  %v15840_v56 = vsub.f32 %v15812_v9, %v15812_v9 }
  0xfe   :  { %v23813_v9 = vand.u32 4294901760, %v15538_v6 }
  0xff   :  { %23800 = vst [vmem:[#allocation74_spill] sm:$0xff] %v15799_v40  ;;  %12780 = vmatpush3.bf16.msra.mxu1 %v15435_v20  ;;  %12948 = vmatpush3.bf16.msra.mxu0 %v15789_v5  ;;  %v15820_v18 = vpack.c.bf16 %v23803_v42, %v23802_v29  ;;  %v23806_v20 = vand.u32 4294901760, %v15781_v7  ;;  %v22615_v5 = vand.u32 4294901760, %v15807_v36  ;;  %v15834_v29 = vld [vmem:[#allocation2 + $0x170] sm:$0xff]  ;;  %v15836_v42 = vld [vmem:[#allocation2 + $0x178] sm:$0xff]  ;;  %23808 = vst [vmem:[#allocation78_spill] sm:$0xff] %v15840_v56 }
 0x100   :  { %12782 = vmatprep.subr.bf16.mxu1 %v15449_v31  ;;  %12950 = vmatprep.subr.bf16.mxu0 %v15799_v40  ;;  %v23809_v31 = vand.u32 4294901760, %v15805_v22 }
 0x101   :  { %23804 = vst [vmem:[#allocation76_spill] sm:$0xff] %v15820_v18  ;;  %v15830_v16 = vpack.c.bf16 %v23806_v20, %v23805_v63  ;;  %v22613_v20 = vand.u32 4294901760, %v15834_v29 }
 0x102   :  { %v15848_v63 = vpack.c.bf16 %v23809_v31, %v22612_v51  ;;  %v15864_v31 = vsub.f32 %v15538_v6, %v23813_v9  ;;  %v23814_v51 = vand.u32 4294901760, %v15540_v10  ;;  %v23818_v9 = vand.u32 4294901760, %v15555_v60 }
 0x103   :  { %23807 = vst [vmem:[#allocation77_spill] sm:$0xff] %v15830_v16  ;;  %12784 = vmatpush3.bf16.msra.mxu1 %v15447_v50  ;;  %12952 = vmatpush3.bf16.msra.mxu0 %v15820_v18  ;;  %v23811_v50 = vand.u32 4294901760, %v15809_v52  ;;  %v22614_v18 = vand.u32 4294901760, %v15840_v56 }
 0x104   :  { %23810 = vst [vmem:[#allocation79_spill] sm:$0xff] %v15848_v63  ;;  %12786 = vmatprep.subr.bf16.mxu1 %v15461_v2  ;;  %12954 = vmatprep.subr.bf16.mxu0 %v15830_v16  ;;  %v15869_v49 = vsub.f32 %v15540_v10, %v23814_v51  ;;  %v23815_v2 = vand.u32 4294901760, %v15836_v42  ;;  %v12993_v10 = vpack.c.bf16 %v15406_v54, %v15393_v46  ;;  %v16213_v16 = vld [vmem:[#allocation2 + $0x280] sm:$0xff] }
 0x105   :  { %v15858_v40 = vpack.c.bf16 %v23811_v50, %v22615_v5  ;;  %v1709_v6 = vsub.f32 %v15840_v56, %v22614_v18  ;;  %v23820_v18 = vand.u32 4294901760, %v15576_v47 }
 0x106   :  { %v15877_v50 = vpack.c.bf16 %v23815_v2, %v22613_v20  ;;  %v15894_v2 = vsub.f32 %v15555_v60, %v23818_v9  ;;  %v23821_v60 = vand.u32 4294901760, %v15578_v19 }
 0x107   :  { %23812 = vst [vmem:[#allocation80_spill] sm:$0xff] %v15858_v40  ;;  %12788 = vmatpush3.bf16.msra.mxu1 %v15459_v24  ;;  %12956 = vmatpush3.bf16.msra.mxu0 %v15848_v63  ;;  %v23817_v24 = vand.u32 4294901760, %v15553_v1  ;;  %v15904_v5 = vsub.f32 %v15576_v47, %v23820_v18  ;;  %v1710_v18 = vand.u32 4294901760, %v1709_v6  ;;  %v23825_v6 = vld [vmem:[#allocation13_spill] sm:$0xff] }
 0x108   :  { %23816 = vst [vmem:[#allocation81_spill] sm:$0xff] %v15877_v50  ;;  %12790 = vmatprep.subr.bf16.mxu1 %v15475_v57  ;;  %12958 = vmatprep.subr.bf16.mxu0 %v15858_v40  ;;  %v23819_v57 = vand.u32 4294901760, %v15565_v30 }
 0x109   :  { %v15889_v51 = vsub.f32 %v15553_v1, %v23817_v24  ;;  %v12995_v1 = vpack.c.bf16 %v15869_v49, %v15864_v31  ;;  %v15913_v24 = vsub.f32 %v15578_v19, %v23821_v60 }
 0x10a   :  { %v15899_v20 = vsub.f32 %v15565_v30, %v23819_v57  ;;  %v23822_v30 = vand.u32 4294901760, %v15585_v37 }
 0x10b   :  { %12792 = vmatpush3.bf16.msra.mxu1 %v15471_v61  ;;  %12960 = vmatpush3.bf16.msra.mxu0 %v15877_v50  ;;  %v12997_v47 = vpack.c.bf16 %v15894_v2, %v15889_v51  ;;  %v23823_v61 = vand.u32 4294901760, %v15630_v26  ;;  %v23914_v50 = vmov 0.0  }
 0x10c   :  { %v15918_v9 = vsub.f32 %v15585_v37, %v23822_v30  ;;  %12794 = vmatprep.subr.bf16.mxu1 %v15491_v59  ;;  %12994 = vmatprep.subr.bf16.mxu0 %v12993_v10  ;;  %v12999_v19 = vpack.c.bf16 %v15904_v5, %v15899_v20  ;;  %v23824_v37 = vand.u32 4294901760, %v15632_v32  ;;  %v23826_v10 = vld [vmem:[#allocation14_spill] sm:$0xff]  ;;  %v23828_v30 = vand.u32 4294901760, %v15655_v35 }
 0x10d   :  { %v15926_v57 = vsub.f32 %v15630_v26, %v23823_v61  ;;  %v12801_v60 = vpack.c.bf16 %v23826_v10, %v23825_v6  ;;  %v23831_v61 = vld [vmem:[#allocation15_spill] sm:$0xff] }
 0x10e   :  { %1711 = vmatmul.mubr.f32.vlgmr.msra.gmra.mrb[2].mxu0 %v1710_v18  ;;  %v15934_v59 = vsub.f32 %v15632_v32, %v23824_v37  ;;  %v13001_v26 = vpack.c.bf16 %v15918_v9, %v15913_v24  ;;  %v15950_v32 = vsub.f32 %v15655_v35, %v23828_v30  ;;  %v23829_v18 = vand.u32 4294901760, %v15657_v21  ;;  %v23832_v37 = vld [vmem:[#allocation16_spill] sm:$0xff] }
 0x10f   :  { %12796 = vmatpush3.bf16.msra.mxu1 %v15483_v11  ;;  %12996 = vmatpush3.bf16.msra.mxu0 %v12995_v1  ;;  %v23827_v11 = vand.u32 4294901760, %v15644_v43  ;;  %v12803_v6 = vpack.c.bf16 %v23832_v37, %v23831_v61  ;;  %v23843_v30 = vand.u32 4294901760, %v15743_v23  ;;  %v23849_v37 = vand.u32 4294901760, %v15776_v55 }
 0x110   :  { %2078 = vmatprep.mubr.f32.mxu0 %v15706_v39  ;;  %12798 = vmatprep.subr.bf16.mxu1 %v15495_v17  ;;  %v15955_v17 = vsub.f32 %v15657_v21, %v23829_v18  ;;  %v13003_v35 = vpack.c.bf16 %v15934_v59, %v15926_v57  ;;  %v12805_v21 = vpack.c.bf16 %v15151_v28, %v15148_v27  ;;  %v23839_v28 = vand.u32 4294901760, %v15731_v53  ;;  %v16215_v39 = vld [vmem:[#allocation2 + $0x288] sm:$0xff] }
 0x111   :  { %v15945_v1 = vsub.f32 %v15644_v43, %v23827_v11  ;;  %12998 = vmatprep.subr.bf16.mxu0 %v12997_v47  ;;  %v23833_v43 = vand.u32 4294901760, %v15687_v8  ;;  %v23835_v47 = vand.u32 4294901760, %v15689_v15  ;;  %v12807_v27 = vpack.c.bf16 %v15166_v38, %v15160_v33 }
 0x112   :  { %23830 = vst [vmem:[#allocation13_spill] sm:$0xff] %v15955_v17  ;;  %v16000_v18 = vsub.f32 %v15743_v23, %v23843_v30  ;;  %v23845_v33 = vand.u32 4294901760, %v15745_v25  ;;  %v16017_v23 = vsub.f32 %v15776_v55, %v23849_v37  ;;  %v23870_v30 = vand.u32 4294901760, %v15834_v29 }
 0x113   :  { %12800 = vmatpush3.bf16.msra.mxu1 %v15493_v41  ;;  %13000 = vmatpush3.bf16.msra.mxu0 %v12999_v19  ;;  %v15963_v10 = vsub.f32 %v15687_v8, %v23833_v43  ;;  %v15972_v41 = vsub.f32 %v15689_v15, %v23835_v47  ;;  %v23837_v19 = vand.u32 4294901760, %v15699_v14  ;;  %v13005_v8 = vpack.c.bf16 %v15950_v32, %v15945_v1 }
 0x114   :  { %12802 = vmatprep.subr.bf16.mxu1 %v12801_v60  ;;  %13002 = vmatprep.subr.bf16.mxu0 %v13001_v26  ;;  %v15988_v15 = vsub.f32 %v15731_v53, %v23839_v28  ;;  %v23841_v60 = vand.u32 4294901760, %v15733_v48  ;;  %23844 = vst [vmem:[#allocation84_spill] sm:$0xff] %v16000_v18  ;;  %v16005_v38 = vsub.f32 %v15745_v25, %v23845_v33  ;;  %v23847_v53 = vand.u32 4294901760, %v15774_v0 }
 0x115   :  { %23834 = vst [vmem:[#allocation14_spill] sm:$0xff] %v15963_v10  ;;  %23836 = vst [vmem:[#allocation15_spill] sm:$0xff] %v15972_v41  ;;  %v15977_v11 = vsub.f32 %v15699_v14, %v23837_v19  ;;  %v13007_v26 = vpack.c.bf16 %v15963_v10, %v15955_v17  ;;  %v23851_v25 = vpack.c.bf16 %v15197_v62, %v15193_v58  ;;  %v23852_v43 = vand.u32 4294901760, %v15779_v13 }
 0x116   :  { %1081 = vmatmul.mubr.f32.vlgmr.msra.gmra.mrb[2].mxu1 %v15638_v45  ;;  %23840 = vst [vmem:[#allocation82_spill] sm:$0xff] %v15988_v15  ;;  %v15993_v14 = vsub.f32 %v15733_v48, %v23841_v60  ;;  %23846 = vst [vmem:[#allocation85_spill] sm:$0xff] %v16005_v38  ;;  %v16012_v61 = vsub.f32 %v15774_v0, %v23847_v53  ;;  %v23854_v0 = vand.u32 4294901760, %v15781_v7  ;;  %v23857_v62 = vand.u32 4294901760, %v15803_v34  ;;  %v23867_v60 = vld [vmem:[#allocation24_spill] sm:$0xff]  ;;  %v23875_v53 = vld [vmem:[#allocation26_spill] sm:$0xff] }
 0x117   :  { %23838 = vst [vmem:[#allocation16_spill] sm:$0xff] %v15977_v11  ;;  %12804 = vmatpush3.bf16.msra.mxu1 %v12803_v6  ;;  %1216 = vmatprep.mubr.f32.mxu1 %v15624_v44  ;;  %v13009_v48 = vpack.c.bf16 %v15977_v11, %v15972_v41  ;;  %23850 = vst [vmem:[#allocation87_spill] sm:$0xff] %v16017_v23  ;;  %v13013_v55 = vpack.c.bf16 %v16005_v38, %v16000_v18 }
 0x118   :  { %23842 = vst [vmem:[#allocation83_spill] sm:$0xff] %v15993_v14  ;;  %13004 = vmatpush3.bf16.msra.mxu0 %v13003_v35  ;;  %12806 = vmatprep.subr.bf16.mxu1 %v12805_v21  ;;  %23848 = vst [vmem:[#allocation86_spill] sm:$0xff] %v16012_v61  ;;  %v13011_v6 = vpack.c.bf16 %v15993_v14, %v15988_v15  ;;  %v16027_v35 = vsub.f32 %v15779_v13, %v23852_v43  ;;  %v23859_v13 = vand.u32 4294901760, %v15805_v22 }
 0x119   :  { %13006 = vmatprep.subr.bf16.mxu0 %v13005_v8  ;;  %v16032_v21 = vsub.f32 %v15781_v7, %v23854_v0  ;;  %v23856_v58 = vpack.c.bf16 %v15206_v4, %v15204_v3  ;;  %v16042_v47 = vsub.f32 %v15803_v34, %v23857_v62  ;;  %v23861_v7 = vld [vmem:[#allocation20_spill] sm:$0xff]  ;;  %v23863_v3 = vand.u32 4294901760, %v15807_v36  ;;  %v23877_v0 = vld [vmem:[#allocation30_spill] sm:$0xff]  ;;  %v23881_v62 = vld [vmem:[#allocation31_spill] sm:$0xff] }
 0x11a   :  { %23853 = vst [vmem:[#allocation88_spill] sm:$0xff] %v16027_v35  ;;  %v16047_v19 = vsub.f32 %v15805_v22, %v23859_v13  ;;  %v23862_v8 = vpack.c.bf16 %v15220_v12, %v23861_v7  ;;  %v23865_v34 = vand.u32 4294901760, %v15809_v52  ;;  %v23868_v12 = vld [vmem:[#allocation22_spill] sm:$0xff]  ;;  %v16072_v33 = vsub.f32 %v15834_v29, %v23870_v30  ;;  %v23886_v30 = vld [vmem:[#allocation39_spill] sm:$0xff] }
 0x11b   :  { %12808 = vmatpush3.bf16.msra.mxu1 %v12807_v27  ;;  %23855 = vst [vmem:[#allocation89_spill] sm:$0xff] %v16032_v21  ;;  %23858 = vst [vmem:[#allocation90_spill] sm:$0xff] %v16042_v47  ;;  %v13015_v27 = vpack.c.bf16 %v16017_v23, %v16012_v61  ;;  %v16057_v4 = vsub.f32 %v15807_v36, %v23863_v3  ;;  %v13017_v22 = vpack.c.bf16 %v16032_v21, %v16027_v35 }
 0x11c   :  { %13008 = vmatpush3.bf16.msra.mxu0 %v13007_v26  ;;  %12810 = vmatprep.subr.bf16.mxu1 %v23851_v25  ;;  %23860 = vst [vmem:[#allocation91_spill] sm:$0xff] %v16047_v19  ;;  %v16062_v28 = vsub.f32 %v15809_v52, %v23865_v34  ;;  %v23869_v26 = vpack.c.bf16 %v23867_v60, %v23868_v12  ;;  %23871 = vst [vmem:[#allocation24_spill] sm:$0xff] %v16072_v33  ;;  %v23872_v36 = vand.u32 4294901760, %v15836_v42  ;;  %v23874_v52 = vld [vmem:[#allocation27_spill] sm:$0xff]  ;;  %v23883_v60 = vld [vmem:[#allocation36_spill] sm:$0xff] }
 0x11d   :  { %13010 = vmatprep.subr.bf16.mxu0 %v13009_v48  ;;  %23864 = vst [vmem:[#allocation20_spill] sm:$0xff] %v16057_v4  ;;  %v23876_v37 = vpack.c.bf16 %v23874_v52, %v23875_v53  ;;  %v13019_v25 = vpack.c.bf16 %v16047_v19, %v16042_v47  ;;  %v22629_v29 = vand.u32 4294901760, %v15393_v46  ;;  %v22628_v43 = vand.u32 4294901760, %v15406_v54  ;;  %v23884_v12 = vld [vmem:[#allocation34_spill] sm:$0xff] }
 0x11e   :  { %23866 = vst [vmem:[#allocation92_spill] sm:$0xff] %v16062_v28  ;;  %v16077_v48 = vsub.f32 %v15836_v42, %v23872_v36  ;;  %v22619_v34 = vand.u32 4294901760, %v15889_v51  ;;  %v23887_v36 = vld [vmem:[#allocation38_spill] sm:$0xff]  ;;  %v22664_v63 = vand.u32 4294901760, %v16057_v4 }
 0x11f   :  { %12812 = vmatpush3.bf16.msra.mxu1 %v23856_v58  ;;  %v23880_v58 = vld [vmem:[#allocation33_spill] sm:$0xff]  ;;  %v13057_v3 = vpack.c.bf16 %v22628_v43, %v22629_v29  ;;  %v23888_v52 = vpack.c.bf16 %v23886_v30, %v23887_v36  ;;  %v22621_v30 = vand.u32 4294901760, %v15934_v59  ;;  %v23910_v43 = vld [vmem:[#allocation58_spill] sm:$0xff] }
 0x120   :  { %13012 = vmatpush3.bf16.msra.mxu0 %v13011_v6  ;;  %12814 = vmatprep.subr.bf16.mxu1 %v23862_v8  ;;  %23873 = vst [vmem:[#allocation22_spill] sm:$0xff] %v16077_v48  ;;  %v13021_v6 = vpack.c.bf16 %v16062_v28, %v16057_v4  ;;  %v23882_v13 = vpack.c.bf16 %v23880_v58, %v23881_v62  ;;  %v22627_v8 = vand.u32 4294901760, %v15864_v31  ;;  %v23890_v62 = vld [vmem:[#allocation42_spill] sm:$0xff]  ;;  %v23895_v36 = vld [vmem:[#allocation45_spill] sm:$0xff]  ;;  %v23926_v4 = vand.u32 4294901760, %v16215_v39 }
 0x121   :  { %13014 = vmatprep.subr.bf16.mxu0 %v13013_v55  ;;  %v23878_v55 = vld [vmem:[#allocation29_spill] sm:$0xff]  ;;  %v13023_v7 = vpack.c.bf16 %v16077_v48, %v16072_v33 }
 0x122   :  { %v23879_v42 = vpack.c.bf16 %v23877_v0, %v23878_v55  ;;  %v22623_v0 = vand.u32 4294901760, %v15913_v24  ;;  %v22620_v55 = vand.u32 4294901760, %v15918_v9  ;;  %v23911_v29 = vld [vmem:[#allocation21_spill] sm:$0xff] }
 0x123   :  { %12816 = vmatpush3.bf16.msra.mxu1 %v23869_v26  ;;  %v23885_v26 = vpack.c.bf16 %v23883_v60, %v23884_v12  ;;  %v23893_v60 = vld [vmem:[#allocation56_spill] sm:$0xff] }
 0x124   :  { %13016 = vmatpush3.bf16.msra.mxu0 %v13015_v27  ;;  %12818 = vmatprep.subr.bf16.mxu1 %v23876_v37  ;;  %v22624_v27 = vand.u32 4294901760, %v15869_v49  ;;  %v22618_v37 = vand.u32 4294901760, %v15899_v20 }
 0x125   :  { %13018 = vmatprep.subr.bf16.mxu0 %v13017_v22  ;;  %v22616_v22 = vand.u32 4294901760, %v15894_v2 }
 0x126   :  { %v13059_v53 = vpack.c.bf16 %v22624_v27, %v22627_v8  ;;  %v23909_v27 = vld [vmem:[#allocation19_spill] sm:$0xff]  ;;  %v22639_v8 = vand.u32 4294901760, %v15993_v14 }
 0x127   :  { %12820 = vmatpush3.bf16.msra.mxu1 %v23879_v42  ;;  %v23889_v42 = vld [vmem:[#allocation53_spill] sm:$0xff] }
 0x128   :  { %13020 = vmatpush3.bf16.msra.mxu0 %v13019_v25  ;;  %12822 = vmatprep.subr.bf16.mxu1 %v23882_v13  ;;  %v22617_v25 = vand.u32 4294901760, %v15904_v5  ;;  %v94_v58 = vadd.s32 640, %v23889_v42  ;;  %v23891_v13 = vld [vmem:[#allocation41_spill] sm:$0xff] }
 0x129   :  { %13022 = vmatprep.subr.bf16.mxu0 %v13021_v6  ;;  %v13061_v6 = vpack.c.bf16 %v22616_v22, %v22619_v34 }
 0x12a   :  { %vm143_vm12 = vcmp.eq.s32.totalorder %v94_v58, %v23893_v60  ;;  %v13063_v12 = vpack.c.bf16 %v22617_v25, %v22618_v37  ;;  %v23899_v25 = vld [vmem:[#allocation48_spill] sm:$0xff]  ;;  %v23900_v37 = vld [vmem:[#allocation46_spill] sm:$0xff]  ;;  %vm327_vm5 = vcmp.eq.s32.totalorder %v94_v58, %v23910_v43 }
 0x12b   :  { %12824 = vmatpush3.bf16.msra.mxu1 %v23885_v26  ;;  %v22622_v26 = vand.u32 4294901760, %v15926_v57  ;;  %v23901_v34 = vpack.c.bf16 %v23899_v25, %v23900_v37  ;;  %v22633_v37 = vand.u32 4294901760, %v15972_v41  ;;  %v22632_v25 = vand.u32 4294901760, %v15977_v11  ;;  %v16297_v41 = vld [vmem:[#allocation2 + $0x2b0] sm:$0xff] }
 0x12c   :  { %13024 = vmatpush3.bf16.msra.mxu0 %v13023_v7  ;;  %12826 = vmatprep.subr.bf16.mxu1 %v23888_v52  ;;  %v23892_v7 = vpack.c.bf16 %v23890_v62, %v23891_v13  ;;  %v23896_v52 = vld [vmem:[#allocation43_spill] sm:$0xff]  ;;  %v22626_v62 = vand.u32 4294901760, %v15945_v1  ;;  %v22625_v13 = vand.u32 4294901760, %v15950_v32 }
 0x12d   :  { %13058 = vmatprep.subr.bf16.mxu0 %v13057_v3  ;;  %v23894_v3 = vld [vmem:[#allocation67_spill] sm:$0xff]  ;;  %v23897_v22 = vpack.c.bf16 %v23895_v36, %v23896_v52  ;;  %v23902_v36 = vld [vmem:[#allocation17_spill] sm:$0xff]  ;;  %v22630_v52 = vand.u32 4294901760, %v15963_v10  ;;  %v23942_v10 = vld [vmem:[#allocation50_spill] sm:$0xff] }
 0x12f   :  { %2081 = vmatmul.mubr.f32.vlgmr.msra.gmra.mrb[4].mxu0 %v15840_v56  ;;  %12828 = vmatpush3.bf16.msra.mxu1 %v23892_v7  ;;  %v23898_v7 = vld [vmem:[#allocation54_spill] sm:$0xff]  ;;  %v23913_v56 = vld [vmem:[#allocation25_spill] sm:$0xff] }
 0x130   :  { %13060 = vmatpush3.bf16.msra.mxu0 %v13059_v53  ;;  %2355 = vmatprep.mubr.f32.mxu0 %v23894_v3  ;;  %v13065_v53 = vpack.c.bf16 %v22620_v55, %v22623_v0  ;;  %vm118_vm13 = vcmp.eq.s32.totalorder %v94_v58, %v23898_v7  ;;  %v23903_v55 = vld [vmem:[#allocation55_spill] sm:$0xff]  ;;  %v23907_v0 = vld [vmem:[#allocation18_spill] sm:$0xff] }
 0x131   :  { %12830 = vmatprep.subr.bf16.mxu1 %v23897_v22  ;;  %13062 = vmatprep.subr.bf16.mxu0 %v13061_v6  ;;  %vm164_vm14 = vmor %vm118_vm13, %vm143_vm12  ;;  %v13067_v22 = vpack.c.bf16 %v22621_v30, %v22622_v26  ;;  %v22631_v6 = vand.u32 4294901760, %v15955_v17  ;;  %vm189_vm15 = vcmp.eq.s32.totalorder %v94_v58, %v23903_v55  ;;  %v23905_v30 = vld [vmem:[#allocation64_spill] sm:$0xff]  ;;  %v23906_v26 = vld [vmem:[#allocation59_spill] sm:$0xff] }
 0x132   :  { %vm210_vm0 = vmor %vm164_vm14, %vm189_vm15  ;;  %vm281_vm2 = vcmp.eq.s32.totalorder %v94_v58, %v23906_v26  ;;  %v16328_v3 = vld [vmem:[#allocation2 + $0x238] sm:$0xff] }
 0x133   :  { %12832 = vmatpush3.bf16.msra.mxu1 %v23901_v34  ;;  %v13069_v34 = vpack.c.bf16 %v22625_v13, %v22626_v62  ;;  %v13071_v13 = vpack.c.bf16 %v22630_v52, %v22631_v6  ;;  %v22640_v62 = vand.u32 4294901760, %v15988_v15  ;;  %v23912_v52 = vld [vmem:[#allocation23_spill] sm:$0xff]  ;;  %v22649_v6 = vand.u32 4294901760, %v16012_v61  ;;  %v23946_v17 = vld [vmem:[#allocation52_spill] sm:$0xff] }
 0x134   :  { %13064 = vmatpush3.bf16.msra.mxu0 %v13063_v12  ;;  %12834 = vmatprep.subr.bf16.mxu1 %v23902_v36  ;;  %v23904_v12 = vld [vmem:[#allocation57_spill] sm:$0xff] }
 0x135   :  { %13066 = vmatprep.subr.bf16.mxu0 %v13065_v53  ;;  %vm235_vm1 = vcmp.eq.s32.totalorder %v94_v58, %v23904_v12  ;;  %v23908_v53 = vand.u32 4294901760, %v15624_v44  ;;  %v13073_v44 = vpack.c.bf16 %v22632_v25, %v22633_v37  ;;  %v22648_v25 = vand.u32 4294901760, %v16017_v23  ;;  %v16235_v23 = vld [vmem:[#allocation2 + $0x200] sm:$0xff] }
 0x136   :  { %1219 = vmatmul.mubr.f32.vlgmr.msra.gmra.mrb[4].mxu1 %v23905_v30  ;;  %vm256_vm3 = vmor %vm210_vm0, %vm235_vm1  ;;  %v22650_v37 = vand.u32 4294901760, %v16032_v21 }
 0x137   :  { %12836 = vmatpush3.bf16.msra.mxu1 %v23907_v0  ;;  %1323 = vmatprep.mubr.f32.mxu1 %v23908_v53  ;;  %v22641_v53 = vand.u32 4294901760, %v16005_v38  ;;  %vm302_vm4 = vmor %vm256_vm3, %vm281_vm2  ;;  %v16260_v38 = vld [vmem:[#allocation2 + $0x210] sm:$0xff] }
 0x138   :  { %13068 = vmatpush3.bf16.msra.mxu0 %v13067_v22  ;;  %12838 = vmatprep.subr.bf16.mxu1 %v23909_v27  ;;  %v22642_v22 = vand.u32 4294901760, %v16000_v18  ;;  %vm348_vm6 = vmor %vm302_vm4, %vm327_vm5 }
 0x139   :  { %13070 = vmatprep.subr.bf16.mxu0 %v13069_v34  ;;  %v13075_v34 = vpack.c.bf16 %v22639_v8, %v22640_v62  ;;  %v16198_v40 = vsel %vm348_vm6, 1.0, %v23914_v50  ;;  %v23916_v8 = vld [vmem:[#allocation28_spill] sm:$0xff]  ;;  %v22663_v62 = vand.u32 4294901760, %v16042_v47  ;;  %v16237_v47 = vld [vmem:[#allocation2 + $0x208] sm:$0xff] }
 0x13a   :  { %v13077_v58 = vpack.c.bf16 %v22641_v53, %v22642_v22  ;;  %23915 = vst [vmem:[#allocation27_spill] sm:$0xff] %v16198_v40  ;;  %v22662_v53 = vand.u32 4294901760, %v16047_v19  ;;  %v23932_v61 = vand.u32 4294901760, %v16237_v47 }
 0x13b   :  { %12840 = vmatpush3.bf16.msra.mxu1 %v23911_v29 }
 0x13c   :  { %13072 = vmatpush3.bf16.msra.mxu0 %v13071_v13  ;;  %12842 = vmatprep.subr.bf16.mxu1 %v23912_v52  ;;  %v22651_v13 = vand.u32 4294901760, %v16027_v35  ;;  %v23929_v35 = vld [vmem:[#allocation44_spill] sm:$0xff] }
 0x13d   :  { %13074 = vmatprep.subr.bf16.mxu0 %v13073_v44  ;;  %v13079_v44 = vpack.c.bf16 %v22648_v25, %v22649_v6  ;;  %v16219_v25 = vsub.f32 %v16198_v40, %v16198_v40  ;;  %v23918_v6 = vld [vmem:[#allocation32_spill] sm:$0xff]  ;;  %v23920_v40 = vand.u32 4294901760, %v16062_v28 }
 0x13e   :  { %v13081_v22 = vpack.c.bf16 %v22650_v37, %v22651_v13  ;;  %v13083_v37 = vpack.c.bf16 %v22662_v53, %v22663_v62  ;;  %v16240_v62 = vld [vmem:[#allocation2 + $0x290] sm:$0xff]  ;;  %v16242_v13 = vld [vmem:[#allocation2 + $0x298] sm:$0xff]  ;;  %v23925_v53 = vand.u32 4294901760, %v16213_v16  ;;  %v16267_v28 = vld [vmem:[#allocation2 + $0x2a0] sm:$0xff] }
 0x13f   :  { %12844 = vmatpush3.bf16.msra.mxu1 %v23913_v56  ;;  %23917 = vst [vmem:[#allocation26_spill] sm:$0xff] %v16219_v25  ;;  %v13085_v21 = vpack.c.bf16 %v23920_v40, %v22664_v63  ;;  %v23923_v40 = vand.u32 4294901760, %v16072_v33  ;;  %v23924_v63 = vand.u32 4294901760, %v16077_v48  ;;  %v16262_v33 = vld [vmem:[#allocation2 + $0x218] sm:$0xff]  ;;  %v23934_v14 = vand.u32 4294901760, %v16240_v62  ;;  %v16295_v48 = vld [vmem:[#allocation2 + $0x228] sm:$0xff] }
 0x140   :  { %13076 = vmatpush3.bf16.msra.mxu0 %v13075_v34  ;;  %12846 = vmatprep.subr.bf16.mxu1 %v23916_v8  ;;  %v23922_v34 = vld [vmem:[#allocation40_spill] sm:$0xff]  ;;  %v16256_v19 = vpack.c.bf16 %v23926_v4, %v23925_v53  ;;  %v23930_v4 = vld [vmem:[#allocation47_spill] sm:$0xff]  ;;  %v23931_v53 = vand.u32 4294901760, %v16235_v23 }
 0x141   :  { %13078 = vmatprep.subr.bf16.mxu0 %v13077_v58  ;;  %v23919_v58 = vld [vmem:[#allocation35_spill] sm:$0xff] }
 0x142   :  { %23927 = vst [vmem:[#allocation30_spill] sm:$0xff] %v16256_v19 }
 0x143   :  { %12848 = vmatpush3.bf16.msra.mxu1 %v23918_v6 }
 0x144   :  { %13080 = vmatpush3.bf16.msra.mxu0 %v13079_v44  ;;  %12850 = vmatprep.subr.bf16.mxu1 %v23919_v58  ;;  %v13087_v44 = vpack.c.bf16 %v23924_v63, %v23923_v40  ;;  %v23928_v63 = vand.u32 4294901760, %v16219_v25 }
 0x145   :  { %13082 = vmatprep.subr.bf16.mxu0 %v13081_v22  ;;  %v23921_v22 = vld [vmem:[#allocation37_spill] sm:$0xff] }
 0x146   :  { %v2565_v40 = vsub.f32 %v16219_v25, %v23928_v63  ;;  %v16282_v63 = vadd.s32 512, %v23889_v42  ;;  %v16299_v42 = vld [vmem:[#allocation2 + $0x2b8] sm:$0xff] }
 0x147   :  { %12852 = vmatpush3.bf16.msra.mxu1 %v23921_v22 }
 0x148   :  { %13084 = vmatpush3.bf16.msra.mxu0 %v13083_v37  ;;  %12854 = vmatprep.subr.bf16.mxu1 %v23922_v34  ;;  %v16277_v37 = vpack.c.bf16 %v23932_v61, %v23931_v53  ;;  %v16293_v53 = vld [vmem:[#allocation2 + $0x220] sm:$0xff]  ;;  %v2566_v18 = vand.u32 4294901760, %v2565_v40  ;;  %vm142_vm7 = vcmp.eq.s32.totalorder %v16282_v63, %v23893_v60  ;;  %v23940_v61 = vand.u32 4294901760, %v16262_v33  ;;  %v16326_v40 = vld [vmem:[#allocation2 + $0x230] sm:$0xff] }
 0x149   :  { %13086 = vmatprep.subr.bf16.mxu0 %v13085_v21  ;;  %v16269_v21 = vld [vmem:[#allocation2 + $0x2a8] sm:$0xff]  ;;  %vm117_vm8 = vcmp.eq.s32.totalorder %v16282_v63, %v23898_v7  ;;  %v16333_v7 = vld [vmem:[#allocation2 + $0x2c0] sm:$0xff]  ;;  %vm188_vm10 = vcmp.eq.s32.totalorder %v16282_v63, %v23903_v55  ;;  %vm234_vm12 = vcmp.eq.s32.totalorder %v16282_v63, %v23904_v12  ;;  %vm280_vm13 = vcmp.eq.s32.totalorder %v16282_v63, %v23906_v26  ;;  %v16371_v12 = vld [vmem:[#allocation2 + $0x2d8] sm:$0xff] }
 0x14a   :  { %23933 = vst [vmem:[#allocation29_spill] sm:$0xff] %v16277_v37  ;;  %vm163_vm9 = vmor %vm117_vm8, %vm142_vm7  ;;  %v23954_v60 = vand.u32 4294901760, %v23905_v30  ;;  %vm326_vm0 = vcmp.eq.s32.totalorder %v16282_v63, %v23910_v43  ;;  %v16400_v30 = vld [vmem:[#allocation2 + $0x2e0] sm:$0xff]  ;;  %v16402_v26 = vld [vmem:[#allocation2 + $0x2e8] sm:$0xff] }
 0x14b   :  { %12856 = vmatpush3.bf16.msra.mxu1 %v23929_v35  ;;  %vm209_vm11 = vmor %vm163_vm9, %vm188_vm10  ;;  %23955 = vst [vmem:[#allocation42_spill] sm:$0xff] %v16371_v12 }
 0x14c   :  { %13088 = vmatpush3.bf16.msra.mxu0 %v13087_v44  ;;  %12858 = vmatprep.subr.bf16.mxu1 %v23930_v4  ;;  %v23935_v44 = vand.u32 4294901760, %v16242_v13  ;;  %vm255_vm14 = vmor %vm209_vm11, %vm234_vm12 }
 0x14d   :  { %13122 = vmatprep.subr.bf16.mxu0 %v16256_v19  ;;  %v23937_v19 = vld [vmem:[#allocation75_spill] sm:$0xff]  ;;  %vm301_vm15 = vmor %vm255_vm14, %vm280_vm13 }
 0x14e   :  { %v16289_v15 = vpack.c.bf16 %v23935_v44, %v23934_v14  ;;  %v23938_v14 = vld [vmem:[#allocation49_spill] sm:$0xff]  ;;  %v23939_v44 = vand.u32 4294901760, %v16260_v38  ;;  %vm347_vm1 = vmor %vm301_vm15, %vm326_vm0 }
 0x14f   :  { %2357 = vmatmul.mubr.f32.vlgmr.msra.gmra.mrb[6].mxu0 %v23937_v19  ;;  %12860 = vmatpush3.bf16.msra.mxu1 %v23938_v14 }
 0x150   :  { %23936 = vst [vmem:[#allocation33_spill] sm:$0xff] %v16289_v15  ;;  %13124 = vmatpush3.bf16.msra.mxu0 %v16277_v37  ;;  %2567 = vmatprep.mubr.f32.mxu0 %v2566_v18  ;;  %v16310_v11 = vpack.c.bf16 %v23940_v61, %v23939_v44  ;;  %v23943_v37 = vand.u32 4294901760, %v16267_v28  ;;  %v23944_v18 = vand.u32 4294901760, %v16269_v21  ;;  %v16363_v61 = vld [vmem:[#allocation2 + $0x248] sm:$0xff] }
 0x151   :  { %12862 = vmatprep.subr.bf16.mxu1 %v23942_v10  ;;  %13126 = vmatprep.subr.bf16.mxu0 %v16289_v15  ;;  %v16335_v15 = vld [vmem:[#allocation2 + $0x2c8] sm:$0xff] }
 0x152   :  { %23941 = vst [vmem:[#allocation31_spill] sm:$0xff] %v16310_v11  ;;  %v16322_v19 = vpack.c.bf16 %v23944_v18, %v23943_v37  ;;  %v23947_v37 = vand.u32 4294901760, %v16293_v53  ;;  %v23948_v18 = vand.u32 4294901760, %v16295_v48 }
 0x153   :  { %12864 = vmatpush3.bf16.msra.mxu1 %v23946_v17 }
 0x154   :  { %23945 = vst [vmem:[#allocation36_spill] sm:$0xff] %v16322_v19  ;;  %13128 = vmatpush3.bf16.msra.mxu0 %v16310_v11  ;;  %12898 = vmatprep.subr.bf16.mxu1 %v23902_v36  ;;  %v16346_v44 = vpack.c.bf16 %v23948_v18, %v23947_v37  ;;  %v23950_v11 = vand.u32 4294901760, %v16297_v41  ;;  %v23951_v36 = vand.u32 4294901760, %v16299_v42  ;;  %v16361_v18 = vld [vmem:[#allocation2 + $0x240] sm:$0xff]  ;;  %v23958_v37 = vand.u32 4294901760, %v16328_v3 }
 0x155   :  { %13130 = vmatprep.subr.bf16.mxu0 %v16322_v19  ;;  %23953 = vst [vmem:[#allocation38_spill] sm:$0xff] %v16361_v18  ;;  %v16369_v19 = vld [vmem:[#allocation2 + $0x2d0] sm:$0xff]  ;;  %v23964_v63 = vand.u32 4294901760, %v16361_v18  ;;  %v16424_v18 = vld [vmem:[#allocation2 + $0x260] sm:$0xff] }
 0x156   :  { %23949 = vst [vmem:[#allocation34_spill] sm:$0xff] %v16346_v44  ;;  %v16357_v55 = vpack.c.bf16 %v23951_v36, %v23950_v11  ;;  %1327 = vmatmul.mubr.f32.vlgmr.msra.gmra.mrb[6].mxu1 %v23954_v60  ;;  %v23956_v11 = vld [vmem:[#allocation61_spill] sm:$0xff]  ;;  %v23957_v36 = vand.u32 4294901760, %v16326_v40  ;;  %v16398_v60 = vld [vmem:[#allocation2 + $0x258] sm:$0xff] }
 0x157   :  { %12900 = vmatpush3.bf16.msra.mxu1 %v23907_v0  ;;  %1597 = vmatprep.mubr.f32.mxu1 %v23956_v11  ;;  %v23960_v0 = vand.u32 4294901760, %v16333_v7 }
 0x158   :  { %23952 = vst [vmem:[#allocation39_spill] sm:$0xff] %v16357_v55  ;;  %13132 = vmatpush3.bf16.msra.mxu0 %v16346_v44  ;;  %12902 = vmatprep.subr.bf16.mxu1 %v23909_v27  ;;  %v16381_v45 = vpack.c.bf16 %v23958_v37, %v23957_v36  ;;  %v23961_v27 = vand.u32 4294901760, %v16335_v15  ;;  %v16396_v36 = vld [vmem:[#allocation2 + $0x250] sm:$0xff]  ;;  %v16430_v37 = vld [vmem:[#allocation2 + $0x2f8] sm:$0xff]  ;;  %v16433_v44 = vsel %vm347_vm1, 1.0, %v23914_v50  ;;  %v23974_v50 = vand.u32 4294901760, %v16400_v30 }
 0x159   :  { %13134 = vmatprep.subr.bf16.mxu0 %v16357_v55  ;;  %23963 = vst [vmem:[#allocation43_spill] sm:$0xff] %v16396_v36  ;;  %v23967_v55 = vand.u32 4294901760, %v16369_v19  ;;  %23970 = vst [vmem:[#allocation17_spill] sm:$0xff] %v16433_v44 }
 0x15a   :  { %23959 = vst [vmem:[#allocation41_spill] sm:$0xff] %v16381_v45  ;;  %v16392_v11 = vpack.c.bf16 %v23961_v27, %v23960_v0  ;;  %v23965_v0 = vand.u32 4294901760, %v16363_v61 }
 0x15b   :  { %12904 = vmatpush3.bf16.msra.mxu1 %v23911_v29  ;;  %v23968_v29 = vand.u32 4294901760, %v16371_v12 }
 0x15c   :  { %23962 = vst [vmem:[#allocation45_spill] sm:$0xff] %v16392_v11  ;;  %13136 = vmatpush3.bf16.msra.mxu0 %v16381_v45  ;;  %12906 = vmatprep.subr.bf16.mxu1 %v23912_v52  ;;  %v16411_v27 = vpack.c.bf16 %v23965_v0, %v23964_v63  ;;  %v16426_v63 = vld [vmem:[#allocation2 + $0x268] sm:$0xff]  ;;  %v16428_v0 = vld [vmem:[#allocation2 + $0x2f0] sm:$0xff]  ;;  %v22733_v52 = vand.u32 4294901760, %v16424_v18 }
 0x15d   :  { %13138 = vmatprep.subr.bf16.mxu0 %v16392_v11  ;;  %v16420_v43 = vpack.c.bf16 %v23968_v29, %v23967_v55  ;;  %v23971_v55 = vand.u32 4294901760, %v16396_v36  ;;  %v23972_v29 = vand.u32 4294901760, %v16398_v60  ;;  %v22732_v11 = vand.u32 4294901760, %v16426_v63  ;;  %v16455_v36 = vld [vmem:[#allocation2 + $0x270] sm:$0xff] }
 0x15e   :  { %23966 = vst [vmem:[#allocation48_spill] sm:$0xff] %v16411_v27 }
 0x15f   :  { %23969 = vst [vmem:[#allocation46_spill] sm:$0xff] %v16420_v43  ;;  %12908 = vmatpush3.bf16.msra.mxu1 %v23913_v56  ;;  %v16442_v45 = vpack.c.bf16 %v23972_v29, %v23971_v55  ;;  %v23975_v56 = vand.u32 4294901760, %v16402_v26  ;;  %v16457_v55 = vld [vmem:[#allocation2 + $0x278] sm:$0xff]  ;;  %v16461_v29 = vsub.f32 %v16433_v44, %v16433_v44 }
 0x160   :  { %13140 = vmatpush3.bf16.msra.mxu0 %v16411_v27  ;;  %12910 = vmatprep.subr.bf16.mxu1 %v23916_v8  ;;  %v23979_v8 = vand.u32 4294901760, %v16213_v16 }
 0x161   :  { %23973 = vst [vmem:[#allocation64_spill] sm:$0xff] %v16442_v45  ;;  %13142 = vmatprep.subr.bf16.mxu0 %v16420_v43  ;;  %v16451_v12 = vpack.c.bf16 %v23975_v56, %v23974_v50  ;;  %23977 = vst [vmem:[#allocation19_spill] sm:$0xff] %v16461_v29  ;;  %v16470_v50 = vpack.c.bf16 %v22732_v11, %v22733_v52  ;;  %v23982_v11 = vand.u32 4294901760, %v16430_v37  ;;  %v23984_v56 = vand.u32 4294901760, %v16235_v23 }
 0x162   :  { %v16477_v43 = vsub.f32 %v16213_v16, %v23979_v8  ;;  %v23985_v8 = vand.u32 4294901760, %v16237_v47 }
 0x163   :  { %23976 = vst [vmem:[#allocation18_spill] sm:$0xff] %v16451_v12  ;;  %12912 = vmatpush3.bf16.msra.mxu1 %v23918_v6  ;;  %23978 = vst [vmem:[#allocation21_spill] sm:$0xff] %v16470_v50  ;;  %v23980_v6 = vand.u32 4294901760, %v16215_v39  ;;  %v16495_v16 = vsub.f32 %v16235_v23, %v23984_v56  ;;  %v23988_v23 = vand.u32 4294901760, %v16455_v36 }
 0x164   :  { %13144 = vmatpush3.bf16.msra.mxu0 %v16442_v45  ;;  %12914 = vmatprep.subr.bf16.mxu1 %v23919_v58  ;;  %v23981_v58 = vand.u32 4294901760, %v16428_v0 }
 0x165   :  { %v16482_v45 = vsub.f32 %v16215_v39, %v23980_v6  ;;  %13146 = vmatprep.subr.bf16.mxu0 %v16451_v12  ;;  %v16500_v39 = vsub.f32 %v16237_v47, %v23985_v8  ;;  %v23986_v6 = vand.u32 4294901760, %v16240_v62  ;;  %v23989_v47 = vand.u32 4294901760, %v16457_v55 }
 0x166   :  { %v16489_v52 = vpack.c.bf16 %v23982_v11, %v23981_v58  ;;  %v23987_v11 = vand.u32 4294901760, %v16242_v13 }
 0x167   :  { %v16505_v12 = vsub.f32 %v16240_v62, %v23986_v6  ;;  %12916 = vmatpush3.bf16.msra.mxu1 %v23921_v22  ;;  %v16519_v56 = vpack.c.bf16 %v23989_v47, %v23988_v23  ;;  %v23991_v62 = vand.u32 4294901760, %v15393_v46  ;;  %v23992_v6 = vand.u32 4294901760, %v15406_v54 }
 0x168   :  { %23983 = vst [vmem:[#allocation23_spill] sm:$0xff] %v16489_v52  ;;  %v16510_v58 = vsub.f32 %v16242_v13, %v23987_v11  ;;  %13148 = vmatpush3.bf16.msra.mxu0 %v16470_v50  ;;  %12918 = vmatprep.subr.bf16.mxu1 %v23922_v34  ;;  %v23993_v22 = vand.u32 4294901760, %v16260_v38  ;;  %v23994_v34 = vand.u32 4294901760, %v16262_v33  ;;  %v23995_v23 = vand.u32 4294901760, %v16461_v29 }
 0x169   :  { %23990 = vst [vmem:[#allocation25_spill] sm:$0xff] %v16519_v56  ;;  %v1832_v8 = vsub.f32 %v15393_v46, %v23991_v62  ;;  %v1839_v13 = vsub.f32 %v15406_v54, %v23992_v6  ;;  %13150 = vmatprep.subr.bf16.mxu0 %v16489_v52  ;;  %v13185_v47 = vpack.c.bf16 %v16482_v45, %v16477_v43  ;;  %v23996_v54 = vand.u32 4294901760, %v16267_v28 }
 0x16a   :  { %v16530_v11 = vsub.f32 %v16260_v38, %v23993_v22  ;;  %v16535_v27 = vsub.f32 %v16262_v33, %v23994_v34  ;;  %v2571_v46 = vsub.f32 %v16461_v29, %v23995_v23  ;;  %v23997_v38 = vand.u32 4294901760, %v16269_v21 }
 0x16b   :  { %v16546_v62 = vsub.f32 %v16267_v28, %v23996_v54  ;;  %v23998_v33 = vand.u32 4294901760, %v15864_v31  ;;  %v23999_v34 = vand.u32 4294901760, %v15869_v49  ;;  %v24000_v52 = vand.u32 4294901760, %v16293_v53  ;;  %12920 = vmatpush3.bf16.msra.mxu1 %v23929_v35 }
 0x16c   :  { %v16551_v6 = vsub.f32 %v16269_v21, %v23997_v38  ;;  %v24001_v28 = vand.u32 4294901760, %v16295_v48  ;;  %v24002_v21 = vand.u32 4294901760, %v16297_v41  ;;  %13152 = vmatpush3.bf16.msra.mxu0 %v16519_v56  ;;  %12922 = vmatprep.subr.bf16.mxu1 %v23930_v4  ;;  %v2572_v4 = vand.u32 4294901760, %v2571_v46 }
 0x16d   :  { %v1720_v22 = vsub.f32 %v15864_v31, %v23998_v33  ;;  %v1727_v23 = vsub.f32 %v15869_v49, %v23999_v34  ;;  %v16562_v50 = vsub.f32 %v16293_v53, %v24000_v52  ;;  %v13187_v49 = vpack.c.bf16 %v16500_v39, %v16495_v16  ;;  %13186 = vmatprep.subr.bf16.mxu0 %v13185_v47 }
 0x16e   :  { %v16567_v54 = vsub.f32 %v16295_v48, %v24001_v28  ;;  %v16572_v38 = vsub.f32 %v16297_v41, %v24002_v21  ;;  %v1833_v31 = vand.u32 4294901760, %v1832_v8  ;;  %v1840_v53 = vand.u32 4294901760, %v1839_v13 }
 0x16f   :  { %v24003_v52 = vand.u32 4294901760, %v15889_v51  ;;  %v24004_v33 = vand.u32 4294901760, %v15894_v2  ;;  %v24005_v34 = vand.u32 4294901760, %v16299_v42  ;;  %v24007_v28 = vand.u32 4294901760, %v16326_v40  ;;  %2573 = vmatmul.mubr.f32.vlgmr.msra.gmra.mrb[8].mxu0 %v2572_v4  ;;  %12924 = vmatpush3.bf16.msra.mxu1 %v23938_v14 }
 0x170   :  { %v13189_v8 = vpack.c.bf16 %v16510_v58, %v16505_v12  ;;  %v24013_v47 = vand.u32 4294901760, %v15913_v24  ;;  %13188 = vmatpush3.bf16.msra.mxu0 %v13187_v49  ;;  %2940 = vmatprep.mubr.f32.mxu0 %v16219_v25  ;;  %v24015_v4 = vand.u32 4294901760, %v16333_v7  ;;  %v16896_v25 = vld [vmem:[#allocation2 + $0x380] sm:$0xff] }
 0x171   :  { %v1846_v48 = vsub.f32 %v15889_v51, %v24003_v52  ;;  %v1853_v41 = vsub.f32 %v15894_v2, %v24004_v33  ;;  %v16588_v35 = vsub.f32 %v16299_v42, %v24005_v34  ;;  %v16593_v21 = vsub.f32 %v16326_v40, %v24007_v28  ;;  %12926 = vmatprep.subr.bf16.mxu1 %v23942_v10 }
 0x172   :  { %v24009_v51 = vand.u32 4294901760, %v16328_v3  ;;  %v1721_v2 = vand.u32 4294901760, %v1720_v22  ;;  %v1728_v52 = vand.u32 4294901760, %v1727_v23  ;;  %v24011_v42 = vand.u32 4294901760, %v15899_v20  ;;  %13190 = vmatprep.subr.bf16.mxu0 %v13189_v8 }
 0x173   :  { %24006 = vst [vmem:[#allocation28_spill] sm:$0xff] %v16588_v35  ;;  %24008 = vst [vmem:[#allocation32_spill] sm:$0xff] %v16593_v21  ;;  %v24012_v40 = vand.u32 4294901760, %v15904_v5  ;;  %v1860_v34 = vsub.f32 %v15913_v24, %v24013_v47  ;;  %v12961_v23 = vpack.c.bf16 %v1840_v53, %v1833_v31  ;;  %v1847_v14 = vand.u32 4294901760, %v1846_v48  ;;  %12928 = vmatpush3.bf16.msra.mxu1 %v23946_v17 }
 0x174   :  { %v16600_v13 = vsub.f32 %v16328_v3, %v24009_v51  ;;  %v1734_v33 = vsub.f32 %v15899_v20, %v24011_v42  ;;  %v24014_v3 = vand.u32 4294901760, %v15918_v9  ;;  %v13191_v20 = vpack.c.bf16 %v16535_v27, %v16530_v11 }
 0x175   :  { %v1741_v46 = vsub.f32 %v15904_v5, %v24012_v40  ;;  %v1854_v28 = vand.u32 4294901760, %v1853_v41  ;;  %v16621_v5 = vsub.f32 %v16333_v7, %v24015_v4  ;;  %v24017_v24 = vand.u32 4294901760, %v16335_v15  ;;  %12962 = vmatprep.subr.bf16.mxu1 %v12961_v23  ;;  %v24031_v23 = vld [vmem:[#allocation13_spill] sm:$0xff] }
 0x176   :  { %24010 = vst [vmem:[#allocation35_spill] sm:$0xff] %v16600_v13  ;;  %v1867_v22 = vsub.f32 %v15918_v9, %v24014_v3  ;;  %v13193_v9 = vpack.c.bf16 %v16551_v6, %v16546_v62  ;;  %v12963_v49 = vpack.c.bf16 %v1728_v52, %v1721_v2  ;;  %v13195_v31 = vpack.c.bf16 %v16567_v54, %v16562_v50  ;;  %v24023_v3 = vld [vmem:[#allocation38_spill] sm:$0xff] }
 0x177   :  { %24016 = vst [vmem:[#allocation37_spill] sm:$0xff] %v16621_v5  ;;  %v16626_v51 = vsub.f32 %v16335_v15, %v24017_v24  ;;  %v24019_v53 = vand.u32 4294901760, %v15926_v57  ;;  %v24020_v48 = vand.u32 4294901760, %v15934_v59  ;;  %v1735_v15 = vand.u32 4294901760, %v1734_v33  ;;  %13192 = vmatpush3.bf16.msra.mxu0 %v13191_v20  ;;  %v24033_v24 = vld [vmem:[#allocation14_spill] sm:$0xff] }
 0x178   :  { %v1742_v10 = vand.u32 4294901760, %v1741_v46  ;;  %v1861_v8 = vand.u32 4294901760, %v1860_v34  ;;  %v1868_v42 = vand.u32 4294901760, %v1867_v22  ;;  %v12965_v2 = vpack.c.bf16 %v1854_v28, %v1847_v14  ;;  %13194 = vmatprep.subr.bf16.mxu0 %v13193_v9 }
 0x179   :  { %24018 = vst [vmem:[#allocation40_spill] sm:$0xff] %v16626_v51  ;;  %v1748_v7 = vsub.f32 %v15926_v57, %v24019_v53  ;;  %v1755_v41 = vsub.f32 %v15934_v59, %v24020_v48  ;;  %v24021_v52 = vand.u32 4294901760, %v15945_v1  ;;  %v24022_v47 = vand.u32 4294901760, %v15950_v32  ;;  %v24035_v48 = vld [vmem:[#allocation67_spill] sm:$0xff] }
 0x17a   :  { %v24024_v4 = vand.u32 4294901760, %v24023_v3  ;;  %v24026_v17 = vand.u32 4294901760, %v16363_v61  ;;  %v24028_v46 = vand.u32 4294901760, %v16369_v19  ;;  %v24032_v14 = vand.u32 4294901760, %v24031_v23 }
 0x17b   :  { %v1874_v40 = vsub.f32 %v15945_v1, %v24021_v52  ;;  %v1881_v57 = vsub.f32 %v15950_v32, %v24022_v47  ;;  %v13197_v1 = vpack.c.bf16 %v16588_v35, %v16572_v38  ;;  %v24030_v32 = vld [vmem:[#allocation63_spill] sm:$0xff]  ;;  %v1749_v22 = vand.u32 4294901760, %v1748_v7  ;;  %13196 = vmatpush3.bf16.msra.mxu0 %v13195_v31 }
 0x17c   :  { %v16649_v59 = vsub.f32 %v24023_v3, %v24024_v4  ;;  %v16654_v33 = vsub.f32 %v16363_v61, %v24026_v17  ;;  %v16659_v34 = vsub.f32 %v16369_v19, %v24028_v46  ;;  %1599 = vmatmul.mubr.f32.vlgmr.msra.gmra.mrb[8].mxu1 %v24030_v32  ;;  %v1756_v20 = vand.u32 4294901760, %v1755_v41  ;;  %v24036_v47 = vld [vmem:[#allocation15_spill] sm:$0xff]  ;;  %v24038_v17 = vld [vmem:[#allocation16_spill] sm:$0xff] }
 0x17d   :  { %v1762_v28 = vsub.f32 %v24031_v23, %v24032_v14  ;;  %v24034_v61 = vand.u32 4294901760, %v24033_v24  ;;  %12964 = vmatpush3.bf16.msra.mxu1 %v12963_v49  ;;  %1941 = vmatprep.mubr.f32.mxu1 %v24035_v48  ;;  %v12967_v19 = vpack.c.bf16 %v1742_v10, %v1735_v15  ;;  %v13199_v9 = vpack.c.bf16 %v16600_v13, %v16593_v21  ;;  %v24040_v49 = vld [vmem:[#allocation42_spill] sm:$0xff]  ;;  %v24043_v10 = vld [vmem:[#allocation43_spill] sm:$0xff] }
 0x17e   :  { %24025 = vst [vmem:[#allocation44_spill] sm:$0xff] %v16649_v59  ;;  %24027 = vst [vmem:[#allocation47_spill] sm:$0xff] %v16654_v33  ;;  %v12969_v52 = vpack.c.bf16 %v1868_v42, %v1861_v8  ;;  %12966 = vmatprep.subr.bf16.mxu1 %v12965_v2  ;;  %v1875_v7 = vand.u32 4294901760, %v1874_v40  ;;  %v1882_v41 = vand.u32 4294901760, %v1881_v57  ;;  %v24037_v3 = vand.u32 4294901760, %v24036_v47  ;;  %13198 = vmatprep.subr.bf16.mxu0 %v13197_v1 }
 0x17f   :  { %24029 = vst [vmem:[#allocation49_spill] sm:$0xff] %v16659_v34  ;;  %v1769_v53 = vsub.f32 %v24033_v24, %v24034_v61  ;;  %v24039_v46 = vand.u32 4294901760, %v24038_v17  ;;  %v24041_v23 = vand.u32 4294901760, %v24040_v49  ;;  %v24044_v14 = vand.u32 4294901760, %v24043_v10  ;;  %13200 = vmatpush3.bf16.msra.mxu0 %v13199_v9 }
 0x180   :  { %v1888_v4 = vsub.f32 %v24036_v47, %v24037_v3  ;;  %v24046_v8 = vand.u32 4294901760, %v16398_v60  ;;  %v13201_v2 = vpack.c.bf16 %v16626_v51, %v16621_v5  ;;  %v24048_v40 = vand.u32 4294901760, %v16400_v30  ;;  %v24050_v3 = vld [vmem:[#allocation82_spill] sm:$0xff] }
 0x181   :  { %v1895_v32 = vsub.f32 %v24038_v17, %v24039_v46  ;;  %v16682_v15 = vsub.f32 %v24040_v49, %v24041_v23  ;;  %v16687_v31 = vsub.f32 %v24043_v10, %v24044_v14  ;;  %v12971_v24 = vpack.c.bf16 %v1756_v20, %v1749_v22  ;;  %12968 = vmatpush3.bf16.msra.mxu1 %v12967_v19  ;;  %v24052_v49 = vld [vmem:[#allocation83_spill] sm:$0xff]  ;;  %v24054_v23 = vld [vmem:[#allocation84_spill] sm:$0xff] }
 0x182   :  { %v16692_v42 = vsub.f32 %v16398_v60, %v24046_v8  ;;  %v16699_v57 = vsub.f32 %v16400_v30, %v24048_v40  ;;  %v1763_v61 = vand.u32 4294901760, %v1762_v28  ;;  %v1770_v47 = vand.u32 4294901760, %v1769_v53  ;;  %v24056_v8 = vld [vmem:[#allocation85_spill] sm:$0xff]  ;;  %12970 = vmatprep.subr.bf16.mxu1 %v12969_v52  ;;  %13202 = vmatprep.subr.bf16.mxu0 %v13201_v2 }
 0x183   :  { %24042 = vst [vmem:[#allocation50_spill] sm:$0xff] %v16682_v15  ;;  %24045 = vst [vmem:[#allocation52_spill] sm:$0xff] %v16687_v31  ;;  %v24051_v17 = vand.u32 4294901760, %v24050_v3  ;;  %v24053_v60 = vand.u32 4294901760, %v24052_v49  ;;  %v24055_v10 = vand.u32 4294901760, %v24054_v23  ;;  %v24057_v56 = vand.u32 4294901760, %v24056_v8 }
 0x184   :  { %24047 = vst [vmem:[#allocation61_spill] sm:$0xff] %v16692_v42  ;;  %24049 = vst [vmem:[#allocation38_spill] sm:$0xff] %v16699_v57  ;;  %v13203_v22 = vpack.c.bf16 %v16654_v33, %v16649_v59  ;;  %v12973_v20 = vpack.c.bf16 %v1882_v41, %v1875_v7  ;;  %v1889_v28 = vand.u32 4294901760, %v1888_v4  ;;  %v1896_v53 = vand.u32 4294901760, %v1895_v32 }
 0x185   :  { %v1776_v46 = vsub.f32 %v24050_v3, %v24051_v17  ;;  %v1783_v1 = vsub.f32 %v24052_v49, %v24053_v60  ;;  %v1902_v14 = vsub.f32 %v24054_v23, %v24055_v10  ;;  %v1909_v30 = vsub.f32 %v24056_v8, %v24057_v56  ;;  %v24066_v49 = vld [vmem:[#allocation87_spill] sm:$0xff]  ;;  %12972 = vmatpush3.bf16.msra.mxu1 %v12971_v24 }
 0x186   :  { %v24058_v19 = vand.u32 4294901760, %v16402_v26  ;;  %v24060_v3 = vand.u32 4294901760, %v16424_v18  ;;  %v24062_v56 = vand.u32 4294901760, %v16426_v63  ;;  %v13205_v52 = vpack.c.bf16 %v16682_v15, %v16659_v34  ;;  %13204 = vmatpush3.bf16.msra.mxu0 %v13203_v22  ;;  %12974 = vmatprep.subr.bf16.mxu1 %v12973_v20 }
 0x187   :  { %v12975_v7 = vpack.c.bf16 %v1770_v47, %v1763_v61  ;;  %v13207_v41 = vpack.c.bf16 %v16692_v42, %v16687_v31  ;;  %v1777_v23 = vand.u32 4294901760, %v1776_v46  ;;  %v1903_v10 = vand.u32 4294901760, %v1902_v14  ;;  %v24068_v61 = vld [vmem:[#allocation88_spill] sm:$0xff] }
 0x188   :  { %v16718_v40 = vsub.f32 %v16402_v26, %v24058_v19  ;;  %v16723_v17 = vsub.f32 %v16424_v18, %v24060_v3  ;;  %v16728_v9 = vsub.f32 %v16426_v63, %v24062_v56  ;;  %v24064_v26 = vld [vmem:[#allocation86_spill] sm:$0xff]  ;;  %v24067_v18 = vand.u32 4294901760, %v24066_v49  ;;  %v24070_v3 = vld [vmem:[#allocation89_spill] sm:$0xff]  ;;  %13206 = vmatprep.subr.bf16.mxu0 %v13205_v52 }
 0x189   :  { %v24065_v4 = vand.u32 4294901760, %v24064_v26  ;;  %v1784_v63 = vand.u32 4294901760, %v1783_v1  ;;  %v1910_v2 = vand.u32 4294901760, %v1909_v30  ;;  %v12977_v8 = vpack.c.bf16 %v1896_v53, %v1889_v28  ;;  %12976 = vmatpush3.bf16.msra.mxu1 %v12975_v7 }
 0x18a   :  { %24059 = vst [vmem:[#allocation63_spill] sm:$0xff] %v16718_v40  ;;  %24061 = vst [vmem:[#allocation13_spill] sm:$0xff] %v16723_v17  ;;  %v1797_v60 = vsub.f32 %v24066_v49, %v24067_v18  ;;  %v24069_v47 = vand.u32 4294901760, %v24068_v61  ;;  %v24071_v56 = vand.u32 4294901760, %v24070_v3  ;;  %v24074_v24 = vand.u32 4294901760, %v16430_v37  ;;  %13208 = vmatpush3.bf16.msra.mxu0 %v13207_v41 }
 0x18b   :  { %24063 = vst [vmem:[#allocation14_spill] sm:$0xff] %v16728_v9  ;;  %v1790_v32 = vsub.f32 %v24064_v26, %v24065_v4  ;;  %v24072_v4 = vand.u32 4294901760, %v16428_v0  ;;  %v24076_v1 = vand.u32 4294901760, %v16455_v36  ;;  %v13209_v30 = vpack.c.bf16 %v16718_v40, %v16699_v57  ;;  %12978 = vmatprep.subr.bf16.mxu1 %v12977_v8 }
 0x18c   :  { %v1916_v19 = vsub.f32 %v24068_v61, %v24069_v47  ;;  %v1923_v26 = vsub.f32 %v24070_v3, %v24071_v56  ;;  %v16754_v46 = vsub.f32 %v16430_v37, %v24074_v24  ;;  %v24078_v22 = vand.u32 4294901760, %v16457_v55  ;;  %v24080_v61 = vld [vmem:[#allocation90_spill] sm:$0xff]  ;;  %v24082_v47 = vld [vmem:[#allocation91_spill] sm:$0xff] }
 0x18d   :  { %v16749_v49 = vsub.f32 %v16428_v0, %v24072_v4  ;;  %v16759_v14 = vsub.f32 %v16455_v36, %v24076_v1  ;;  %v13211_v0 = vpack.c.bf16 %v16728_v9, %v16723_v17  ;;  %v1791_v28 = vand.u32 4294901760, %v1790_v32  ;;  %13210 = vmatprep.subr.bf16.mxu0 %v13209_v30 }
 0x18e   :  { %24075 = vst [vmem:[#allocation15_spill] sm:$0xff] %v16754_v46  ;;  %v16766_v20 = vsub.f32 %v16457_v55, %v24078_v22  ;;  %v1798_v37 = vand.u32 4294901760, %v1797_v60  ;;  %v12979_v53 = vpack.c.bf16 %v1784_v63, %v1777_v23  ;;  %v12981_v18 = vpack.c.bf16 %v1910_v2, %v1903_v10  ;;  %v24084_v60 = vld [vmem:[#allocation20_spill] sm:$0xff] }
 0x18f   :  { %24073 = vst [vmem:[#allocation67_spill] sm:$0xff] %v16749_v49  ;;  %24077 = vst [vmem:[#allocation16_spill] sm:$0xff] %v16759_v14  ;;  %v24081_v36 = vand.u32 4294901760, %v24080_v61  ;;  %v24083_v3 = vand.u32 4294901760, %v24082_v47  ;;  %v1917_v55 = vand.u32 4294901760, %v1916_v19  ;;  %v1924_v4 = vand.u32 4294901760, %v1923_v26  ;;  %13212 = vmatpush3.bf16.msra.mxu0 %v13211_v0 }
 0x190   :  { %24079 = vst [vmem:[#allocation42_spill] sm:$0xff] %v16766_v20  ;;  %v22759_v24 = vand.u32 4294901760, %v16477_v43  ;;  %v22758_v32 = vand.u32 4294901760, %v16482_v45  ;;  %v13213_v7 = vpack.c.bf16 %v16754_v46, %v16749_v49  ;;  %v24085_v23 = vand.u32 4294901760, %v24084_v60  ;;  %v24086_v10 = vld [vmem:[#allocation92_spill] sm:$0xff]  ;;  %12980 = vmatpush3.bf16.msra.mxu1 %v12979_v53 }
 0x191   :  { %v1804_v52 = vsub.f32 %v24080_v61, %v24081_v36  ;;  %v1811_v56 = vsub.f32 %v24082_v47, %v24083_v3  ;;  %v24087_v2 = vand.u32 4294901760, %v24086_v10  ;;  %v12983_v41 = vpack.c.bf16 %v1798_v37, %v1791_v28  ;;  %v24088_v22 = vld [vmem:[#allocation24_spill] sm:$0xff]  ;;  %v24090_v36 = vld [vmem:[#allocation22_spill] sm:$0xff]  ;;  %12982 = vmatprep.subr.bf16.mxu1 %v12981_v18 }
 0x192   :  { %v1930_v63 = vsub.f32 %v24084_v60, %v24085_v23  ;;  %v13215_v8 = vpack.c.bf16 %v16766_v20, %v16759_v14  ;;  %v24089_v30 = vand.u32 4294901760, %v24088_v22  ;;  %v24091_v47 = vand.u32 4294901760, %v24090_v36  ;;  %13214 = vmatprep.subr.bf16.mxu0 %v13213_v7 }
 0x193   :  { %v1937_v1 = vsub.f32 %v24086_v10, %v24087_v2  ;;  %v1805_v19 = vand.u32 4294901760, %v1804_v52  ;;  %v1812_v26 = vand.u32 4294901760, %v1811_v56  ;;  %v12985_v60 = vpack.c.bf16 %v1924_v4, %v1917_v55 }
 0x194   :  { %v1818_v61 = vsub.f32 %v24088_v22, %v24089_v30  ;;  %v1825_v3 = vsub.f32 %v24090_v36, %v24091_v47  ;;  %v13249_v28 = vpack.c.bf16 %v22758_v32, %v22759_v24  ;;  %v22757_v37 = vand.u32 4294901760, %v16495_v16  ;;  %12984 = vmatpush3.bf16.msra.mxu1 %v12983_v41  ;;  %13216 = vmatpush3.bf16.msra.mxu0 %v13215_v8  ;;  %v24093_v30 = vld [vmem:[#allocation56_spill] sm:$0xff] }
 0x195   :  { %v22752_v53 = vand.u32 4294901760, %v16500_v39  ;;  %v1931_v52 = vand.u32 4294901760, %v1930_v63  ;;  %v1938_v56 = vand.u32 4294901760, %v1937_v1  ;;  %v22751_v23 = vand.u32 4294901760, %v16505_v12  ;;  %12986 = vmatprep.subr.bf16.mxu1 %v12985_v60  ;;  %v24092_v63 = vld [vmem:[#allocation53_spill] sm:$0xff] }
 0x196   :  { %v22750_v10 = vand.u32 4294901760, %v16510_v58  ;;  %v12987_v0 = vpack.c.bf16 %v1812_v26, %v1805_v19  ;;  %v1819_v18 = vand.u32 4294901760, %v1818_v61  ;;  %v1826_v55 = vand.u32 4294901760, %v1825_v3  ;;  %13250 = vmatprep.subr.bf16.mxu0 %v13249_v28  ;;  %v24094_v61 = vld [vmem:[#allocation27_spill] sm:$0xff] }
 0x197   :  { %v13251_v4 = vpack.c.bf16 %v22752_v53, %v22757_v37  ;;  %v22747_v2 = vand.u32 4294901760, %v16530_v11  ;;  %v22746_v7 = vand.u32 4294901760, %v16535_v27  ;;  %v96_v1 = vadd.s32 896, %v24092_v63  ;;  %2943 = vmatmul.mubr.f32.vlgmr.msra.gmra.mrb[10].mxu0 %v16461_v29  ;;  %v24106_v53 = vld [vmem:[#allocation65_spill] sm:$0xff] }
 0x198   :  { %v12989_v22 = vpack.c.bf16 %v1938_v56, %v1931_v52  ;;  %v13253_v41 = vpack.c.bf16 %v22750_v10, %v22751_v23  ;;  %v22745_v8 = vand.u32 4294901760, %v16546_v62  ;;  %v22742_v19 = vand.u32 4294901760, %v16551_v6  ;;  %12988 = vmatpush3.bf16.msra.mxu1 %v12987_v0  ;;  %3217 = vmatprep.mubr.f32.mxu0 %v24094_v61  ;;  %v24095_v56 = vld [vmem:[#allocation54_spill] sm:$0xff]  ;;  %v24096_v0 = vld [vmem:[#allocation51_spill] sm:$0xff]  ;;  %v24108_v37 = vld [vmem:[#allocation69_spill] sm:$0xff] }
 0x199   :  { %v12991_v26 = vpack.c.bf16 %v1826_v55, %v1819_v18  ;;  %vm145_vm2 = vcmp.eq.s32.totalorder %v96_v1, %v24093_v30  ;;  %13252 = vmatpush3.bf16.msra.mxu0 %v13251_v4  ;;  %v13255_v36 = vpack.c.bf16 %v22746_v7, %v22747_v2  ;;  %v22744_v47 = vand.u32 4294901760, %v16562_v50  ;;  %v24102_v7 = vld [vmem:[#allocation68_spill] sm:$0xff]  ;;  %v24104_v2 = vld [vmem:[#allocation62_spill] sm:$0xff] }
 0x19a   :  { %v22743_v3 = vand.u32 4294901760, %v16567_v54  ;;  %12990 = vmatprep.subr.bf16.mxu1 %v12989_v22  ;;  %13254 = vmatprep.subr.bf16.mxu0 %v13253_v41  ;;  %v13257_v60 = vpack.c.bf16 %v22742_v19, %v22745_v8  ;;  %v22749_v28 = vand.u32 4294901760, %v16572_v38  ;;  %v22748_v52 = vand.u32 4294901760, %v16588_v35  ;;  %v24097_v22 = vld [vmem:[#allocation55_spill] sm:$0xff]  ;;  %v24098_v19 = vld [vmem:[#allocation57_spill] sm:$0xff]  ;;  %v24101_v8 = vld [vmem:[#allocation60_spill] sm:$0xff] }
 0x19b   :  { %vm120_vm3 = vcmp.eq.s32.totalorder %v96_v1, %v24095_v56  ;;  %v22754_v55 = vand.u32 4294901760, %v16593_v21  ;;  %v22753_v4 = vand.u32 4294901760, %v16600_v13  ;;  %vm191_vm5 = vcmp.eq.s32.totalorder %v96_v1, %v24097_v22  ;;  %v24105_v23 = vld [vmem:[#allocation58_spill] sm:$0xff]  ;;  %v17023_v61 = vld [vmem:[#allocation2 + $0x3c0] sm:$0xff] }
 0x19c   :  { %vm166_vm4 = vmor %vm120_vm3, %vm145_vm2  ;;  %12992 = vmatpush3.bf16.msra.mxu1 %v12991_v26  ;;  %v13259_v18 = vpack.c.bf16 %v22743_v3, %v22744_v47  ;;  %v13261_v41 = vpack.c.bf16 %v22748_v52, %v22749_v28  ;;  %v22756_v26 = vand.u32 4294901760, %v16621_v5  ;;  %vm237_vm7 = vcmp.eq.s32.totalorder %v96_v1, %v24098_v19  ;;  %v24099_v3 = vld [vmem:[#allocation75_spill] sm:$0xff]  ;;  %v17058_v35 = vld [vmem:[#allocation2 + $0x340] sm:$0xff] }
 0x19d   :  { %13256 = vmatpush3.bf16.msra.mxu0 %v13255_v36  ;;  %13026 = vmatprep.subr.bf16.mxu1 %v24096_v0  ;;  %v22755_v36 = vand.u32 4294901760, %v16626_v51  ;;  %vm212_vm6 = vmor %vm166_vm4, %vm191_vm5  ;;  %v24100_v47 = vld [vmem:[#allocation59_spill] sm:$0xff]  ;;  %v13263_v52 = vpack.c.bf16 %v22753_v4, %v22754_v55  ;;  %v22761_v28 = vand.u32 4294901760, %v16649_v59  ;;  %v22760_v10 = vand.u32 4294901760, %v16654_v33  ;;  %v24107_v4 = vld [vmem:[#allocation66_spill] sm:$0xff] }
 0x19e   :  { %13258 = vmatprep.subr.bf16.mxu0 %v13257_v60  ;;  %vm283_vm8 = vcmp.eq.s32.totalorder %v96_v1, %v24100_v47  ;;  %v24103_v60 = vand.u32 4294901760, %v24102_v7  ;;  %vm258_vm9 = vmor %vm212_vm6, %vm237_vm7  ;;  %vm329_vm11 = vcmp.eq.s32.totalorder %v96_v1, %v24105_v23  ;;  %v22769_v55 = vand.u32 4294901760, %v16687_v31  ;;  %v16898_v31 = vld [vmem:[#allocation2 + $0x388] sm:$0xff]  ;;  %v16980_v51 = vld [vmem:[#allocation2 + $0x320] sm:$0xff] }
 0x19f   :  { %1943 = vmatmul.mubr.f32.vlgmr.msra.gmra.mrb[10].mxu1 %v24099_v3  ;;  %v13265_v7 = vpack.c.bf16 %v22755_v36, %v22756_v26  ;;  %vm304_vm10 = vmor %vm258_vm9, %vm283_vm8  ;;  %v22768_v36 = vand.u32 4294901760, %v16692_v42  ;;  %v22770_v26 = vand.u32 4294901760, %v16718_v40  ;;  %v24109_v32 = vmov 0.0   ;;  %v16918_v42 = vld [vmem:[#allocation2 + $0x300] sm:$0xff] }
 0x1a0   :  { %13028 = vmatpush3.bf16.msra.mxu1 %v24101_v8  ;;  %2185 = vmatprep.mubr.f32.mxu1 %v24103_v60  ;;  %v22762_v60 = vand.u32 4294901760, %v16682_v15  ;;  %vm350_vm12 = vmor %vm304_vm10, %vm329_vm11  ;;  %v22784_v29 = vand.u32 4294901760, %v16749_v49  ;;  %v24120_v49 = vand.u32 4294901760, %v16896_v25 }
 0x1a1   :  { %13260 = vmatpush3.bf16.msra.mxu0 %v13259_v18  ;;  %13030 = vmatprep.subr.bf16.mxu1 %v24104_v2  ;;  %v22763_v18 = vand.u32 4294901760, %v16659_v34  ;;  %v16881_v24 = vsel %vm350_vm12, 1.0, %v24109_v32  ;;  %v16946_v34 = vld [vmem:[#allocation2 + $0x310] sm:$0xff] }
 0x1a2   :  { %13262 = vmatprep.subr.bf16.mxu0 %v13261_v41  ;;  %v13267_v41 = vpack.c.bf16 %v22760_v10, %v22761_v28  ;;  %24110 = vst [vmem:[#allocation43_spill] sm:$0xff] %v16881_v24  ;;  %v24111_v10 = vld [vmem:[#allocation70_spill] sm:$0xff]  ;;  %v22783_v28 = vand.u32 4294901760, %v16723_v17 }
 0x1a3   :  { %v13269_v1 = vpack.c.bf16 %v22762_v60, %v22763_v18  ;;  %v22782_v60 = vand.u32 4294901760, %v16728_v9  ;;  %v16920_v17 = vld [vmem:[#allocation2 + $0x308] sm:$0xff]  ;;  %v24121_v9 = vand.u32 4294901760, %v16898_v31 }
 0x1a4   :  { %13032 = vmatpush3.bf16.msra.mxu1 %v24106_v53 }
 0x1a5   :  { %13264 = vmatpush3.bf16.msra.mxu0 %v13263_v52  ;;  %13034 = vmatprep.subr.bf16.mxu1 %v24107_v4  ;;  %v22771_v52 = vand.u32 4294901760, %v16699_v57  ;;  %v16942_v15 = vpack.c.bf16 %v24121_v9, %v24120_v49  ;;  %v24124_v9 = vld [vmem:[#allocation76_spill] sm:$0xff]  ;;  %v24125_v49 = vld [vmem:[#allocation77_spill] sm:$0xff] }
 0x1a6   :  { %13266 = vmatprep.subr.bf16.mxu0 %v13265_v7  ;;  %v13271_v7 = vpack.c.bf16 %v22768_v36, %v22769_v55  ;;  %v16902_v36 = vsub.f32 %v16881_v24, %v16881_v24  ;;  %v24113_v55 = vld [vmem:[#allocation71_spill] sm:$0xff]  ;;  %v24115_v24 = vand.u32 4294901760, %v16754_v46  ;;  %v22808_v46 = vand.u32 4294901760, %v16918_v42 }
 0x1a7   :  { %v13273_v18 = vpack.c.bf16 %v22770_v26, %v22771_v52  ;;  %v13275_v26 = vpack.c.bf16 %v22782_v60, %v22783_v28  ;;  %v16923_v28 = vld [vmem:[#allocation2 + $0x390] sm:$0xff]  ;;  %v16925_v52 = vld [vmem:[#allocation2 + $0x398] sm:$0xff]  ;;  %24122 = vst [vmem:[#allocation83_spill] sm:$0xff] %v16942_v15  ;;  %v16957_v60 = vld [vmem:[#allocation2 + $0x3a8] sm:$0xff] }
 0x1a8   :  { %13036 = vmatpush3.bf16.msra.mxu1 %v24108_v37  ;;  %24112 = vst [vmem:[#allocation82_spill] sm:$0xff] %v16902_v36  ;;  %v13277_v40 = vpack.c.bf16 %v24115_v24, %v22784_v29  ;;  %v24117_v24 = vld [vmem:[#allocation74_spill] sm:$0xff]  ;;  %v24118_v29 = vand.u32 4294901760, %v16759_v14  ;;  %v16948_v14 = vld [vmem:[#allocation2 + $0x318] sm:$0xff] }
 0x1a9   :  { %13268 = vmatpush3.bf16.msra.mxu0 %v13267_v41  ;;  %13038 = vmatprep.subr.bf16.mxu1 %v24111_v10  ;;  %v16929_v41 = vadd.s32 768, %v24092_v63  ;;  %v24126_v63 = vand.u32 4294901760, %v16920_v17  ;;  %v24135_v59 = vand.u32 4294901760, %v16948_v14 }
 0x1aa   :  { %13270 = vmatprep.subr.bf16.mxu0 %v13269_v1  ;;  %v24114_v1 = vld [vmem:[#allocation72_spill] sm:$0xff] }
 0x1ab   :  { %vm144_vm13 = vcmp.eq.s32.totalorder %v16929_v41, %v24093_v30  ;;  %vm119_vm14 = vcmp.eq.s32.totalorder %v16929_v41, %v24095_v56  ;;  %v24129_v56 = vand.u32 4294901760, %v16925_v52  ;;  %v16986_v30 = vld [vmem:[#allocation2 + $0x3b8] sm:$0xff]  ;;  %vm190_vm0 = vcmp.eq.s32.totalorder %v16929_v41, %v24097_v22 }
 0x1ac   :  { %13040 = vmatpush3.bf16.msra.mxu1 %v24113_v55  ;;  %vm165_vm15 = vmor %vm119_vm14, %vm144_vm13  ;;  %vm236_vm2 = vcmp.eq.s32.totalorder %v16929_v41, %v24098_v19  ;;  %vm282_vm3 = vcmp.eq.s32.totalorder %v16929_v41, %v24100_v47  ;;  %v24137_v22 = vld [vmem:[#allocation80_spill] sm:$0xff]  ;;  %v17025_v47 = vld [vmem:[#allocation2 + $0x3c8] sm:$0xff]  ;;  %vm328_vm6 = vcmp.eq.s32.totalorder %v16929_v41, %v24105_v23  ;;  %v24148_v21 = vand.u32 4294901760, %v16986_v30 }
 0x1ad   :  { %13272 = vmatpush3.bf16.msra.mxu0 %v13271_v7  ;;  %13042 = vmatprep.subr.bf16.mxu1 %v24114_v1  ;;  %v24119_v7 = vand.u32 4294901760, %v16766_v20  ;;  %v24128_v20 = vand.u32 4294901760, %v16923_v28  ;;  %vm16992_vm1 = vmor %vm165_vm15, %vm190_vm0  ;;  %v17064_v19 = vld [vmem:[#allocation2 + $0x3d0] sm:$0xff]  ;;  %v17101_v41 = vld [vmem:[#allocation2 + $0x3e0] sm:$0xff] }
 0x1ae   :  { %13274 = vmatprep.subr.bf16.mxu0 %v13273_v18  ;;  %v24116_v18 = vld [vmem:[#allocation73_spill] sm:$0xff]  ;;  %vm257_vm4 = vmor %vm16992_vm1, %vm236_vm2 }
 0x1af   :  { %v13279_v57 = vpack.c.bf16 %v24119_v7, %v24118_v29  ;;  %v24123_v29 = vand.u32 4294901760, %v16902_v36  ;;  %v16955_v7 = vld [vmem:[#allocation2 + $0x3a0] sm:$0xff]  ;;  %vm17033_vm5 = vmor %vm257_vm4, %vm282_vm3 }
 0x1b0   :  { %13044 = vmatpush3.bf16.msra.mxu1 %v24116_v18  ;;  %vm349_vm7 = vmor %vm17033_vm5, %vm328_vm6 }
 0x1b1   :  { %13276 = vmatpush3.bf16.msra.mxu0 %v13275_v26  ;;  %13046 = vmatprep.subr.bf16.mxu1 %v24117_v24  ;;  %v16967_v26 = vpack.c.bf16 %v24126_v63, %v22808_v46  ;;  %v16982_v63 = vld [vmem:[#allocation2 + $0x328] sm:$0xff] }
 0x1b2   :  { %13278 = vmatprep.subr.bf16.mxu0 %v13277_v40  ;;  %v3427_v40 = vsub.f32 %v16902_v36, %v24123_v29  ;;  %v16984_v29 = vld [vmem:[#allocation2 + $0x3b0] sm:$0xff] }
 0x1b3   :  { %24127 = vst [vmem:[#allocation84_spill] sm:$0xff] %v16967_v26  ;;  %v24147_v13 = vand.u32 4294901760, %v16984_v29 }
 0x1b4   :  { %13048 = vmatpush3.bf16.msra.mxu1 %v24124_v9  ;;  %v3428_v46 = vand.u32 4294901760, %v3427_v40  ;;  %v24134_v40 = vand.u32 4294901760, %v16946_v34 }
 0x1b5   :  { %13280 = vmatpush3.bf16.msra.mxu0 %v13279_v57  ;;  %13050 = vmatprep.subr.bf16.mxu1 %v24125_v49  ;;  %v16976_v57 = vpack.c.bf16 %v24129_v56, %v24128_v20  ;;  %v24131_v20 = vld [vmem:[#allocation79_spill] sm:$0xff]  ;;  %v17054_v3 = vpack.c.bf16 %v24148_v21, %v24147_v13 }
 0x1b6   :  { %13314 = vmatprep.subr.bf16.mxu0 %v16942_v15  ;;  %v17003_v33 = vpack.c.bf16 %v24135_v59, %v24134_v40  ;;  %v17019_v15 = vld [vmem:[#allocation2 + $0x330] sm:$0xff]  ;;  %v24144_v40 = vand.u32 4294901760, %v16980_v51  ;;  %v24145_v59 = vand.u32 4294901760, %v16982_v63 }
 0x1b7   :  { %24130 = vst [vmem:[#allocation85_spill] sm:$0xff] %v16976_v57  ;;  %24149 = vst [vmem:[#allocation89_spill] sm:$0xff] %v17054_v3  ;;  %v24153_v21 = vand.u32 4294901760, %v17019_v15 }
 0x1b8   :  { %3219 = vmatmul.mubr.f32.vlgmr.msra.gmra.mrb[12].mxu0 %v16433_v44  ;;  %13052 = vmatpush3.bf16.msra.mxu1 %v24131_v20  ;;  %24136 = vst [vmem:[#allocation86_spill] sm:$0xff] %v17003_v33  ;;  %v17021_v44 = vld [vmem:[#allocation2 + $0x338] sm:$0xff] }
 0x1b9   :  { %13316 = vmatpush3.bf16.msra.mxu0 %v16967_v26  ;;  %3429 = vmatprep.mubr.f32.mxu0 %v3428_v46  ;;  %v24138_v26 = vand.u32 4294901760, %v16955_v7  ;;  %v24139_v46 = vand.u32 4294901760, %v16957_v60  ;;  %v24154_v13 = vand.u32 4294901760, %v17021_v44 }
 0x1ba   :  { %13054 = vmatprep.subr.bf16.mxu1 %v24137_v22  ;;  %13318 = vmatprep.subr.bf16.mxu0 %v16976_v57  ;;  %v17045_v57 = vpack.c.bf16 %v24145_v59, %v24144_v40  ;;  %v17060_v59 = vld [vmem:[#allocation2 + $0x348] sm:$0xff] }
 0x1bb   :  { %v17015_v5 = vpack.c.bf16 %v24139_v46, %v24138_v26  ;;  %v24141_v26 = vld [vmem:[#allocation81_spill] sm:$0xff]  ;;  %v24150_v40 = vld [vmem:[#allocation78_spill] sm:$0xff] }
 0x1bc   :  { %13056 = vmatpush3.bf16.msra.mxu1 %v24141_v26  ;;  %24146 = vst [vmem:[#allocation88_spill] sm:$0xff] %v17045_v57  ;;  %v24151_v56 = vand.u32 4294901760, %v24150_v40  ;;  %v17094_v46 = vld [vmem:[#allocation2 + $0x350] sm:$0xff]  ;;  %v17103_v40 = vld [vmem:[#allocation2 + $0x3e8] sm:$0xff] }
 0x1bd   :  { %24140 = vst [vmem:[#allocation87_spill] sm:$0xff] %v17015_v5  ;;  %13320 = vmatpush3.bf16.msra.mxu0 %v17003_v33  ;;  %13090 = vmatprep.subr.bf16.mxu1 %v24096_v0  ;;  %v22833_v0 = vand.u32 4294901760, %v17023_v61  ;;  %v22832_v33 = vand.u32 4294901760, %v17025_v47  ;;  %24157 = vst [vmem:[#allocation92_spill] sm:$0xff] %v17094_v46 }
 0x1be   :  { %13322 = vmatprep.subr.bf16.mxu0 %v17015_v5  ;;  %v17066_v5 = vld [vmem:[#allocation2 + $0x3d8] sm:$0xff] }
 0x1bf   :  { %2189 = vmatmul.mubr.f32.vlgmr.msra.gmra.mrb[12].mxu1 %v24151_v56  ;;  %24152 = vst [vmem:[#allocation90_spill] sm:$0xff] %v17066_v5  ;;  %v17081_v56 = vpack.c.bf16 %v24154_v13, %v24153_v21  ;;  %v17096_v21 = vld [vmem:[#allocation2 + $0x358] sm:$0xff]  ;;  %v17099_v13 = vsel %vm349_vm7, 1.0, %v24109_v32 }
 0x1c0   :  { %13092 = vmatpush3.bf16.msra.mxu1 %v24101_v8  ;;  %2459 = vmatprep.mubr.f32.mxu1 %v24035_v48  ;;  %v17090_v48 = vpack.c.bf16 %v22832_v33, %v22833_v0  ;;  %24158 = vst [vmem:[#allocation24_spill] sm:$0xff] %v17096_v21  ;;  %24159 = vst [vmem:[#allocation22_spill] sm:$0xff] %v17099_v13  ;;  %v24160_v33 = vand.u32 4294901760, %v17058_v35  ;;  %v24161_v0 = vand.u32 4294901760, %v17060_v59 }
 0x1c1   :  { %13324 = vmatpush3.bf16.msra.mxu0 %v17045_v57  ;;  %13094 = vmatprep.subr.bf16.mxu1 %v24104_v2  ;;  %24155 = vst [vmem:[#allocation91_spill] sm:$0xff] %v17081_v56  ;;  %v17118_v57 = vsub.f32 %v17099_v13, %v17099_v13  ;;  %v17131_v2 = vld [vmem:[#allocation2 + $0x368] sm:$0xff]  ;;  %v17135_v13 = vld [vmem:[#allocation2 + $0x3f8] sm:$0xff] }
 0x1c2   :  { %13326 = vmatprep.subr.bf16.mxu0 %v17054_v3  ;;  %24156 = vst [vmem:[#allocation20_spill] sm:$0xff] %v17090_v48  ;;  %v17112_v8 = vpack.c.bf16 %v24161_v0, %v24160_v33  ;;  %v17129_v0 = vld [vmem:[#allocation2 + $0x360] sm:$0xff]  ;;  %v17133_v3 = vld [vmem:[#allocation2 + $0x3f0] sm:$0xff]  ;;  %v17160_v33 = vld [vmem:[#allocation2 + $0x378] sm:$0xff] }
 0x1c3   :  { %24163 = vst [vmem:[#allocation60_spill] sm:$0xff] %v17118_v57 }
 0x1c4   :  { %13096 = vmatpush3.bf16.msra.mxu1 %v24106_v53  ;;  %24162 = vst [vmem:[#allocation51_spill] sm:$0xff] %v17112_v8  ;;  %v24164_v53 = vand.u32 4294901760, %v17064_v19 }
 0x1c5   :  { %13328 = vmatpush3.bf16.msra.mxu0 %v17081_v56  ;;  %13098 = vmatprep.subr.bf16.mxu1 %v24107_v4  ;;  %v24165_v4 = vand.u32 4294901760, %v17066_v5  ;;  %v10393_v5 = vpop.f32.mrb[0].mxu0 }
 0x1c6   :  { %13330 = vmatprep.subr.bf16.mxu0 %v17090_v48  ;;  %v10394_v48 = vpop.f32.mrb[1].mxu0 }
 0x1c7   :  { %v17125_v56 = vpack.c.bf16 %v24165_v4, %v24164_v53  ;;  %v24167_v53 = vand.u32 4294901760, %v17094_v46  ;;  %v24168_v4 = vand.u32 4294901760, %v17096_v21  ;;  %v17162_v21 = vadd.f32 %v10394_v48, %v10393_v5 }
 0x1c8   :  { %13100 = vmatpush3.bf16.msra.mxu1 %v24108_v37  ;;  %v24170_v37 = vand.u32 4294901760, %v17101_v41 }
 0x1c9   :  { %24166 = vst [vmem:[#allocation68_spill] sm:$0xff] %v17125_v56  ;;  %13332 = vmatpush3.bf16.msra.mxu0 %v17112_v8  ;;  %13102 = vmatprep.subr.bf16.mxu1 %v24111_v10  ;;  %v17144_v32 = vpack.c.bf16 %v24168_v4, %v24167_v53  ;;  %v24171_v8 = vand.u32 4294901760, %v17103_v40  ;;  %v17158_v4 = vld [vmem:[#allocation2 + $0x370] sm:$0xff]  ;;  %24173 = vst [vmem:[#allocation66_spill] sm:$0xff] %v17162_v21 }
 0x1ca   :  { %13334 = vmatprep.subr.bf16.mxu0 %v17125_v56  ;;  %v24177_v56 = vand.u32 4294901760, %v17118_v57 }
 0x1cb   :  { %24169 = vst [vmem:[#allocation62_spill] sm:$0xff] %v17144_v32  ;;  %v17154_v10 = vpack.c.bf16 %v24171_v8, %v24170_v37  ;;  %v24174_v8 = vand.u32 4294901760, %v17129_v0  ;;  %v24175_v37 = vand.u32 4294901760, %v17131_v2 }
 0x1cc   :  { %13104 = vmatpush3.bf16.msra.mxu1 %v24113_v55  ;;  %v3433_v5 = vsub.f32 %v17118_v57, %v24177_v56  ;;  %v24178_v55 = vand.u32 4294901760, %v16896_v25  ;;  %v24183_v56 = vand.u32 4294901760, %v16918_v42 }
 0x1cd   :  { %24172 = vst [vmem:[#allocation65_spill] sm:$0xff] %v17154_v10  ;;  %13336 = vmatpush3.bf16.msra.mxu0 %v17144_v32  ;;  %13106 = vmatprep.subr.bf16.mxu1 %v24114_v1  ;;  %v17171_v46 = vpack.c.bf16 %v24175_v37, %v24174_v8  ;;  %v24179_v1 = vand.u32 4294901760, %v16898_v31  ;;  %v24180_v8 = vand.u32 4294901760, %v17133_v3  ;;  %v24181_v37 = vand.u32 4294901760, %v17135_v13 }
 0x1ce   :  { %v17181_v48 = vsub.f32 %v16896_v25, %v24178_v55  ;;  %13338 = vmatprep.subr.bf16.mxu0 %v17154_v10  ;;  %v17198_v53 = vsub.f32 %v16918_v42, %v24183_v56  ;;  %v24184_v25 = vand.u32 4294901760, %v16920_v17  ;;  %v24186_v10 = vand.u32 4294901760, %v16925_v52 }
 0x1cf   :  { %24176 = vst [vmem:[#allocation69_spill] sm:$0xff] %v17171_v46  ;;  %v17186_v32 = vsub.f32 %v16898_v31, %v24179_v1  ;;  %v17193_v23 = vpack.c.bf16 %v24181_v37, %v24180_v8  ;;  %v24185_v31 = vand.u32 4294901760, %v16923_v28  ;;  %v24187_v42 = vand.u32 4294901760, %v17158_v4 }
 0x1d0   :  { %v17203_v55 = vsub.f32 %v16920_v17, %v24184_v25  ;;  %v17213_v8 = vsub.f32 %v16925_v52, %v24186_v10  ;;  %13108 = vmatpush3.bf16.msra.mxu1 %v24116_v18  ;;  %v24188_v17 = vand.u32 4294901760, %v17160_v33  ;;  %v3434_v56 = vand.u32 4294901760, %v3433_v5 }
 0x1d1   :  { %24182 = vst [vmem:[#allocation70_spill] sm:$0xff] %v17193_v23  ;;  %v17208_v1 = vsub.f32 %v16923_v28, %v24185_v31  ;;  %13340 = vmatpush3.bf16.msra.mxu0 %v17171_v46  ;;  %13110 = vmatprep.subr.bf16.mxu1 %v24117_v24  ;;  %v24190_v28 = vand.u32 4294901760, %v16477_v43  ;;  %v24191_v52 = vand.u32 4294901760, %v16482_v45  ;;  %v24192_v18 = vand.u32 4294901760, %v16946_v34 }
 0x1d2   :  { %v17222_v37 = vpack.c.bf16 %v24188_v17, %v24187_v42  ;;  %v24193_v24 = vand.u32 4294901760, %v16948_v14  ;;  %v24194_v5 = vand.u32 4294901760, %v16955_v7  ;;  %13342 = vmatprep.subr.bf16.mxu0 %v17193_v23  ;;  %v24195_v17 = vand.u32 4294901760, %v16957_v60 }
 0x1d3   :  { %v2694_v25 = vsub.f32 %v16477_v43, %v24190_v28  ;;  %v2701_v10 = vsub.f32 %v16482_v45, %v24191_v52  ;;  %v17233_v31 = vsub.f32 %v16946_v34, %v24192_v18  ;;  %v10253_v43 = vpop.f32.mrb[0].mxu1  ;;  %v13377_v45 = vpack.c.bf16 %v17186_v32, %v17181_v48 }
 0x1d4   :  { %24189 = vst [vmem:[#allocation71_spill] sm:$0xff] %v17222_v37  ;;  %v17238_v46 = vsub.f32 %v16948_v14, %v24193_v24  ;;  %v17243_v42 = vsub.f32 %v16955_v7, %v24194_v5  ;;  %v17251_v34 = vsub.f32 %v16957_v60, %v24195_v17  ;;  %v24196_v28 = vand.u32 4294901760, %v16980_v51  ;;  %v10254_v52 = vpop.f32.mrb[1].mxu1  ;;  %13112 = vmatpush3.bf16.msra.mxu1 %v24124_v9 }
 0x1d5   :  { %v24197_v7 = vand.u32 4294901760, %v16495_v16  ;;  %v24198_v24 = vand.u32 4294901760, %v16500_v39  ;;  %v24199_v23 = vand.u32 4294901760, %v16982_v63  ;;  %v17269_v60 = vadd.f32 %v10254_v52, %v10253_v43  ;;  %13344 = vmatpush3.bf16.msra.mxu0 %v17222_v37  ;;  %13114 = vmatprep.subr.bf16.mxu1 %v24125_v49 }
 0x1d6   :  { %v17256_v14 = vsub.f32 %v16980_v51, %v24196_v28  ;;  %v24200_v51 = vand.u32 4294901760, %v16505_v12  ;;  %v24201_v28 = vand.u32 4294901760, %v16510_v58  ;;  %v2695_v9 = vand.u32 4294901760, %v2694_v25  ;;  %13378 = vmatprep.subr.bf16.mxu0 %v13377_v45 }
 0x1d7   :  { %v2582_v18 = vsub.f32 %v16495_v16, %v24197_v7  ;;  %v2589_v5 = vsub.f32 %v16500_v39, %v24198_v24  ;;  %v17267_v21 = vsub.f32 %v16982_v63, %v24199_v23  ;;  %v24202_v7 = vand.u32 4294901760, %v16984_v29 }
 0x1d8   :  { %v2708_v17 = vsub.f32 %v16505_v12, %v24200_v51  ;;  %v2715_v16 = vsub.f32 %v16510_v58, %v24201_v28  ;;  %v13379_v23 = vpack.c.bf16 %v17203_v55, %v17198_v53  ;;  %v2702_v63 = vand.u32 4294901760, %v2701_v10  ;;  %3435 = vmatmul.mubr.f32.vlgmr.msra.gmra.mrb[14].mxu0 %v3434_v56  ;;  %13116 = vmatpush3.bf16.msra.mxu1 %v24131_v20 }
 0x1d9   :  { %v17281_v39 = vsub.f32 %v16984_v29, %v24202_v7  ;;  %v24204_v12 = vand.u32 4294901760, %v16986_v30  ;;  %v24206_v58 = vand.u32 4294901760, %v17019_v15  ;;  %v24208_v29 = vand.u32 4294901760, %v17021_v44  ;;  %3802 = vmatprep.mubr.f32.mxu0 %v16902_v36  ;;  %13118 = vmatprep.subr.bf16.mxu1 %v24137_v22  ;;  %v24274_v36 = vld [vmem:[#allocation63_spill] sm:$0xff] }
 0x1da   :  { %v13381_v49 = vpack.c.bf16 %v17213_v8, %v17208_v1  ;;  %v24210_v25 = vand.u32 4294901760, %v17023_v61  ;;  %v2583_v51 = vand.u32 4294901760, %v2582_v18  ;;  %v2709_v28 = vand.u32 4294901760, %v2708_v17  ;;  %13380 = vmatpush3.bf16.msra.mxu0 %v13379_v23 }
 0x1db   :  { %24203 = vst [vmem:[#allocation72_spill] sm:$0xff] %v17281_v39  ;;  %v17290_v43 = vsub.f32 %v16986_v30, %v24204_v12  ;;  %v17295_v52 = vsub.f32 %v17019_v15, %v24206_v58  ;;  %v17300_v24 = vsub.f32 %v17021_v44, %v24208_v29  ;;  %v13383_v30 = vpack.c.bf16 %v17238_v46, %v17233_v31 }
 0x1dc   :  { %v17307_v10 = vsub.f32 %v17023_v61, %v24210_v25  ;;  %v2590_v15 = vand.u32 4294901760, %v2589_v5  ;;  %v2716_v44 = vand.u32 4294901760, %v2715_v16  ;;  %v24212_v45 = vand.u32 4294901760, %v16530_v11  ;;  %13382 = vmatprep.subr.bf16.mxu0 %v13381_v49  ;;  %13120 = vmatpush3.bf16.msra.mxu1 %v24141_v26 }
 0x1dd   :  { %24205 = vst [vmem:[#allocation73_spill] sm:$0xff] %v17290_v43  ;;  %24207 = vst [vmem:[#allocation74_spill] sm:$0xff] %v17295_v52  ;;  %v24213_v12 = vand.u32 4294901760, %v16535_v27  ;;  %v13153_v61 = vpack.c.bf16 %v2702_v63, %v2695_v9  ;;  %v24214_v18 = vand.u32 4294901760, %v16546_v62  ;;  %v24215_v20 = vand.u32 4294901760, %v16551_v6 }
 0x1de   :  { %24209 = vst [vmem:[#allocation76_spill] sm:$0xff] %v17300_v24  ;;  %24211 = vst [vmem:[#allocation77_spill] sm:$0xff] %v17307_v10  ;;  %v2596_v7 = vsub.f32 %v16530_v11, %v24212_v45  ;;  %v24216_v17 = vand.u32 4294901760, %v17025_v47  ;;  %v24218_v16 = vand.u32 4294901760, %v17058_v35  ;;  %v24220_v23 = vand.u32 4294901760, %v17060_v59  ;;  %13384 = vmatpush3.bf16.msra.mxu0 %v13383_v30 }
 0x1df   :  { %v2603_v58 = vsub.f32 %v16535_v27, %v24213_v12  ;;  %v2722_v56 = vsub.f32 %v16546_v62, %v24214_v18  ;;  %v2729_v5 = vsub.f32 %v16551_v6, %v24215_v20  ;;  %v13385_v62 = vpack.c.bf16 %v17251_v34, %v17243_v42  ;;  %13154 = vmatprep.subr.bf16.mxu1 %v13153_v61 }
 0x1e0   :  { %v17328_v11 = vsub.f32 %v17025_v47, %v24216_v17  ;;  %v17333_v27 = vsub.f32 %v17058_v35, %v24218_v16  ;;  %v17341_v6 = vsub.f32 %v17060_v59, %v24220_v23  ;;  %v13387_v47 = vpack.c.bf16 %v17267_v21, %v17256_v14  ;;  %v24225_v17 = vld [vmem:[#allocation28_spill] sm:$0xff] }
 0x1e1   :  { %v24222_v9 = vand.u32 4294901760, %v16562_v50  ;;  %v24223_v35 = vand.u32 4294901760, %v16567_v54  ;;  %v13155_v29 = vpack.c.bf16 %v2590_v15, %v2583_v51  ;;  %v13157_v49 = vpack.c.bf16 %v2716_v44, %v2709_v28  ;;  %v24229_v51 = vld [vmem:[#allocation90_spill] sm:$0xff]  ;;  %v24232_v28 = vld [vmem:[#allocation92_spill] sm:$0xff]  ;;  %13386 = vmatprep.subr.bf16.mxu0 %v13385_v62  ;;  %v24241_v62 = vld [vmem:[#allocation37_spill] sm:$0xff] }
 0x1e2   :  { %24217 = vst [vmem:[#allocation79_spill] sm:$0xff] %v17328_v11  ;;  %24219 = vst [vmem:[#allocation80_spill] sm:$0xff] %v17333_v27  ;;  %v2597_v25 = vand.u32 4294901760, %v2596_v7  ;;  %v2604_v45 = vand.u32 4294901760, %v2603_v58  ;;  %v2723_v59 = vand.u32 4294901760, %v2722_v56  ;;  %v2730_v12 = vand.u32 4294901760, %v2729_v5  ;;  %13388 = vmatpush3.bf16.msra.mxu0 %v13387_v47 }
 0x1e3   :  { %24221 = vst [vmem:[#allocation81_spill] sm:$0xff] %v17341_v6  ;;  %v2610_v63 = vsub.f32 %v16562_v50, %v24222_v9  ;;  %v2617_v22 = vsub.f32 %v16567_v54, %v24223_v35  ;;  %v24224_v18 = vand.u32 4294901760, %v16572_v38  ;;  %v24226_v50 = vand.u32 4294901760, %v24225_v17  ;;  %v24235_v58 = vld [vmem:[#allocation75_spill] sm:$0xff] }
 0x1e4   :  { %v24227_v54 = vand.u32 4294901760, %v17064_v19  ;;  %v24230_v15 = vand.u32 4294901760, %v24229_v51  ;;  %v24233_v44 = vand.u32 4294901760, %v24232_v28  ;;  %2461 = vmatmul.mubr.f32.vlgmr.msra.gmra.mrb[14].mxu1 %v24235_v58  ;;  %v24238_v9 = vld [vmem:[#allocation35_spill] sm:$0xff] }
 0x1e5   :  { %v2736_v20 = vsub.f32 %v16572_v38, %v24224_v18  ;;  %v2743_v16 = vsub.f32 %v24225_v17, %v24226_v50  ;;  %v13389_v38 = vpack.c.bf16 %v17290_v43, %v17281_v39  ;;  %v2611_v61 = vand.u32 4294901760, %v2610_v63  ;;  %13156 = vmatpush3.bf16.msra.mxu1 %v13155_v29  ;;  %v24240_v17 = vld [vmem:[#allocation27_spill] sm:$0xff]  ;;  %v24245_v29 = vld [vmem:[#allocation24_spill] sm:$0xff] }
 0x1e6   :  { %v17361_v26 = vsub.f32 %v17064_v19, %v24227_v54  ;;  %v17366_v30 = vsub.f32 %v24229_v51, %v24230_v15  ;;  %v17371_v7 = vsub.f32 %v24232_v28, %v24233_v44  ;;  %v2618_v56 = vand.u32 4294901760, %v2617_v22  ;;  %v24236_v19 = vld [vmem:[#allocation32_spill] sm:$0xff]  ;;  %2803 = vmatprep.mubr.f32.mxu1 %v24240_v17  ;;  %13158 = vmatprep.subr.bf16.mxu1 %v13157_v49 }
 0x1e7   :  { %v24237_v5 = vand.u32 4294901760, %v24236_v19  ;;  %v24239_v35 = vand.u32 4294901760, %v24238_v9  ;;  %v13159_v50 = vpack.c.bf16 %v2604_v45, %v2597_v25  ;;  %v24242_v54 = vand.u32 4294901760, %v24241_v62  ;;  %v24243_v15 = vld [vmem:[#allocation40_spill] sm:$0xff]  ;;  %13390 = vmatprep.subr.bf16.mxu0 %v13389_v38 }
 0x1e8   :  { %24228 = vst [vmem:[#allocation78_spill] sm:$0xff] %v17361_v26  ;;  %24231 = vst [vmem:[#allocation28_spill] sm:$0xff] %v17366_v30  ;;  %v24244_v28 = vand.u32 4294901760, %v24243_v15  ;;  %v13391_v22 = vpack.c.bf16 %v17300_v24, %v17295_v52  ;;  %v13161_v44 = vpack.c.bf16 %v2730_v12, %v2723_v59  ;;  %v2737_v58 = vand.u32 4294901760, %v2736_v20 }
 0x1e9   :  { %24234 = vst [vmem:[#allocation90_spill] sm:$0xff] %v17371_v7  ;;  %v2624_v23 = vsub.f32 %v24236_v19, %v24237_v5  ;;  %v2631_v18 = vsub.f32 %v24238_v9, %v24239_v35  ;;  %v2750_v51 = vsub.f32 %v24241_v62, %v24242_v54  ;;  %v2744_v19 = vand.u32 4294901760, %v2743_v16  ;;  %13160 = vmatpush3.bf16.msra.mxu1 %v13159_v50 }
 0x1ea   :  { %v2757_v63 = vsub.f32 %v24243_v15, %v24244_v28  ;;  %v24246_v5 = vand.u32 4294901760, %v24245_v29  ;;  %v24248_v45 = vand.u32 4294901760, %v17101_v41  ;;  %v24250_v35 = vand.u32 4294901760, %v17103_v40  ;;  %13392 = vmatpush3.bf16.msra.mxu0 %v13391_v22  ;;  %13162 = vmatprep.subr.bf16.mxu1 %v13161_v44 }
 0x1eb   :  { %v13393_v49 = vpack.c.bf16 %v17328_v11, %v17307_v10  ;;  %v13163_v59 = vpack.c.bf16 %v2618_v56, %v2611_v61  ;;  %v13395_v12 = vpack.c.bf16 %v17341_v6, %v17333_v27  ;;  %v2625_v20 = vand.u32 4294901760, %v2624_v23  ;;  %v24256_v61 = vld [vmem:[#allocation49_spill] sm:$0xff]  ;;  %v24258_v23 = vld [vmem:[#allocation50_spill] sm:$0xff] }
 0x1ec   :  { %v17394_v25 = vsub.f32 %v24245_v29, %v24246_v5  ;;  %v17399_v9 = vsub.f32 %v17101_v41, %v24248_v45  ;;  %v17404_v47 = vsub.f32 %v17103_v40, %v24250_v35  ;;  %v2632_v16 = vand.u32 4294901760, %v2631_v18  ;;  %v24252_v41 = vld [vmem:[#allocation44_spill] sm:$0xff]  ;;  %v24254_v29 = vld [vmem:[#allocation47_spill] sm:$0xff] }
 0x1ed   :  { %v2751_v62 = vand.u32 4294901760, %v2750_v51  ;;  %v2758_v54 = vand.u32 4294901760, %v2757_v63  ;;  %v24253_v15 = vand.u32 4294901760, %v24252_v41  ;;  %v24255_v40 = vand.u32 4294901760, %v24254_v29  ;;  %13394 = vmatprep.subr.bf16.mxu0 %v13393_v49  ;;  %13164 = vmatpush3.bf16.msra.mxu1 %v13163_v59 }
 0x1ee   :  { %24247 = vst [vmem:[#allocation92_spill] sm:$0xff] %v17394_v25  ;;  %24249 = vst [vmem:[#allocation75_spill] sm:$0xff] %v17399_v9  ;;  %v13165_v5 = vpack.c.bf16 %v2744_v19, %v2737_v58  ;;  %v24257_v56 = vand.u32 4294901760, %v24256_v61  ;;  %v24259_v18 = vand.u32 4294901760, %v24258_v23  ;;  %v24260_v51 = vand.u32 4294901760, %v17129_v0  ;;  %13396 = vmatpush3.bf16.msra.mxu0 %v13395_v12 }
 0x1ef   :  { %24251 = vst [vmem:[#allocation32_spill] sm:$0xff] %v17404_v47  ;;  %v2638_v28 = vsub.f32 %v24252_v41, %v24253_v15  ;;  %v2645_v38 = vsub.f32 %v24254_v29, %v24255_v40  ;;  %v24262_v35 = vand.u32 4294901760, %v17131_v2  ;;  %v24264_v22 = vand.u32 4294901760, %v17133_v3  ;;  %v24268_v29 = vld [vmem:[#allocation52_spill] sm:$0xff] }
 0x1f0   :  { %v2764_v45 = vsub.f32 %v24256_v61, %v24257_v56  ;;  %v2771_v50 = vsub.f32 %v24258_v23, %v24259_v18  ;;  %v17425_v63 = vsub.f32 %v17129_v0, %v24260_v51  ;;  %v13397_v58 = vpack.c.bf16 %v17366_v30, %v17361_v26  ;;  %v24270_v61 = vld [vmem:[#allocation61_spill] sm:$0xff]  ;;  %13166 = vmatprep.subr.bf16.mxu1 %v13165_v5 }
 0x1f1   :  { %v17430_v41 = vsub.f32 %v17131_v2, %v24262_v35  ;;  %v17435_v44 = vsub.f32 %v17133_v3, %v24264_v22  ;;  %v24266_v19 = vand.u32 4294901760, %v17135_v13  ;;  %v13399_v0 = vpack.c.bf16 %v17394_v25, %v17371_v7  ;;  %v24272_v22 = vld [vmem:[#allocation38_spill] sm:$0xff]  ;;  %v24281_v5 = vld [vmem:[#allocation13_spill] sm:$0xff] }
 0x1f2   :  { %24261 = vst [vmem:[#allocation35_spill] sm:$0xff] %v17425_v63  ;;  %v24269_v2 = vand.u32 4294901760, %v24268_v29  ;;  %v24271_v56 = vand.u32 4294901760, %v24270_v61  ;;  %v13167_v49 = vpack.c.bf16 %v2632_v16, %v2625_v20  ;;  %v13169_v23 = vpack.c.bf16 %v2758_v54, %v2751_v62  ;;  %v10463_v20 = vpop.f32.mrb[2].mxu0  ;;  %13398 = vmatprep.subr.bf16.mxu0 %v13397_v58  ;;  %v24283_v58 = vld [vmem:[#allocation14_spill] sm:$0xff] }
 0x1f3   :  { %24263 = vst [vmem:[#allocation37_spill] sm:$0xff] %v17430_v41  ;;  %24265 = vst [vmem:[#allocation40_spill] sm:$0xff] %v17435_v44  ;;  %v17442_v15 = vsub.f32 %v17135_v13, %v24266_v19  ;;  %v2639_v18 = vand.u32 4294901760, %v2638_v28  ;;  %v2646_v51 = vand.u32 4294901760, %v2645_v38  ;;  %v2765_v13 = vand.u32 4294901760, %v2764_v45  ;;  %v10464_v54 = vpop.f32.mrb[3].mxu0  ;;  %13400 = vmatpush3.bf16.msra.mxu0 %v13399_v0 }
 0x1f4   :  { %v2652_v40 = vsub.f32 %v24268_v29, %v24269_v2  ;;  %v2659_v3 = vsub.f32 %v24270_v61, %v24271_v56  ;;  %v2772_v35 = vand.u32 4294901760, %v2771_v50  ;;  %v24273_v19 = vand.u32 4294901760, %v24272_v22  ;;  %13168 = vmatpush3.bf16.msra.mxu1 %v13167_v49 }
 0x1f5   :  { %24267 = vst [vmem:[#allocation24_spill] sm:$0xff] %v17442_v15  ;;  %v24275_v17 = vand.u32 4294901760, %v24274_v36  ;;  %v24276_v2 = vand.u32 4294901760, %v17158_v4  ;;  %v13401_v12 = vpack.c.bf16 %v17404_v47, %v17399_v9  ;;  %v24278_v16 = vand.u32 4294901760, %v17160_v33  ;;  %13170 = vmatprep.subr.bf16.mxu1 %v13169_v23 }
 0x1f6   :  { %v2778_v37 = vsub.f32 %v24272_v22, %v24273_v19  ;;  %v13403_v28 = vpack.c.bf16 %v17430_v41, %v17425_v63  ;;  %v17472_v38 = vadd.f32 %v10464_v54, %v10463_v20  ;;  %v24282_v45 = vand.u32 4294901760, %v24281_v5  ;;  %v24287_v20 = vld [vmem:[#allocation15_spill] sm:$0xff] }
 0x1f7   :  { %v2785_v29 = vsub.f32 %v24274_v36, %v24275_v17  ;;  %v17461_v59 = vsub.f32 %v17158_v4, %v24276_v2  ;;  %v17468_v62 = vsub.f32 %v17160_v33, %v24278_v16  ;;  %v2653_v36 = vand.u32 4294901760, %v2652_v40  ;;  %13402 = vmatprep.subr.bf16.mxu0 %v13401_v12  ;;  %v24289_v12 = vld [vmem:[#allocation16_spill] sm:$0xff] }
 0x1f8   :  { %v2660_v17 = vand.u32 4294901760, %v2659_v3  ;;  %24280 = vst [vmem:[#allocation49_spill] sm:$0xff] %v17472_v38  ;;  %v13171_v4 = vpack.c.bf16 %v2646_v51, %v2639_v18  ;;  %v2666_v50 = vsub.f32 %v24281_v5, %v24282_v45  ;;  %v24284_v61 = vand.u32 4294901760, %v24283_v58  ;;  %v24285_v51 = vld [vmem:[#allocation67_spill] sm:$0xff]  ;;  %v24291_v45 = vld [vmem:[#allocation42_spill] sm:$0xff]  ;;  %13404 = vmatpush3.bf16.msra.mxu0 %v13403_v28  ;;  %v17611_v38 = vld [vmem:[#allocation2 + $0x480] sm:$0xff] }
 0x1f9   :  { %24277 = vst [vmem:[#allocation44_spill] sm:$0xff] %v17461_v59  ;;  %24279 = vst [vmem:[#allocation47_spill] sm:$0xff] %v17468_v62  ;;  %v13173_v33 = vpack.c.bf16 %v2772_v35, %v2765_v13  ;;  %v13405_v22 = vpack.c.bf16 %v17442_v15, %v17435_v44  ;;  %v2779_v40 = vand.u32 4294901760, %v2778_v37  ;;  %v2786_v3 = vand.u32 4294901760, %v2785_v29 }
 0x1fa   :  { %v2673_v56 = vsub.f32 %v24283_v58, %v24284_v61  ;;  %v22888_v49 = vand.u32 4294901760, %v17181_v48  ;;  %v22883_v18 = vand.u32 4294901760, %v17186_v32  ;;  %v24286_v19 = vand.u32 4294901760, %v24285_v51  ;;  %13172 = vmatpush3.bf16.msra.mxu1 %v13171_v4  ;;  %v10288_v4 = vpop.f32.mrb[2].mxu1 }
 0x1fb   :  { %v24288_v16 = vand.u32 4294901760, %v24287_v20  ;;  %v13175_v23 = vpack.c.bf16 %v2660_v17, %v2653_v36  ;;  %v13407_v13 = vpack.c.bf16 %v17468_v62, %v17461_v59  ;;  %v22882_v37 = vand.u32 4294901760, %v17198_v53  ;;  %13174 = vmatprep.subr.bf16.mxu1 %v13173_v33  ;;  %13406 = vmatprep.subr.bf16.mxu0 %v13405_v22 }
 0x1fc   :  { %v2792_v2 = vsub.f32 %v24285_v51, %v24286_v19  ;;  %v2667_v35 = vand.u32 4294901760, %v2666_v50  ;;  %v2674_v29 = vand.u32 4294901760, %v2673_v56  ;;  %v24290_v54 = vand.u32 4294901760, %v24289_v12 }
 0x1fd   :  { %v2799_v0 = vsub.f32 %v24287_v20, %v24288_v16  ;;  %v24292_v58 = vand.u32 4294901760, %v24291_v45  ;;  %v13177_v51 = vpack.c.bf16 %v2786_v3, %v2779_v40  ;;  %v22881_v36 = vand.u32 4294901760, %v17203_v55  ;;  %v10289_v16 = vpop.f32.mrb[3].mxu1  ;;  %13408 = vmatpush3.bf16.msra.mxu0 %v13407_v13 }
 0x1fe   :  { %v2680_v5 = vsub.f32 %v24289_v12, %v24290_v54  ;;  %v22880_v17 = vand.u32 4294901760, %v17208_v1  ;;  %v22875_v19 = vand.u32 4294901760, %v17213_v8  ;;  %v13441_v50 = vpack.c.bf16 %v22883_v18, %v22888_v49  ;;  %v24293_v12 = vld [vmem:[#allocation53_spill] sm:$0xff]  ;;  %13176 = vmatpush3.bf16.msra.mxu1 %v13175_v23  ;;  %v17642_v49 = vld [vmem:[#allocation2 + $0x498] sm:$0xff] }
 0x1ff   :  { %v2687_v61 = vsub.f32 %v24291_v45, %v24292_v58  ;;  %v2793_v56 = vand.u32 4294901760, %v2792_v2  ;;  %v2800_v20 = vand.u32 4294901760, %v2799_v0  ;;  %v17507_v28 = vadd.s32 1152, %v24293_v12  ;;  %13178 = vmatprep.subr.bf16.mxu1 %v13177_v51  ;;  %v24294_v58 = vld [vmem:[#allocation56_spill] sm:$0xff] }
 0x200   :  { %v10290_v33 = vadd.f32 %v10289_v16, %v10288_v4  ;;  %v13179_v40 = vpack.c.bf16 %v2674_v29, %v2667_v35  ;;  %v2681_v3 = vand.u32 4294901760, %v2680_v5  ;;  %v13443_v22 = vpack.c.bf16 %v22881_v36, %v22882_v37  ;;  %13442 = vmatprep.subr.bf16.mxu0 %v13441_v50  ;;  %3805 = vmatmul.mubr.f32.vlgmr.msra.gmra.mrb[16].mxu0 %v17118_v57  ;;  %v24296_v16 = vld [vmem:[#allocation54_spill] sm:$0xff] }
 0x201   :  { %v2688_v54 = vand.u32 4294901760, %v2687_v61  ;;  %v13445_v2 = vpack.c.bf16 %v22875_v19, %v22880_v17  ;;  %v22874_v0 = vand.u32 4294901760, %v17233_v31  ;;  %v22873_v45 = vand.u32 4294901760, %v17238_v46  ;;  %v24295_v61 = vld [vmem:[#allocation43_spill] sm:$0xff]  ;;  %v24306_v19 = vld [vmem:[#allocation58_spill] sm:$0xff] }
 0x202   :  { %v17520_v23 = vadd.f32 %v10290_v33, %v17269_v60  ;;  %v13181_v13 = vpack.c.bf16 %v2800_v20, %v2793_v56  ;;  %v22870_v35 = vand.u32 4294901760, %v17243_v42  ;;  %v22869_v29 = vand.u32 4294901760, %v17251_v34  ;;  %13180 = vmatpush3.bf16.msra.mxu1 %v13179_v40  ;;  %13444 = vmatpush3.bf16.msra.mxu0 %v13443_v22  ;;  %v24297_v33 = vld [vmem:[#allocation30_spill] sm:$0xff]  ;;  %v24298_v22 = vld [vmem:[#allocation55_spill] sm:$0xff]  ;;  %v10533_v57 = vpop.f32.mrb[4].mxu0 }
 0x203   :  { %v13183_v5 = vpack.c.bf16 %v2688_v54, %v2681_v3  ;;  %vm147_vm8 = vcmp.eq.s32.totalorder %v17507_v28, %v24294_v58  ;;  %4079 = vmatprep.mubr.f32.mxu0 %v24295_v61  ;;  %v13447_v60 = vpack.c.bf16 %v22873_v45, %v22874_v0  ;;  %v22868_v51 = vand.u32 4294901760, %v17256_v14  ;;  %13446 = vmatprep.subr.bf16.mxu0 %v13445_v2  ;;  %v24309_v36 = vld [vmem:[#allocation34_spill] sm:$0xff] }
 0x204   :  { %v22867_v4 = vand.u32 4294901760, %v17267_v21  ;;  %13182 = vmatprep.subr.bf16.mxu1 %v13181_v13  ;;  %v13449_v50 = vpack.c.bf16 %v22869_v29, %v22870_v35  ;;  %v22872_v56 = vand.u32 4294901760, %v17281_v39  ;;  %v22871_v20 = vand.u32 4294901760, %v17290_v43  ;;  %v24302_v29 = vld [vmem:[#allocation29_spill] sm:$0xff] }
 0x205   :  { %vm122_vm9 = vcmp.eq.s32.totalorder %v17507_v28, %v24296_v16  ;;  %v22877_v3 = vand.u32 4294901760, %v17295_v52  ;;  %v22876_v54 = vand.u32 4294901760, %v17300_v24  ;;  %vm193_vm11 = vcmp.eq.s32.totalorder %v17507_v28, %v24298_v22  ;;  %v17852_v39 = vld [vmem:[#allocation2 + $0x460] sm:$0xff] }
 0x206   :  { %vm168_vm10 = vmor %vm122_vm9, %vm147_vm8  ;;  %13184 = vmatpush3.bf16.msra.mxu1 %v13183_v5  ;;  %13448 = vmatpush3.bf16.msra.mxu0 %v13447_v60  ;;  %v13451_v40 = vpack.c.bf16 %v22867_v4, %v22868_v51  ;;  %v13453_v2 = vpack.c.bf16 %v22871_v20, %v22872_v56  ;;  %v22879_v13 = vand.u32 4294901760, %v17307_v10  ;;  %v22878_v5 = vand.u32 4294901760, %v17328_v11  ;;  %v24299_v60 = vld [vmem:[#allocation57_spill] sm:$0xff]  ;;  %v24301_v51 = vld [vmem:[#allocation59_spill] sm:$0xff] }
 0x207   :  { %13218 = vmatprep.subr.bf16.mxu1 %v24297_v33  ;;  %13450 = vmatprep.subr.bf16.mxu0 %v13449_v50  ;;  %vm214_vm12 = vmor %vm168_vm10, %vm193_vm11  ;;  %vm239_vm13 = vcmp.eq.s32.totalorder %v17507_v28, %v24299_v60  ;;  %v24300_v4 = vld [vmem:[#allocation17_spill] sm:$0xff]  ;;  %vm285_vm14 = vcmp.eq.s32.totalorder %v17507_v28, %v24301_v51  ;;  %v24303_v50 = vld [vmem:[#allocation26_spill] sm:$0xff]  ;;  %v13455_v56 = vpack.c.bf16 %v22876_v54, %v22877_v3  ;;  %v22885_v45 = vand.u32 4294901760, %v17333_v27 }
 0x208   :  { %v24304_v35 = vand.u32 4294901760, %v24303_v50  ;;  %v24305_v20 = vld [vmem:[#allocation33_spill] sm:$0xff]  ;;  %v22884_v0 = vand.u32 4294901760, %v17341_v6  ;;  %vm260_vm15 = vmor %vm214_vm12, %vm239_vm13  ;;  %v13457_v50 = vpack.c.bf16 %v22878_v5, %v22879_v13  ;;  %vm331_vm1 = vcmp.eq.s32.totalorder %v17507_v28, %v24306_v19  ;;  %v24307_v54 = vld [vmem:[#allocation31_spill] sm:$0xff] }
 0x209   :  { %2805 = vmatmul.mubr.f32.vlgmr.msra.gmra.mrb[16].mxu1 %v24300_v4  ;;  %vm306_vm0 = vmor %vm260_vm15, %vm285_vm14  ;;  %v24308_v3 = vld [vmem:[#allocation36_spill] sm:$0xff]  ;;  %v22893_v5 = vand.u32 4294901760, %v17371_v7  ;;  %v22892_v13 = vand.u32 4294901760, %v17394_v25  ;;  %v22894_v17 = vand.u32 4294901760, %v17404_v47  ;;  %v24310_v37 = vmov 0.0   ;;  %v17613_v7 = vld [vmem:[#allocation2 + $0x488] sm:$0xff] }
 0x20a   :  { %13220 = vmatpush3.bf16.msra.mxu1 %v24302_v29  ;;  %3047 = vmatprep.mubr.f32.mxu1 %v24304_v35  ;;  %v22887_v35 = vand.u32 4294901760, %v17361_v26  ;;  %vm352_vm2 = vmor %vm306_vm0, %vm331_vm1  ;;  %v24320_v47 = vld [vmem:[#allocation48_spill] sm:$0xff]  ;;  %v17713_v11 = vld [vmem:[#allocation2 + $0x4b0] sm:$0xff] }
 0x20b   :  { %13452 = vmatpush3.bf16.msra.mxu0 %v13451_v40  ;;  %13222 = vmatprep.subr.bf16.mxu1 %v24305_v20  ;;  %v22886_v40 = vand.u32 4294901760, %v17366_v30  ;;  %v17596_v18 = vsel %vm352_vm2, 1.0, %v24310_v37  ;;  %v17674_v30 = vld [vmem:[#allocation2 + $0x4a8] sm:$0xff]  ;;  %v24345_v10 = vld [vmem:[#allocation23_spill] sm:$0xff] }
 0x20c   :  { %13454 = vmatprep.subr.bf16.mxu0 %v13453_v2  ;;  %v13459_v2 = vpack.c.bf16 %v22884_v0, %v22885_v45  ;;  %24311 = vst [vmem:[#allocation50_spill] sm:$0xff] %v17596_v18  ;;  %v24312_v0 = vld [vmem:[#allocation39_spill] sm:$0xff]  ;;  %v22904_v45 = vand.u32 4294901760, %v17425_v63  ;;  %v24347_v61 = vand.u32 4294901760, %v17674_v30 }
 0x20d   :  { %v13461_v28 = vpack.c.bf16 %v22886_v40, %v22887_v35 }
 0x20e   :  { %13224 = vmatpush3.bf16.msra.mxu1 %v24307_v54 }
 0x20f   :  { %13456 = vmatpush3.bf16.msra.mxu0 %v13455_v56  ;;  %13226 = vmatprep.subr.bf16.mxu1 %v24308_v3  ;;  %v22895_v56 = vand.u32 4294901760, %v17399_v9  ;;  %v24319_v9 = vand.u32 4294901760, %v17442_v15 }
 0x210   :  { %13458 = vmatprep.subr.bf16.mxu0 %v13457_v50  ;;  %v13463_v50 = vpack.c.bf16 %v22892_v13, %v22893_v5  ;;  %v17617_v13 = vsub.f32 %v17596_v18, %v17596_v18  ;;  %v10534_v5 = vpop.f32.mrb[5].mxu0  ;;  %v24318_v18 = vand.u32 4294901760, %v17435_v44  ;;  %v10323_v44 = vpop.f32.mrb[4].mxu1 }
 0x211   :  { %v13465_v35 = vpack.c.bf16 %v22894_v17, %v22895_v56  ;;  %v17620_v40 = vadd.f32 %v10534_v5, %v10533_v57  ;;  %v24316_v17 = vld [vmem:[#allocation45_spill] sm:$0xff]  ;;  %v24317_v56 = vand.u32 4294901760, %v17430_v41  ;;  %v24323_v5 = vand.u32 4294901760, %v17468_v62 }
 0x212   :  { %13228 = vmatpush3.bf16.msra.mxu1 %v24309_v36  ;;  %24313 = vst [vmem:[#allocation52_spill] sm:$0xff] %v17617_v13  ;;  %v13469_v25 = vpack.c.bf16 %v24319_v9, %v24318_v18  ;;  %v24321_v9 = vld [vmem:[#allocation46_spill] sm:$0xff]  ;;  %v24322_v18 = vand.u32 4294901760, %v17461_v59  ;;  %v24327_v15 = vand.u32 4294901760, %v17617_v13 }
 0x213   :  { %13460 = vmatpush3.bf16.msra.mxu0 %v13459_v2  ;;  %13230 = vmatprep.subr.bf16.mxu1 %v24312_v0  ;;  %24315 = vst [vmem:[#allocation61_spill] sm:$0xff] %v17620_v40  ;;  %v13467_v2 = vpack.c.bf16 %v24317_v56, %v22904_v45  ;;  %v17637_v40 = vld [vmem:[#allocation2 + $0x408] sm:$0xff]  ;;  %v17640_v45 = vld [vmem:[#allocation2 + $0x490] sm:$0xff]  ;;  %v10324_v56 = vpop.f32.mrb[5].mxu1 }
 0x214   :  { %13462 = vmatprep.subr.bf16.mxu0 %v13461_v28  ;;  %v24314_v28 = vld [vmem:[#allocation41_spill] sm:$0xff]  ;;  %v13471_v57 = vpack.c.bf16 %v24323_v5, %v24322_v18  ;;  %v17665_v5 = vld [vmem:[#allocation2 + $0x410] sm:$0xff]  ;;  %v17667_v18 = vld [vmem:[#allocation2 + $0x418] sm:$0xff]  ;;  %v4289_v63 = vsub.f32 %v17617_v13, %v24327_v15  ;;  %v24333_v26 = vand.u32 4294901760, %v17637_v40 }
 0x215   :  { %v24331_v59 = vld [vmem:[#allocation18_spill] sm:$0xff]  ;;  %v24343_v62 = vand.u32 4294901760, %v17667_v18 }
 0x216   :  { %13232 = vmatpush3.bf16.msra.mxu1 %v24314_v28 }
 0x217   :  { %13464 = vmatpush3.bf16.msra.mxu0 %v13463_v50  ;;  %13234 = vmatprep.subr.bf16.mxu1 %v24316_v17  ;;  %v17635_v50 = vld [vmem:[#allocation2 + $0x400] sm:$0xff] }
 0x218   :  { %13466 = vmatprep.subr.bf16.mxu0 %v13465_v35  ;;  %v17645_v35 = vadd.s32 1024, %v24293_v12  ;;  %v24324_v12 = vand.u32 4294901760, %v17611_v38  ;;  %v24332_v15 = vand.u32 4294901760, %v17635_v50 }
 0x21a   :  { %13236 = vmatpush3.bf16.msra.mxu1 %v24320_v47  ;;  %vm146_vm3 = vcmp.eq.s32.totalorder %v17645_v35, %v24294_v58  ;;  %vm121_vm4 = vcmp.eq.s32.totalorder %v17645_v35, %v24296_v16  ;;  %v17691_v6 = vpack.c.bf16 %v24333_v26, %v24332_v15  ;;  %vm192_vm6 = vcmp.eq.s32.totalorder %v17645_v35, %v24298_v22  ;;  %v17759_v26 = vld [vmem:[#allocation2 + $0x4c8] sm:$0xff] }
 0x21b   :  { %13468 = vmatpush3.bf16.msra.mxu0 %v13467_v2  ;;  %13238 = vmatprep.subr.bf16.mxu1 %v24321_v9  ;;  %v24325_v2 = vand.u32 4294901760, %v17613_v7  ;;  %vm17682_vm5 = vmor %vm121_vm4, %vm146_vm3  ;;  %v24336_v58 = vand.u32 4294901760, %v17642_v49  ;;  %v4290_v22 = vand.u32 4294901760, %v4289_v63  ;;  %vm238_vm8 = vcmp.eq.s32.totalorder %v17645_v35, %v24299_v60  ;;  %v17786_v60 = vld [vmem:[#allocation2 + $0x440] sm:$0xff] }
 0x21c   :  { %13470 = vmatprep.subr.bf16.mxu0 %v13469_v25  ;;  %v17672_v25 = vld [vmem:[#allocation2 + $0x4a0] sm:$0xff]  ;;  %24334 = vst [vmem:[#allocation63_spill] sm:$0xff] %v17691_v6  ;;  %vm17719_vm7 = vmor %vm17682_vm5, %vm192_vm6  ;;  %vm284_vm9 = vcmp.eq.s32.totalorder %v17645_v35, %v24301_v51  ;;  %v24342_v63 = vand.u32 4294901760, %v17665_v5  ;;  %vm330_vm12 = vcmp.eq.s32.totalorder %v17645_v35, %v24306_v19  ;;  %v24353_v35 = vand.u32 4294901760, %v17713_v11 }
 0x21d   :  { %v17661_v41 = vpack.c.bf16 %v24325_v2, %v24324_v12  ;;  %v10325_v12 = vadd.f32 %v10324_v56, %v10323_v44  ;;  %v24328_v2 = vld [vmem:[#allocation64_spill] sm:$0xff]  ;;  %v17711_v56 = vld [vmem:[#allocation2 + $0x428] sm:$0xff]  ;;  %vm259_vm10 = vmor %vm17719_vm7, %vm238_vm8 }
 0x21e   :  { %13240 = vmatpush3.bf16.msra.mxu1 %v24328_v2  ;;  %v17709_v44 = vld [vmem:[#allocation2 + $0x420] sm:$0xff]  ;;  %v17734_v15 = vpack.c.bf16 %v24343_v62, %v24342_v63  ;;  %v17748_v63 = vld [vmem:[#allocation2 + $0x430] sm:$0xff]  ;;  %v17750_v62 = vld [vmem:[#allocation2 + $0x438] sm:$0xff] }
 0x21f   :  { %24326 = vst [vmem:[#allocation38_spill] sm:$0xff] %v17661_v41  ;;  %13472 = vmatpush3.bf16.msra.mxu0 %v13471_v57  ;;  %13242 = vmatprep.subr.bf16.mxu1 %v24331_v59  ;;  %v17698_v16 = vadd.f32 %v10325_v12, %v17520_v23  ;;  %v24335_v57 = vand.u32 4294901760, %v17640_v45  ;;  %v17715_v23 = vld [vmem:[#allocation2 + $0x4b8] sm:$0xff]  ;;  %vm305_vm11 = vmor %vm259_vm10, %vm284_vm9  ;;  %v24350_v12 = vand.u32 4294901760, %v17709_v44 }
 0x220   :  { %13506 = vmatprep.subr.bf16.mxu0 %v17661_v41  ;;  %24344 = vst [vmem:[#allocation14_spill] sm:$0xff] %v17734_v15  ;;  %v17757_v41 = vld [vmem:[#allocation2 + $0x4c0] sm:$0xff]  ;;  %v24354_v19 = vand.u32 4294901760, %v17715_v23  ;;  %vm351_vm13 = vmor %vm305_vm11, %vm330_vm12 }
 0x221   :  { %v17705_v27 = vpack.c.bf16 %v24336_v58, %v24335_v57  ;;  %v24340_v58 = vld [vmem:[#allocation22_spill] sm:$0xff]  ;;  %v24341_v57 = vld [vmem:[#allocation21_spill] sm:$0xff]  ;;  %v17809_v52 = vsel %vm351_vm13, 1.0, %v24310_v37 }
 0x222   :  { %4081 = vmatmul.mubr.f32.vlgmr.msra.gmra.mrb[18].mxu0 %v24340_v58  ;;  %13244 = vmatpush3.bf16.msra.mxu1 %v24341_v57  ;;  %v24346_v58 = vand.u32 4294901760, %v17672_v25  ;;  %v17782_v51 = vpack.c.bf16 %v24354_v19, %v24353_v35  ;;  %v24359_v19 = vld [vmem:[#allocation27_spill] sm:$0xff]  ;;  %v24360_v35 = vand.u32 4294901760, %v17748_v63  ;;  %24363 = vst [vmem:[#allocation29_spill] sm:$0xff] %v17809_v52  ;;  %v17826_v37 = vld [vmem:[#allocation2 + $0x4e8] sm:$0xff] }
 0x223   :  { %24337 = vst [vmem:[#allocation13_spill] sm:$0xff] %v17705_v27  ;;  %13508 = vmatpush3.bf16.msra.mxu0 %v17691_v6  ;;  %4291 = vmatprep.mubr.f32.mxu0 %v4290_v22  ;;  %24369 = vst [vmem:[#allocation36_spill] sm:$0xff] %v17826_v37  ;;  %v24381_v4 = vand.u32 4294901760, %v17826_v37  ;;  %v24388_v37 = vand.u32 4294901760, %v17611_v38 }
 0x224   :  { %13246 = vmatprep.subr.bf16.mxu1 %v24345_v10  ;;  %13510 = vmatprep.subr.bf16.mxu0 %v17705_v27  ;;  %v17744_v6 = vpack.c.bf16 %v24347_v61, %v24346_v58  ;;  %v24349_v61 = vld [vmem:[#allocation25_spill] sm:$0xff]  ;;  %v24351_v58 = vand.u32 4294901760, %v17711_v56  ;;  %24355 = vst [vmem:[#allocation16_spill] sm:$0xff] %v17782_v51  ;;  %v17792_v27 = vld [vmem:[#allocation2 + $0x4d0] sm:$0xff] }
 0x226   :  { %24348 = vst [vmem:[#allocation67_spill] sm:$0xff] %v17744_v6  ;;  %13248 = vmatpush3.bf16.msra.mxu1 %v24349_v61  ;;  %v17773_v24 = vpack.c.bf16 %v24351_v58, %v24350_v12  ;;  %v17788_v12 = vld [vmem:[#allocation2 + $0x448] sm:$0xff]  ;;  %v24356_v58 = vld [vmem:[#allocation19_spill] sm:$0xff] }
 0x227   :  { %13512 = vmatpush3.bf16.msra.mxu0 %v17734_v15  ;;  %13282 = vmatprep.subr.bf16.mxu1 %v24297_v33  ;;  %v24357_v22 = vand.u32 4294901760, %v24356_v58  ;;  %v24361_v15 = vand.u32 4294901760, %v17750_v62  ;;  %v17824_v58 = vld [vmem:[#allocation2 + $0x4e0] sm:$0xff] }
 0x228   :  { %24352 = vst [vmem:[#allocation15_spill] sm:$0xff] %v17773_v24  ;;  %13514 = vmatprep.subr.bf16.mxu0 %v17744_v6  ;;  %v17794_v6 = vld [vmem:[#allocation2 + $0x4d8] sm:$0xff]  ;;  %24368 = vst [vmem:[#allocation31_spill] sm:$0xff] %v17824_v58 }
 0x229   :  { %3051 = vmatmul.mubr.f32.vlgmr.msra.gmra.mrb[18].mxu1 %v24357_v22  ;;  %24358 = vst [vmem:[#allocation42_spill] sm:$0xff] %v17794_v6  ;;  %v17804_v33 = vpack.c.bf16 %v24361_v15, %v24360_v35  ;;  %v17820_v35 = vld [vmem:[#allocation2 + $0x450] sm:$0xff]  ;;  %v17822_v22 = vld [vmem:[#allocation2 + $0x458] sm:$0xff] }
 0x22a   :  { %13284 = vmatpush3.bf16.msra.mxu1 %v24302_v29  ;;  %3321 = vmatprep.mubr.f32.mxu1 %v24359_v19  ;;  %v24364_v29 = vand.u32 4294901760, %v17757_v41  ;;  %v24365_v19 = vand.u32 4294901760, %v17759_v26  ;;  %24367 = vst [vmem:[#allocation33_spill] sm:$0xff] %v17820_v35 }
 0x22b   :  { %13516 = vmatpush3.bf16.msra.mxu0 %v17773_v24  ;;  %13286 = vmatprep.subr.bf16.mxu1 %v24305_v20  ;;  %24362 = vst [vmem:[#allocation30_spill] sm:$0xff] %v17804_v33  ;;  %v17858_v24 = vld [vmem:[#allocation2 + $0x4f8] sm:$0xff] }
 0x22c   :  { %13518 = vmatprep.subr.bf16.mxu0 %v17782_v51  ;;  %v17816_v20 = vpack.c.bf16 %v24365_v19, %v24364_v29  ;;  %v17831_v51 = vsub.f32 %v17809_v52, %v17809_v52  ;;  %v24371_v29 = vand.u32 4294901760, %v17786_v60  ;;  %v24372_v19 = vand.u32 4294901760, %v17788_v12 }
 0x22d   :  { %v24375_v52 = vand.u32 4294901760, %v17794_v6 }
 0x22e   :  { %24366 = vst [vmem:[#allocation26_spill] sm:$0xff] %v17816_v20  ;;  %13288 = vmatpush3.bf16.msra.mxu1 %v24307_v54  ;;  %24370 = vst [vmem:[#allocation34_spill] sm:$0xff] %v17831_v51  ;;  %v17839_v15 = vpack.c.bf16 %v24372_v19, %v24371_v29  ;;  %v24374_v54 = vand.u32 4294901760, %v17792_v27  ;;  %v17854_v29 = vld [vmem:[#allocation2 + $0x468] sm:$0xff]  ;;  %v17856_v19 = vld [vmem:[#allocation2 + $0x4f0] sm:$0xff] }
 0x22f   :  { %13520 = vmatpush3.bf16.msra.mxu0 %v17804_v33  ;;  %13290 = vmatprep.subr.bf16.mxu1 %v24308_v3 }
 0x230   :  { %24373 = vst [vmem:[#allocation39_spill] sm:$0xff] %v17839_v15  ;;  %13522 = vmatprep.subr.bf16.mxu0 %v17816_v20  ;;  %v17848_v43 = vpack.c.bf16 %v24375_v52, %v24374_v54  ;;  %v24377_v52 = vand.u32 4294901760, %v17820_v35  ;;  %v24378_v54 = vand.u32 4294901760, %v17822_v22  ;;  %v17881_v35 = vld [vmem:[#allocation2 + $0x470] sm:$0xff]  ;;  %v24383_v20 = vand.u32 4294901760, %v17831_v51 }
 0x232   :  { %24376 = vst [vmem:[#allocation41_spill] sm:$0xff] %v17848_v43  ;;  %13292 = vmatpush3.bf16.msra.mxu1 %v24309_v36  ;;  %v17868_v33 = vpack.c.bf16 %v24378_v54, %v24377_v52  ;;  %v24380_v36 = vand.u32 4294901760, %v17824_v58  ;;  %v17883_v52 = vld [vmem:[#allocation2 + $0x478] sm:$0xff]  ;;  %v10603_v54 = vpop.f32.mrb[6].mxu0 }
 0x233   :  { %13524 = vmatpush3.bf16.msra.mxu0 %v17839_v15  ;;  %13294 = vmatprep.subr.bf16.mxu1 %v24312_v0  ;;  %v10604_v3 = vpop.f32.mrb[7].mxu0 }
 0x234   :  { %24379 = vst [vmem:[#allocation45_spill] sm:$0xff] %v17868_v33  ;;  %13526 = vmatprep.subr.bf16.mxu0 %v17848_v43  ;;  %v17877_v6 = vpack.c.bf16 %v24381_v4, %v24380_v36  ;;  %v4295_v43 = vsub.f32 %v17831_v51, %v24383_v20  ;;  %v17889_v58 = vadd.f32 %v10604_v3, %v10603_v54  ;;  %v24385_v4 = vand.u32 4294901760, %v17852_v39 }
 0x235   :  { %v24386_v36 = vand.u32 4294901760, %v17854_v29  ;;  %v17904_v20 = vsub.f32 %v17611_v38, %v24388_v37  ;;  %v24389_v3 = vand.u32 4294901760, %v17613_v7  ;;  %v24394_v38 = vand.u32 4294901760, %v17637_v40 }
 0x236   :  { %24382 = vst [vmem:[#allocation48_spill] sm:$0xff] %v17877_v6  ;;  %13296 = vmatpush3.bf16.msra.mxu1 %v24314_v28  ;;  %24384 = vst [vmem:[#allocation46_spill] sm:$0xff] %v17889_v58  ;;  %v24393_v28 = vand.u32 4294901760, %v17635_v50  ;;  %v24487_v58 = vld [vmem:[#allocation32_spill] sm:$0xff] }
 0x237   :  { %13528 = vmatpush3.bf16.msra.mxu0 %v17868_v33  ;;  %13298 = vmatprep.subr.bf16.mxu1 %v24316_v17  ;;  %v17897_v15 = vpack.c.bf16 %v24386_v36, %v24385_v4  ;;  %v17909_v54 = vsub.f32 %v17613_v7, %v24389_v3  ;;  %v24390_v17 = vand.u32 4294901760, %v17856_v19  ;;  %v24391_v4 = vand.u32 4294901760, %v17858_v24 }
 0x238   :  { %13530 = vmatprep.subr.bf16.mxu0 %v17877_v6  ;;  %v17921_v0 = vsub.f32 %v17635_v50, %v24393_v28  ;;  %v17926_v37 = vsub.f32 %v17637_v40, %v24394_v38  ;;  %v24395_v7 = vand.u32 4294901760, %v17640_v45  ;;  %v24396_v6 = vand.u32 4294901760, %v17642_v49 }
 0x239   :  { %24387 = vst [vmem:[#allocation64_spill] sm:$0xff] %v17897_v15  ;;  %v17916_v36 = vpack.c.bf16 %v24391_v4, %v24390_v17  ;;  %v24397_v4 = vand.u32 4294901760, %v17665_v5  ;;  %v24398_v28 = vand.u32 4294901760, %v17667_v18  ;;  %v4296_v38 = vand.u32 4294901760, %v4295_v43 }
 0x23a   :  { %v17931_v3 = vsub.f32 %v17640_v45, %v24395_v7  ;;  %v17936_v17 = vsub.f32 %v17642_v49, %v24396_v6  ;;  %13300 = vmatpush3.bf16.msra.mxu1 %v24320_v47  ;;  %v24399_v45 = vand.u32 4294901760, %v17881_v35  ;;  %v24400_v6 = vand.u32 4294901760, %v17883_v52 }
 0x23b   :  { %24392 = vst [vmem:[#allocation18_spill] sm:$0xff] %v17916_v36  ;;  %v17941_v50 = vsub.f32 %v17665_v5, %v24397_v4  ;;  %v17946_v40 = vsub.f32 %v17667_v18, %v24398_v28  ;;  %13532 = vmatpush3.bf16.msra.mxu0 %v17897_v15  ;;  %13302 = vmatprep.subr.bf16.mxu1 %v24321_v9  ;;  %v24402_v5 = vand.u32 4294901760, %v17181_v48  ;;  %v24403_v18 = vand.u32 4294901760, %v17186_v32 }
 0x23c   :  { %v17955_v49 = vpack.c.bf16 %v24400_v6, %v24399_v45  ;;  %v24404_v47 = vand.u32 4294901760, %v17672_v25  ;;  %v24405_v9 = vand.u32 4294901760, %v17674_v30  ;;  %v24406_v43 = vand.u32 4294901760, %v17709_v44  ;;  %13534 = vmatprep.subr.bf16.mxu0 %v17916_v36 }
 0x23d   :  { %v3556_v7 = vsub.f32 %v17181_v48, %v24402_v5  ;;  %v3563_v4 = vsub.f32 %v17186_v32, %v24403_v18  ;;  %v10358_v48 = vpop.f32.mrb[6].mxu1  ;;  %v13569_v32 = vpack.c.bf16 %v17909_v54, %v17904_v20  ;;  %v24407_v6 = vand.u32 4294901760, %v17711_v56 }
 0x23e   :  { %24401 = vst [vmem:[#allocation21_spill] sm:$0xff] %v17955_v49  ;;  %v17966_v28 = vsub.f32 %v17672_v25, %v24404_v47  ;;  %v17971_v15 = vsub.f32 %v17674_v30, %v24405_v9  ;;  %v17976_v45 = vsub.f32 %v17709_v44, %v24406_v43  ;;  %v24408_v5 = vand.u32 4294901760, %v17713_v11  ;;  %v10359_v18 = vpop.f32.mrb[7].mxu1  ;;  %13304 = vmatpush3.bf16.msra.mxu1 %v24328_v2 }
 0x23f   :  { %v17984_v25 = vsub.f32 %v17711_v56, %v24407_v6  ;;  %v24410_v44 = vand.u32 4294901760, %v17198_v53  ;;  %v24411_v9 = vand.u32 4294901760, %v17203_v55  ;;  %v24412_v36 = vand.u32 4294901760, %v17715_v23  ;;  %13536 = vmatpush3.bf16.msra.mxu0 %v17955_v49  ;;  %13306 = vmatprep.subr.bf16.mxu1 %v24331_v59 }
 0x240   :  { %v17989_v30 = vsub.f32 %v17713_v11, %v24408_v5  ;;  %v10360_v56 = vadd.f32 %v10359_v18, %v10358_v48  ;;  %v24414_v11 = vand.u32 4294901760, %v17208_v1  ;;  %v24415_v5 = vand.u32 4294901760, %v17213_v8  ;;  %13570 = vmatprep.subr.bf16.mxu0 %v13569_v32 }
 0x241   :  { %v3444_v47 = vsub.f32 %v17198_v53, %v24410_v44  ;;  %v3451_v43 = vsub.f32 %v17203_v55, %v24411_v9  ;;  %v18000_v33 = vsub.f32 %v17715_v23, %v24412_v36  ;;  %v24416_v44 = vand.u32 4294901760, %v17748_v63 }
 0x242   :  { %24409 = vst [vmem:[#allocation23_spill] sm:$0xff] %v17989_v30  ;;  %v3570_v6 = vsub.f32 %v17208_v1, %v24414_v11  ;;  %v3577_v53 = vsub.f32 %v17213_v8, %v24415_v5  ;;  %v13571_v2 = vpack.c.bf16 %v17926_v37, %v17921_v0  ;;  %v3557_v23 = vand.u32 4294901760, %v3556_v7  ;;  %4297 = vmatmul.mubr.f32.vlgmr.msra.gmra.mrb[20].mxu0 %v4296_v38 }
 0x243   :  { %24413 = vst [vmem:[#allocation25_spill] sm:$0xff] %v18000_v33  ;;  %v18012_v55 = vsub.f32 %v17748_v63, %v24416_v44  ;;  %v3564_v36 = vand.u32 4294901760, %v3563_v4  ;;  %v24418_v1 = vand.u32 4294901760, %v17750_v62  ;;  %v24420_v8 = vand.u32 4294901760, %v17757_v41  ;;  %13308 = vmatpush3.bf16.msra.mxu1 %v24341_v57  ;;  %4664 = vmatprep.mubr.f32.mxu0 %v17617_v13 }
 0x244   :  { %v1329_v63 = vadd.f32 %v10360_v56, %v17698_v16  ;;  %v13573_v59 = vpack.c.bf16 %v17936_v17, %v17931_v3  ;;  %v13575_v7 = vpack.c.bf16 %v17946_v40, %v17941_v50  ;;  %v3445_v4 = vand.u32 4294901760, %v3444_v47  ;;  %v24424_v56 = vld [vmem:[#allocation66_spill] sm:$0xff]  ;;  %13572 = vmatpush3.bf16.msra.mxu0 %v13571_v2  ;;  %13310 = vmatprep.subr.bf16.mxu1 %v24345_v10 }
 0x245   :  { %24417 = vst [vmem:[#allocation19_spill] sm:$0xff] %v18012_v55  ;;  %v18021_v48 = vsub.f32 %v17750_v62, %v24418_v1  ;;  %v18026_v18 = vsub.f32 %v17757_v41, %v24420_v8  ;;  %v3452_v9 = vand.u32 4294901760, %v3451_v43  ;;  %v24422_v11 = vand.u32 4294901760, %v17233_v31 }
 0x246   :  { %v3571_v41 = vand.u32 4294901760, %v3570_v6  ;;  %v3578_v5 = vand.u32 4294901760, %v3577_v53  ;;  %v24423_v16 = vand.u32 4294901760, %v17238_v46  ;;  %v18041_v44 = vadd.f32 %v24424_v56, %v1329_v63  ;;  %13574 = vmatprep.subr.bf16.mxu0 %v13573_v59  ;;  %v24435_v56 = vld [vmem:[#allocation72_spill] sm:$0xff] }
 0x247   :  { %24419 = vst [vmem:[#allocation27_spill] sm:$0xff] %v18021_v48  ;;  %24421 = vst [vmem:[#allocation93_spill] sm:$0xff] %v18026_v18  ;;  %v3458_v62 = vsub.f32 %v17233_v31, %v24422_v11  ;;  %v13345_v47 = vpack.c.bf16 %v3564_v36, %v3557_v23  ;;  %v24425_v43 = vand.u32 4294901760, %v17243_v42  ;;  %v24426_v38 = vand.u32 4294901760, %v17251_v34  ;;  %13312 = vmatpush3.bf16.msra.mxu1 %v24349_v61 }
 0x248   :  { %v3465_v32 = vsub.f32 %v17238_v46, %v24423_v16  ;;  %v24427_v6 = vand.u32 4294901760, %v17759_v26  ;;  %v24429_v46 = vand.u32 4294901760, %v17786_v60  ;;  %v24431_v23 = vand.u32 4294901760, %v17788_v12  ;;  %13576 = vmatpush3.bf16.msra.mxu0 %v13575_v7 }
 0x249   :  { %v3584_v31 = vsub.f32 %v17243_v42, %v24425_v43  ;;  %v3591_v57 = vsub.f32 %v17251_v34, %v24426_v38  ;;  %v13577_v42 = vpack.c.bf16 %v17971_v15, %v17966_v28  ;;  %v24433_v36 = vand.u32 4294901760, %v17256_v14  ;;  %13346 = vmatprep.subr.bf16.mxu1 %v13345_v47  ;;  %v24447_v47 = vld [vmem:[#allocation17_spill] sm:$0xff] }
 0x24a   :  { %v18053_v53 = vsub.f32 %v17759_v26, %v24427_v6  ;;  %v18058_v2 = vsub.f32 %v17786_v60, %v24429_v46  ;;  %v18066_v34 = vsub.f32 %v17788_v12, %v24431_v23  ;;  %v13579_v26 = vpack.c.bf16 %v17984_v25, %v17976_v45  ;;  %v24437_v6 = vld [vmem:[#allocation73_spill] sm:$0xff]  ;;  %3323 = vmatmul.mubr.f32.vlgmr.msra.gmra.mrb[20].mxu1 %v24447_v47 }
 0x24b   :  { %v3472_v1 = vsub.f32 %v17256_v14, %v24433_v36  ;;  %v24434_v60 = vand.u32 4294901760, %v17267_v21  ;;  %v13347_v8 = vpack.c.bf16 %v3452_v9, %v3445_v4  ;;  %v13349_v63 = vpack.c.bf16 %v3578_v5, %v3571_v41  ;;  %v24441_v4 = vld [vmem:[#allocation42_spill] sm:$0xff]  ;;  %13578 = vmatprep.subr.bf16.mxu0 %v13577_v42  ;;  %v24453_v42 = vld [vmem:[#allocation77_spill] sm:$0xff] }
 0x24c   :  { %24428 = vst [vmem:[#allocation66_spill] sm:$0xff] %v18053_v53  ;;  %24430 = vst [vmem:[#allocation94_spill] sm:$0xff] %v18058_v2  ;;  %v3459_v59 = vand.u32 4294901760, %v3458_v62  ;;  %v3466_v11 = vand.u32 4294901760, %v3465_v32  ;;  %v3585_v12 = vand.u32 4294901760, %v3584_v31  ;;  %v3592_v16 = vand.u32 4294901760, %v3591_v57  ;;  %13580 = vmatpush3.bf16.msra.mxu0 %v13579_v26 }
 0x24d   :  { %24432 = vst [vmem:[#allocation95_spill] sm:$0xff] %v18066_v34  ;;  %v3479_v10 = vsub.f32 %v17267_v21, %v24434_v60  ;;  %v24436_v43 = vand.u32 4294901760, %v24435_v56  ;;  %v24438_v14 = vand.u32 4294901760, %v24437_v6  ;;  %v24439_v21 = vand.u32 4294901760, %v17792_v27  ;;  %v24444_v62 = vld [vmem:[#allocation33_spill] sm:$0xff]  ;;  %v24450_v60 = vld [vmem:[#allocation76_spill] sm:$0xff]  ;;  %13348 = vmatpush3.bf16.msra.mxu1 %v13347_v8 }
 0x24e   :  { %v24442_v9 = vand.u32 4294901760, %v24441_v4  ;;  %v24445_v41 = vand.u32 4294901760, %v24444_v62  ;;  %v13581_v32 = vpack.c.bf16 %v18000_v33, %v17989_v30  ;;  %v3473_v31 = vand.u32 4294901760, %v3472_v1  ;;  %13350 = vmatprep.subr.bf16.mxu1 %v13349_v63 }
 0x24f   :  { %v3598_v38 = vsub.f32 %v24435_v56, %v24436_v43  ;;  %v3605_v46 = vsub.f32 %v24437_v6, %v24438_v14  ;;  %v18086_v61 = vsub.f32 %v17792_v27, %v24439_v21  ;;  %v3480_v57 = vand.u32 4294901760, %v3479_v10  ;;  %v24448_v27 = vld [vmem:[#allocation74_spill] sm:$0xff]  ;;  %v24452_v6 = vld [vmem:[#allocation43_spill] sm:$0xff] }
 0x250   :  { %v18091_v7 = vsub.f32 %v24441_v4, %v24442_v9  ;;  %v18096_v5 = vsub.f32 %v24444_v62, %v24445_v41  ;;  %v24449_v23 = vand.u32 4294901760, %v24448_v27  ;;  %v24451_v56 = vand.u32 4294901760, %v24450_v60  ;;  %3665 = vmatprep.mubr.f32.mxu1 %v24452_v6  ;;  %v24455_v9 = vld [vmem:[#allocation79_spill] sm:$0xff]  ;;  %13582 = vmatprep.subr.bf16.mxu0 %v13581_v32 }
 0x251   :  { %24440 = vst [vmem:[#allocation72_spill] sm:$0xff] %v18086_v61  ;;  %v13351_v14 = vpack.c.bf16 %v3466_v11, %v3459_v59  ;;  %v24454_v21 = vand.u32 4294901760, %v24453_v42  ;;  %v24456_v62 = vand.u32 4294901760, %v24455_v9  ;;  %v13583_v10 = vpack.c.bf16 %v18021_v48, %v18012_v55  ;;  %v24459_v11 = vld [vmem:[#allocation31_spill] sm:$0xff] }
 0x252   :  { %24443 = vst [vmem:[#allocation73_spill] sm:$0xff] %v18091_v7  ;;  %24446 = vst [vmem:[#allocation42_spill] sm:$0xff] %v18096_v5  ;;  %v3486_v36 = vsub.f32 %v24448_v27, %v24449_v23  ;;  %v3493_v43 = vsub.f32 %v24450_v60, %v24451_v56  ;;  %v13353_v41 = vpack.c.bf16 %v3592_v16, %v3585_v12  ;;  %v3599_v47 = vand.u32 4294901760, %v3598_v38  ;;  %v24462_v56 = vld [vmem:[#allocation36_spill] sm:$0xff] }
 0x253   :  { %v3612_v4 = vsub.f32 %v24453_v42, %v24454_v21  ;;  %v3619_v1 = vsub.f32 %v24455_v9, %v24456_v62  ;;  %v3606_v27 = vand.u32 4294901760, %v3605_v46  ;;  %v24457_v8 = vand.u32 4294901760, %v17822_v22  ;;  %13352 = vmatpush3.bf16.msra.mxu1 %v13351_v14  ;;  %v24465_v9 = vld [vmem:[#allocation80_spill] sm:$0xff]  ;;  %13584 = vmatpush3.bf16.msra.mxu0 %v13583_v10 }
 0x254   :  { %v24460_v23 = vand.u32 4294901760, %v24459_v11  ;;  %v24463_v42 = vand.u32 4294901760, %v24462_v56  ;;  %v13585_v63 = vpack.c.bf16 %v18053_v53, %v18026_v18  ;;  %v13355_v12 = vpack.c.bf16 %v3480_v57, %v3473_v31  ;;  %13354 = vmatprep.subr.bf16.mxu1 %v13353_v41  ;;  %v24469_v31 = vld [vmem:[#allocation78_spill] sm:$0xff] }
 0x255   :  { %v18119_v59 = vsub.f32 %v17822_v22, %v24457_v8  ;;  %v13587_v16 = vpack.c.bf16 %v18066_v34, %v18058_v2  ;;  %v3487_v22 = vand.u32 4294901760, %v3486_v36  ;;  %v3494_v38 = vand.u32 4294901760, %v3493_v43  ;;  %v24471_v36 = vld [vmem:[#allocation28_spill] sm:$0xff] }
 0x256   :  { %v18124_v60 = vsub.f32 %v24459_v11, %v24460_v23  ;;  %v18129_v26 = vsub.f32 %v24462_v56, %v24463_v42  ;;  %v3613_v46 = vand.u32 4294901760, %v3612_v4  ;;  %v3620_v21 = vand.u32 4294901760, %v3619_v1  ;;  %v24467_v11 = vld [vmem:[#allocation81_spill] sm:$0xff]  ;;  %13586 = vmatprep.subr.bf16.mxu0 %v13585_v63 }
 0x257   :  { %24458 = vst [vmem:[#allocation33_spill] sm:$0xff] %v18119_v59  ;;  %v24466_v62 = vand.u32 4294901760, %v24465_v9  ;;  %v24468_v23 = vand.u32 4294901760, %v24467_v11  ;;  %v13357_v56 = vpack.c.bf16 %v3606_v27, %v3599_v47  ;;  %v24470_v57 = vand.u32 4294901760, %v24469_v31  ;;  %13356 = vmatpush3.bf16.msra.mxu1 %v13355_v12  ;;  %13588 = vmatpush3.bf16.msra.mxu0 %v13587_v16 }
 0x258   :  { %24461 = vst [vmem:[#allocation17_spill] sm:$0xff] %v18124_v60  ;;  %24464 = vst [vmem:[#allocation74_spill] sm:$0xff] %v18129_v26  ;;  %v24472_v43 = vand.u32 4294901760, %v24471_v36  ;;  %v24473_v4 = vand.u32 4294901760, %v17852_v39  ;;  %v24477_v10 = vand.u32 4294901760, %v17856_v19  ;;  %v13589_v47 = vpack.c.bf16 %v18091_v7, %v18086_v61 }
 0x259   :  { %v3500_v8 = vsub.f32 %v24465_v9, %v24466_v62  ;;  %v3507_v32 = vsub.f32 %v24467_v11, %v24468_v23  ;;  %v3626_v42 = vsub.f32 %v24469_v31, %v24470_v57  ;;  %v24475_v9 = vand.u32 4294901760, %v17854_v29  ;;  %v24481_v23 = vld [vmem:[#allocation90_spill] sm:$0xff]  ;;  %v24483_v57 = vld [vmem:[#allocation92_spill] sm:$0xff]  ;;  %13358 = vmatprep.subr.bf16.mxu1 %v13357_v56 }
 0x25a   :  { %v3633_v14 = vsub.f32 %v24471_v36, %v24472_v43  ;;  %v18150_v1 = vsub.f32 %v17852_v39, %v24473_v4  ;;  %v18160_v41 = vsub.f32 %v17856_v19, %v24477_v10  ;;  %v24479_v27 = vand.u32 4294901760, %v17858_v24  ;;  %13590 = vmatprep.subr.bf16.mxu0 %v13589_v47 }
 0x25b   :  { %v18155_v62 = vsub.f32 %v17854_v29, %v24475_v9  ;;  %v13591_v39 = vpack.c.bf16 %v18119_v59, %v18096_v5  ;;  %v24482_v29 = vand.u32 4294901760, %v24481_v23  ;;  %v24484_v36 = vand.u32 4294901760, %v24483_v57 }
 0x25c   :  { %24474 = vst [vmem:[#allocation76_spill] sm:$0xff] %v18150_v1  ;;  %24478 = vst [vmem:[#allocation79_spill] sm:$0xff] %v18160_v41  ;;  %v18167_v11 = vsub.f32 %v17858_v24, %v24479_v27  ;;  %v13359_v63 = vpack.c.bf16 %v3494_v38, %v3487_v22  ;;  %v13361_v43 = vpack.c.bf16 %v3620_v21, %v3613_v46  ;;  %v3501_v4 = vand.u32 4294901760, %v3500_v8  ;;  %v24485_v27 = vld [vmem:[#allocation75_spill] sm:$0xff]  ;;  %v10673_v46 = vpop.f32.mrb[8].mxu0 }
 0x25d   :  { %24476 = vst [vmem:[#allocation77_spill] sm:$0xff] %v18155_v62  ;;  %v3514_v31 = vsub.f32 %v24481_v23, %v24482_v29  ;;  %v3521_v19 = vsub.f32 %v24483_v57, %v24484_v36  ;;  %v3508_v9 = vand.u32 4294901760, %v3507_v32  ;;  %v3627_v24 = vand.u32 4294901760, %v3626_v42  ;;  %v24493_v32 = vld [vmem:[#allocation35_spill] sm:$0xff]  ;;  %13592 = vmatpush3.bf16.msra.mxu0 %v13591_v39 }
 0x25e   :  { %24480 = vst [vmem:[#allocation31_spill] sm:$0xff] %v18167_v11  ;;  %v3634_v10 = vand.u32 4294901760, %v3633_v14  ;;  %v24486_v49 = vand.u32 4294901760, %v24485_v27  ;;  %v24488_v6 = vand.u32 4294901760, %v24487_v58  ;;  %v24489_v29 = vand.u32 4294901760, %v17881_v35  ;;  %13360 = vmatpush3.bf16.msra.mxu1 %v13359_v63  ;;  %v24495_v14 = vld [vmem:[#allocation37_spill] sm:$0xff] }
 0x25f   :  { %v13593_v16 = vpack.c.bf16 %v18129_v26, %v18124_v60  ;;  %v24491_v22 = vand.u32 4294901760, %v17883_v52  ;;  %v3515_v21 = vand.u32 4294901760, %v3514_v31  ;;  %v13363_v8 = vpack.c.bf16 %v3508_v9, %v3501_v4  ;;  %13362 = vmatprep.subr.bf16.mxu1 %v13361_v43  ;;  %v24498_v9 = vld [vmem:[#allocation40_spill] sm:$0xff] }
 0x260   :  { %v3640_v13 = vsub.f32 %v24485_v27, %v24486_v49  ;;  %v3647_v23 = vsub.f32 %v24487_v58, %v24488_v6  ;;  %v18186_v12 = vsub.f32 %v17881_v35, %v24489_v29  ;;  %v13595_v49 = vpack.c.bf16 %v18155_v62, %v18150_v1  ;;  %v10674_v6 = vpop.f32.mrb[9].mxu0 }
 0x261   :  { %v18193_v38 = vsub.f32 %v17883_v52, %v24491_v22  ;;  %v3522_v58 = vand.u32 4294901760, %v3521_v19  ;;  %v13597_v35 = vpack.c.bf16 %v18167_v11, %v18160_v41  ;;  %v24494_v56 = vand.u32 4294901760, %v24493_v32  ;;  %13594 = vmatprep.subr.bf16.mxu0 %v13593_v16  ;;  %v24500_v22 = vld [vmem:[#allocation24_spill] sm:$0xff] }
 0x262   :  { %24490 = vst [vmem:[#allocation36_spill] sm:$0xff] %v18186_v12  ;;  %v24496_v47 = vand.u32 4294901760, %v24495_v14  ;;  %v18205_v57 = vadd.f32 %v10674_v6, %v10673_v46  ;;  %v13365_v31 = vpack.c.bf16 %v3634_v10, %v3627_v24  ;;  %v3641_v36 = vand.u32 4294901760, %v3640_v13  ;;  %13364 = vmatpush3.bf16.msra.mxu1 %v13363_v8  ;;  %v24502_v10 = vld [vmem:[#allocation44_spill] sm:$0xff]  ;;  %v24504_v6 = vld [vmem:[#allocation47_spill] sm:$0xff]  ;;  %13596 = vmatpush3.bf16.msra.mxu0 %v13595_v49  ;;  %v10428_v8 = vpop.f32.mrb[8].mxu1 }
 0x263   :  { %24492 = vst [vmem:[#allocation80_spill] sm:$0xff] %v18193_v38  ;;  %v3528_v42 = vsub.f32 %v24493_v32, %v24494_v56  ;;  %v3648_v19 = vand.u32 4294901760, %v3647_v23  ;;  %v23009_v63 = vand.u32 4294901760, %v17904_v20  ;;  %v23004_v4 = vand.u32 4294901760, %v17909_v54  ;;  %13598 = vmatprep.subr.bf16.mxu0 %v13597_v35 }
 0x264   :  { %v3535_v52 = vsub.f32 %v24495_v14, %v24496_v47  ;;  %24497 = vst [vmem:[#allocation81_spill] sm:$0xff] %v18205_v57  ;;  %v24499_v27 = vand.u32 4294901760, %v24498_v9  ;;  %v24501_v32 = vand.u32 4294901760, %v24500_v22  ;;  %v13367_v46 = vpack.c.bf16 %v3522_v58, %v3515_v21  ;;  %13366 = vmatprep.subr.bf16.mxu1 %v13365_v31  ;;  %v18337_v57 = vld [vmem:[#allocation2 + $0x580] sm:$0xff] }
 0x265   :  { %v13599_v39 = vpack.c.bf16 %v18193_v38, %v18186_v12  ;;  %v23003_v13 = vand.u32 4294901760, %v17921_v0  ;;  %v3529_v43 = vand.u32 4294901760, %v3528_v42  ;;  %v24503_v23 = vand.u32 4294901760, %v24502_v10 }
 0x266   :  { %v3654_v29 = vsub.f32 %v24498_v9, %v24499_v27  ;;  %v3661_v56 = vsub.f32 %v24500_v22, %v24501_v32  ;;  %v3536_v24 = vand.u32 4294901760, %v3535_v52  ;;  %v24505_v14 = vand.u32 4294901760, %v24504_v6  ;;  %v10429_v32 = vpop.f32.mrb[9].mxu1  ;;  %13368 = vmatpush3.bf16.msra.mxu1 %v13367_v46 }
 0x267   :  { %v3542_v16 = vsub.f32 %v24502_v10, %v24503_v23  ;;  %v13369_v9 = vpack.c.bf16 %v3648_v19, %v3641_v36  ;;  %v23002_v21 = vand.u32 4294901760, %v17926_v37  ;;  %v23001_v58 = vand.u32 4294901760, %v17931_v3  ;;  %v24506_v10 = vld [vmem:[#allocation53_spill] sm:$0xff]  ;;  %13600 = vmatpush3.bf16.msra.mxu0 %v13599_v39 }
 0x268   :  { %v3549_v47 = vsub.f32 %v24504_v6, %v24505_v14  ;;  %v22996_v27 = vand.u32 4294901760, %v17936_v17  ;;  %v13633_v42 = vpack.c.bf16 %v23004_v4, %v23009_v63  ;;  %v3655_v52 = vand.u32 4294901760, %v3654_v29  ;;  %v24507_v14 = vld [vmem:[#allocation49_spill] sm:$0xff]  ;;  %v18368_v63 = vld [vmem:[#allocation2 + $0x598] sm:$0xff] }
 0x269   :  { %v3662_v22 = vand.u32 4294901760, %v3661_v56  ;;  %v18232_v49 = vadd.s32 1408, %v24506_v10  ;;  %v10430_v31 = vadd.f32 %v10429_v32, %v10428_v8  ;;  %v13371_v36 = vpack.c.bf16 %v3536_v24, %v3529_v43  ;;  %13370 = vmatprep.subr.bf16.mxu1 %v13369_v9  ;;  %v24508_v9 = vld [vmem:[#allocation56_spill] sm:$0xff]  ;;  %v24509_v8 = vld [vmem:[#allocation50_spill] sm:$0xff] }
 0x26a   :  { %v3543_v19 = vand.u32 4294901760, %v3542_v16  ;;  %v3550_v23 = vand.u32 4294901760, %v3549_v47  ;;  %v13635_v35 = vpack.c.bf16 %v23002_v21, %v23003_v13  ;;  %v13637_v29 = vpack.c.bf16 %v22996_v27, %v23001_v58  ;;  %13634 = vmatprep.subr.bf16.mxu0 %v13633_v42  ;;  %4667 = vmatmul.mubr.f32.vlgmr.msra.gmra.mrb[22].mxu0 %v17831_v51  ;;  %v24520_v27 = vld [vmem:[#allocation58_spill] sm:$0xff]  ;;  %v24523_v21 = vld [vmem:[#allocation88_spill] sm:$0xff]  ;;  %v10743_v51 = vpop.f32.mrb[10].mxu0 }
 0x26b   :  { %v22995_v56 = vand.u32 4294901760, %v17941_v50  ;;  %v22994_v6 = vand.u32 4294901760, %v17946_v40  ;;  %v1601_v46 = vadd.f32 %v10430_v31, %v18041_v44  ;;  %v13373_v43 = vpack.c.bf16 %v3662_v22, %v3655_v52  ;;  %13372 = vmatpush3.bf16.msra.mxu1 %v13371_v36  ;;  %4941 = vmatprep.mubr.f32.mxu0 %v24509_v8  ;;  %v24510_v36 = vld [vmem:[#allocation54_spill] sm:$0xff] }
 0x26c   :  { %v22991_v39 = vand.u32 4294901760, %v17966_v28  ;;  %v22990_v24 = vand.u32 4294901760, %v17971_v15  ;;  %v13375_v16 = vpack.c.bf16 %v3550_v23, %v3543_v19  ;;  %vm149_vm14 = vcmp.eq.s32.totalorder %v18232_v49, %v24508_v9  ;;  %13636 = vmatpush3.bf16.msra.mxu0 %v13635_v35  ;;  %v24511_v19 = vld [vmem:[#allocation83_spill] sm:$0xff]  ;;  %v24560_v8 = vld [vmem:[#allocation70_spill] sm:$0xff] }
 0x26d   :  { %v18249_v47 = vadd.f32 %v24507_v14, %v1601_v46  ;;  %v13639_v44 = vpack.c.bf16 %v22994_v6, %v22995_v56  ;;  %v22989_v42 = vand.u32 4294901760, %v17976_v45  ;;  %v22988_v52 = vand.u32 4294901760, %v17984_v25  ;;  %13374 = vmatprep.subr.bf16.mxu1 %v13373_v43  ;;  %13638 = vmatprep.subr.bf16.mxu0 %v13637_v29  ;;  %v24512_v46 = vld [vmem:[#allocation55_spill] sm:$0xff] }
 0x26e   :  { %v13641_v22 = vpack.c.bf16 %v22990_v24, %v22991_v39  ;;  %v22993_v32 = vand.u32 4294901760, %v17989_v30  ;;  %v22992_v31 = vand.u32 4294901760, %v18000_v33  ;;  %vm124_vm15 = vcmp.eq.s32.totalorder %v18232_v49, %v24510_v36  ;;  %v24516_v24 = vld [vmem:[#allocation84_spill] sm:$0xff] }
 0x26f   :  { %vm170_vm0 = vmor %vm124_vm15, %vm149_vm14  ;;  %13376 = vmatpush3.bf16.msra.mxu1 %v13375_v16  ;;  %v13643_v23 = vpack.c.bf16 %v22988_v52, %v22989_v42  ;;  %v22998_v35 = vand.u32 4294901760, %v18012_v55  ;;  %v22997_v29 = vand.u32 4294901760, %v18021_v48  ;;  %vm195_vm1 = vcmp.eq.s32.totalorder %v18232_v49, %v24512_v46  ;;  %v24514_v52 = vld [vmem:[#allocation22_spill] sm:$0xff]  ;;  %v24515_v42 = vld [vmem:[#allocation59_spill] sm:$0xff] }
 0x270   :  { %13640 = vmatpush3.bf16.msra.mxu0 %v13639_v44  ;;  %13410 = vmatprep.subr.bf16.mxu1 %v24511_v19  ;;  %v13645_v43 = vpack.c.bf16 %v22992_v31, %v22993_v32  ;;  %v23000_v16 = vand.u32 4294901760, %v18026_v18  ;;  %v22999_v14 = vand.u32 4294901760, %v18053_v53  ;;  %vm216_vm2 = vmor %vm170_vm0, %vm195_vm1  ;;  %v24513_v44 = vld [vmem:[#allocation57_spill] sm:$0xff]  ;;  %vm287_vm4 = vcmp.eq.s32.totalorder %v18232_v49, %v24515_v42 }
 0x271   :  { %13642 = vmatprep.subr.bf16.mxu0 %v13641_v22  ;;  %vm241_vm3 = vcmp.eq.s32.totalorder %v18232_v49, %v24513_v44  ;;  %v24517_v22 = vld [vmem:[#allocation82_spill] sm:$0xff]  ;;  %v24519_v31 = vld [vmem:[#allocation85_spill] sm:$0xff]  ;;  %v13647_v32 = vpack.c.bf16 %v22997_v29, %v22998_v35  ;;  %v23006_v6 = vand.u32 4294901760, %v18058_v2  ;;  %v23005_v56 = vand.u32 4294901760, %v18066_v34  ;;  %v24522_v35 = vld [vmem:[#allocation87_spill] sm:$0xff] }
 0x272   :  { %3667 = vmatmul.mubr.f32.vlgmr.msra.gmra.mrb[22].mxu1 %v24514_v52  ;;  %v24518_v39 = vand.u32 4294901760, %v24517_v22  ;;  %vm262_vm5 = vmor %vm216_vm2, %vm241_vm3  ;;  %v13649_v22 = vpack.c.bf16 %v22999_v14, %v23000_v16  ;;  %vm333_vm7 = vcmp.eq.s32.totalorder %v18232_v49, %v24520_v27  ;;  %v24521_v29 = vld [vmem:[#allocation86_spill] sm:$0xff]  ;;  %v23014_v14 = vand.u32 4294901760, %v18096_v5  ;;  %v18579_v30 = vld [vmem:[#allocation2 + $0x560] sm:$0xff] }
 0x273   :  { %13412 = vmatpush3.bf16.msra.mxu1 %v24516_v24  ;;  %vm308_vm6 = vmor %vm262_vm5, %vm287_vm4  ;;  %v23013_v16 = vand.u32 4294901760, %v18119_v59  ;;  %v23015_v58 = vand.u32 4294901760, %v18129_v26  ;;  %v24524_v13 = vmov 0.0   ;;  %v18339_v5 = vld [vmem:[#allocation2 + $0x588] sm:$0xff]  ;;  %v24534_v26 = vld [vmem:[#allocation51_spill] sm:$0xff] }
 0x274   :  { %3909 = vmatprep.mubr.f32.mxu1 %v24518_v39  ;;  %13644 = vmatpush3.bf16.msra.mxu0 %v13643_v23  ;;  %v23008_v39 = vand.u32 4294901760, %v18086_v61  ;;  %v23007_v23 = vand.u32 4294901760, %v18091_v7  ;;  %vm354_vm8 = vmor %vm308_vm6, %vm333_vm7  ;;  %v18400_v7 = vld [vmem:[#allocation2 + $0x5a8] sm:$0xff] }
 0x275   :  { %13414 = vmatprep.subr.bf16.mxu1 %v24519_v31  ;;  %13646 = vmatprep.subr.bf16.mxu0 %v13645_v43  ;;  %v13651_v43 = vpack.c.bf16 %v23005_v56, %v23006_v6  ;;  %v18322_v4 = vsel %vm354_vm8, 1.0, %v24524_v13  ;;  %v24526_v56 = vld [vmem:[#allocation89_spill] sm:$0xff]  ;;  %v23025_v6 = vand.u32 4294901760, %v18150_v1 }
 0x276   :  { %v13653_v49 = vpack.c.bf16 %v23007_v23, %v23008_v39  ;;  %24525 = vst [vmem:[#allocation78_spill] sm:$0xff] %v18322_v4  ;;  %v18486_v18 = vld [vmem:[#allocation2 + $0x5c8] sm:$0xff] }
 0x277   :  { %13416 = vmatpush3.bf16.msra.mxu1 %v24521_v29 }
 0x278   :  { %13648 = vmatpush3.bf16.msra.mxu0 %v13647_v32  ;;  %13418 = vmatprep.subr.bf16.mxu1 %v24522_v35  ;;  %v23016_v32 = vand.u32 4294901760, %v18124_v60  ;;  %v24533_v60 = vand.u32 4294901760, %v18167_v11 }
 0x279   :  { %13650 = vmatprep.subr.bf16.mxu0 %v13649_v22  ;;  %v13655_v22 = vpack.c.bf16 %v23013_v16, %v23014_v14  ;;  %v18343_v16 = vsub.f32 %v18322_v4, %v18322_v4  ;;  %v10744_v14 = vpop.f32.mrb[11].mxu0  ;;  %v24532_v4 = vand.u32 4294901760, %v18160_v41  ;;  %v10498_v41 = vpop.f32.mrb[10].mxu1 }
 0x27a   :  { %v13657_v39 = vpack.c.bf16 %v23015_v58, %v23016_v32  ;;  %v18346_v23 = vadd.f32 %v10744_v14, %v10743_v51  ;;  %v24530_v58 = vld [vmem:[#allocation20_spill] sm:$0xff]  ;;  %v24531_v32 = vand.u32 4294901760, %v18155_v62  ;;  %v24537_v14 = vand.u32 4294901760, %v18193_v38 }
 0x27b   :  { %13420 = vmatpush3.bf16.msra.mxu1 %v24523_v21  ;;  %24527 = vst [vmem:[#allocation28_spill] sm:$0xff] %v18343_v16  ;;  %v13661_v59 = vpack.c.bf16 %v24533_v60, %v24532_v4  ;;  %v24535_v60 = vld [vmem:[#allocation68_spill] sm:$0xff]  ;;  %v24536_v4 = vand.u32 4294901760, %v18186_v12  ;;  %v24541_v11 = vand.u32 4294901760, %v18343_v16  ;;  %v24545_v12 = vld [vmem:[#allocation65_spill] sm:$0xff] }
 0x27c   :  { %13652 = vmatpush3.bf16.msra.mxu0 %v13651_v43  ;;  %13422 = vmatprep.subr.bf16.mxu1 %v24526_v56  ;;  %24529 = vst [vmem:[#allocation90_spill] sm:$0xff] %v18346_v23  ;;  %v13659_v43 = vpack.c.bf16 %v24531_v32, %v23025_v6  ;;  %v18363_v23 = vld [vmem:[#allocation2 + $0x508] sm:$0xff]  ;;  %v18366_v6 = vld [vmem:[#allocation2 + $0x590] sm:$0xff]  ;;  %v10499_v32 = vpop.f32.mrb[11].mxu1 }
 0x27d   :  { %13654 = vmatprep.subr.bf16.mxu0 %v13653_v49  ;;  %v24528_v49 = vld [vmem:[#allocation91_spill] sm:$0xff]  ;;  %v13663_v51 = vpack.c.bf16 %v24537_v14, %v24536_v4  ;;  %v5151_v1 = vsub.f32 %v18343_v16, %v24541_v11  ;;  %v24547_v61 = vand.u32 4294901760, %v18363_v23 }
 0x27e   :  { %v18391_v14 = vld [vmem:[#allocation2 + $0x510] sm:$0xff]  ;;  %v18393_v4 = vld [vmem:[#allocation2 + $0x518] sm:$0xff] }
 0x27f   :  { %13424 = vmatpush3.bf16.msra.mxu1 %v24528_v49  ;;  %v5152_v53 = vand.u32 4294901760, %v5151_v1  ;;  %v24557_v1 = vand.u32 4294901760, %v18391_v14  ;;  %v24558_v38 = vand.u32 4294901760, %v18393_v4 }
 0x280   :  { %13656 = vmatpush3.bf16.msra.mxu0 %v13655_v22  ;;  %13426 = vmatprep.subr.bf16.mxu1 %v24530_v58  ;;  %v18361_v22 = vld [vmem:[#allocation2 + $0x500] sm:$0xff] }
 0x281   :  { %13658 = vmatprep.subr.bf16.mxu0 %v13657_v39  ;;  %v18371_v39 = vadd.s32 1280, %v24506_v10  ;;  %v24538_v10 = vand.u32 4294901760, %v18337_v57  ;;  %v24546_v11 = vand.u32 4294901760, %v18361_v22 }
 0x283   :  { %13428 = vmatpush3.bf16.msra.mxu1 %v24534_v26  ;;  %vm148_vm9 = vcmp.eq.s32.totalorder %v18371_v39, %v24508_v9  ;;  %vm123_vm10 = vcmp.eq.s32.totalorder %v18371_v39, %v24510_v36  ;;  %v18417_v34 = vpack.c.bf16 %v24547_v61, %v24546_v11  ;;  %vm194_vm12 = vcmp.eq.s32.totalorder %v18371_v39, %v24512_v46  ;;  %v18437_v46 = vld [vmem:[#allocation2 + $0x5b0] sm:$0xff]  ;;  %v24556_v11 = vld [vmem:[#allocation61_spill] sm:$0xff] }
 0x284   :  { %13660 = vmatpush3.bf16.msra.mxu0 %v13659_v43  ;;  %13430 = vmatprep.subr.bf16.mxu1 %v24535_v60  ;;  %v24539_v43 = vand.u32 4294901760, %v18339_v5  ;;  %vm18408_vm11 = vmor %vm123_vm10, %vm148_vm9  ;;  %v24550_v9 = vand.u32 4294901760, %v18368_v63  ;;  %vm240_vm14 = vcmp.eq.s32.totalorder %v18371_v39, %v24513_v44  ;;  %vm286_vm15 = vcmp.eq.s32.totalorder %v18371_v39, %v24515_v42  ;;  %v18513_v44 = vld [vmem:[#allocation2 + $0x540] sm:$0xff] }
 0x285   :  { %13662 = vmatprep.subr.bf16.mxu0 %v13661_v59  ;;  %v18398_v59 = vld [vmem:[#allocation2 + $0x5a0] sm:$0xff]  ;;  %24548 = vst [vmem:[#allocation75_spill] sm:$0xff] %v18417_v34  ;;  %vm18443_vm13 = vmor %vm18408_vm11, %vm194_vm12  ;;  %vm332_vm2 = vcmp.eq.s32.totalorder %v18371_v39, %v24520_v27  ;;  %v24568_v39 = vand.u32 4294901760, %v18437_v46 }
 0x286   :  { %v18387_v62 = vpack.c.bf16 %v24539_v43, %v24538_v10  ;;  %v10500_v10 = vadd.f32 %v10499_v32, %v10498_v41  ;;  %v24542_v43 = vld [vmem:[#allocation62_spill] sm:$0xff]  ;;  %v18433_v41 = vld [vmem:[#allocation2 + $0x520] sm:$0xff]  ;;  %vm261_vm0 = vmor %vm18443_vm13, %vm240_vm14 }
 0x287   :  { %13432 = vmatpush3.bf16.msra.mxu1 %v24542_v43  ;;  %v18435_v32 = vld [vmem:[#allocation2 + $0x528] sm:$0xff]  ;;  %vm307_vm1 = vmor %vm261_vm0, %vm286_vm15 }
 0x288   :  { %24540 = vst [vmem:[#allocation92_spill] sm:$0xff] %v18387_v62  ;;  %13664 = vmatpush3.bf16.msra.mxu0 %v13663_v51  ;;  %13434 = vmatprep.subr.bf16.mxu1 %v24545_v12  ;;  %v1945_v36 = vadd.f32 %v10500_v10, %v18249_v47  ;;  %v24549_v51 = vand.u32 4294901760, %v18366_v6  ;;  %v18439_v47 = vld [vmem:[#allocation2 + $0x5b8] sm:$0xff]  ;;  %v24565_v10 = vand.u32 4294901760, %v18433_v41  ;;  %vm353_vm3 = vmor %vm307_vm1, %vm332_vm2 }
 0x289   :  { %13698 = vmatprep.subr.bf16.mxu0 %v18387_v62  ;;  %v18461_v62 = vpack.c.bf16 %v24558_v38, %v24557_v1  ;;  %v18475_v1 = vld [vmem:[#allocation2 + $0x530] sm:$0xff]  ;;  %v18477_v38 = vld [vmem:[#allocation2 + $0x538] sm:$0xff]  ;;  %v24569_v27 = vand.u32 4294901760, %v18439_v47  ;;  %v18536_v55 = vsel %vm353_vm3, 1.0, %v24524_v13  ;;  %v18553_v13 = vld [vmem:[#allocation2 + $0x5e8] sm:$0xff] }
 0x28a   :  { %v18429_v2 = vpack.c.bf16 %v24550_v9, %v24549_v51  ;;  %v24554_v9 = vld [vmem:[#allocation29_spill] sm:$0xff]  ;;  %v18452_v61 = vadd.f32 %v24556_v11, %v1945_v36  ;;  %v24561_v36 = vand.u32 4294901760, %v18398_v59  ;;  %v24562_v11 = vand.u32 4294901760, %v18400_v7  ;;  %24578 = vst [vmem:[#allocation49_spill] sm:$0xff] %v18536_v55  ;;  %24584 = vst [vmem:[#allocation85_spill] sm:$0xff] %v18553_v13 }
 0x28b   :  { %4943 = vmatmul.mubr.f32.vlgmr.msra.gmra.mrb[24].mxu0 %v24554_v9  ;;  %v24555_v51 = vld [vmem:[#allocation69_spill] sm:$0xff]  ;;  %24559 = vst [vmem:[#allocation35_spill] sm:$0xff] %v18461_v62  ;;  %v18509_v42 = vpack.c.bf16 %v24569_v27, %v24568_v39  ;;  %v24574_v27 = vld [vmem:[#allocation43_spill] sm:$0xff]  ;;  %v24575_v39 = vand.u32 4294901760, %v18475_v1  ;;  %v24596_v52 = vand.u32 4294901760, %v18553_v13  ;;  %v24603_v13 = vand.u32 4294901760, %v18337_v57 }
 0x28c   :  { %24551 = vst [vmem:[#allocation32_spill] sm:$0xff] %v18429_v2  ;;  %13436 = vmatpush3.bf16.msra.mxu1 %v24555_v51  ;;  %13700 = vmatpush3.bf16.msra.mxu0 %v18417_v34  ;;  %v18471_v34 = vpack.c.bf16 %v24562_v11, %v24561_v36  ;;  %v18484_v9 = vld [vmem:[#allocation2 + $0x5c0] sm:$0xff]  ;;  %v24564_v36 = vld [vmem:[#allocation71_spill] sm:$0xff]  ;;  %v24566_v11 = vand.u32 4294901760, %v18435_v32 }
 0x28d   :  { %5153 = vmatprep.mubr.f32.mxu0 %v5152_v53  ;;  %13438 = vmatprep.subr.bf16.mxu1 %v24560_v8  ;;  %24570 = vst [vmem:[#allocation24_spill] sm:$0xff] %v18509_v42 }
 0x28e   :  { %13702 = vmatprep.subr.bf16.mxu0 %v18429_v2  ;;  %24563 = vst [vmem:[#allocation37_spill] sm:$0xff] %v18471_v34  ;;  %v18500_v48 = vpack.c.bf16 %v24566_v11, %v24565_v10  ;;  %v18515_v10 = vld [vmem:[#allocation2 + $0x548] sm:$0xff]  ;;  %v24571_v11 = vld [vmem:[#allocation60_spill] sm:$0xff]  ;;  %v18519_v2 = vld [vmem:[#allocation2 + $0x5d0] sm:$0xff] }
 0x28f   :  { %v24572_v53 = vand.u32 4294901760, %v24571_v11  ;;  %v18551_v11 = vld [vmem:[#allocation2 + $0x5e0] sm:$0xff] }
 0x290   :  { %13440 = vmatpush3.bf16.msra.mxu1 %v24564_v36  ;;  %13704 = vmatpush3.bf16.msra.mxu0 %v18461_v62  ;;  %24567 = vst [vmem:[#allocation40_spill] sm:$0xff] %v18500_v48  ;;  %v24576_v62 = vand.u32 4294901760, %v18477_v38  ;;  %24583 = vst [vmem:[#allocation82_spill] sm:$0xff] %v18551_v11 }
 0x291   :  { %13474 = vmatprep.subr.bf16.mxu1 %v24511_v19  ;;  %13706 = vmatprep.subr.bf16.mxu0 %v18471_v34  ;;  %v18521_v34 = vld [vmem:[#allocation2 + $0x5d8] sm:$0xff] }
 0x292   :  { %24573 = vst [vmem:[#allocation44_spill] sm:$0xff] %v18521_v34  ;;  %v18531_v19 = vpack.c.bf16 %v24576_v62, %v24575_v39  ;;  %v18547_v39 = vld [vmem:[#allocation2 + $0x550] sm:$0xff] }
 0x293   :  { %3913 = vmatmul.mubr.f32.vlgmr.msra.gmra.mrb[24].mxu1 %v24572_v53  ;;  %24582 = vst [vmem:[#allocation84_spill] sm:$0xff] %v18547_v39  ;;  %v18549_v53 = vld [vmem:[#allocation2 + $0x558] sm:$0xff] }
 0x294   :  { %13476 = vmatpush3.bf16.msra.mxu1 %v24516_v24  ;;  %4183 = vmatprep.mubr.f32.mxu1 %v24574_v27  ;;  %24577 = vst [vmem:[#allocation47_spill] sm:$0xff] %v18531_v19  ;;  %v24579_v24 = vand.u32 4294901760, %v18484_v9  ;;  %v24580_v27 = vand.u32 4294901760, %v18486_v18 }
 0x295   :  { %13708 = vmatpush3.bf16.msra.mxu0 %v18500_v48  ;;  %13478 = vmatprep.subr.bf16.mxu1 %v24519_v31  ;;  %v18585_v48 = vld [vmem:[#allocation2 + $0x5f8] sm:$0xff] }
 0x296   :  { %13710 = vmatprep.subr.bf16.mxu0 %v18509_v42  ;;  %v18543_v31 = vpack.c.bf16 %v24580_v27, %v24579_v24  ;;  %v18558_v42 = vsub.f32 %v18536_v55, %v18536_v55  ;;  %v24586_v24 = vand.u32 4294901760, %v18513_v44  ;;  %v24587_v27 = vand.u32 4294901760, %v18515_v10 }
 0x297   :  { %v24590_v55 = vand.u32 4294901760, %v18521_v34 }
 0x298   :  { %24581 = vst [vmem:[#allocation83_spill] sm:$0xff] %v18543_v31  ;;  %13480 = vmatpush3.bf16.msra.mxu1 %v24521_v29  ;;  %24585 = vst [vmem:[#allocation86_spill] sm:$0xff] %v18558_v42  ;;  %v18566_v62 = vpack.c.bf16 %v24587_v27, %v24586_v24  ;;  %v24589_v29 = vand.u32 4294901760, %v18519_v2  ;;  %v18581_v24 = vld [vmem:[#allocation2 + $0x568] sm:$0xff]  ;;  %v18583_v27 = vld [vmem:[#allocation2 + $0x5f0] sm:$0xff] }
 0x299   :  { %13712 = vmatpush3.bf16.msra.mxu0 %v18531_v19  ;;  %13482 = vmatprep.subr.bf16.mxu1 %v24522_v35 }
 0x29a   :  { %24588 = vst [vmem:[#allocation87_spill] sm:$0xff] %v18566_v62  ;;  %13714 = vmatprep.subr.bf16.mxu0 %v18543_v31  ;;  %v18575_v33 = vpack.c.bf16 %v24590_v55, %v24589_v29  ;;  %v24592_v55 = vand.u32 4294901760, %v18547_v39  ;;  %v24593_v29 = vand.u32 4294901760, %v18549_v53  ;;  %v18608_v39 = vld [vmem:[#allocation2 + $0x570] sm:$0xff]  ;;  %v24598_v31 = vand.u32 4294901760, %v18558_v42 }
 0x29c   :  { %24591 = vst [vmem:[#allocation88_spill] sm:$0xff] %v18575_v33  ;;  %13484 = vmatpush3.bf16.msra.mxu1 %v24523_v21  ;;  %v18595_v19 = vpack.c.bf16 %v24593_v29, %v24592_v55  ;;  %v24595_v21 = vand.u32 4294901760, %v18551_v11  ;;  %v18610_v55 = vld [vmem:[#allocation2 + $0x578] sm:$0xff]  ;;  %v10813_v29 = vpop.f32.mrb[12].mxu0 }
 0x29d   :  { %13716 = vmatpush3.bf16.msra.mxu0 %v18566_v62  ;;  %13486 = vmatprep.subr.bf16.mxu1 %v24526_v56  ;;  %v10814_v35 = vpop.f32.mrb[13].mxu0 }
 0x29e   :  { %24594 = vst [vmem:[#allocation89_spill] sm:$0xff] %v18595_v19  ;;  %13718 = vmatprep.subr.bf16.mxu0 %v18575_v33  ;;  %v18604_v34 = vpack.c.bf16 %v24596_v52, %v24595_v21  ;;  %v5157_v33 = vsub.f32 %v18558_v42, %v24598_v31  ;;  %v18616_v11 = vadd.f32 %v10814_v35, %v10813_v29  ;;  %v24600_v52 = vand.u32 4294901760, %v18579_v30 }
 0x29f   :  { %v24601_v21 = vand.u32 4294901760, %v18581_v24  ;;  %v18631_v31 = vsub.f32 %v18337_v57, %v24603_v13  ;;  %v24604_v35 = vand.u32 4294901760, %v18339_v5  ;;  %v24609_v57 = vand.u32 4294901760, %v18363_v23 }
 0x2a0   :  { %24597 = vst [vmem:[#allocation91_spill] sm:$0xff] %v18604_v34  ;;  %13488 = vmatpush3.bf16.msra.mxu1 %v24528_v49  ;;  %24599 = vst [vmem:[#allocation20_spill] sm:$0xff] %v18616_v11  ;;  %v24608_v49 = vand.u32 4294901760, %v18361_v22  ;;  %v24702_v11 = vld [vmem:[#allocation74_spill] sm:$0xff] }
 0x2a1   :  { %13720 = vmatpush3.bf16.msra.mxu0 %v18595_v19  ;;  %13490 = vmatprep.subr.bf16.mxu1 %v24530_v58  ;;  %v18624_v62 = vpack.c.bf16 %v24601_v21, %v24600_v52  ;;  %v18636_v29 = vsub.f32 %v18339_v5, %v24604_v35  ;;  %v24605_v58 = vand.u32 4294901760, %v18583_v27  ;;  %v24606_v52 = vand.u32 4294901760, %v18585_v48 }
 0x2a2   :  { %13722 = vmatprep.subr.bf16.mxu0 %v18604_v34  ;;  %v18648_v56 = vsub.f32 %v18361_v22, %v24608_v49  ;;  %v18653_v13 = vsub.f32 %v18363_v23, %v24609_v57  ;;  %v24610_v5 = vand.u32 4294901760, %v18366_v6  ;;  %v24611_v34 = vand.u32 4294901760, %v18368_v63 }
 0x2a3   :  { %24602 = vst [vmem:[#allocation51_spill] sm:$0xff] %v18624_v62  ;;  %v18643_v21 = vpack.c.bf16 %v24606_v52, %v24605_v58  ;;  %v24612_v52 = vand.u32 4294901760, %v18391_v14  ;;  %v24613_v49 = vand.u32 4294901760, %v18393_v4  ;;  %v5158_v57 = vand.u32 4294901760, %v5157_v33 }
 0x2a4   :  { %v18658_v35 = vsub.f32 %v18366_v6, %v24610_v5  ;;  %v18663_v58 = vsub.f32 %v18368_v63, %v24611_v34  ;;  %13492 = vmatpush3.bf16.msra.mxu1 %v24534_v26  ;;  %v24614_v6 = vand.u32 4294901760, %v18608_v39  ;;  %v24615_v34 = vand.u32 4294901760, %v18610_v55 }
 0x2a5   :  { %24607 = vst [vmem:[#allocation68_spill] sm:$0xff] %v18643_v21  ;;  %v18668_v22 = vsub.f32 %v18391_v14, %v24612_v52  ;;  %v18673_v23 = vsub.f32 %v18393_v4, %v24613_v49  ;;  %13724 = vmatpush3.bf16.msra.mxu0 %v18624_v62  ;;  %13494 = vmatprep.subr.bf16.mxu1 %v24535_v60  ;;  %v24617_v14 = vand.u32 4294901760, %v17904_v20  ;;  %v24618_v4 = vand.u32 4294901760, %v17909_v54 }
 0x2a6   :  { %v18682_v63 = vpack.c.bf16 %v24615_v34, %v24614_v6  ;;  %v24619_v26 = vand.u32 4294901760, %v18398_v59  ;;  %v24620_v60 = vand.u32 4294901760, %v18400_v7  ;;  %v24621_v33 = vand.u32 4294901760, %v18433_v41  ;;  %13726 = vmatprep.subr.bf16.mxu0 %v18643_v21 }
 0x2a7   :  { %v4418_v5 = vsub.f32 %v17904_v20, %v24617_v14  ;;  %v4425_v52 = vsub.f32 %v17909_v54, %v24618_v4  ;;  %v10568_v20 = vpop.f32.mrb[12].mxu1  ;;  %v13761_v54 = vpack.c.bf16 %v18636_v29, %v18631_v31  ;;  %v24622_v34 = vand.u32 4294901760, %v18435_v32 }
 0x2a8   :  { %24616 = vst [vmem:[#allocation62_spill] sm:$0xff] %v18682_v63  ;;  %v18693_v49 = vsub.f32 %v18398_v59, %v24619_v26  ;;  %v18698_v62 = vsub.f32 %v18400_v7, %v24620_v60  ;;  %v18703_v6 = vsub.f32 %v18433_v41, %v24621_v33  ;;  %v24623_v14 = vand.u32 4294901760, %v18437_v46  ;;  %v10569_v4 = vpop.f32.mrb[13].mxu1  ;;  %13496 = vmatpush3.bf16.msra.mxu1 %v24542_v43 }
 0x2a9   :  { %v18711_v59 = vsub.f32 %v18435_v32, %v24622_v34  ;;  %v24625_v41 = vand.u32 4294901760, %v17921_v0  ;;  %v24626_v60 = vand.u32 4294901760, %v17926_v37  ;;  %v24627_v21 = vand.u32 4294901760, %v18439_v47  ;;  %13728 = vmatpush3.bf16.msra.mxu0 %v18682_v63  ;;  %13498 = vmatprep.subr.bf16.mxu1 %v24545_v12 }
 0x2aa   :  { %v18716_v7 = vsub.f32 %v18437_v46, %v24623_v14  ;;  %v10570_v32 = vadd.f32 %v10569_v4, %v10568_v20  ;;  %v24629_v46 = vand.u32 4294901760, %v17931_v3  ;;  %v24630_v14 = vand.u32 4294901760, %v17936_v17  ;;  %13762 = vmatprep.subr.bf16.mxu0 %v13761_v54 }
 0x2ab   :  { %v4306_v26 = vsub.f32 %v17921_v0, %v24625_v41  ;;  %v4313_v33 = vsub.f32 %v17926_v37, %v24626_v60  ;;  %v18727_v19 = vsub.f32 %v18439_v47, %v24627_v21  ;;  %v24631_v41 = vand.u32 4294901760, %v18475_v1 }
 0x2ac   :  { %24624 = vst [vmem:[#allocation65_spill] sm:$0xff] %v18716_v7  ;;  %v4432_v34 = vsub.f32 %v17931_v3, %v24629_v46  ;;  %v4439_v0 = vsub.f32 %v17936_v17, %v24630_v14  ;;  %v13763_v43 = vpack.c.bf16 %v18653_v13, %v18648_v56  ;;  %v4419_v47 = vand.u32 4294901760, %v4418_v5  ;;  %5159 = vmatmul.mubr.f32.vlgmr.msra.gmra.mrb[26].mxu0 %v5158_v57 }
 0x2ad   :  { %24628 = vst [vmem:[#allocation69_spill] sm:$0xff] %v18727_v19  ;;  %v18739_v37 = vsub.f32 %v18475_v1, %v24631_v41  ;;  %v4426_v21 = vand.u32 4294901760, %v4425_v52  ;;  %v24633_v3 = vand.u32 4294901760, %v18477_v38  ;;  %v24635_v17 = vand.u32 4294901760, %v18484_v9  ;;  %13500 = vmatpush3.bf16.msra.mxu1 %v24555_v51  ;;  %5526 = vmatprep.mubr.f32.mxu0 %v18343_v16 }
 0x2ae   :  { %v2191_v1 = vadd.f32 %v10570_v32, %v18452_v61  ;;  %v13765_v12 = vpack.c.bf16 %v18663_v58, %v18658_v35  ;;  %v13767_v5 = vpack.c.bf16 %v18673_v23, %v18668_v22  ;;  %v4307_v52 = vand.u32 4294901760, %v4306_v26  ;;  %v24639_v32 = vld [vmem:[#allocation46_spill] sm:$0xff]  ;;  %13764 = vmatpush3.bf16.msra.mxu0 %v13763_v43  ;;  %13502 = vmatprep.subr.bf16.mxu1 %v24560_v8 }
 0x2af   :  { %24632 = vst [vmem:[#allocation61_spill] sm:$0xff] %v18739_v37  ;;  %v18748_v20 = vsub.f32 %v18477_v38, %v24633_v3  ;;  %v18753_v4 = vsub.f32 %v18484_v9, %v24635_v17  ;;  %v4314_v60 = vand.u32 4294901760, %v4313_v33  ;;  %v24637_v46 = vand.u32 4294901760, %v17941_v50 }
 0x2b0   :  { %v4433_v9 = vand.u32 4294901760, %v4432_v34  ;;  %v4440_v14 = vand.u32 4294901760, %v4439_v0  ;;  %v24638_v61 = vand.u32 4294901760, %v17946_v40  ;;  %v18768_v41 = vadd.f32 %v24639_v32, %v2191_v1  ;;  %13766 = vmatprep.subr.bf16.mxu0 %v13765_v12  ;;  %v24650_v32 = vld [vmem:[#allocation23_spill] sm:$0xff] }
 0x2b1   :  { %24634 = vst [vmem:[#allocation70_spill] sm:$0xff] %v18748_v20  ;;  %24636 = vst [vmem:[#allocation71_spill] sm:$0xff] %v18753_v4  ;;  %v4320_v38 = vsub.f32 %v17941_v50, %v24637_v46  ;;  %v13537_v26 = vpack.c.bf16 %v4426_v21, %v4419_v47  ;;  %v24640_v33 = vand.u32 4294901760, %v17966_v28  ;;  %v24641_v57 = vand.u32 4294901760, %v17971_v15  ;;  %13504 = vmatpush3.bf16.msra.mxu1 %v24564_v36 }
 0x2b2   :  { %v4327_v54 = vsub.f32 %v17946_v40, %v24638_v61  ;;  %v24642_v34 = vand.u32 4294901760, %v18486_v18  ;;  %v24644_v40 = vand.u32 4294901760, %v18513_v44  ;;  %v24646_v47 = vand.u32 4294901760, %v18515_v10  ;;  %13768 = vmatpush3.bf16.msra.mxu0 %v13767_v5 }
 0x2b3   :  { %v4446_v50 = vsub.f32 %v17966_v28, %v24640_v33  ;;  %v4453_v51 = vsub.f32 %v17971_v15, %v24641_v57  ;;  %v13769_v28 = vpack.c.bf16 %v18698_v62, %v18693_v49  ;;  %v24648_v21 = vand.u32 4294901760, %v17976_v45  ;;  %13538 = vmatprep.subr.bf16.mxu1 %v13537_v26  ;;  %v24662_v26 = vld [vmem:[#allocation22_spill] sm:$0xff] }
 0x2b4   :  { %v18780_v0 = vsub.f32 %v18486_v18, %v24642_v34  ;;  %v18785_v43 = vsub.f32 %v18513_v44, %v24644_v40  ;;  %v18793_v15 = vsub.f32 %v18515_v10, %v24646_v47  ;;  %v13771_v18 = vpack.c.bf16 %v18711_v59, %v18703_v6  ;;  %v24652_v34 = vld [vmem:[#allocation25_spill] sm:$0xff]  ;;  %4185 = vmatmul.mubr.f32.vlgmr.msra.gmra.mrb[26].mxu1 %v24662_v26 }
 0x2b5   :  { %v4334_v3 = vsub.f32 %v17976_v45, %v24648_v21  ;;  %v24649_v44 = vand.u32 4294901760, %v17984_v25  ;;  %v13539_v17 = vpack.c.bf16 %v4314_v60, %v4307_v52  ;;  %v13541_v1 = vpack.c.bf16 %v4440_v14, %v4433_v9  ;;  %v24656_v52 = vld [vmem:[#allocation44_spill] sm:$0xff]  ;;  %13770 = vmatprep.subr.bf16.mxu0 %v13769_v28  ;;  %v24668_v28 = vld [vmem:[#allocation93_spill] sm:$0xff] }
 0x2b6   :  { %24643 = vst [vmem:[#allocation60_spill] sm:$0xff] %v18780_v0  ;;  %24645 = vst [vmem:[#allocation43_spill] sm:$0xff] %v18785_v43  ;;  %v4321_v12 = vand.u32 4294901760, %v4320_v38  ;;  %v4328_v46 = vand.u32 4294901760, %v4327_v54  ;;  %v4447_v10 = vand.u32 4294901760, %v4446_v50  ;;  %v4454_v61 = vand.u32 4294901760, %v4453_v51  ;;  %13772 = vmatpush3.bf16.msra.mxu0 %v13771_v18 }
 0x2b7   :  { %24647 = vst [vmem:[#allocation46_spill] sm:$0xff] %v18793_v15  ;;  %v4341_v8 = vsub.f32 %v17984_v25, %v24649_v44  ;;  %v24651_v33 = vand.u32 4294901760, %v24650_v32  ;;  %v24653_v45 = vand.u32 4294901760, %v24652_v34  ;;  %v24654_v25 = vand.u32 4294901760, %v18519_v2  ;;  %v24659_v38 = vld [vmem:[#allocation84_spill] sm:$0xff]  ;;  %v24665_v44 = vld [vmem:[#allocation27_spill] sm:$0xff]  ;;  %13540 = vmatpush3.bf16.msra.mxu1 %v13539_v17 }
 0x2b8   :  { %v24657_v60 = vand.u32 4294901760, %v24656_v52  ;;  %v24660_v9 = vand.u32 4294901760, %v24659_v38  ;;  %v13773_v54 = vpack.c.bf16 %v18727_v19, %v18716_v7  ;;  %v4335_v50 = vand.u32 4294901760, %v4334_v3  ;;  %13542 = vmatprep.subr.bf16.mxu1 %v13541_v1 }
 0x2b9   :  { %v4460_v57 = vsub.f32 %v24650_v32, %v24651_v33  ;;  %v4467_v40 = vsub.f32 %v24652_v34, %v24653_v45  ;;  %v18813_v36 = vsub.f32 %v18519_v2, %v24654_v25  ;;  %v4342_v51 = vand.u32 4294901760, %v4341_v8  ;;  %v24663_v2 = vld [vmem:[#allocation19_spill] sm:$0xff]  ;;  %v24667_v34 = vld [vmem:[#allocation50_spill] sm:$0xff] }
 0x2ba   :  { %v18818_v5 = vsub.f32 %v24656_v52, %v24657_v60  ;;  %v18823_v14 = vsub.f32 %v24659_v38, %v24660_v9  ;;  %v24664_v47 = vand.u32 4294901760, %v24663_v2  ;;  %v24666_v32 = vand.u32 4294901760, %v24665_v44  ;;  %4527 = vmatprep.mubr.f32.mxu1 %v24667_v34  ;;  %v24670_v60 = vld [vmem:[#allocation66_spill] sm:$0xff]  ;;  %13774 = vmatprep.subr.bf16.mxu0 %v13773_v54 }
 0x2bb   :  { %24655 = vst [vmem:[#allocation23_spill] sm:$0xff] %v18813_v36  ;;  %v13543_v45 = vpack.c.bf16 %v4328_v46, %v4321_v12  ;;  %v24669_v25 = vand.u32 4294901760, %v24668_v28  ;;  %v24671_v38 = vand.u32 4294901760, %v24670_v60  ;;  %v13775_v8 = vpack.c.bf16 %v18748_v20, %v18739_v37  ;;  %v24674_v46 = vld [vmem:[#allocation82_spill] sm:$0xff] }
 0x2bc   :  { %24658 = vst [vmem:[#allocation25_spill] sm:$0xff] %v18818_v5  ;;  %24661 = vst [vmem:[#allocation44_spill] sm:$0xff] %v18823_v14  ;;  %v4348_v21 = vsub.f32 %v24663_v2, %v24664_v47  ;;  %v4355_v33 = vsub.f32 %v24665_v44, %v24666_v32  ;;  %v13545_v9 = vpack.c.bf16 %v4454_v61, %v4447_v10  ;;  %v4461_v26 = vand.u32 4294901760, %v4460_v57  ;;  %v24677_v32 = vld [vmem:[#allocation85_spill] sm:$0xff] }
 0x2bd   :  { %v4474_v52 = vsub.f32 %v24668_v28, %v24669_v25  ;;  %v4481_v3 = vsub.f32 %v24670_v60, %v24671_v38  ;;  %v4468_v2 = vand.u32 4294901760, %v4467_v40  ;;  %v24672_v17 = vand.u32 4294901760, %v18549_v53  ;;  %13544 = vmatpush3.bf16.msra.mxu1 %v13543_v45  ;;  %v24680_v60 = vld [vmem:[#allocation94_spill] sm:$0xff]  ;;  %13776 = vmatpush3.bf16.msra.mxu0 %v13775_v8 }
 0x2be   :  { %v24675_v47 = vand.u32 4294901760, %v24674_v46  ;;  %v24678_v28 = vand.u32 4294901760, %v24677_v32  ;;  %v13777_v1 = vpack.c.bf16 %v18780_v0, %v18753_v4  ;;  %v13547_v10 = vpack.c.bf16 %v4342_v51, %v4335_v50  ;;  %13546 = vmatprep.subr.bf16.mxu1 %v13545_v9  ;;  %v24684_v50 = vld [vmem:[#allocation72_spill] sm:$0xff] }
 0x2bf   :  { %v18846_v12 = vsub.f32 %v18549_v53, %v24672_v17  ;;  %v13779_v61 = vpack.c.bf16 %v18793_v15, %v18785_v43  ;;  %v4349_v53 = vand.u32 4294901760, %v4348_v21  ;;  %v4356_v57 = vand.u32 4294901760, %v4355_v33  ;;  %v24686_v21 = vld [vmem:[#allocation73_spill] sm:$0xff] }
 0x2c0   :  { %v18851_v44 = vsub.f32 %v24674_v46, %v24675_v47  ;;  %v18856_v18 = vsub.f32 %v24677_v32, %v24678_v28  ;;  %v4475_v40 = vand.u32 4294901760, %v4474_v52  ;;  %v4482_v25 = vand.u32 4294901760, %v4481_v3  ;;  %v24682_v46 = vld [vmem:[#allocation95_spill] sm:$0xff]  ;;  %13778 = vmatprep.subr.bf16.mxu0 %v13777_v1 }
 0x2c1   :  { %24673 = vst [vmem:[#allocation84_spill] sm:$0xff] %v18846_v12  ;;  %v24681_v38 = vand.u32 4294901760, %v24680_v60  ;;  %v24683_v47 = vand.u32 4294901760, %v24682_v46  ;;  %v13549_v32 = vpack.c.bf16 %v4468_v2, %v4461_v26  ;;  %v24685_v51 = vand.u32 4294901760, %v24684_v50  ;;  %13548 = vmatpush3.bf16.msra.mxu1 %v13547_v10  ;;  %13780 = vmatpush3.bf16.msra.mxu0 %v13779_v61 }
 0x2c2   :  { %24676 = vst [vmem:[#allocation22_spill] sm:$0xff] %v18851_v44  ;;  %24679 = vst [vmem:[#allocation19_spill] sm:$0xff] %v18856_v18  ;;  %v24687_v33 = vand.u32 4294901760, %v24686_v21  ;;  %v24688_v52 = vand.u32 4294901760, %v18579_v30  ;;  %v24692_v8 = vand.u32 4294901760, %v18583_v27  ;;  %v13781_v26 = vpack.c.bf16 %v18818_v5, %v18813_v36 }
 0x2c3   :  { %v4362_v17 = vsub.f32 %v24680_v60, %v24681_v38  ;;  %v4369_v54 = vsub.f32 %v24682_v46, %v24683_v47  ;;  %v4488_v28 = vsub.f32 %v24684_v50, %v24685_v51  ;;  %v24690_v60 = vand.u32 4294901760, %v18581_v24  ;;  %v24696_v47 = vld [vmem:[#allocation42_spill] sm:$0xff]  ;;  %v24698_v51 = vld [vmem:[#allocation33_spill] sm:$0xff]  ;;  %13550 = vmatprep.subr.bf16.mxu1 %v13549_v32 }
 0x2c4   :  { %v4495_v45 = vsub.f32 %v24686_v21, %v24687_v33  ;;  %v18877_v3 = vsub.f32 %v18579_v30, %v24688_v52  ;;  %v18887_v9 = vsub.f32 %v18583_v27, %v24692_v8  ;;  %v24694_v2 = vand.u32 4294901760, %v18585_v48  ;;  %13782 = vmatprep.subr.bf16.mxu0 %v13781_v26 }
 0x2c5   :  { %v18882_v38 = vsub.f32 %v18581_v24, %v24690_v60  ;;  %v13783_v30 = vpack.c.bf16 %v18846_v12, %v18823_v14  ;;  %v24697_v24 = vand.u32 4294901760, %v24696_v47  ;;  %v24699_v21 = vand.u32 4294901760, %v24698_v51 }
 0x2c6   :  { %24689 = vst [vmem:[#allocation27_spill] sm:$0xff] %v18877_v3  ;;  %24693 = vst [vmem:[#allocation66_spill] sm:$0xff] %v18887_v9  ;;  %v18894_v46 = vsub.f32 %v18585_v48, %v24694_v2  ;;  %v13551_v1 = vpack.c.bf16 %v4356_v57, %v4349_v53  ;;  %v13553_v33 = vpack.c.bf16 %v4482_v25, %v4475_v40  ;;  %v4363_v52 = vand.u32 4294901760, %v4362_v17  ;;  %v24700_v2 = vld [vmem:[#allocation17_spill] sm:$0xff]  ;;  %v10883_v40 = vpop.f32.mrb[14].mxu0 }
 0x2c7   :  { %24691 = vst [vmem:[#allocation93_spill] sm:$0xff] %v18882_v38  ;;  %v4376_v50 = vsub.f32 %v24696_v47, %v24697_v24  ;;  %v4383_v27 = vsub.f32 %v24698_v51, %v24699_v21  ;;  %v4370_v60 = vand.u32 4294901760, %v4369_v54  ;;  %v4489_v48 = vand.u32 4294901760, %v4488_v28  ;;  %v24708_v54 = vld [vmem:[#allocation76_spill] sm:$0xff]  ;;  %13784 = vmatpush3.bf16.msra.mxu0 %v13783_v30 }
 0x2c8   :  { %24695 = vst [vmem:[#allocation82_spill] sm:$0xff] %v18894_v46  ;;  %v4496_v8 = vand.u32 4294901760, %v4495_v45  ;;  %v24701_v63 = vand.u32 4294901760, %v24700_v2  ;;  %v24703_v34 = vand.u32 4294901760, %v24702_v11  ;;  %v24704_v24 = vand.u32 4294901760, %v18608_v39  ;;  %13552 = vmatpush3.bf16.msra.mxu1 %v13551_v1  ;;  %v24710_v45 = vld [vmem:[#allocation77_spill] sm:$0xff] }
 0x2c9   :  { %v13785_v61 = vpack.c.bf16 %v18856_v18, %v18851_v44  ;;  %v24706_v53 = vand.u32 4294901760, %v18610_v55  ;;  %v4377_v25 = vand.u32 4294901760, %v4376_v50  ;;  %v13555_v17 = vpack.c.bf16 %v4370_v60, %v4363_v52  ;;  %13554 = vmatprep.subr.bf16.mxu1 %v13553_v33  ;;  %v24713_v60 = vld [vmem:[#allocation79_spill] sm:$0xff] }
 0x2ca   :  { %v4502_v16 = vsub.f32 %v24700_v2, %v24701_v63  ;;  %v4509_v47 = vsub.f32 %v24702_v11, %v24703_v34  ;;  %v18913_v10 = vsub.f32 %v18608_v39, %v24704_v24  ;;  %v13787_v63 = vpack.c.bf16 %v18882_v38, %v18877_v3  ;;  %v10884_v34 = vpop.f32.mrb[15].mxu0 }
 0x2cb   :  { %v18920_v57 = vsub.f32 %v18610_v55, %v24706_v53  ;;  %v4384_v11 = vand.u32 4294901760, %v4383_v27  ;;  %v13789_v39 = vpack.c.bf16 %v18894_v46, %v18887_v9  ;;  %v24709_v32 = vand.u32 4294901760, %v24708_v54  ;;  %13786 = vmatprep.subr.bf16.mxu0 %v13785_v61  ;;  %v24715_v53 = vld [vmem:[#allocation31_spill] sm:$0xff] }
 0x2cc   :  { %24705 = vst [vmem:[#allocation85_spill] sm:$0xff] %v18913_v10  ;;  %v24711_v26 = vand.u32 4294901760, %v24710_v45  ;;  %v18932_v51 = vadd.f32 %v10884_v34, %v10883_v40  ;;  %v13557_v50 = vpack.c.bf16 %v4496_v8, %v4489_v48  ;;  %v4503_v21 = vand.u32 4294901760, %v4502_v16  ;;  %13556 = vmatpush3.bf16.msra.mxu1 %v13555_v17  ;;  %v24717_v8 = vld [vmem:[#allocation36_spill] sm:$0xff]  ;;  %13788 = vmatpush3.bf16.msra.mxu0 %v13787_v63  ;;  %v10638_v17 = vpop.f32.mrb[14].mxu1 }
 0x2cd   :  { %24707 = vst [vmem:[#allocation94_spill] sm:$0xff] %v18920_v57  ;;  %v4390_v28 = vsub.f32 %v24708_v54, %v24709_v32  ;;  %v4510_v27 = vand.u32 4294901760, %v4509_v47  ;;  %v23130_v1 = vand.u32 4294901760, %v18631_v31  ;;  %v23125_v52 = vand.u32 4294901760, %v18636_v29  ;;  %v24719_v34 = vld [vmem:[#allocation80_spill] sm:$0xff]  ;;  %13790 = vmatprep.subr.bf16.mxu0 %v13789_v39 }
 0x2ce   :  { %v4397_v55 = vsub.f32 %v24710_v45, %v24711_v26  ;;  %24712 = vst [vmem:[#allocation95_spill] sm:$0xff] %v18932_v51  ;;  %v24714_v2 = vand.u32 4294901760, %v24713_v60  ;;  %v24716_v54 = vand.u32 4294901760, %v24715_v53  ;;  %v13559_v40 = vpack.c.bf16 %v4384_v11, %v4377_v25  ;;  %13558 = vmatprep.subr.bf16.mxu1 %v13557_v50  ;;  %v19064_v51 = vld [vmem:[#allocation2 + $0x680] sm:$0xff] }
 0x2cf   :  { %v13791_v30 = vpack.c.bf16 %v18920_v57, %v18913_v10  ;;  %v23124_v16 = vand.u32 4294901760, %v18648_v56  ;;  %v4391_v33 = vand.u32 4294901760, %v4390_v28  ;;  %v24718_v47 = vand.u32 4294901760, %v24717_v8 }
 0x2d0   :  { %v4516_v24 = vsub.f32 %v24713_v60, %v24714_v2  ;;  %v4523_v32 = vsub.f32 %v24715_v53, %v24716_v54  ;;  %v4398_v48 = vand.u32 4294901760, %v4397_v55  ;;  %v24720_v45 = vand.u32 4294901760, %v24719_v34  ;;  %v10639_v54 = vpop.f32.mrb[15].mxu1  ;;  %13560 = vmatpush3.bf16.msra.mxu1 %v13559_v40 }
 0x2d1   :  { %v4404_v61 = vsub.f32 %v24717_v8, %v24718_v47  ;;  %v13561_v60 = vpack.c.bf16 %v4510_v27, %v4503_v21  ;;  %v23123_v25 = vand.u32 4294901760, %v18653_v13  ;;  %v23122_v11 = vand.u32 4294901760, %v18658_v35  ;;  %v24721_v8 = vld [vmem:[#allocation53_spill] sm:$0xff]  ;;  %13792 = vmatpush3.bf16.msra.mxu0 %v13791_v30 }
 0x2d2   :  { %v4411_v26 = vsub.f32 %v24719_v34, %v24720_v45  ;;  %v23117_v2 = vand.u32 4294901760, %v18663_v58  ;;  %v13825_v28 = vpack.c.bf16 %v23125_v52, %v23130_v1  ;;  %v4517_v55 = vand.u32 4294901760, %v4516_v24  ;;  %v24722_v45 = vld [vmem:[#allocation81_spill] sm:$0xff]  ;;  %v19095_v1 = vld [vmem:[#allocation2 + $0x698] sm:$0xff] }
 0x2d3   :  { %v4524_v53 = vand.u32 4294901760, %v4523_v32  ;;  %v18959_v63 = vadd.s32 1664, %v24721_v8  ;;  %v10640_v50 = vadd.f32 %v10639_v54, %v10638_v17  ;;  %v13563_v21 = vpack.c.bf16 %v4398_v48, %v4391_v33  ;;  %13562 = vmatprep.subr.bf16.mxu1 %v13561_v60  ;;  %v24723_v60 = vld [vmem:[#allocation56_spill] sm:$0xff]  ;;  %v24724_v17 = vld [vmem:[#allocation78_spill] sm:$0xff] }
 0x2d4   :  { %v4405_v27 = vand.u32 4294901760, %v4404_v61  ;;  %v4412_v47 = vand.u32 4294901760, %v4411_v26  ;;  %v13827_v39 = vpack.c.bf16 %v23123_v25, %v23124_v16  ;;  %v13829_v24 = vpack.c.bf16 %v23117_v2, %v23122_v11  ;;  %13826 = vmatprep.subr.bf16.mxu0 %v13825_v28  ;;  %5529 = vmatmul.mubr.f32.vlgmr.msra.gmra.mrb[28].mxu0 %v18558_v42  ;;  %v24735_v2 = vld [vmem:[#allocation58_spill] sm:$0xff]  ;;  %v24738_v25 = vld [vmem:[#allocation15_spill] sm:$0xff]  ;;  %v10953_v42 = vpop.f32.mrb[16].mxu0 }
 0x2d5   :  { %v23116_v32 = vand.u32 4294901760, %v18668_v22  ;;  %v23115_v34 = vand.u32 4294901760, %v18673_v23  ;;  %v2463_v40 = vadd.f32 %v10640_v50, %v18768_v41  ;;  %v13565_v33 = vpack.c.bf16 %v4524_v53, %v4517_v55  ;;  %13564 = vmatpush3.bf16.msra.mxu1 %v13563_v21  ;;  %5803 = vmatprep.mubr.f32.mxu0 %v24724_v17  ;;  %v24725_v21 = vld [vmem:[#allocation54_spill] sm:$0xff] }
 0x2d6   :  { %v23112_v30 = vand.u32 4294901760, %v18693_v49  ;;  %v23111_v48 = vand.u32 4294901760, %v18698_v62  ;;  %v13567_v61 = vpack.c.bf16 %v4412_v47, %v4405_v27  ;;  %vm151_vm4 = vcmp.eq.s32.totalorder %v18959_v63, %v24723_v60  ;;  %13828 = vmatpush3.bf16.msra.mxu0 %v13827_v39  ;;  %v24726_v27 = vld [vmem:[#allocation38_spill] sm:$0xff] }
 0x2d7   :  { %v18976_v26 = vadd.f32 %v24722_v45, %v2463_v40  ;;  %v13831_v41 = vpack.c.bf16 %v23115_v34, %v23116_v32  ;;  %v23110_v28 = vand.u32 4294901760, %v18703_v6  ;;  %v23109_v55 = vand.u32 4294901760, %v18711_v59  ;;  %13566 = vmatprep.subr.bf16.mxu1 %v13565_v33  ;;  %13830 = vmatprep.subr.bf16.mxu0 %v13829_v24  ;;  %v24727_v40 = vld [vmem:[#allocation55_spill] sm:$0xff]  ;;  %v24775_v17 = vld [vmem:[#allocation18_spill] sm:$0xff] }
 0x2d8   :  { %v13833_v53 = vpack.c.bf16 %v23111_v48, %v23112_v30  ;;  %v23114_v54 = vand.u32 4294901760, %v18716_v7  ;;  %v23113_v50 = vand.u32 4294901760, %v18727_v19  ;;  %vm126_vm5 = vcmp.eq.s32.totalorder %v18959_v63, %v24725_v21  ;;  %v24731_v48 = vld [vmem:[#allocation63_spill] sm:$0xff]  ;;  %v19306_v7 = vld [vmem:[#allocation2 + $0x660] sm:$0xff] }
 0x2d9   :  { %vm172_vm6 = vmor %vm126_vm5, %vm151_vm4  ;;  %13568 = vmatpush3.bf16.msra.mxu1 %v13567_v61  ;;  %v13835_v47 = vpack.c.bf16 %v23109_v55, %v23110_v28  ;;  %v23119_v39 = vand.u32 4294901760, %v18739_v37  ;;  %v23118_v24 = vand.u32 4294901760, %v18748_v20  ;;  %vm197_vm7 = vcmp.eq.s32.totalorder %v18959_v63, %v24727_v40  ;;  %v24729_v55 = vld [vmem:[#allocation29_spill] sm:$0xff]  ;;  %v24730_v28 = vld [vmem:[#allocation59_spill] sm:$0xff] }
 0x2da   :  { %13832 = vmatpush3.bf16.msra.mxu0 %v13831_v41  ;;  %13602 = vmatprep.subr.bf16.mxu1 %v24726_v27  ;;  %v13837_v33 = vpack.c.bf16 %v23113_v50, %v23114_v54  ;;  %v23121_v61 = vand.u32 4294901760, %v18753_v4  ;;  %v23120_v45 = vand.u32 4294901760, %v18780_v0  ;;  %vm218_vm8 = vmor %vm172_vm6, %vm197_vm7  ;;  %v24728_v41 = vld [vmem:[#allocation57_spill] sm:$0xff]  ;;  %vm289_vm10 = vcmp.eq.s32.totalorder %v18959_v63, %v24730_v28 }
 0x2db   :  { %13834 = vmatprep.subr.bf16.mxu0 %v13833_v53  ;;  %vm243_vm9 = vcmp.eq.s32.totalorder %v18959_v63, %v24728_v41  ;;  %v24732_v53 = vld [vmem:[#allocation52_spill] sm:$0xff]  ;;  %v24734_v50 = vld [vmem:[#allocation13_spill] sm:$0xff]  ;;  %v13839_v54 = vpack.c.bf16 %v23118_v24, %v23119_v39  ;;  %v23127_v34 = vand.u32 4294901760, %v18785_v43  ;;  %v23126_v32 = vand.u32 4294901760, %v18793_v15  ;;  %v24736_v24 = vld [vmem:[#allocation14_spill] sm:$0xff] }
 0x2dc   :  { %4529 = vmatmul.mubr.f32.vlgmr.msra.gmra.mrb[28].mxu1 %v24729_v55  ;;  %v24733_v30 = vand.u32 4294901760, %v24732_v53  ;;  %vm264_vm11 = vmor %vm218_vm8, %vm243_vm9  ;;  %v13841_v53 = vpack.c.bf16 %v23120_v45, %v23121_v61  ;;  %vm335_vm13 = vcmp.eq.s32.totalorder %v18959_v63, %v24735_v2  ;;  %v24737_v39 = vld [vmem:[#allocation67_spill] sm:$0xff]  ;;  %v23135_v45 = vand.u32 4294901760, %v18823_v14  ;;  %v19066_v14 = vld [vmem:[#allocation2 + $0x688] sm:$0xff] }
 0x2dd   :  { %13604 = vmatpush3.bf16.msra.mxu1 %v24731_v48  ;;  %vm310_vm12 = vmor %vm264_vm11, %vm289_vm10  ;;  %v23134_v61 = vand.u32 4294901760, %v18846_v12  ;;  %v23136_v11 = vand.u32 4294901760, %v18856_v18  ;;  %v24739_v16 = vmov 0.0   ;;  %v24749_v18 = vld [vmem:[#allocation39_spill] sm:$0xff]  ;;  %v19213_v4 = vld [vmem:[#allocation2 + $0x6c8] sm:$0xff] }
 0x2de   :  { %4771 = vmatprep.mubr.f32.mxu1 %v24733_v30  ;;  %13836 = vmatpush3.bf16.msra.mxu0 %v13835_v47  ;;  %v23129_v30 = vand.u32 4294901760, %v18813_v36  ;;  %v23128_v47 = vand.u32 4294901760, %v18818_v5  ;;  %vm356_vm14 = vmor %vm310_vm12, %vm335_vm13  ;;  %v19127_v5 = vld [vmem:[#allocation2 + $0x6a8] sm:$0xff] }
 0x2df   :  { %13606 = vmatprep.subr.bf16.mxu1 %v24734_v50  ;;  %13838 = vmatprep.subr.bf16.mxu0 %v13837_v33  ;;  %v13843_v33 = vpack.c.bf16 %v23126_v32, %v23127_v34  ;;  %v19049_v52 = vsel %vm356_vm14, 1.0, %v24739_v16  ;;  %v24741_v32 = vld [vmem:[#allocation16_spill] sm:$0xff]  ;;  %v23146_v34 = vand.u32 4294901760, %v18877_v3 }
 0x2e0   :  { %v13845_v63 = vpack.c.bf16 %v23128_v47, %v23129_v30  ;;  %24740 = vst [vmem:[#allocation72_spill] sm:$0xff] %v19049_v52 }
 0x2e1   :  { %13608 = vmatpush3.bf16.msra.mxu1 %v24736_v24 }
 0x2e2   :  { %13840 = vmatpush3.bf16.msra.mxu0 %v13839_v54  ;;  %13610 = vmatprep.subr.bf16.mxu1 %v24737_v39  ;;  %v23137_v54 = vand.u32 4294901760, %v18851_v44  ;;  %v24748_v44 = vand.u32 4294901760, %v18894_v46 }
 0x2e3   :  { %13842 = vmatprep.subr.bf16.mxu0 %v13841_v53  ;;  %v13847_v53 = vpack.c.bf16 %v23134_v61, %v23135_v45  ;;  %v19070_v61 = vsub.f32 %v19049_v52, %v19049_v52  ;;  %v10954_v45 = vpop.f32.mrb[17].mxu0  ;;  %v24747_v52 = vand.u32 4294901760, %v18887_v9  ;;  %v10708_v9 = vpop.f32.mrb[16].mxu1 }
 0x2e4   :  { %v13849_v30 = vpack.c.bf16 %v23136_v11, %v23137_v54  ;;  %v19073_v47 = vadd.f32 %v10954_v45, %v10953_v42  ;;  %v24745_v11 = vld [vmem:[#allocation26_spill] sm:$0xff]  ;;  %v24746_v54 = vand.u32 4294901760, %v18882_v38  ;;  %v24752_v45 = vand.u32 4294901760, %v18920_v57 }
 0x2e5   :  { %13612 = vmatpush3.bf16.msra.mxu1 %v24738_v25  ;;  %24742 = vst [vmem:[#allocation73_spill] sm:$0xff] %v19070_v61  ;;  %v13853_v12 = vpack.c.bf16 %v24748_v44, %v24747_v52  ;;  %v24750_v44 = vld [vmem:[#allocation41_spill] sm:$0xff]  ;;  %v24751_v52 = vand.u32 4294901760, %v18913_v10  ;;  %v24756_v46 = vand.u32 4294901760, %v19070_v61  ;;  %v24760_v10 = vld [vmem:[#allocation48_spill] sm:$0xff] }
 0x2e6   :  { %13844 = vmatpush3.bf16.msra.mxu0 %v13843_v33  ;;  %13614 = vmatprep.subr.bf16.mxu1 %v24741_v32  ;;  %24744 = vst [vmem:[#allocation42_spill] sm:$0xff] %v19073_v47  ;;  %v13851_v33 = vpack.c.bf16 %v24746_v54, %v23146_v34  ;;  %v19090_v47 = vld [vmem:[#allocation2 + $0x608] sm:$0xff]  ;;  %v19093_v34 = vld [vmem:[#allocation2 + $0x690] sm:$0xff]  ;;  %v10709_v54 = vpop.f32.mrb[17].mxu1 }
 0x2e7   :  { %13846 = vmatprep.subr.bf16.mxu0 %v13845_v63  ;;  %v24743_v63 = vld [vmem:[#allocation30_spill] sm:$0xff]  ;;  %v13855_v42 = vpack.c.bf16 %v24752_v45, %v24751_v52  ;;  %v19120_v52 = vld [vmem:[#allocation2 + $0x618] sm:$0xff]  ;;  %v6013_v3 = vsub.f32 %v19070_v61, %v24756_v46  ;;  %v24762_v36 = vand.u32 4294901760, %v19090_v47 }
 0x2e8   :  { %v19118_v45 = vld [vmem:[#allocation2 + $0x610] sm:$0xff]  ;;  %v24773_v57 = vand.u32 4294901760, %v19120_v52 }
 0x2e9   :  { %13616 = vmatpush3.bf16.msra.mxu1 %v24743_v63  ;;  %v6014_v0 = vand.u32 4294901760, %v6013_v3  ;;  %v24772_v3 = vand.u32 4294901760, %v19118_v45 }
 0x2ea   :  { %13848 = vmatpush3.bf16.msra.mxu0 %v13847_v53  ;;  %13618 = vmatprep.subr.bf16.mxu1 %v24745_v11  ;;  %v19088_v53 = vld [vmem:[#allocation2 + $0x600] sm:$0xff] }
 0x2eb   :  { %13850 = vmatprep.subr.bf16.mxu0 %v13849_v30  ;;  %v19098_v30 = vadd.s32 1536, %v24721_v8  ;;  %v24753_v8 = vand.u32 4294901760, %v19064_v51  ;;  %v24761_v46 = vand.u32 4294901760, %v19088_v53 }
 0x2ed   :  { %13620 = vmatpush3.bf16.msra.mxu1 %v24749_v18  ;;  %vm150_vm15 = vcmp.eq.s32.totalorder %v19098_v30, %v24723_v60  ;;  %vm125_vm0 = vcmp.eq.s32.totalorder %v19098_v30, %v24725_v21  ;;  %v19144_v15 = vpack.c.bf16 %v24762_v36, %v24761_v46  ;;  %vm196_vm2 = vcmp.eq.s32.totalorder %v19098_v30, %v24727_v40  ;;  %v19164_v40 = vld [vmem:[#allocation2 + $0x6b0] sm:$0xff] }
 0x2ee   :  { %13852 = vmatpush3.bf16.msra.mxu0 %v13851_v33  ;;  %13622 = vmatprep.subr.bf16.mxu1 %v24750_v44  ;;  %v24754_v33 = vand.u32 4294901760, %v19066_v14  ;;  %vm19135_vm1 = vmor %vm125_vm0, %vm150_vm15  ;;  %v24765_v60 = vand.u32 4294901760, %v19095_v1  ;;  %vm242_vm4 = vcmp.eq.s32.totalorder %v19098_v30, %v24728_v41  ;;  %v24771_v46 = vld [vmem:[#allocation90_spill] sm:$0xff]  ;;  %vm288_vm5 = vcmp.eq.s32.totalorder %v19098_v30, %v24730_v28  ;;  %v19240_v41 = vld [vmem:[#allocation2 + $0x640] sm:$0xff] }
 0x2ef   :  { %13854 = vmatprep.subr.bf16.mxu0 %v13853_v12  ;;  %v19125_v12 = vld [vmem:[#allocation2 + $0x6a0] sm:$0xff]  ;;  %24763 = vst [vmem:[#allocation17_spill] sm:$0xff] %v19144_v15  ;;  %vm19170_vm3 = vmor %vm19135_vm1, %vm196_vm2  ;;  %vm334_vm8 = vcmp.eq.s32.totalorder %v19098_v30, %v24735_v2  ;;  %v24783_v30 = vand.u32 4294901760, %v19164_v40 }
 0x2f0   :  { %v19114_v38 = vpack.c.bf16 %v24754_v33, %v24753_v8  ;;  %v10710_v8 = vadd.f32 %v10709_v54, %v10708_v9  ;;  %v24757_v33 = vld [vmem:[#allocation45_spill] sm:$0xff]  ;;  %vm263_vm6 = vmor %vm19170_vm3, %vm242_vm4 }
 0x2f1   :  { %13624 = vmatpush3.bf16.msra.mxu1 %v24757_v33  ;;  %v19160_v9 = vld [vmem:[#allocation2 + $0x620] sm:$0xff]  ;;  %v19162_v54 = vld [vmem:[#allocation2 + $0x628] sm:$0xff]  ;;  %vm309_vm7 = vmor %vm263_vm6, %vm288_vm5 }
 0x2f2   :  { %24755 = vst [vmem:[#allocation33_spill] sm:$0xff] %v19114_v38  ;;  %13856 = vmatpush3.bf16.msra.mxu0 %v13855_v42  ;;  %13626 = vmatprep.subr.bf16.mxu1 %v24760_v10  ;;  %v2807_v21 = vadd.f32 %v10710_v8, %v18976_v26  ;;  %v24764_v42 = vand.u32 4294901760, %v19093_v34  ;;  %v19166_v26 = vld [vmem:[#allocation2 + $0x6b8] sm:$0xff]  ;;  %v24780_v8 = vand.u32 4294901760, %v19160_v9  ;;  %vm355_vm9 = vmor %vm309_vm7, %vm334_vm8 }
 0x2f3   :  { %13890 = vmatprep.subr.bf16.mxu0 %v19114_v38  ;;  %v19188_v38 = vpack.c.bf16 %v24773_v57, %v24772_v3  ;;  %v19202_v3 = vld [vmem:[#allocation2 + $0x630] sm:$0xff]  ;;  %v19204_v57 = vld [vmem:[#allocation2 + $0x638] sm:$0xff]  ;;  %v24784_v2 = vand.u32 4294901760, %v19166_v26  ;;  %v19263_v37 = vsel %vm355_vm9, 1.0, %v24739_v16  ;;  %v19280_v16 = vld [vmem:[#allocation2 + $0x6e8] sm:$0xff] }
 0x2f4   :  { %v19156_v43 = vpack.c.bf16 %v24765_v60, %v24764_v42  ;;  %v24769_v60 = vld [vmem:[#allocation49_spill] sm:$0xff]  ;;  %v24770_v42 = vld [vmem:[#allocation64_spill] sm:$0xff]  ;;  %v19179_v36 = vadd.f32 %v24771_v46, %v2807_v21  ;;  %v24776_v21 = vand.u32 4294901760, %v19125_v12  ;;  %v24777_v46 = vand.u32 4294901760, %v19127_v5  ;;  %24793 = vst [vmem:[#allocation81_spill] sm:$0xff] %v19263_v37  ;;  %24799 = vst [vmem:[#allocation13_spill] sm:$0xff] %v19280_v16 }
 0x2f5   :  { %5805 = vmatmul.mubr.f32.vlgmr.msra.gmra.mrb[30].mxu0 %v24769_v60  ;;  %13628 = vmatpush3.bf16.msra.mxu1 %v24770_v42  ;;  %24774 = vst [vmem:[#allocation76_spill] sm:$0xff] %v19188_v38  ;;  %v19211_v60 = vld [vmem:[#allocation2 + $0x6c0] sm:$0xff]  ;;  %v19236_v28 = vpack.c.bf16 %v24784_v2, %v24783_v30  ;;  %v24789_v2 = vld [vmem:[#allocation50_spill] sm:$0xff]  ;;  %v24790_v30 = vand.u32 4294901760, %v19202_v3  ;;  %v24811_v55 = vand.u32 4294901760, %v19280_v16  ;;  %v24818_v16 = vand.u32 4294901760, %v19064_v51 }
 0x2f6   :  { %24766 = vst [vmem:[#allocation74_spill] sm:$0xff] %v19156_v43  ;;  %13892 = vmatpush3.bf16.msra.mxu0 %v19144_v15  ;;  %6015 = vmatprep.mubr.f32.mxu0 %v6014_v0  ;;  %v19198_v15 = vpack.c.bf16 %v24777_v46, %v24776_v21  ;;  %v24779_v21 = vld [vmem:[#allocation21_spill] sm:$0xff]  ;;  %v24781_v46 = vand.u32 4294901760, %v19162_v54 }
 0x2f7   :  { %13630 = vmatprep.subr.bf16.mxu1 %v24775_v17  ;;  %13894 = vmatprep.subr.bf16.mxu0 %v19156_v43  ;;  %24785 = vst [vmem:[#allocation31_spill] sm:$0xff] %v19236_v28  ;;  %v19246_v43 = vld [vmem:[#allocation2 + $0x6d0] sm:$0xff] }
 0x2f8   :  { %24778 = vst [vmem:[#allocation77_spill] sm:$0xff] %v19198_v15  ;;  %v19227_v20 = vpack.c.bf16 %v24781_v46, %v24780_v8  ;;  %v19242_v8 = vld [vmem:[#allocation2 + $0x648] sm:$0xff] }
 0x2f9   :  { %13632 = vmatpush3.bf16.msra.mxu1 %v24779_v21  ;;  %v24786_v46 = vld [vmem:[#allocation34_spill] sm:$0xff] }
 0x2fa   :  { %13896 = vmatpush3.bf16.msra.mxu0 %v19188_v38  ;;  %13666 = vmatprep.subr.bf16.mxu1 %v24726_v27  ;;  %24782 = vst [vmem:[#allocation79_spill] sm:$0xff] %v19227_v20  ;;  %v24787_v0 = vand.u32 4294901760, %v24786_v46  ;;  %v24791_v38 = vand.u32 4294901760, %v19204_v57  ;;  %v19278_v46 = vld [vmem:[#allocation2 + $0x6e0] sm:$0xff] }
 0x2fb   :  { %13898 = vmatprep.subr.bf16.mxu0 %v19198_v15  ;;  %v19248_v15 = vld [vmem:[#allocation2 + $0x6d8] sm:$0xff]  ;;  %24798 = vst [vmem:[#allocation52_spill] sm:$0xff] %v19278_v46 }
 0x2fc   :  { %4775 = vmatmul.mubr.f32.vlgmr.msra.gmra.mrb[30].mxu1 %v24787_v0  ;;  %24788 = vst [vmem:[#allocation36_spill] sm:$0xff] %v19248_v15  ;;  %v19258_v27 = vpack.c.bf16 %v24791_v38, %v24790_v30  ;;  %v19274_v30 = vld [vmem:[#allocation2 + $0x650] sm:$0xff]  ;;  %v19276_v0 = vld [vmem:[#allocation2 + $0x658] sm:$0xff] }
 0x2fd   :  { %13668 = vmatpush3.bf16.msra.mxu1 %v24731_v48  ;;  %5045 = vmatprep.mubr.f32.mxu1 %v24789_v2  ;;  %v24794_v48 = vand.u32 4294901760, %v19211_v60  ;;  %v24795_v2 = vand.u32 4294901760, %v19213_v4  ;;  %24797 = vst [vmem:[#allocation63_spill] sm:$0xff] %v19274_v30 }
 0x2fe   :  { %13900 = vmatpush3.bf16.msra.mxu0 %v19227_v20  ;;  %13670 = vmatprep.subr.bf16.mxu1 %v24734_v50  ;;  %24792 = vst [vmem:[#allocation80_spill] sm:$0xff] %v19258_v27  ;;  %v19312_v20 = vld [vmem:[#allocation2 + $0x6f8] sm:$0xff] }
 0x2ff   :  { %13902 = vmatprep.subr.bf16.mxu0 %v19236_v28  ;;  %v19270_v50 = vpack.c.bf16 %v24795_v2, %v24794_v48  ;;  %v19285_v28 = vsub.f32 %v19263_v37, %v19263_v37  ;;  %v24801_v48 = vand.u32 4294901760, %v19240_v41  ;;  %v24802_v2 = vand.u32 4294901760, %v19242_v8 }
 0x300   :  { %v24805_v37 = vand.u32 4294901760, %v19248_v15 }
 0x301   :  { %24796 = vst [vmem:[#allocation38_spill] sm:$0xff] %v19270_v50  ;;  %13672 = vmatpush3.bf16.msra.mxu1 %v24736_v24  ;;  %24800 = vst [vmem:[#allocation14_spill] sm:$0xff] %v19285_v28  ;;  %v19293_v38 = vpack.c.bf16 %v24802_v2, %v24801_v48  ;;  %v24804_v24 = vand.u32 4294901760, %v19246_v43  ;;  %v19308_v48 = vld [vmem:[#allocation2 + $0x668] sm:$0xff]  ;;  %v19310_v2 = vld [vmem:[#allocation2 + $0x6f0] sm:$0xff] }
 0x302   :  { %13904 = vmatpush3.bf16.msra.mxu0 %v19258_v27  ;;  %13674 = vmatprep.subr.bf16.mxu1 %v24737_v39 }
 0x303   :  { %24803 = vst [vmem:[#allocation67_spill] sm:$0xff] %v19293_v38  ;;  %13906 = vmatprep.subr.bf16.mxu0 %v19270_v50  ;;  %v19302_v19 = vpack.c.bf16 %v24805_v37, %v24804_v24  ;;  %v24807_v37 = vand.u32 4294901760, %v19274_v30  ;;  %v24808_v24 = vand.u32 4294901760, %v19276_v0  ;;  %v19335_v30 = vld [vmem:[#allocation2 + $0x670] sm:$0xff]  ;;  %v24813_v50 = vand.u32 4294901760, %v19285_v28 }
 0x305   :  { %24806 = vst [vmem:[#allocation15_spill] sm:$0xff] %v19302_v19  ;;  %13676 = vmatpush3.bf16.msra.mxu1 %v24738_v25  ;;  %v19322_v27 = vpack.c.bf16 %v24808_v24, %v24807_v37  ;;  %v24810_v25 = vand.u32 4294901760, %v19278_v46  ;;  %v19337_v37 = vld [vmem:[#allocation2 + $0x678] sm:$0xff]  ;;  %v11023_v24 = vpop.f32.mrb[18].mxu0 }
 0x306   :  { %13908 = vmatpush3.bf16.msra.mxu0 %v19293_v38  ;;  %13678 = vmatprep.subr.bf16.mxu1 %v24741_v32  ;;  %v11024_v39 = vpop.f32.mrb[19].mxu0 }
 0x307   :  { %24809 = vst [vmem:[#allocation16_spill] sm:$0xff] %v19322_v27  ;;  %13910 = vmatprep.subr.bf16.mxu0 %v19302_v19  ;;  %v19331_v15 = vpack.c.bf16 %v24811_v55, %v24810_v25  ;;  %v6019_v19 = vsub.f32 %v19285_v28, %v24813_v50  ;;  %v19343_v46 = vadd.f32 %v11024_v39, %v11023_v24  ;;  %v24815_v55 = vand.u32 4294901760, %v19306_v7 }
 0x308   :  { %v24816_v25 = vand.u32 4294901760, %v19308_v48  ;;  %v19358_v50 = vsub.f32 %v19064_v51, %v24818_v16  ;;  %v24819_v39 = vand.u32 4294901760, %v19066_v14  ;;  %v24824_v51 = vand.u32 4294901760, %v19090_v47 }
 0x309   :  { %24812 = vst [vmem:[#allocation30_spill] sm:$0xff] %v19331_v15  ;;  %13680 = vmatpush3.bf16.msra.mxu1 %v24743_v63  ;;  %24814 = vst [vmem:[#allocation26_spill] sm:$0xff] %v19343_v46  ;;  %v24823_v63 = vand.u32 4294901760, %v19088_v53  ;;  %v24917_v46 = vld [vmem:[#allocation19_spill] sm:$0xff] }
 0x30a   :  { %13912 = vmatpush3.bf16.msra.mxu0 %v19322_v27  ;;  %13682 = vmatprep.subr.bf16.mxu1 %v24745_v11  ;;  %v19351_v38 = vpack.c.bf16 %v24816_v25, %v24815_v55  ;;  %v19363_v24 = vsub.f32 %v19066_v14, %v24819_v39  ;;  %v24820_v11 = vand.u32 4294901760, %v19310_v2  ;;  %v24821_v55 = vand.u32 4294901760, %v19312_v20 }
 0x30b   :  { %13914 = vmatprep.subr.bf16.mxu0 %v19331_v15  ;;  %v19375_v32 = vsub.f32 %v19088_v53, %v24823_v63  ;;  %v19380_v16 = vsub.f32 %v19090_v47, %v24824_v51  ;;  %v24825_v14 = vand.u32 4294901760, %v19093_v34  ;;  %v24826_v15 = vand.u32 4294901760, %v19095_v1 }
 0x30c   :  { %24817 = vst [vmem:[#allocation39_spill] sm:$0xff] %v19351_v38  ;;  %v19370_v25 = vpack.c.bf16 %v24821_v55, %v24820_v11  ;;  %v24827_v55 = vand.u32 4294901760, %v19118_v45  ;;  %v24828_v63 = vand.u32 4294901760, %v19120_v52  ;;  %v6020_v51 = vand.u32 4294901760, %v6019_v19 }
 0x30d   :  { %v19385_v39 = vsub.f32 %v19093_v34, %v24825_v14  ;;  %v19390_v11 = vsub.f32 %v19095_v1, %v24826_v15  ;;  %13684 = vmatpush3.bf16.msra.mxu1 %v24749_v18  ;;  %v24829_v34 = vand.u32 4294901760, %v19335_v30  ;;  %v24830_v15 = vand.u32 4294901760, %v19337_v37 }
 0x30e   :  { %24822 = vst [vmem:[#allocation41_spill] sm:$0xff] %v19370_v25  ;;  %v19395_v53 = vsub.f32 %v19118_v45, %v24827_v55  ;;  %v19400_v47 = vsub.f32 %v19120_v52, %v24828_v63  ;;  %13916 = vmatpush3.bf16.msra.mxu0 %v19351_v38  ;;  %13686 = vmatprep.subr.bf16.mxu1 %v24750_v44  ;;  %v24832_v45 = vand.u32 4294901760, %v18631_v31  ;;  %v24833_v52 = vand.u32 4294901760, %v18636_v29 }
 0x30f   :  { %v19409_v1 = vpack.c.bf16 %v24830_v15, %v24829_v34  ;;  %v24834_v18 = vand.u32 4294901760, %v19125_v12  ;;  %v24835_v44 = vand.u32 4294901760, %v19127_v5  ;;  %v24836_v19 = vand.u32 4294901760, %v19160_v9  ;;  %13918 = vmatprep.subr.bf16.mxu0 %v19370_v25 }
 0x310   :  { %v5280_v14 = vsub.f32 %v18631_v31, %v24832_v45  ;;  %v5287_v55 = vsub.f32 %v18636_v29, %v24833_v52  ;;  %v10778_v31 = vpop.f32.mrb[18].mxu1  ;;  %v13953_v29 = vpack.c.bf16 %v19363_v24, %v19358_v50  ;;  %v24837_v15 = vand.u32 4294901760, %v19162_v54 }
 0x311   :  { %24831 = vst [vmem:[#allocation45_spill] sm:$0xff] %v19409_v1  ;;  %v19420_v63 = vsub.f32 %v19125_v12, %v24834_v18  ;;  %v19425_v38 = vsub.f32 %v19127_v5, %v24835_v44  ;;  %v19430_v34 = vsub.f32 %v19160_v9, %v24836_v19  ;;  %v24838_v45 = vand.u32 4294901760, %v19164_v40  ;;  %v10779_v52 = vpop.f32.mrb[19].mxu1  ;;  %13688 = vmatpush3.bf16.msra.mxu1 %v24757_v33 }
 0x312   :  { %v19438_v12 = vsub.f32 %v19162_v54, %v24837_v15  ;;  %v24840_v9 = vand.u32 4294901760, %v18648_v56  ;;  %v24841_v44 = vand.u32 4294901760, %v18653_v13  ;;  %v24842_v25 = vand.u32 4294901760, %v19166_v26  ;;  %13920 = vmatpush3.bf16.msra.mxu0 %v19409_v1  ;;  %13690 = vmatprep.subr.bf16.mxu1 %v24760_v10 }
 0x313   :  { %v19443_v5 = vsub.f32 %v19164_v40, %v24838_v45  ;;  %v10780_v54 = vadd.f32 %v10779_v52, %v10778_v31  ;;  %v24844_v40 = vand.u32 4294901760, %v18658_v35  ;;  %v24845_v45 = vand.u32 4294901760, %v18663_v58  ;;  %13954 = vmatprep.subr.bf16.mxu0 %v13953_v29 }
 0x314   :  { %v5168_v18 = vsub.f32 %v18648_v56, %v24840_v9  ;;  %v5175_v19 = vsub.f32 %v18653_v13, %v24841_v44  ;;  %v19454_v27 = vsub.f32 %v19166_v26, %v24842_v25  ;;  %v24846_v9 = vand.u32 4294901760, %v19202_v3 }
 0x315   :  { %24839 = vst [vmem:[#allocation48_spill] sm:$0xff] %v19443_v5  ;;  %v5294_v15 = vsub.f32 %v18658_v35, %v24844_v40  ;;  %v5301_v56 = vsub.f32 %v18663_v58, %v24845_v45  ;;  %v13955_v33 = vpack.c.bf16 %v19380_v16, %v19375_v32  ;;  %v5281_v26 = vand.u32 4294901760, %v5280_v14  ;;  %6021 = vmatmul.mubr.f32.vlgmr.msra.gmra.mrb[32].mxu0 %v6020_v51 }
 0x316   :  { %24843 = vst [vmem:[#allocation64_spill] sm:$0xff] %v19454_v27  ;;  %v19466_v13 = vsub.f32 %v19202_v3, %v24846_v9  ;;  %v5288_v25 = vand.u32 4294901760, %v5287_v55  ;;  %v24848_v35 = vand.u32 4294901760, %v19204_v57  ;;  %v24850_v58 = vand.u32 4294901760, %v19211_v60  ;;  %13692 = vmatpush3.bf16.msra.mxu1 %v24770_v42  ;;  %6388 = vmatprep.mubr.f32.mxu0 %v19070_v61 }
 0x317   :  { %v3053_v3 = vadd.f32 %v10780_v54, %v19179_v36  ;;  %v13957_v10 = vpack.c.bf16 %v19390_v11, %v19385_v39  ;;  %v13959_v14 = vpack.c.bf16 %v19400_v47, %v19395_v53  ;;  %v5169_v55 = vand.u32 4294901760, %v5168_v18  ;;  %v24854_v54 = vld [vmem:[#allocation20_spill] sm:$0xff]  ;;  %13956 = vmatpush3.bf16.msra.mxu0 %v13955_v33  ;;  %13694 = vmatprep.subr.bf16.mxu1 %v24775_v17 }
 0x318   :  { %24847 = vst [vmem:[#allocation90_spill] sm:$0xff] %v19466_v13  ;;  %v19475_v31 = vsub.f32 %v19204_v57, %v24848_v35  ;;  %v19480_v52 = vsub.f32 %v19211_v60, %v24850_v58  ;;  %v5176_v44 = vand.u32 4294901760, %v5175_v19  ;;  %v24852_v40 = vand.u32 4294901760, %v18668_v22 }
 0x319   :  { %v5295_v60 = vand.u32 4294901760, %v5294_v15  ;;  %v5302_v45 = vand.u32 4294901760, %v5301_v56  ;;  %v24853_v36 = vand.u32 4294901760, %v18673_v23  ;;  %v19495_v9 = vadd.f32 %v24854_v54, %v3053_v3  ;;  %13958 = vmatprep.subr.bf16.mxu0 %v13957_v10  ;;  %v24865_v54 = vld [vmem:[#allocation65_spill] sm:$0xff] }
 0x31a   :  { %24849 = vst [vmem:[#allocation18_spill] sm:$0xff] %v19475_v31  ;;  %24851 = vst [vmem:[#allocation21_spill] sm:$0xff] %v19480_v52  ;;  %v5182_v57 = vsub.f32 %v18668_v22, %v24852_v40  ;;  %v13729_v18 = vpack.c.bf16 %v5288_v25, %v5281_v26  ;;  %v24855_v19 = vand.u32 4294901760, %v18693_v49  ;;  %v24856_v51 = vand.u32 4294901760, %v18698_v62  ;;  %13696 = vmatpush3.bf16.msra.mxu1 %v24779_v21 }
 0x31b   :  { %v5189_v29 = vsub.f32 %v18673_v23, %v24853_v36  ;;  %v24857_v15 = vand.u32 4294901760, %v19213_v4  ;;  %v24859_v23 = vand.u32 4294901760, %v19240_v41  ;;  %v24861_v26 = vand.u32 4294901760, %v19242_v8  ;;  %13960 = vmatpush3.bf16.msra.mxu0 %v13959_v14 }
 0x31c   :  { %v5308_v22 = vsub.f32 %v18693_v49, %v24855_v19  ;;  %v5315_v42 = vsub.f32 %v18698_v62, %v24856_v51  ;;  %v13961_v49 = vpack.c.bf16 %v19425_v38, %v19420_v63  ;;  %v24863_v25 = vand.u32 4294901760, %v18703_v6  ;;  %13730 = vmatprep.subr.bf16.mxu1 %v13729_v18  ;;  %v24877_v18 = vld [vmem:[#allocation29_spill] sm:$0xff] }
 0x31d   :  { %v19507_v56 = vsub.f32 %v19213_v4, %v24857_v15  ;;  %v19512_v33 = vsub.f32 %v19240_v41, %v24859_v23  ;;  %v19520_v62 = vsub.f32 %v19242_v8, %v24861_v26  ;;  %v13963_v4 = vpack.c.bf16 %v19438_v12, %v19430_v34  ;;  %v24867_v15 = vld [vmem:[#allocation69_spill] sm:$0xff]  ;;  %5047 = vmatmul.mubr.f32.vlgmr.msra.gmra.mrb[32].mxu1 %v24877_v18 }
 0x31e   :  { %v5196_v35 = vsub.f32 %v18703_v6, %v24863_v25  ;;  %v24864_v41 = vand.u32 4294901760, %v18711_v59  ;;  %v13731_v58 = vpack.c.bf16 %v5176_v44, %v5169_v55  ;;  %v13733_v3 = vpack.c.bf16 %v5302_v45, %v5295_v60  ;;  %v24871_v55 = vld [vmem:[#allocation36_spill] sm:$0xff]  ;;  %13962 = vmatprep.subr.bf16.mxu0 %v13961_v49  ;;  %v24883_v49 = vld [vmem:[#allocation71_spill] sm:$0xff] }
 0x31f   :  { %24858 = vst [vmem:[#allocation34_spill] sm:$0xff] %v19507_v56  ;;  %24860 = vst [vmem:[#allocation50_spill] sm:$0xff] %v19512_v33  ;;  %v5183_v10 = vand.u32 4294901760, %v5182_v57  ;;  %v5190_v40 = vand.u32 4294901760, %v5189_v29  ;;  %v5309_v8 = vand.u32 4294901760, %v5308_v22  ;;  %v5316_v36 = vand.u32 4294901760, %v5315_v42  ;;  %13964 = vmatpush3.bf16.msra.mxu0 %v13963_v4 }
 0x320   :  { %24862 = vst [vmem:[#allocation20_spill] sm:$0xff] %v19520_v62  ;;  %v5203_v17 = vsub.f32 %v18711_v59, %v24864_v41  ;;  %v24866_v19 = vand.u32 4294901760, %v24865_v54  ;;  %v24868_v6 = vand.u32 4294901760, %v24867_v15  ;;  %v24869_v59 = vand.u32 4294901760, %v19246_v43  ;;  %v24874_v57 = vld [vmem:[#allocation63_spill] sm:$0xff]  ;;  %v24880_v41 = vld [vmem:[#allocation70_spill] sm:$0xff]  ;;  %13732 = vmatpush3.bf16.msra.mxu1 %v13731_v58 }
 0x321   :  { %v24872_v44 = vand.u32 4294901760, %v24871_v55  ;;  %v24875_v60 = vand.u32 4294901760, %v24874_v57  ;;  %v13965_v29 = vpack.c.bf16 %v19454_v27, %v19443_v5  ;;  %v5197_v22 = vand.u32 4294901760, %v5196_v35  ;;  %13734 = vmatprep.subr.bf16.mxu1 %v13733_v3 }
 0x322   :  { %v5322_v51 = vsub.f32 %v24865_v54, %v24866_v19  ;;  %v5329_v23 = vsub.f32 %v24867_v15, %v24868_v6  ;;  %v19540_v21 = vsub.f32 %v19246_v43, %v24869_v59  ;;  %v5204_v42 = vand.u32 4294901760, %v5203_v17  ;;  %v24878_v43 = vld [vmem:[#allocation61_spill] sm:$0xff]  ;;  %v24882_v15 = vld [vmem:[#allocation78_spill] sm:$0xff] }
 0x323   :  { %v19545_v14 = vsub.f32 %v24871_v55, %v24872_v44  ;;  %v19550_v45 = vsub.f32 %v24874_v57, %v24875_v60  ;;  %v24879_v26 = vand.u32 4294901760, %v24878_v43  ;;  %v24881_v54 = vand.u32 4294901760, %v24880_v41  ;;  %5389 = vmatprep.mubr.f32.mxu1 %v24882_v15  ;;  %v24885_v44 = vld [vmem:[#allocation60_spill] sm:$0xff]  ;;  %13966 = vmatprep.subr.bf16.mxu0 %v13965_v29 }
 0x324   :  { %24870 = vst [vmem:[#allocation65_spill] sm:$0xff] %v19540_v21  ;;  %v13735_v6 = vpack.c.bf16 %v5190_v40, %v5183_v10  ;;  %v24884_v59 = vand.u32 4294901760, %v24883_v49  ;;  %v24886_v57 = vand.u32 4294901760, %v24885_v44  ;;  %v13967_v17 = vpack.c.bf16 %v19475_v31, %v19466_v13  ;;  %v24889_v40 = vld [vmem:[#allocation52_spill] sm:$0xff] }
 0x325   :  { %24873 = vst [vmem:[#allocation69_spill] sm:$0xff] %v19545_v14  ;;  %24876 = vst [vmem:[#allocation36_spill] sm:$0xff] %v19550_v45  ;;  %v5210_v25 = vsub.f32 %v24878_v43, %v24879_v26  ;;  %v5217_v19 = vsub.f32 %v24880_v41, %v24881_v54  ;;  %v13737_v60 = vpack.c.bf16 %v5316_v36, %v5309_v8  ;;  %v5323_v18 = vand.u32 4294901760, %v5322_v51  ;;  %v24892_v54 = vld [vmem:[#allocation13_spill] sm:$0xff] }
 0x326   :  { %v5336_v55 = vsub.f32 %v24883_v49, %v24884_v59  ;;  %v5343_v35 = vsub.f32 %v24885_v44, %v24886_v57  ;;  %v5330_v43 = vand.u32 4294901760, %v5329_v23  ;;  %v24887_v58 = vand.u32 4294901760, %v19276_v0  ;;  %13736 = vmatpush3.bf16.msra.mxu1 %v13735_v6  ;;  %v24895_v44 = vld [vmem:[#allocation43_spill] sm:$0xff]  ;;  %13968 = vmatpush3.bf16.msra.mxu0 %v13967_v17 }
 0x327   :  { %v24890_v26 = vand.u32 4294901760, %v24889_v40  ;;  %v24893_v49 = vand.u32 4294901760, %v24892_v54  ;;  %v13969_v3 = vpack.c.bf16 %v19507_v56, %v19480_v52  ;;  %v13739_v8 = vpack.c.bf16 %v5204_v42, %v5197_v22  ;;  %13738 = vmatprep.subr.bf16.mxu1 %v13737_v60  ;;  %v24899_v22 = vld [vmem:[#allocation23_spill] sm:$0xff] }
 0x328   :  { %v19573_v10 = vsub.f32 %v19276_v0, %v24887_v58  ;;  %v13971_v36 = vpack.c.bf16 %v19520_v62, %v19512_v33  ;;  %v5211_v0 = vand.u32 4294901760, %v5210_v25  ;;  %v5218_v51 = vand.u32 4294901760, %v5217_v19  ;;  %v24901_v25 = vld [vmem:[#allocation25_spill] sm:$0xff] }
 0x329   :  { %v19578_v41 = vsub.f32 %v24889_v40, %v24890_v26  ;;  %v19583_v4 = vsub.f32 %v24892_v54, %v24893_v49  ;;  %v5337_v23 = vand.u32 4294901760, %v5336_v55  ;;  %v5344_v59 = vand.u32 4294901760, %v5343_v35  ;;  %v24897_v40 = vld [vmem:[#allocation46_spill] sm:$0xff]  ;;  %13970 = vmatprep.subr.bf16.mxu0 %v13969_v3 }
 0x32a   :  { %24888 = vst [vmem:[#allocation63_spill] sm:$0xff] %v19573_v10  ;;  %v24896_v57 = vand.u32 4294901760, %v24895_v44  ;;  %v24898_v26 = vand.u32 4294901760, %v24897_v40  ;;  %v13741_v54 = vpack.c.bf16 %v5330_v43, %v5323_v18  ;;  %v24900_v42 = vand.u32 4294901760, %v24899_v22  ;;  %13740 = vmatpush3.bf16.msra.mxu1 %v13739_v8  ;;  %13972 = vmatpush3.bf16.msra.mxu0 %v13971_v36 }
 0x32b   :  { %24891 = vst [vmem:[#allocation29_spill] sm:$0xff] %v19578_v41  ;;  %24894 = vst [vmem:[#allocation61_spill] sm:$0xff] %v19583_v4  ;;  %v24902_v19 = vand.u32 4294901760, %v24901_v25  ;;  %v24903_v55 = vand.u32 4294901760, %v19306_v7  ;;  %v24907_v17 = vand.u32 4294901760, %v19310_v2  ;;  %v13973_v18 = vpack.c.bf16 %v19545_v14, %v19540_v21 }
 0x32c   :  { %v5224_v58 = vsub.f32 %v24895_v44, %v24896_v57  ;;  %v5231_v29 = vsub.f32 %v24897_v40, %v24898_v26  ;;  %v5350_v49 = vsub.f32 %v24899_v22, %v24900_v42  ;;  %v24905_v44 = vand.u32 4294901760, %v19308_v48  ;;  %v24911_v26 = vld [vmem:[#allocation44_spill] sm:$0xff]  ;;  %13742 = vmatprep.subr.bf16.mxu1 %v13741_v54 }
 0x32d   :  { %v5357_v6 = vsub.f32 %v24901_v25, %v24902_v19  ;;  %v19604_v35 = vsub.f32 %v19306_v7, %v24903_v55  ;;  %v19614_v60 = vsub.f32 %v19310_v2, %v24907_v17  ;;  %v24909_v43 = vand.u32 4294901760, %v19312_v20  ;;  %v24913_v42 = vld [vmem:[#allocation84_spill] sm:$0xff]  ;;  %13974 = vmatprep.subr.bf16.mxu0 %v13973_v18 }
 0x32e   :  { %v19609_v57 = vsub.f32 %v19308_v48, %v24905_v44  ;;  %v13975_v7 = vpack.c.bf16 %v19573_v10, %v19550_v45  ;;  %v24912_v48 = vand.u32 4294901760, %v24911_v26  ;;  %v24914_v25 = vand.u32 4294901760, %v24913_v42 }
 0x32f   :  { %24904 = vst [vmem:[#allocation70_spill] sm:$0xff] %v19604_v35  ;;  %24908 = vst [vmem:[#allocation60_spill] sm:$0xff] %v19614_v60  ;;  %v19621_v40 = vsub.f32 %v19312_v20, %v24909_v43  ;;  %v13743_v3 = vpack.c.bf16 %v5218_v51, %v5211_v0  ;;  %v13745_v19 = vpack.c.bf16 %v5344_v59, %v5337_v23  ;;  %v5225_v55 = vand.u32 4294901760, %v5224_v58  ;;  %v24915_v43 = vld [vmem:[#allocation22_spill] sm:$0xff]  ;;  %v11093_v23 = vpop.f32.mrb[20].mxu0 }
 0x330   :  { %24906 = vst [vmem:[#allocation71_spill] sm:$0xff] %v19609_v57  ;;  %v5238_v22 = vsub.f32 %v24911_v26, %v24912_v48  ;;  %v5245_v2 = vsub.f32 %v24913_v42, %v24914_v25  ;;  %v5232_v44 = vand.u32 4294901760, %v5231_v29  ;;  %v5351_v20 = vand.u32 4294901760, %v5350_v49  ;;  %v24923_v29 = vld [vmem:[#allocation27_spill] sm:$0xff]  ;;  %13976 = vmatpush3.bf16.msra.mxu0 %v13975_v7 }
 0x331   :  { %24910 = vst [vmem:[#allocation52_spill] sm:$0xff] %v19621_v40  ;;  %v5358_v17 = vand.u32 4294901760, %v5357_v6  ;;  %v24916_v1 = vand.u32 4294901760, %v24915_v43  ;;  %v24918_v15 = vand.u32 4294901760, %v24917_v46  ;;  %v24919_v48 = vand.u32 4294901760, %v19335_v30  ;;  %13744 = vmatpush3.bf16.msra.mxu1 %v13743_v3  ;;  %v24925_v6 = vld [vmem:[#allocation93_spill] sm:$0xff] }
 0x332   :  { %v13977_v36 = vpack.c.bf16 %v19583_v4, %v19578_v41  ;;  %v24921_v0 = vand.u32 4294901760, %v19337_v37  ;;  %v5239_v59 = vand.u32 4294901760, %v5238_v22  ;;  %v13747_v58 = vpack.c.bf16 %v5232_v44, %v5225_v55  ;;  %13746 = vmatprep.subr.bf16.mxu1 %v13745_v19  ;;  %v24928_v44 = vld [vmem:[#allocation66_spill] sm:$0xff] }
 0x333   :  { %v5364_v61 = vsub.f32 %v24915_v43, %v24916_v1  ;;  %v5371_v26 = vsub.f32 %v24917_v46, %v24918_v15  ;;  %v19640_v8 = vsub.f32 %v19335_v30, %v24919_v48  ;;  %v13979_v1 = vpack.c.bf16 %v19609_v57, %v19604_v35  ;;  %v11094_v15 = vpop.f32.mrb[21].mxu0 }
 0x334   :  { %v19647_v51 = vsub.f32 %v19337_v37, %v24921_v0  ;;  %v5246_v46 = vand.u32 4294901760, %v5245_v2  ;;  %v13981_v30 = vpack.c.bf16 %v19621_v40, %v19614_v60  ;;  %v24924_v54 = vand.u32 4294901760, %v24923_v29  ;;  %13978 = vmatprep.subr.bf16.mxu0 %v13977_v36  ;;  %v24930_v0 = vld [vmem:[#allocation82_spill] sm:$0xff] }
 0x335   :  { %24920 = vst [vmem:[#allocation13_spill] sm:$0xff] %v19640_v8  ;;  %v24926_v18 = vand.u32 4294901760, %v24925_v6  ;;  %v19659_v42 = vadd.f32 %v11094_v15, %v11093_v23  ;;  %v13749_v22 = vpack.c.bf16 %v5358_v17, %v5351_v20  ;;  %v5365_v25 = vand.u32 4294901760, %v5364_v61  ;;  %13748 = vmatpush3.bf16.msra.mxu1 %v13747_v58  ;;  %v24932_v17 = vld [vmem:[#allocation85_spill] sm:$0xff]  ;;  %v24934_v15 = vld [vmem:[#allocation94_spill] sm:$0xff]  ;;  %13980 = vmatpush3.bf16.msra.mxu0 %v13979_v1  ;;  %v10848_v58 = vpop.f32.mrb[20].mxu1 }
 0x336   :  { %24922 = vst [vmem:[#allocation43_spill] sm:$0xff] %v19647_v51  ;;  %v5252_v49 = vsub.f32 %v24923_v29, %v24924_v54  ;;  %v5372_v2 = vand.u32 4294901760, %v5371_v26  ;;  %v23251_v3 = vand.u32 4294901760, %v19358_v50  ;;  %v23246_v55 = vand.u32 4294901760, %v19363_v24  ;;  %13982 = vmatprep.subr.bf16.mxu0 %v13981_v30 }
 0x337   :  { %v5259_v37 = vsub.f32 %v24925_v6, %v24926_v18  ;;  %24927 = vst [vmem:[#allocation46_spill] sm:$0xff] %v19659_v42  ;;  %v24929_v43 = vand.u32 4294901760, %v24928_v44  ;;  %v24931_v29 = vand.u32 4294901760, %v24930_v0  ;;  %v13751_v23 = vpack.c.bf16 %v5246_v46, %v5239_v59  ;;  %13750 = vmatprep.subr.bf16.mxu1 %v13749_v22  ;;  %v19791_v42 = vld [vmem:[#allocation2 + $0x780] sm:$0xff] }
 0x338   :  { %v13983_v7 = vpack.c.bf16 %v19647_v51, %v19640_v8  ;;  %v23245_v61 = vand.u32 4294901760, %v19375_v32  ;;  %v5253_v19 = vand.u32 4294901760, %v5252_v49  ;;  %v24933_v26 = vand.u32 4294901760, %v24932_v17 }
 0x339   :  { %v5378_v48 = vsub.f32 %v24928_v44, %v24929_v43  ;;  %v5385_v54 = vsub.f32 %v24930_v0, %v24931_v29  ;;  %v5260_v20 = vand.u32 4294901760, %v5259_v37  ;;  %v24935_v6 = vand.u32 4294901760, %v24934_v15  ;;  %v10849_v29 = vpop.f32.mrb[21].mxu1  ;;  %13752 = vmatpush3.bf16.msra.mxu1 %v13751_v23 }
 0x33a   :  { %v5266_v36 = vsub.f32 %v24932_v17, %v24933_v26  ;;  %v13753_v44 = vpack.c.bf16 %v5372_v2, %v5365_v25  ;;  %v23244_v59 = vand.u32 4294901760, %v19380_v16  ;;  %v23243_v46 = vand.u32 4294901760, %v19385_v39  ;;  %v24936_v17 = vld [vmem:[#allocation53_spill] sm:$0xff]  ;;  %13984 = vmatpush3.bf16.msra.mxu0 %v13983_v7 }
 0x33b   :  { %v5273_v18 = vsub.f32 %v24934_v15, %v24935_v6  ;;  %v23238_v43 = vand.u32 4294901760, %v19390_v11  ;;  %v14017_v49 = vpack.c.bf16 %v23246_v55, %v23251_v3  ;;  %v5379_v37 = vand.u32 4294901760, %v5378_v48  ;;  %v24937_v6 = vld [vmem:[#allocation95_spill] sm:$0xff] }
 0x33c   :  { %v5386_v0 = vand.u32 4294901760, %v5385_v54  ;;  %v19686_v1 = vadd.s32 1920, %v24936_v17  ;;  %v10850_v22 = vadd.f32 %v10849_v29, %v10848_v58  ;;  %v13755_v25 = vpack.c.bf16 %v5260_v20, %v5253_v19  ;;  %13754 = vmatprep.subr.bf16.mxu1 %v13753_v44  ;;  %v24938_v44 = vld [vmem:[#allocation56_spill] sm:$0xff] }
 0x33d   :  { %v5267_v2 = vand.u32 4294901760, %v5266_v36  ;;  %v5274_v26 = vand.u32 4294901760, %v5273_v18  ;;  %v14019_v30 = vpack.c.bf16 %v23244_v59, %v23245_v61  ;;  %v14021_v48 = vpack.c.bf16 %v23238_v43, %v23243_v46  ;;  %14018 = vmatprep.subr.bf16.mxu0 %v14017_v49  ;;  %6391 = vmatmul.mubr.f32.vlgmr.msra.gmra.mrb[34].mxu0 %v19285_v28  ;;  %v24939_v58 = vld [vmem:[#allocation72_spill] sm:$0xff]  ;;  %v24950_v43 = vld [vmem:[#allocation58_spill] sm:$0xff]  ;;  %v11163_v28 = vpop.f32.mrb[22].mxu0 }
 0x33e   :  { %v23237_v54 = vand.u32 4294901760, %v19395_v53  ;;  %v23236_v15 = vand.u32 4294901760, %v19400_v47  ;;  %v3325_v23 = vadd.f32 %v10850_v22, %v19495_v9  ;;  %v13757_v19 = vpack.c.bf16 %v5386_v0, %v5379_v37  ;;  %13756 = vmatpush3.bf16.msra.mxu1 %v13755_v25  ;;  %6665 = vmatprep.mubr.f32.mxu0 %v24939_v58  ;;  %v24940_v25 = vld [vmem:[#allocation54_spill] sm:$0xff]  ;;  %v24953_v59 = vld [vmem:[#allocation40_spill] sm:$0xff] }
 0x33f   :  { %v23233_v7 = vand.u32 4294901760, %v19420_v63  ;;  %v23232_v20 = vand.u32 4294901760, %v19425_v38  ;;  %v13759_v36 = vpack.c.bf16 %v5274_v26, %v5267_v2  ;;  %vm153_vm10 = vcmp.eq.s32.totalorder %v19686_v1, %v24938_v44  ;;  %14020 = vmatpush3.bf16.msra.mxu0 %v14019_v30  ;;  %v24941_v2 = vld [vmem:[#allocation92_spill] sm:$0xff] }
 0x340   :  { %v19703_v18 = vadd.f32 %v24937_v6, %v3325_v23  ;;  %v14023_v9 = vpack.c.bf16 %v23236_v15, %v23237_v54  ;;  %v23231_v49 = vand.u32 4294901760, %v19430_v34  ;;  %v23230_v37 = vand.u32 4294901760, %v19438_v12  ;;  %13758 = vmatprep.subr.bf16.mxu1 %v13757_v19  ;;  %14022 = vmatprep.subr.bf16.mxu0 %v14021_v48  ;;  %v24942_v23 = vld [vmem:[#allocation55_spill] sm:$0xff]  ;;  %v24990_v58 = vld [vmem:[#allocation68_spill] sm:$0xff] }
 0x341   :  { %v14025_v0 = vpack.c.bf16 %v23232_v20, %v23233_v7  ;;  %v23235_v29 = vand.u32 4294901760, %v19443_v5  ;;  %v23234_v22 = vand.u32 4294901760, %v19454_v27  ;;  %vm128_vm11 = vcmp.eq.s32.totalorder %v19686_v1, %v24940_v25  ;;  %v24946_v20 = vld [vmem:[#allocation75_spill] sm:$0xff]  ;;  %v20033_v5 = vld [vmem:[#allocation2 + $0x760] sm:$0xff] }
 0x342   :  { %vm174_vm12 = vmor %vm128_vm11, %vm153_vm10  ;;  %13760 = vmatpush3.bf16.msra.mxu1 %v13759_v36  ;;  %v14027_v26 = vpack.c.bf16 %v23230_v37, %v23231_v49  ;;  %v23240_v30 = vand.u32 4294901760, %v19466_v13  ;;  %v23239_v48 = vand.u32 4294901760, %v19475_v31  ;;  %vm199_vm13 = vcmp.eq.s32.totalorder %v19686_v1, %v24942_v23  ;;  %v24944_v37 = vld [vmem:[#allocation49_spill] sm:$0xff]  ;;  %v24945_v49 = vld [vmem:[#allocation59_spill] sm:$0xff] }
 0x343   :  { %14024 = vmatpush3.bf16.msra.mxu0 %v14023_v9  ;;  %13794 = vmatprep.subr.bf16.mxu1 %v24941_v2  ;;  %v14029_v19 = vpack.c.bf16 %v23234_v22, %v23235_v29  ;;  %v23242_v36 = vand.u32 4294901760, %v19480_v52  ;;  %v23241_v6 = vand.u32 4294901760, %v19507_v56  ;;  %vm220_vm14 = vmor %vm174_vm12, %vm199_vm13  ;;  %v24943_v9 = vld [vmem:[#allocation57_spill] sm:$0xff]  ;;  %vm291_vm0 = vcmp.eq.s32.totalorder %v19686_v1, %v24945_v49  ;;  %v24949_v22 = vld [vmem:[#allocation32_spill] sm:$0xff] }
 0x344   :  { %14026 = vmatprep.subr.bf16.mxu0 %v14025_v0  ;;  %vm245_vm15 = vcmp.eq.s32.totalorder %v19686_v1, %v24943_v9  ;;  %v24947_v0 = vld [vmem:[#allocation28_spill] sm:$0xff]  ;;  %v14031_v29 = vpack.c.bf16 %v23239_v48, %v23240_v30  ;;  %v23248_v15 = vand.u32 4294901760, %v19512_v33  ;;  %v23247_v54 = vand.u32 4294901760, %v19520_v62  ;;  %v24951_v48 = vld [vmem:[#allocation35_spill] sm:$0xff]  ;;  %v24952_v30 = vld [vmem:[#allocation37_spill] sm:$0xff] }
 0x345   :  { %5391 = vmatmul.mubr.f32.vlgmr.msra.gmra.mrb[34].mxu1 %v24944_v37  ;;  %v24948_v7 = vand.u32 4294901760, %v24947_v0  ;;  %vm266_vm1 = vmor %vm220_vm14, %vm245_vm15  ;;  %v14033_v0 = vpack.c.bf16 %v23241_v6, %v23242_v36  ;;  %vm337_vm3 = vcmp.eq.s32.totalorder %v19686_v1, %v24950_v43  ;;  %v23256_v6 = vand.u32 4294901760, %v19550_v45  ;;  %v19793_v45 = vld [vmem:[#allocation2 + $0x788] sm:$0xff]  ;;  %v19822_v3 = vld [vmem:[#allocation2 + $0x798] sm:$0xff] }
 0x346   :  { %13796 = vmatpush3.bf16.msra.mxu1 %v24946_v20  ;;  %vm312_vm2 = vmor %vm266_vm1, %vm291_vm0  ;;  %v23255_v36 = vand.u32 4294901760, %v19573_v10  ;;  %v23257_v46 = vand.u32 4294901760, %v19583_v4  ;;  %v24954_v61 = vmov 0.0   ;;  %v24964_v4 = vld [vmem:[#allocation87_spill] sm:$0xff]  ;;  %v19940_v52 = vld [vmem:[#allocation2 + $0x7c8] sm:$0xff] }
 0x347   :  { %5633 = vmatprep.mubr.f32.mxu1 %v24948_v7  ;;  %14028 = vmatpush3.bf16.msra.mxu0 %v14027_v26  ;;  %v23250_v7 = vand.u32 4294901760, %v19540_v21  ;;  %v23249_v26 = vand.u32 4294901760, %v19545_v14  ;;  %vm358_vm4 = vmor %vm312_vm2, %vm337_vm3  ;;  %v19854_v14 = vld [vmem:[#allocation2 + $0x7a8] sm:$0xff] }
 0x348   :  { %13798 = vmatprep.subr.bf16.mxu1 %v24949_v22  ;;  %14030 = vmatprep.subr.bf16.mxu0 %v14029_v19  ;;  %v14035_v19 = vpack.c.bf16 %v23247_v54, %v23248_v15  ;;  %v19776_v55 = vsel %vm358_vm4, 1.0, %v24954_v61  ;;  %v24956_v54 = vld [vmem:[#allocation24_spill] sm:$0xff]  ;;  %v23267_v15 = vand.u32 4294901760, %v19604_v35 }
 0x349   :  { %v14037_v1 = vpack.c.bf16 %v23249_v26, %v23250_v7  ;;  %24955 = vst [vmem:[#allocation23_spill] sm:$0xff] %v19776_v55 }
 0x34a   :  { %13800 = vmatpush3.bf16.msra.mxu1 %v24951_v48 }
 0x34b   :  { %14032 = vmatpush3.bf16.msra.mxu0 %v14031_v29  ;;  %13802 = vmatprep.subr.bf16.mxu1 %v24952_v30  ;;  %v23258_v29 = vand.u32 4294901760, %v19578_v41  ;;  %v24963_v41 = vand.u32 4294901760, %v19621_v40 }
 0x34c   :  { %14034 = vmatprep.subr.bf16.mxu0 %v14033_v0  ;;  %v14039_v0 = vpack.c.bf16 %v23255_v36, %v23256_v6  ;;  %v19797_v36 = vsub.f32 %v19776_v55, %v19776_v55  ;;  %v11164_v6 = vpop.f32.mrb[23].mxu0  ;;  %v24962_v55 = vand.u32 4294901760, %v19614_v60  ;;  %v10918_v60 = vpop.f32.mrb[22].mxu1 }
 0x34d   :  { %v14041_v7 = vpack.c.bf16 %v23257_v46, %v23258_v29  ;;  %v19800_v26 = vadd.f32 %v11164_v6, %v11163_v28  ;;  %v24960_v46 = vld [vmem:[#allocation83_spill] sm:$0xff]  ;;  %v24961_v29 = vand.u32 4294901760, %v19609_v57  ;;  %v24967_v6 = vand.u32 4294901760, %v19647_v51 }
 0x34e   :  { %13804 = vmatpush3.bf16.msra.mxu1 %v24953_v59  ;;  %24957 = vst [vmem:[#allocation25_spill] sm:$0xff] %v19797_v36  ;;  %v14045_v10 = vpack.c.bf16 %v24963_v41, %v24962_v55  ;;  %v24965_v41 = vld [vmem:[#allocation88_spill] sm:$0xff]  ;;  %v24966_v55 = vand.u32 4294901760, %v19640_v8  ;;  %v24971_v40 = vand.u32 4294901760, %v19797_v36  ;;  %v24975_v8 = vld [vmem:[#allocation91_spill] sm:$0xff] }
 0x34f   :  { %14036 = vmatpush3.bf16.msra.mxu0 %v14035_v19  ;;  %13806 = vmatprep.subr.bf16.mxu1 %v24956_v54  ;;  %24959 = vst [vmem:[#allocation44_spill] sm:$0xff] %v19800_v26  ;;  %v14043_v19 = vpack.c.bf16 %v24961_v29, %v23267_v15  ;;  %v19817_v26 = vld [vmem:[#allocation2 + $0x708] sm:$0xff]  ;;  %v19820_v15 = vld [vmem:[#allocation2 + $0x790] sm:$0xff]  ;;  %v10919_v29 = vpop.f32.mrb[23].mxu1 }
 0x350   :  { %14038 = vmatprep.subr.bf16.mxu0 %v14037_v1  ;;  %v24958_v1 = vld [vmem:[#allocation47_spill] sm:$0xff]  ;;  %v14047_v28 = vpack.c.bf16 %v24967_v6, %v24966_v55  ;;  %v6875_v35 = vsub.f32 %v19797_v36, %v24971_v40  ;;  %v24977_v21 = vand.u32 4294901760, %v19817_v26 }
 0x351   :  { %v19845_v6 = vld [vmem:[#allocation2 + $0x710] sm:$0xff]  ;;  %v19847_v55 = vld [vmem:[#allocation2 + $0x718] sm:$0xff] }
 0x352   :  { %13808 = vmatpush3.bf16.msra.mxu1 %v24958_v1  ;;  %v6876_v56 = vand.u32 4294901760, %v6875_v35  ;;  %v24987_v35 = vand.u32 4294901760, %v19845_v6  ;;  %v24988_v51 = vand.u32 4294901760, %v19847_v55 }
 0x353   :  { %14040 = vmatpush3.bf16.msra.mxu0 %v14039_v0  ;;  %13810 = vmatprep.subr.bf16.mxu1 %v24960_v46  ;;  %v19815_v0 = vld [vmem:[#allocation2 + $0x700] sm:$0xff] }
 0x354   :  { %14042 = vmatprep.subr.bf16.mxu0 %v14041_v7  ;;  %v19825_v7 = vadd.s32 1792, %v24936_v17  ;;  %v24968_v17 = vand.u32 4294901760, %v19791_v42  ;;  %v24976_v40 = vand.u32 4294901760, %v19815_v0 }
 0x356   :  { %13812 = vmatpush3.bf16.msra.mxu1 %v24964_v4  ;;  %vm152_vm5 = vcmp.eq.s32.totalorder %v19825_v7, %v24938_v44  ;;  %vm127_vm6 = vcmp.eq.s32.totalorder %v19825_v7, %v24940_v25  ;;  %v19871_v62 = vpack.c.bf16 %v24977_v21, %v24976_v40  ;;  %vm198_vm8 = vcmp.eq.s32.totalorder %v19825_v7, %v24942_v23  ;;  %v19891_v23 = vld [vmem:[#allocation2 + $0x7b0] sm:$0xff] }
 0x357   :  { %14044 = vmatpush3.bf16.msra.mxu0 %v14043_v19  ;;  %13814 = vmatprep.subr.bf16.mxu1 %v24965_v41  ;;  %v24969_v19 = vand.u32 4294901760, %v19793_v45  ;;  %vm19862_vm7 = vmor %vm127_vm6, %vm152_vm5  ;;  %v24980_v44 = vand.u32 4294901760, %v19822_v3  ;;  %vm244_vm10 = vcmp.eq.s32.totalorder %v19825_v7, %v24943_v9  ;;  %v24986_v40 = vld [vmem:[#allocation42_spill] sm:$0xff]  ;;  %vm290_vm11 = vcmp.eq.s32.totalorder %v19825_v7, %v24945_v49  ;;  %v19967_v9 = vld [vmem:[#allocation2 + $0x740] sm:$0xff] }
 0x358   :  { %14046 = vmatprep.subr.bf16.mxu0 %v14045_v10  ;;  %v19852_v10 = vld [vmem:[#allocation2 + $0x7a0] sm:$0xff]  ;;  %24978 = vst [vmem:[#allocation22_spill] sm:$0xff] %v19871_v62  ;;  %vm19897_vm9 = vmor %vm19862_vm7, %vm198_vm8  ;;  %vm336_vm14 = vcmp.eq.s32.totalorder %v19825_v7, %v24950_v43  ;;  %v24998_v7 = vand.u32 4294901760, %v19891_v23 }
 0x359   :  { %v19841_v57 = vpack.c.bf16 %v24969_v19, %v24968_v17  ;;  %v10920_v17 = vadd.f32 %v10919_v29, %v10918_v60  ;;  %v24972_v19 = vld [vmem:[#allocation89_spill] sm:$0xff]  ;;  %vm265_vm12 = vmor %vm19897_vm9, %vm244_vm10 }
 0x35a   :  { %13816 = vmatpush3.bf16.msra.mxu1 %v24972_v19  ;;  %v19887_v60 = vld [vmem:[#allocation2 + $0x720] sm:$0xff]  ;;  %v19889_v29 = vld [vmem:[#allocation2 + $0x728] sm:$0xff]  ;;  %vm311_vm13 = vmor %vm265_vm12, %vm290_vm11 }
 0x35b   :  { %24970 = vst [vmem:[#allocation84_spill] sm:$0xff] %v19841_v57  ;;  %14048 = vmatpush3.bf16.msra.mxu0 %v14047_v28  ;;  %13818 = vmatprep.subr.bf16.mxu1 %v24975_v8  ;;  %v3669_v25 = vadd.f32 %v10920_v17, %v19703_v18  ;;  %v24979_v28 = vand.u32 4294901760, %v19820_v15  ;;  %v19893_v18 = vld [vmem:[#allocation2 + $0x7b8] sm:$0xff]  ;;  %v24995_v17 = vand.u32 4294901760, %v19887_v60  ;;  %vm357_vm15 = vmor %vm311_vm13, %vm336_vm14 }
 0x35c   :  { %14082 = vmatprep.subr.bf16.mxu0 %v19841_v57  ;;  %v19915_v57 = vpack.c.bf16 %v24988_v51, %v24987_v35  ;;  %v19929_v35 = vld [vmem:[#allocation2 + $0x730] sm:$0xff]  ;;  %v19931_v51 = vld [vmem:[#allocation2 + $0x738] sm:$0xff]  ;;  %v24999_v43 = vand.u32 4294901760, %v19893_v18  ;;  %v19990_v13 = vsel %vm357_vm15, 1.0, %v24954_v61  ;;  %v20007_v61 = vld [vmem:[#allocation2 + $0x7e8] sm:$0xff] }
 0x35d   :  { %v19883_v33 = vpack.c.bf16 %v24980_v44, %v24979_v28  ;;  %v24984_v44 = vld [vmem:[#allocation81_spill] sm:$0xff]  ;;  %v24985_v28 = vld [vmem:[#allocation51_spill] sm:$0xff]  ;;  %v19906_v21 = vadd.f32 %v24986_v40, %v3669_v25  ;;  %v24991_v25 = vand.u32 4294901760, %v19852_v10  ;;  %v24992_v40 = vand.u32 4294901760, %v19854_v14  ;;  %25008 = vst [vmem:[#allocation95_spill] sm:$0xff] %v19990_v13  ;;  %25014 = vst [vmem:[#allocation32_spill] sm:$0xff] %v20007_v61 }
 0x35e   :  { %6667 = vmatmul.mubr.f32.vlgmr.msra.gmra.mrb[36].mxu0 %v24984_v44  ;;  %13820 = vmatpush3.bf16.msra.mxu1 %v24985_v28  ;;  %24989 = vst [vmem:[#allocation27_spill] sm:$0xff] %v19915_v57  ;;  %v19938_v44 = vld [vmem:[#allocation2 + $0x7c0] sm:$0xff]  ;;  %v19963_v49 = vpack.c.bf16 %v24999_v43, %v24998_v7  ;;  %v25004_v43 = vld [vmem:[#allocation78_spill] sm:$0xff]  ;;  %v25005_v7 = vand.u32 4294901760, %v19929_v35  ;;  %v25026_v37 = vand.u32 4294901760, %v20007_v61  ;;  %v25033_v61 = vand.u32 4294901760, %v19791_v42 }
 0x35f   :  { %24981 = vst [vmem:[#allocation19_spill] sm:$0xff] %v19883_v33  ;;  %14084 = vmatpush3.bf16.msra.mxu0 %v19871_v62  ;;  %6877 = vmatprep.mubr.f32.mxu0 %v6876_v56  ;;  %v19925_v62 = vpack.c.bf16 %v24992_v40, %v24991_v25  ;;  %v24994_v25 = vld [vmem:[#allocation62_spill] sm:$0xff]  ;;  %v24996_v40 = vand.u32 4294901760, %v19889_v29 }
 0x360   :  { %13822 = vmatprep.subr.bf16.mxu1 %v24990_v58  ;;  %14086 = vmatprep.subr.bf16.mxu0 %v19883_v33  ;;  %25000 = vst [vmem:[#allocation82_spill] sm:$0xff] %v19963_v49  ;;  %v19973_v33 = vld [vmem:[#allocation2 + $0x7d0] sm:$0xff] }
 0x361   :  { %24993 = vst [vmem:[#allocation93_spill] sm:$0xff] %v19925_v62  ;;  %v19954_v31 = vpack.c.bf16 %v24996_v40, %v24995_v17  ;;  %v19969_v17 = vld [vmem:[#allocation2 + $0x748] sm:$0xff] }
 0x362   :  { %13824 = vmatpush3.bf16.msra.mxu1 %v24994_v25  ;;  %v25001_v40 = vld [vmem:[#allocation86_spill] sm:$0xff] }
 0x363   :  { %14088 = vmatpush3.bf16.msra.mxu0 %v19915_v57  ;;  %13858 = vmatprep.subr.bf16.mxu1 %v24941_v2  ;;  %24997 = vst [vmem:[#allocation66_spill] sm:$0xff] %v19954_v31  ;;  %v25002_v56 = vand.u32 4294901760, %v25001_v40  ;;  %v25006_v57 = vand.u32 4294901760, %v19931_v51  ;;  %v20005_v40 = vld [vmem:[#allocation2 + $0x7e0] sm:$0xff] }
 0x364   :  { %14090 = vmatprep.subr.bf16.mxu0 %v19925_v62  ;;  %v19975_v62 = vld [vmem:[#allocation2 + $0x7d8] sm:$0xff]  ;;  %25013 = vst [vmem:[#allocation28_spill] sm:$0xff] %v20005_v40 }
 0x365   :  { %5637 = vmatmul.mubr.f32.vlgmr.msra.gmra.mrb[36].mxu1 %v25002_v56  ;;  %25003 = vst [vmem:[#allocation85_spill] sm:$0xff] %v19975_v62  ;;  %v19985_v2 = vpack.c.bf16 %v25006_v57, %v25005_v7  ;;  %v20001_v7 = vld [vmem:[#allocation2 + $0x750] sm:$0xff]  ;;  %v20003_v56 = vld [vmem:[#allocation2 + $0x758] sm:$0xff] }
 0x366   :  { %13860 = vmatpush3.bf16.msra.mxu1 %v24946_v20  ;;  %5907 = vmatprep.mubr.f32.mxu1 %v25004_v43  ;;  %v25009_v20 = vand.u32 4294901760, %v19938_v44  ;;  %v25010_v43 = vand.u32 4294901760, %v19940_v52  ;;  %25012 = vst [vmem:[#allocation75_spill] sm:$0xff] %v20001_v7 }
 0x367   :  { %14092 = vmatpush3.bf16.msra.mxu0 %v19954_v31  ;;  %13862 = vmatprep.subr.bf16.mxu1 %v24949_v22  ;;  %25007 = vst [vmem:[#allocation94_spill] sm:$0xff] %v19985_v2  ;;  %v20039_v31 = vld [vmem:[#allocation2 + $0x7f8] sm:$0xff] }
 0x368   :  { %14094 = vmatprep.subr.bf16.mxu0 %v19963_v49  ;;  %v19997_v22 = vpack.c.bf16 %v25010_v43, %v25009_v20  ;;  %v20012_v49 = vsub.f32 %v19990_v13, %v19990_v13  ;;  %v25016_v20 = vand.u32 4294901760, %v19967_v9  ;;  %v25017_v43 = vand.u32 4294901760, %v19969_v17 }
 0x369   :  { %v25020_v13 = vand.u32 4294901760, %v19975_v62 }
 0x36a   :  { %25011 = vst [vmem:[#allocation92_spill] sm:$0xff] %v19997_v22  ;;  %13864 = vmatpush3.bf16.msra.mxu1 %v24951_v48  ;;  %25015 = vst [vmem:[#allocation35_spill] sm:$0xff] %v20012_v49  ;;  %v20020_v57 = vpack.c.bf16 %v25017_v43, %v25016_v20  ;;  %v25019_v48 = vand.u32 4294901760, %v19973_v33  ;;  %v20035_v20 = vld [vmem:[#allocation2 + $0x768] sm:$0xff]  ;;  %v20037_v43 = vld [vmem:[#allocation2 + $0x7f0] sm:$0xff] }
 0x36b   :  { %14096 = vmatpush3.bf16.msra.mxu0 %v19985_v2  ;;  %13866 = vmatprep.subr.bf16.mxu1 %v24952_v30 }
 0x36c   :  { %25018 = vst [vmem:[#allocation37_spill] sm:$0xff] %v20020_v57  ;;  %14098 = vmatprep.subr.bf16.mxu0 %v19997_v22  ;;  %v20029_v27 = vpack.c.bf16 %v25020_v13, %v25019_v48  ;;  %v25022_v13 = vand.u32 4294901760, %v20001_v7  ;;  %v25023_v48 = vand.u32 4294901760, %v20003_v56  ;;  %v20062_v7 = vld [vmem:[#allocation2 + $0x770] sm:$0xff]  ;;  %v25028_v22 = vand.u32 4294901760, %v20012_v49 }
 0x36e   :  { %25021 = vst [vmem:[#allocation40_spill] sm:$0xff] %v20029_v27  ;;  %13868 = vmatpush3.bf16.msra.mxu1 %v24953_v59  ;;  %v20049_v2 = vpack.c.bf16 %v25023_v48, %v25022_v13  ;;  %v25025_v59 = vand.u32 4294901760, %v20005_v40  ;;  %v20064_v13 = vld [vmem:[#allocation2 + $0x778] sm:$0xff]  ;;  %v11233_v48 = vpop.f32.mrb[24].mxu0 }
 0x36f   :  { %14100 = vmatpush3.bf16.msra.mxu0 %v20020_v57  ;;  %13870 = vmatprep.subr.bf16.mxu1 %v24956_v54  ;;  %v11234_v30 = vpop.f32.mrb[25].mxu0 }
 0x370   :  { %25024 = vst [vmem:[#allocation24_spill] sm:$0xff] %v20049_v2  ;;  %14102 = vmatprep.subr.bf16.mxu0 %v20029_v27  ;;  %v20058_v62 = vpack.c.bf16 %v25026_v37, %v25025_v59  ;;  %v6881_v27 = vsub.f32 %v20012_v49, %v25028_v22  ;;  %v20070_v40 = vadd.f32 %v11234_v30, %v11233_v48  ;;  %v25030_v37 = vand.u32 4294901760, %v20033_v5 }
 0x371   :  { %v25031_v59 = vand.u32 4294901760, %v20035_v20  ;;  %v20085_v22 = vsub.f32 %v19791_v42, %v25033_v61  ;;  %v25034_v30 = vand.u32 4294901760, %v19793_v45  ;;  %v25039_v42 = vand.u32 4294901760, %v19817_v26 }
 0x372   :  { %25027 = vst [vmem:[#allocation47_spill] sm:$0xff] %v20058_v62  ;;  %13872 = vmatpush3.bf16.msra.mxu1 %v24958_v1  ;;  %25029 = vst [vmem:[#allocation83_spill] sm:$0xff] %v20070_v40  ;;  %v25038_v1 = vand.u32 4294901760, %v19815_v0  ;;  %v25132_v40 = vld [vmem:[#allocation61_spill] sm:$0xff] }
 0x373   :  { %14104 = vmatpush3.bf16.msra.mxu0 %v20049_v2  ;;  %13874 = vmatprep.subr.bf16.mxu1 %v24960_v46  ;;  %v20078_v57 = vpack.c.bf16 %v25031_v59, %v25030_v37  ;;  %v20090_v48 = vsub.f32 %v19793_v45, %v25034_v30  ;;  %v25035_v46 = vand.u32 4294901760, %v20037_v43  ;;  %v25036_v37 = vand.u32 4294901760, %v20039_v31 }
 0x374   :  { %14106 = vmatprep.subr.bf16.mxu0 %v20058_v62  ;;  %v20102_v54 = vsub.f32 %v19815_v0, %v25038_v1  ;;  %v20107_v61 = vsub.f32 %v19817_v26, %v25039_v42  ;;  %v25040_v45 = vand.u32 4294901760, %v19820_v15  ;;  %v25041_v62 = vand.u32 4294901760, %v19822_v3 }
 0x375   :  { %25032 = vst [vmem:[#allocation87_spill] sm:$0xff] %v20078_v57  ;;  %v20097_v59 = vpack.c.bf16 %v25036_v37, %v25035_v46  ;;  %v25042_v37 = vand.u32 4294901760, %v19845_v6  ;;  %v25043_v1 = vand.u32 4294901760, %v19847_v55  ;;  %v6882_v42 = vand.u32 4294901760, %v6881_v27 }
 0x376   :  { %v20112_v30 = vsub.f32 %v19820_v15, %v25040_v45  ;;  %v20117_v46 = vsub.f32 %v19822_v3, %v25041_v62  ;;  %13876 = vmatpush3.bf16.msra.mxu1 %v24964_v4  ;;  %v25044_v15 = vand.u32 4294901760, %v20062_v7  ;;  %v25045_v62 = vand.u32 4294901760, %v20064_v13 }
 0x377   :  { %25037 = vst [vmem:[#allocation88_spill] sm:$0xff] %v20097_v59  ;;  %v20122_v0 = vsub.f32 %v19845_v6, %v25042_v37  ;;  %v20127_v26 = vsub.f32 %v19847_v55, %v25043_v1  ;;  %14108 = vmatpush3.bf16.msra.mxu0 %v20078_v57  ;;  %13878 = vmatprep.subr.bf16.mxu1 %v24965_v41  ;;  %v25047_v6 = vand.u32 4294901760, %v19358_v50  ;;  %v25048_v55 = vand.u32 4294901760, %v19363_v24 }
 0x378   :  { %v20136_v3 = vpack.c.bf16 %v25045_v62, %v25044_v15  ;;  %v25049_v4 = vand.u32 4294901760, %v19852_v10  ;;  %v25050_v41 = vand.u32 4294901760, %v19854_v14  ;;  %v25051_v27 = vand.u32 4294901760, %v19887_v60  ;;  %14110 = vmatprep.subr.bf16.mxu0 %v20097_v59 }
 0x379   :  { %v6142_v45 = vsub.f32 %v19358_v50, %v25047_v6  ;;  %v6149_v37 = vsub.f32 %v19363_v24, %v25048_v55  ;;  %v10988_v50 = vpop.f32.mrb[24].mxu1  ;;  %v14145_v24 = vpack.c.bf16 %v20090_v48, %v20085_v22  ;;  %v25052_v62 = vand.u32 4294901760, %v19889_v29 }
 0x37a   :  { %25046 = vst [vmem:[#allocation89_spill] sm:$0xff] %v20136_v3  ;;  %v20147_v1 = vsub.f32 %v19852_v10, %v25049_v4  ;;  %v20152_v57 = vsub.f32 %v19854_v14, %v25050_v41  ;;  %v20157_v15 = vsub.f32 %v19887_v60, %v25051_v27  ;;  %v25053_v6 = vand.u32 4294901760, %v19891_v23  ;;  %v10989_v55 = vpop.f32.mrb[25].mxu1  ;;  %13880 = vmatpush3.bf16.msra.mxu1 %v24972_v19 }
 0x37b   :  { %v20165_v10 = vsub.f32 %v19889_v29, %v25052_v62  ;;  %v25055_v60 = vand.u32 4294901760, %v19375_v32  ;;  %v25056_v41 = vand.u32 4294901760, %v19380_v16  ;;  %v25057_v59 = vand.u32 4294901760, %v19893_v18  ;;  %14112 = vmatpush3.bf16.msra.mxu0 %v20136_v3  ;;  %13882 = vmatprep.subr.bf16.mxu1 %v24975_v8 }
 0x37c   :  { %v20170_v14 = vsub.f32 %v19891_v23, %v25053_v6  ;;  %v10990_v29 = vadd.f32 %v10989_v55, %v10988_v50  ;;  %v25059_v23 = vand.u32 4294901760, %v19385_v39  ;;  %v25060_v6 = vand.u32 4294901760, %v19390_v11  ;;  %14146 = vmatprep.subr.bf16.mxu0 %v14145_v24 }
 0x37d   :  { %v6030_v4 = vsub.f32 %v19375_v32, %v25055_v60  ;;  %v6037_v27 = vsub.f32 %v19380_v16, %v25056_v41  ;;  %v20181_v2 = vsub.f32 %v19893_v18, %v25057_v59  ;;  %v25061_v60 = vand.u32 4294901760, %v19929_v35 }
 0x37e   :  { %25054 = vst [vmem:[#allocation91_spill] sm:$0xff] %v20170_v14  ;;  %v6156_v62 = vsub.f32 %v19385_v39, %v25059_v23  ;;  %v6163_v32 = vsub.f32 %v19390_v11, %v25060_v6  ;;  %v14147_v19 = vpack.c.bf16 %v20107_v61, %v20102_v54  ;;  %v6143_v18 = vand.u32 4294901760, %v6142_v45  ;;  %6883 = vmatmul.mubr.f32.vlgmr.msra.gmra.mrb[38].mxu0 %v6882_v42 }
 0x37f   :  { %25058 = vst [vmem:[#allocation51_spill] sm:$0xff] %v20181_v2  ;;  %v20193_v16 = vsub.f32 %v19929_v35, %v25061_v60  ;;  %v6150_v59 = vand.u32 4294901760, %v6149_v37  ;;  %v25063_v39 = vand.u32 4294901760, %v19931_v51  ;;  %v25065_v11 = vand.u32 4294901760, %v19938_v44  ;;  %13884 = vmatpush3.bf16.msra.mxu1 %v24985_v28  ;;  %7250 = vmatprep.mubr.f32.mxu0 %v19797_v36 }
 0x380   :  { %v3915_v35 = vadd.f32 %v10990_v29, %v19906_v21  ;;  %v14149_v8 = vpack.c.bf16 %v20117_v46, %v20112_v30  ;;  %v14151_v45 = vpack.c.bf16 %v20127_v26, %v20122_v0  ;;  %v6031_v37 = vand.u32 4294901760, %v6030_v4  ;;  %v25069_v29 = vld [vmem:[#allocation26_spill] sm:$0xff]  ;;  %14148 = vmatpush3.bf16.msra.mxu0 %v14147_v19  ;;  %13886 = vmatprep.subr.bf16.mxu1 %v24990_v58 }
 0x381   :  { %25062 = vst [vmem:[#allocation42_spill] sm:$0xff] %v20193_v16  ;;  %v20202_v50 = vsub.f32 %v19931_v51, %v25063_v39  ;;  %v20207_v55 = vsub.f32 %v19938_v44, %v25065_v11  ;;  %v6038_v41 = vand.u32 4294901760, %v6037_v27  ;;  %v25067_v23 = vand.u32 4294901760, %v19395_v53 }
 0x382   :  { %v6157_v44 = vand.u32 4294901760, %v6156_v62  ;;  %v6164_v6 = vand.u32 4294901760, %v6163_v32  ;;  %v25068_v21 = vand.u32 4294901760, %v19400_v47  ;;  %v20222_v60 = vadd.f32 %v25069_v29, %v3915_v35  ;;  %14150 = vmatprep.subr.bf16.mxu0 %v14149_v8  ;;  %v25080_v29 = vld [vmem:[#allocation48_spill] sm:$0xff] }
 0x383   :  { %25064 = vst [vmem:[#allocation68_spill] sm:$0xff] %v20202_v50  ;;  %25066 = vst [vmem:[#allocation62_spill] sm:$0xff] %v20207_v55  ;;  %v6044_v51 = vsub.f32 %v19395_v53, %v25067_v23  ;;  %v13921_v4 = vpack.c.bf16 %v6150_v59, %v6143_v18  ;;  %v25070_v27 = vand.u32 4294901760, %v19420_v63  ;;  %v25071_v42 = vand.u32 4294901760, %v19425_v38  ;;  %13888 = vmatpush3.bf16.msra.mxu1 %v24994_v25 }
 0x384   :  { %v6051_v24 = vsub.f32 %v19400_v47, %v25068_v21  ;;  %v25072_v62 = vand.u32 4294901760, %v19940_v52  ;;  %v25074_v47 = vand.u32 4294901760, %v19967_v9  ;;  %v25076_v18 = vand.u32 4294901760, %v19969_v17  ;;  %14152 = vmatpush3.bf16.msra.mxu0 %v14151_v45 }
 0x385   :  { %v6170_v53 = vsub.f32 %v19420_v63, %v25070_v27  ;;  %v6177_v28 = vsub.f32 %v19425_v38, %v25071_v42  ;;  %v14153_v63 = vpack.c.bf16 %v20152_v57, %v20147_v1  ;;  %v25078_v59 = vand.u32 4294901760, %v19430_v34  ;;  %13922 = vmatprep.subr.bf16.mxu1 %v13921_v4  ;;  %v25092_v4 = vld [vmem:[#allocation49_spill] sm:$0xff] }
 0x386   :  { %v20234_v32 = vsub.f32 %v19940_v52, %v25072_v62  ;;  %v20239_v19 = vsub.f32 %v19967_v9, %v25074_v47  ;;  %v20247_v38 = vsub.f32 %v19969_v17, %v25076_v18  ;;  %v14155_v52 = vpack.c.bf16 %v20165_v10, %v20157_v15  ;;  %v25082_v62 = vld [vmem:[#allocation64_spill] sm:$0xff]  ;;  %5909 = vmatmul.mubr.f32.vlgmr.msra.gmra.mrb[38].mxu1 %v25092_v4 }
 0x387   :  { %v6058_v39 = vsub.f32 %v19430_v34, %v25078_v59  ;;  %v25079_v9 = vand.u32 4294901760, %v19438_v12  ;;  %v13923_v11 = vpack.c.bf16 %v6038_v41, %v6031_v37  ;;  %v13925_v35 = vpack.c.bf16 %v6164_v6, %v6157_v44  ;;  %v25086_v37 = vld [vmem:[#allocation85_spill] sm:$0xff]  ;;  %14154 = vmatprep.subr.bf16.mxu0 %v14153_v63 }
 0x388   :  { %25073 = vst [vmem:[#allocation86_spill] sm:$0xff] %v20234_v32  ;;  %25075 = vst [vmem:[#allocation78_spill] sm:$0xff] %v20239_v19  ;;  %v6045_v8 = vand.u32 4294901760, %v6044_v51  ;;  %v6052_v23 = vand.u32 4294901760, %v6051_v24  ;;  %v6171_v17 = vand.u32 4294901760, %v6170_v53  ;;  %v6178_v21 = vand.u32 4294901760, %v6177_v28  ;;  %14156 = vmatpush3.bf16.msra.mxu0 %v14155_v52 }
 0x389   :  { %25077 = vst [vmem:[#allocation26_spill] sm:$0xff] %v20247_v38  ;;  %v6065_v58 = vsub.f32 %v19438_v12, %v25079_v9  ;;  %v25081_v27 = vand.u32 4294901760, %v25080_v29  ;;  %v25083_v34 = vand.u32 4294901760, %v25082_v62  ;;  %v25084_v12 = vand.u32 4294901760, %v19973_v33  ;;  %v25089_v51 = vld [vmem:[#allocation75_spill] sm:$0xff]  ;;  %v25095_v9 = vld [vmem:[#allocation18_spill] sm:$0xff]  ;;  %13924 = vmatpush3.bf16.msra.mxu1 %v13923_v11 }
 0x38a   :  { %v25087_v41 = vand.u32 4294901760, %v25086_v37  ;;  %v25090_v44 = vand.u32 4294901760, %v25089_v51  ;;  %v14157_v24 = vpack.c.bf16 %v20181_v2, %v20170_v14  ;;  %v6059_v53 = vand.u32 4294901760, %v6058_v39  ;;  %v25098_v63 = vld [vmem:[#allocation21_spill] sm:$0xff]  ;;  %13926 = vmatprep.subr.bf16.mxu1 %v13925_v35 }
 0x38b   :  { %v6184_v42 = vsub.f32 %v25080_v29, %v25081_v27  ;;  %v6191_v47 = vsub.f32 %v25082_v62, %v25083_v34  ;;  %v20267_v25 = vsub.f32 %v19973_v33, %v25084_v12  ;;  %v6066_v28 = vand.u32 4294901760, %v6065_v58  ;;  %v25093_v33 = vld [vmem:[#allocation90_spill] sm:$0xff]  ;;  %v25097_v62 = vld [vmem:[#allocation72_spill] sm:$0xff] }
 0x38c   :  { %v20272_v45 = vsub.f32 %v25086_v37, %v25087_v41  ;;  %v20277_v6 = vsub.f32 %v25089_v51, %v25090_v44  ;;  %v25094_v18 = vand.u32 4294901760, %v25093_v33  ;;  %v25096_v29 = vand.u32 4294901760, %v25095_v9  ;;  %6251 = vmatprep.mubr.f32.mxu1 %v25097_v62  ;;  %v25100_v41 = vld [vmem:[#allocation34_spill] sm:$0xff]  ;;  %14158 = vmatprep.subr.bf16.mxu0 %v14157_v24 }
 0x38d   :  { %25085 = vst [vmem:[#allocation48_spill] sm:$0xff] %v20267_v25  ;;  %v13927_v34 = vpack.c.bf16 %v6052_v23, %v6045_v8  ;;  %v25099_v12 = vand.u32 4294901760, %v25098_v63  ;;  %v25101_v51 = vand.u32 4294901760, %v25100_v41  ;;  %v14159_v58 = vpack.c.bf16 %v20202_v50, %v20193_v16  ;;  %v25104_v23 = vld [vmem:[#allocation28_spill] sm:$0xff] }
 0x38e   :  { %25088 = vst [vmem:[#allocation64_spill] sm:$0xff] %v20272_v45  ;;  %25091 = vst [vmem:[#allocation85_spill] sm:$0xff] %v20277_v6  ;;  %v6072_v59 = vsub.f32 %v25093_v33, %v25094_v18  ;;  %v6079_v27 = vsub.f32 %v25095_v9, %v25096_v29  ;;  %v13929_v44 = vpack.c.bf16 %v6178_v21, %v6171_v17  ;;  %v6185_v4 = vand.u32 4294901760, %v6184_v42  ;;  %v25107_v29 = vld [vmem:[#allocation32_spill] sm:$0xff] }
 0x38f   :  { %v6198_v37 = vsub.f32 %v25098_v63, %v25099_v12  ;;  %v6205_v39 = vsub.f32 %v25100_v41, %v25101_v51  ;;  %v6192_v33 = vand.u32 4294901760, %v6191_v47  ;;  %v25102_v11 = vand.u32 4294901760, %v20003_v56  ;;  %13928 = vmatpush3.bf16.msra.mxu1 %v13927_v34  ;;  %v25110_v41 = vld [vmem:[#allocation50_spill] sm:$0xff]  ;;  %14160 = vmatpush3.bf16.msra.mxu0 %v14159_v58 }
 0x390   :  { %v25105_v18 = vand.u32 4294901760, %v25104_v23  ;;  %v25108_v63 = vand.u32 4294901760, %v25107_v29  ;;  %v14161_v35 = vpack.c.bf16 %v20234_v32, %v20207_v55  ;;  %v13931_v17 = vpack.c.bf16 %v6066_v28, %v6059_v53  ;;  %13930 = vmatprep.subr.bf16.mxu1 %v13929_v44  ;;  %v25114_v53 = vld [vmem:[#allocation65_spill] sm:$0xff] }
 0x391   :  { %v20300_v8 = vsub.f32 %v20003_v56, %v25102_v11  ;;  %v14163_v21 = vpack.c.bf16 %v20247_v38, %v20239_v19  ;;  %v6073_v56 = vand.u32 4294901760, %v6072_v59  ;;  %v6080_v42 = vand.u32 4294901760, %v6079_v27  ;;  %v25116_v59 = vld [vmem:[#allocation69_spill] sm:$0xff] }
 0x392   :  { %v20305_v9 = vsub.f32 %v25104_v23, %v25105_v18  ;;  %v20310_v52 = vsub.f32 %v25107_v29, %v25108_v63  ;;  %v6199_v47 = vand.u32 4294901760, %v6198_v37  ;;  %v6206_v12 = vand.u32 4294901760, %v6205_v39  ;;  %v25112_v23 = vld [vmem:[#allocation20_spill] sm:$0xff]  ;;  %14162 = vmatprep.subr.bf16.mxu0 %v14161_v35 }
 0x393   :  { %25103 = vst [vmem:[#allocation75_spill] sm:$0xff] %v20300_v8  ;;  %v25111_v51 = vand.u32 4294901760, %v25110_v41  ;;  %v25113_v18 = vand.u32 4294901760, %v25112_v23  ;;  %v13933_v29 = vpack.c.bf16 %v6192_v33, %v6185_v4  ;;  %v25115_v28 = vand.u32 4294901760, %v25114_v53  ;;  %13932 = vmatpush3.bf16.msra.mxu1 %v13931_v17  ;;  %14164 = vmatpush3.bf16.msra.mxu0 %v14163_v21 }
 0x394   :  { %25106 = vst [vmem:[#allocation49_spill] sm:$0xff] %v20305_v9  ;;  %25109 = vst [vmem:[#allocation90_spill] sm:$0xff] %v20310_v52  ;;  %v25117_v27 = vand.u32 4294901760, %v25116_v59  ;;  %v25118_v37 = vand.u32 4294901760, %v20033_v5  ;;  %v25122_v58 = vand.u32 4294901760, %v20037_v43  ;;  %v14165_v4 = vpack.c.bf16 %v20272_v45, %v20267_v25 }
 0x395   :  { %v6086_v11 = vsub.f32 %v25110_v41, %v25111_v51  ;;  %v6093_v24 = vsub.f32 %v25112_v23, %v25113_v18  ;;  %v6212_v63 = vsub.f32 %v25114_v53, %v25115_v28  ;;  %v25120_v41 = vand.u32 4294901760, %v20035_v20  ;;  %v25126_v18 = vld [vmem:[#allocation36_spill] sm:$0xff]  ;;  %v25128_v28 = vld [vmem:[#allocation63_spill] sm:$0xff]  ;;  %13934 = vmatprep.subr.bf16.mxu1 %v13933_v29 }
 0x396   :  { %v6219_v34 = vsub.f32 %v25116_v59, %v25117_v27  ;;  %v20331_v39 = vsub.f32 %v20033_v5, %v25118_v37  ;;  %v20341_v44 = vsub.f32 %v20037_v43, %v25122_v58  ;;  %v25124_v33 = vand.u32 4294901760, %v20039_v31  ;;  %14166 = vmatprep.subr.bf16.mxu0 %v14165_v4 }
 0x397   :  { %v20336_v51 = vsub.f32 %v20035_v20, %v25120_v41  ;;  %v14167_v5 = vpack.c.bf16 %v20300_v8, %v20277_v6  ;;  %v25127_v20 = vand.u32 4294901760, %v25126_v18  ;;  %v25129_v59 = vand.u32 4294901760, %v25128_v28 }
 0x398   :  { %25119 = vst [vmem:[#allocation18_spill] sm:$0xff] %v20331_v39  ;;  %25123 = vst [vmem:[#allocation34_spill] sm:$0xff] %v20341_v44  ;;  %v20348_v23 = vsub.f32 %v20039_v31, %v25124_v33  ;;  %v13935_v35 = vpack.c.bf16 %v6080_v42, %v6073_v56  ;;  %v13937_v27 = vpack.c.bf16 %v6206_v12, %v6199_v47  ;;  %v6087_v37 = vand.u32 4294901760, %v6086_v11  ;;  %v25130_v33 = vld [vmem:[#allocation29_spill] sm:$0xff]  ;;  %v11303_v47 = vpop.f32.mrb[26].mxu0 }
 0x399   :  { %25121 = vst [vmem:[#allocation21_spill] sm:$0xff] %v20336_v51  ;;  %v6100_v53 = vsub.f32 %v25126_v18, %v25127_v20  ;;  %v6107_v43 = vsub.f32 %v25128_v28, %v25129_v59  ;;  %v6094_v41 = vand.u32 4294901760, %v6093_v24  ;;  %v6213_v31 = vand.u32 4294901760, %v6212_v63  ;;  %v25138_v24 = vld [vmem:[#allocation70_spill] sm:$0xff]  ;;  %14168 = vmatpush3.bf16.msra.mxu0 %v14167_v5 }
 0x39a   :  { %25125 = vst [vmem:[#allocation28_spill] sm:$0xff] %v20348_v23  ;;  %v6220_v58 = vand.u32 4294901760, %v6219_v34  ;;  %v25131_v3 = vand.u32 4294901760, %v25130_v33  ;;  %v25133_v62 = vand.u32 4294901760, %v25132_v40  ;;  %v25134_v20 = vand.u32 4294901760, %v20062_v7  ;;  %13936 = vmatpush3.bf16.msra.mxu1 %v13935_v35  ;;  %v25140_v34 = vld [vmem:[#allocation71_spill] sm:$0xff] }
 0x39b   :  { %v14169_v21 = vpack.c.bf16 %v20310_v52, %v20305_v9  ;;  %v25136_v56 = vand.u32 4294901760, %v20064_v13  ;;  %v6101_v12 = vand.u32 4294901760, %v6100_v53  ;;  %v13939_v11 = vpack.c.bf16 %v6094_v41, %v6087_v37  ;;  %13938 = vmatprep.subr.bf16.mxu1 %v13937_v27  ;;  %v25143_v41 = vld [vmem:[#allocation60_spill] sm:$0xff] }
 0x39c   :  { %v6226_v36 = vsub.f32 %v25130_v33, %v25131_v3  ;;  %v6233_v18 = vsub.f32 %v25132_v40, %v25133_v62  ;;  %v20367_v17 = vsub.f32 %v20062_v7, %v25134_v20  ;;  %v14171_v3 = vpack.c.bf16 %v20336_v51, %v20331_v39  ;;  %v11304_v62 = vpop.f32.mrb[27].mxu0 }
 0x39d   :  { %v20374_v42 = vsub.f32 %v20064_v13, %v25136_v56  ;;  %v6108_v40 = vand.u32 4294901760, %v6107_v43  ;;  %v14173_v7 = vpack.c.bf16 %v20348_v23, %v20341_v44  ;;  %v25139_v29 = vand.u32 4294901760, %v25138_v24  ;;  %14170 = vmatprep.subr.bf16.mxu0 %v14169_v21  ;;  %v25145_v56 = vld [vmem:[#allocation52_spill] sm:$0xff] }
 0x39e   :  { %25135 = vst [vmem:[#allocation32_spill] sm:$0xff] %v20367_v17  ;;  %v25141_v4 = vand.u32 4294901760, %v25140_v34  ;;  %v20386_v28 = vadd.f32 %v11304_v62, %v11303_v47  ;;  %v13941_v53 = vpack.c.bf16 %v6220_v58, %v6213_v31  ;;  %v6227_v59 = vand.u32 4294901760, %v6226_v36  ;;  %13940 = vmatpush3.bf16.msra.mxu1 %v13939_v11  ;;  %v25147_v58 = vld [vmem:[#allocation13_spill] sm:$0xff]  ;;  %v25149_v62 = vld [vmem:[#allocation43_spill] sm:$0xff]  ;;  %14172 = vmatpush3.bf16.msra.mxu0 %v14171_v3  ;;  %v11058_v11 = vpop.f32.mrb[26].mxu1 }
 0x39f   :  { %25137 = vst [vmem:[#allocation50_spill] sm:$0xff] %v20374_v42  ;;  %v6114_v63 = vsub.f32 %v25138_v24, %v25139_v29  ;;  %v6234_v43 = vand.u32 4294901760, %v6233_v18  ;;  %v23372_v35 = vand.u32 4294901760, %v20085_v22  ;;  %v23367_v37 = vand.u32 4294901760, %v20090_v48  ;;  %14174 = vmatprep.subr.bf16.mxu0 %v14173_v7 }
 0x3a0   :  { %v6121_v13 = vsub.f32 %v25140_v34, %v25141_v4  ;;  %25142 = vst [vmem:[#allocation20_spill] sm:$0xff] %v20386_v28  ;;  %v25144_v33 = vand.u32 4294901760, %v25143_v41  ;;  %v25146_v24 = vand.u32 4294901760, %v25145_v56  ;;  %v13943_v47 = vpack.c.bf16 %v6108_v40, %v6101_v12  ;;  %13942 = vmatprep.subr.bf16.mxu1 %v13941_v53  ;;  %v20518_v28 = vld [vmem:[#allocation2 + $0x880] sm:$0xff] }
 0x3a1   :  { %v14175_v5 = vpack.c.bf16 %v20374_v42, %v20367_v17  ;;  %v23366_v36 = vand.u32 4294901760, %v20102_v54  ;;  %v6115_v27 = vand.u32 4294901760, %v6114_v63  ;;  %v25148_v18 = vand.u32 4294901760, %v25147_v58 }
 0x3a2   :  { %v6240_v20 = vsub.f32 %v25143_v41, %v25144_v33  ;;  %v6247_v29 = vsub.f32 %v25145_v56, %v25146_v24  ;;  %v6122_v31 = vand.u32 4294901760, %v6121_v13  ;;  %v25150_v34 = vand.u32 4294901760, %v25149_v62  ;;  %v11059_v24 = vpop.f32.mrb[27].mxu1  ;;  %13944 = vmatpush3.bf16.msra.mxu1 %v13943_v47 }
 0x3a3   :  { %v6128_v21 = vsub.f32 %v25147_v58, %v25148_v18  ;;  %v13945_v41 = vpack.c.bf16 %v6234_v43, %v6227_v59  ;;  %v23365_v12 = vand.u32 4294901760, %v20107_v61  ;;  %v23364_v40 = vand.u32 4294901760, %v20112_v30  ;;  %v25151_v58 = vld [vmem:[#allocation53_spill] sm:$0xff]  ;;  %14176 = vmatpush3.bf16.msra.mxu0 %v14175_v5 }
 0x3a4   :  { %v6135_v4 = vsub.f32 %v25149_v62, %v25150_v34  ;;  %v23359_v33 = vand.u32 4294901760, %v20117_v46  ;;  %v14209_v63 = vpack.c.bf16 %v23367_v37, %v23372_v35  ;;  %v6241_v13 = vand.u32 4294901760, %v6240_v20  ;;  %v25152_v34 = vld [vmem:[#allocation46_spill] sm:$0xff]  ;;  %v20549_v35 = vld [vmem:[#allocation2 + $0x898] sm:$0xff] }
 0x3a5   :  { %v6248_v56 = vand.u32 4294901760, %v6247_v29  ;;  %v20413_v3 = vadd.s32 2176, %v25151_v58  ;;  %v11060_v53 = vadd.f32 %v11059_v24, %v11058_v11  ;;  %v13947_v59 = vpack.c.bf16 %v6122_v31, %v6115_v27  ;;  %13946 = vmatprep.subr.bf16.mxu1 %v13945_v41  ;;  %v25153_v41 = vld [vmem:[#allocation56_spill] sm:$0xff]  ;;  %v25154_v11 = vld [vmem:[#allocation23_spill] sm:$0xff] }
 0x3a6   :  { %v6129_v43 = vand.u32 4294901760, %v6128_v21  ;;  %v6136_v18 = vand.u32 4294901760, %v6135_v4  ;;  %v14211_v7 = vpack.c.bf16 %v23365_v12, %v23366_v36  ;;  %v14213_v20 = vpack.c.bf16 %v23359_v33, %v23364_v40  ;;  %14210 = vmatprep.subr.bf16.mxu0 %v14209_v63  ;;  %7253 = vmatmul.mubr.f32.vlgmr.msra.gmra.mrb[40].mxu0 %v20012_v49  ;;  %v25165_v33 = vld [vmem:[#allocation58_spill] sm:$0xff]  ;;  %v25168_v12 = vld [vmem:[#allocation79_spill] sm:$0xff] }
 0x3a7   :  { %v23358_v29 = vand.u32 4294901760, %v20122_v0  ;;  %v23357_v62 = vand.u32 4294901760, %v20127_v26  ;;  %v4187_v47 = vadd.f32 %v11060_v53, %v20222_v60  ;;  %v13949_v27 = vpack.c.bf16 %v6248_v56, %v6241_v13  ;;  %13948 = vmatpush3.bf16.msra.mxu1 %v13947_v59  ;;  %7527 = vmatprep.mubr.f32.mxu0 %v25154_v11  ;;  %v25155_v59 = vld [vmem:[#allocation54_spill] sm:$0xff]  ;;  %v11373_v49 = vpop.f32.mrb[28].mxu0  ;;  %v25205_v11 = vld [vmem:[#allocation41_spill] sm:$0xff] }
 0x3a8   :  { %v23354_v5 = vand.u32 4294901760, %v20147_v1  ;;  %v23353_v31 = vand.u32 4294901760, %v20152_v57  ;;  %v13951_v21 = vpack.c.bf16 %v6136_v18, %v6129_v43  ;;  %vm155_vm0 = vcmp.eq.s32.totalorder %v20413_v3, %v25153_v41  ;;  %14212 = vmatpush3.bf16.msra.mxu0 %v14211_v7  ;;  %v25156_v43 = vld [vmem:[#allocation33_spill] sm:$0xff] }
 0x3a9   :  { %v20430_v4 = vadd.f32 %v25152_v34, %v4187_v47  ;;  %v14215_v60 = vpack.c.bf16 %v23357_v62, %v23358_v29  ;;  %v23352_v63 = vand.u32 4294901760, %v20157_v15  ;;  %v23351_v13 = vand.u32 4294901760, %v20165_v10  ;;  %13950 = vmatprep.subr.bf16.mxu1 %v13949_v27  ;;  %14214 = vmatprep.subr.bf16.mxu0 %v14213_v20  ;;  %v25157_v47 = vld [vmem:[#allocation55_spill] sm:$0xff] }
 0x3aa   :  { %v14217_v56 = vpack.c.bf16 %v23353_v31, %v23354_v5  ;;  %v23356_v24 = vand.u32 4294901760, %v20170_v14  ;;  %v23355_v53 = vand.u32 4294901760, %v20181_v2  ;;  %vm130_vm1 = vcmp.eq.s32.totalorder %v20413_v3, %v25155_v59  ;;  %v25161_v31 = vld [vmem:[#allocation17_spill] sm:$0xff] }
 0x3ab   :  { %vm176_vm2 = vmor %vm130_vm1, %vm155_vm0  ;;  %13952 = vmatpush3.bf16.msra.mxu1 %v13951_v21  ;;  %v14219_v18 = vpack.c.bf16 %v23351_v13, %v23352_v63  ;;  %v23361_v7 = vand.u32 4294901760, %v20193_v16  ;;  %v23360_v20 = vand.u32 4294901760, %v20202_v50  ;;  %vm201_vm3 = vcmp.eq.s32.totalorder %v20413_v3, %v25157_v47  ;;  %v25159_v13 = vld [vmem:[#allocation81_spill] sm:$0xff]  ;;  %v25160_v63 = vld [vmem:[#allocation59_spill] sm:$0xff] }
 0x3ac   :  { %14216 = vmatpush3.bf16.msra.mxu0 %v14215_v60  ;;  %13986 = vmatprep.subr.bf16.mxu1 %v25156_v43  ;;  %v14221_v27 = vpack.c.bf16 %v23355_v53, %v23356_v24  ;;  %v23363_v21 = vand.u32 4294901760, %v20207_v55  ;;  %v23362_v34 = vand.u32 4294901760, %v20234_v32  ;;  %vm222_vm4 = vmor %vm176_vm2, %vm201_vm3  ;;  %v25158_v60 = vld [vmem:[#allocation57_spill] sm:$0xff]  ;;  %vm293_vm6 = vcmp.eq.s32.totalorder %v20413_v3, %v25160_v63  ;;  %v25164_v53 = vld [vmem:[#allocation74_spill] sm:$0xff] }
 0x3ad   :  { %14218 = vmatprep.subr.bf16.mxu0 %v14217_v56  ;;  %vm247_vm5 = vcmp.eq.s32.totalorder %v20413_v3, %v25158_v60  ;;  %v25162_v56 = vld [vmem:[#allocation73_spill] sm:$0xff]  ;;  %v14223_v24 = vpack.c.bf16 %v23360_v20, %v23361_v7  ;;  %v23369_v62 = vand.u32 4294901760, %v20239_v19  ;;  %v23368_v29 = vand.u32 4294901760, %v20247_v38  ;;  %v25166_v20 = vld [vmem:[#allocation76_spill] sm:$0xff] }
 0x3ae   :  { %6253 = vmatmul.mubr.f32.vlgmr.msra.gmra.mrb[40].mxu1 %v25159_v13  ;;  %v25163_v5 = vand.u32 4294901760, %v25162_v56  ;;  %vm268_vm7 = vmor %vm222_vm4, %vm247_vm5  ;;  %v14225_v56 = vpack.c.bf16 %v23362_v34, %v23363_v21  ;;  %vm339_vm9 = vcmp.eq.s32.totalorder %v20413_v3, %v25165_v33  ;;  %v25167_v7 = vld [vmem:[#allocation77_spill] sm:$0xff]  ;;  %v23377_v34 = vand.u32 4294901760, %v20277_v6 }
 0x3af   :  { %13988 = vmatpush3.bf16.msra.mxu1 %v25161_v31  ;;  %vm314_vm8 = vmor %vm268_vm7, %vm293_vm6  ;;  %v23376_v21 = vand.u32 4294901760, %v20300_v8  ;;  %v23378_v40 = vand.u32 4294901760, %v20310_v52  ;;  %v25169_v36 = vmov 0.0   ;;  %v20520_v6 = vld [vmem:[#allocation2 + $0x888] sm:$0xff]  ;;  %v25179_v52 = vld [vmem:[#allocation67_spill] sm:$0xff] }
 0x3b0   :  { %6495 = vmatprep.mubr.f32.mxu1 %v25163_v5  ;;  %14220 = vmatpush3.bf16.msra.mxu0 %v14219_v18  ;;  %v23371_v5 = vand.u32 4294901760, %v20267_v25  ;;  %v23370_v18 = vand.u32 4294901760, %v20272_v45  ;;  %vm360_vm10 = vmor %vm314_vm8, %vm339_vm9  ;;  %v20581_v45 = vld [vmem:[#allocation2 + $0x8a8] sm:$0xff]  ;;  %v20760_v14 = vld [vmem:[#allocation2 + $0x860] sm:$0xff] }
 0x3b1   :  { %13990 = vmatprep.subr.bf16.mxu1 %v25164_v53  ;;  %14222 = vmatprep.subr.bf16.mxu0 %v14221_v27  ;;  %v14227_v27 = vpack.c.bf16 %v23368_v29, %v23369_v62  ;;  %v20503_v37 = vsel %vm360_vm10, 1.0, %v25169_v36  ;;  %v25171_v29 = vld [vmem:[#allocation31_spill] sm:$0xff]  ;;  %v23388_v62 = vand.u32 4294901760, %v20331_v39  ;;  %v20667_v55 = vld [vmem:[#allocation2 + $0x8c8] sm:$0xff] }
 0x3b2   :  { %v14229_v3 = vpack.c.bf16 %v23370_v18, %v23371_v5  ;;  %25170 = vst [vmem:[#allocation65_spill] sm:$0xff] %v20503_v37 }
 0x3b3   :  { %13992 = vmatpush3.bf16.msra.mxu1 %v25166_v20 }
 0x3b4   :  { %14224 = vmatpush3.bf16.msra.mxu0 %v14223_v24  ;;  %13994 = vmatprep.subr.bf16.mxu1 %v25167_v7  ;;  %v23379_v24 = vand.u32 4294901760, %v20305_v9  ;;  %v25178_v9 = vand.u32 4294901760, %v20348_v23 }
 0x3b5   :  { %14226 = vmatprep.subr.bf16.mxu0 %v14225_v56  ;;  %v14231_v56 = vpack.c.bf16 %v23376_v21, %v23377_v34  ;;  %v20524_v21 = vsub.f32 %v20503_v37, %v20503_v37  ;;  %v11374_v34 = vpop.f32.mrb[29].mxu0  ;;  %v25177_v37 = vand.u32 4294901760, %v20341_v44  ;;  %v11128_v44 = vpop.f32.mrb[28].mxu1 }
 0x3b6   :  { %v14233_v5 = vpack.c.bf16 %v23378_v40, %v23379_v24  ;;  %v20527_v18 = vadd.f32 %v11374_v34, %v11373_v49  ;;  %v25175_v40 = vld [vmem:[#allocation38_spill] sm:$0xff]  ;;  %v25176_v24 = vand.u32 4294901760, %v20336_v51  ;;  %v25182_v34 = vand.u32 4294901760, %v20374_v42 }
 0x3b7   :  { %13996 = vmatpush3.bf16.msra.mxu1 %v25168_v12  ;;  %25172 = vst [vmem:[#allocation69_spill] sm:$0xff] %v20524_v21  ;;  %v14237_v8 = vpack.c.bf16 %v25178_v9, %v25177_v37  ;;  %v25180_v9 = vld [vmem:[#allocation15_spill] sm:$0xff]  ;;  %v25181_v37 = vand.u32 4294901760, %v20367_v17  ;;  %v25186_v23 = vand.u32 4294901760, %v20524_v21  ;;  %v25190_v17 = vld [vmem:[#allocation30_spill] sm:$0xff] }
 0x3b8   :  { %14228 = vmatpush3.bf16.msra.mxu0 %v14227_v27  ;;  %13998 = vmatprep.subr.bf16.mxu1 %v25171_v29  ;;  %25174 = vst [vmem:[#allocation36_spill] sm:$0xff] %v20527_v18  ;;  %v14235_v27 = vpack.c.bf16 %v25176_v24, %v23388_v62  ;;  %v20544_v18 = vld [vmem:[#allocation2 + $0x808] sm:$0xff]  ;;  %v20547_v62 = vld [vmem:[#allocation2 + $0x890] sm:$0xff]  ;;  %v11129_v24 = vpop.f32.mrb[29].mxu1 }
 0x3b9   :  { %14230 = vmatprep.subr.bf16.mxu0 %v14229_v3  ;;  %v25173_v3 = vld [vmem:[#allocation80_spill] sm:$0xff]  ;;  %v14239_v49 = vpack.c.bf16 %v25182_v34, %v25181_v37  ;;  %v20572_v34 = vld [vmem:[#allocation2 + $0x810] sm:$0xff]  ;;  %v7737_v39 = vsub.f32 %v20524_v21, %v25186_v23  ;;  %v25192_v25 = vand.u32 4294901760, %v20544_v18 }
 0x3ba   :  { %v20574_v37 = vld [vmem:[#allocation2 + $0x818] sm:$0xff] }
 0x3bb   :  { %14000 = vmatpush3.bf16.msra.mxu1 %v25173_v3  ;;  %v7738_v32 = vand.u32 4294901760, %v7737_v39  ;;  %v25202_v39 = vand.u32 4294901760, %v20572_v34  ;;  %v25203_v42 = vand.u32 4294901760, %v20574_v37 }
 0x3bc   :  { %14232 = vmatpush3.bf16.msra.mxu0 %v14231_v56  ;;  %14002 = vmatprep.subr.bf16.mxu1 %v25175_v40  ;;  %v20542_v56 = vld [vmem:[#allocation2 + $0x800] sm:$0xff] }
 0x3bd   :  { %14234 = vmatprep.subr.bf16.mxu0 %v14233_v5  ;;  %v20552_v5 = vadd.s32 2048, %v25151_v58  ;;  %v25183_v58 = vand.u32 4294901760, %v20518_v28  ;;  %v25191_v23 = vand.u32 4294901760, %v20542_v56 }
 0x3bf   :  { %14004 = vmatpush3.bf16.msra.mxu1 %v25179_v52  ;;  %vm154_vm11 = vcmp.eq.s32.totalorder %v20552_v5, %v25153_v41  ;;  %vm129_vm12 = vcmp.eq.s32.totalorder %v20552_v5, %v25155_v59  ;;  %v20598_v38 = vpack.c.bf16 %v25192_v25, %v25191_v23  ;;  %vm200_vm14 = vcmp.eq.s32.totalorder %v20552_v5, %v25157_v47  ;;  %v20618_v47 = vld [vmem:[#allocation2 + $0x8b0] sm:$0xff]  ;;  %v25201_v23 = vld [vmem:[#allocation44_spill] sm:$0xff] }
 0x3c0   :  { %14236 = vmatpush3.bf16.msra.mxu0 %v14235_v27  ;;  %14006 = vmatprep.subr.bf16.mxu1 %v25180_v9  ;;  %v25184_v27 = vand.u32 4294901760, %v20520_v6  ;;  %vm20589_vm13 = vmor %vm129_vm12, %vm154_vm11  ;;  %v25195_v41 = vand.u32 4294901760, %v20549_v35  ;;  %vm246_vm0 = vcmp.eq.s32.totalorder %v20552_v5, %v25158_v60  ;;  %vm292_vm1 = vcmp.eq.s32.totalorder %v20552_v5, %v25160_v63  ;;  %v20694_v60 = vld [vmem:[#allocation2 + $0x840] sm:$0xff] }
 0x3c1   :  { %14238 = vmatprep.subr.bf16.mxu0 %v14237_v8  ;;  %v20579_v8 = vld [vmem:[#allocation2 + $0x8a0] sm:$0xff]  ;;  %25193 = vst [vmem:[#allocation29_spill] sm:$0xff] %v20598_v38  ;;  %vm20624_vm15 = vmor %vm20589_vm13, %vm200_vm14  ;;  %vm338_vm4 = vcmp.eq.s32.totalorder %v20552_v5, %v25165_v33  ;;  %v25213_v5 = vand.u32 4294901760, %v20618_v47 }
 0x3c2   :  { %v20568_v51 = vpack.c.bf16 %v25184_v27, %v25183_v58  ;;  %v11130_v58 = vadd.f32 %v11129_v24, %v11128_v44  ;;  %v25187_v27 = vld [vmem:[#allocation16_spill] sm:$0xff]  ;;  %v20616_v24 = vld [vmem:[#allocation2 + $0x828] sm:$0xff]  ;;  %vm267_vm2 = vmor %vm20624_vm15, %vm246_vm0 }
 0x3c3   :  { %14008 = vmatpush3.bf16.msra.mxu1 %v25187_v27  ;;  %v20614_v44 = vld [vmem:[#allocation2 + $0x820] sm:$0xff]  ;;  %vm313_vm3 = vmor %vm267_vm2, %vm292_vm1 }
 0x3c4   :  { %25185 = vst [vmem:[#allocation63_spill] sm:$0xff] %v20568_v51  ;;  %14240 = vmatpush3.bf16.msra.mxu0 %v14239_v49  ;;  %14010 = vmatprep.subr.bf16.mxu1 %v25190_v17  ;;  %v4531_v59 = vadd.f32 %v11130_v58, %v20430_v4  ;;  %v25194_v49 = vand.u32 4294901760, %v20547_v62  ;;  %v20620_v4 = vld [vmem:[#allocation2 + $0x8b8] sm:$0xff]  ;;  %v25210_v58 = vand.u32 4294901760, %v20614_v44  ;;  %vm359_vm5 = vmor %vm313_vm3, %vm338_vm4 }
 0x3c5   :  { %14274 = vmatprep.subr.bf16.mxu0 %v20568_v51  ;;  %v20642_v51 = vpack.c.bf16 %v25203_v42, %v25202_v39  ;;  %v20656_v39 = vld [vmem:[#allocation2 + $0x830] sm:$0xff]  ;;  %v20658_v42 = vld [vmem:[#allocation2 + $0x838] sm:$0xff]  ;;  %v25214_v33 = vand.u32 4294901760, %v20620_v4  ;;  %v20717_v16 = vsel %vm359_vm5, 1.0, %v25169_v36  ;;  %v20734_v36 = vld [vmem:[#allocation2 + $0x8e8] sm:$0xff] }
 0x3c6   :  { %v20610_v19 = vpack.c.bf16 %v25195_v41, %v25194_v49  ;;  %v25199_v41 = vld [vmem:[#allocation95_spill] sm:$0xff]  ;;  %v20633_v25 = vadd.f32 %v25201_v23, %v4531_v59  ;;  %v25206_v59 = vand.u32 4294901760, %v20579_v8  ;;  %v25207_v23 = vand.u32 4294901760, %v20581_v45  ;;  %25223 = vst [vmem:[#allocation46_spill] sm:$0xff] %v20717_v16  ;;  %25229 = vst [vmem:[#allocation74_spill] sm:$0xff] %v20734_v36 }
 0x3c7   :  { %7529 = vmatmul.mubr.f32.vlgmr.msra.gmra.mrb[42].mxu0 %v25199_v41  ;;  %v25200_v49 = vld [vmem:[#allocation39_spill] sm:$0xff]  ;;  %25204 = vst [vmem:[#allocation70_spill] sm:$0xff] %v20642_v51  ;;  %v20665_v41 = vld [vmem:[#allocation2 + $0x8c0] sm:$0xff]  ;;  %v20690_v63 = vpack.c.bf16 %v25214_v33, %v25213_v5  ;;  %v25220_v5 = vand.u32 4294901760, %v20656_v39  ;;  %v25241_v13 = vand.u32 4294901760, %v20734_v36  ;;  %v25248_v36 = vand.u32 4294901760, %v20518_v28 }
 0x3c8   :  { %25196 = vst [vmem:[#allocation61_spill] sm:$0xff] %v20610_v19  ;;  %14012 = vmatpush3.bf16.msra.mxu1 %v25200_v49  ;;  %14276 = vmatpush3.bf16.msra.mxu0 %v20598_v38  ;;  %v20652_v38 = vpack.c.bf16 %v25207_v23, %v25206_v59  ;;  %v25209_v59 = vld [vmem:[#allocation45_spill] sm:$0xff]  ;;  %v25211_v23 = vand.u32 4294901760, %v20616_v24  ;;  %v25219_v33 = vld [vmem:[#allocation72_spill] sm:$0xff] }
 0x3c9   :  { %7739 = vmatprep.mubr.f32.mxu0 %v7738_v32  ;;  %14014 = vmatprep.subr.bf16.mxu1 %v25205_v11  ;;  %25215 = vst [vmem:[#allocation52_spill] sm:$0xff] %v20690_v63 }
 0x3ca   :  { %14278 = vmatprep.subr.bf16.mxu0 %v20610_v19  ;;  %25208 = vst [vmem:[#allocation71_spill] sm:$0xff] %v20652_v38  ;;  %v20681_v50 = vpack.c.bf16 %v25211_v23, %v25210_v58  ;;  %v20696_v58 = vld [vmem:[#allocation2 + $0x848] sm:$0xff]  ;;  %v20700_v19 = vld [vmem:[#allocation2 + $0x8d0] sm:$0xff] }
 0x3cb   :  { %v25216_v23 = vld [vmem:[#allocation14_spill] sm:$0xff] }
 0x3cc   :  { %14016 = vmatpush3.bf16.msra.mxu1 %v25209_v59  ;;  %14280 = vmatpush3.bf16.msra.mxu0 %v20642_v51  ;;  %25212 = vst [vmem:[#allocation60_spill] sm:$0xff] %v20681_v50  ;;  %v25217_v32 = vand.u32 4294901760, %v25216_v23  ;;  %v25221_v51 = vand.u32 4294901760, %v20658_v42  ;;  %v20732_v23 = vld [vmem:[#allocation2 + $0x8e0] sm:$0xff] }
 0x3cd   :  { %14050 = vmatprep.subr.bf16.mxu1 %v25156_v43  ;;  %14282 = vmatprep.subr.bf16.mxu0 %v20652_v38  ;;  %v20702_v38 = vld [vmem:[#allocation2 + $0x8d8] sm:$0xff]  ;;  %25228 = vst [vmem:[#allocation73_spill] sm:$0xff] %v20732_v23 }
 0x3ce   :  { %25218 = vst [vmem:[#allocation13_spill] sm:$0xff] %v20702_v38  ;;  %v20712_v43 = vpack.c.bf16 %v25221_v51, %v25220_v5  ;;  %v20728_v5 = vld [vmem:[#allocation2 + $0x850] sm:$0xff] }
 0x3cf   :  { %6499 = vmatmul.mubr.f32.vlgmr.msra.gmra.mrb[42].mxu1 %v25217_v32  ;;  %25227 = vst [vmem:[#allocation17_spill] sm:$0xff] %v20728_v5  ;;  %v20730_v32 = vld [vmem:[#allocation2 + $0x858] sm:$0xff] }
 0x3d0   :  { %14052 = vmatpush3.bf16.msra.mxu1 %v25161_v31  ;;  %6769 = vmatprep.mubr.f32.mxu1 %v25219_v33  ;;  %25222 = vst [vmem:[#allocation43_spill] sm:$0xff] %v20712_v43  ;;  %v25224_v31 = vand.u32 4294901760, %v20665_v41  ;;  %v25225_v33 = vand.u32 4294901760, %v20667_v55 }
 0x3d1   :  { %14284 = vmatpush3.bf16.msra.mxu0 %v20681_v50  ;;  %14054 = vmatprep.subr.bf16.mxu1 %v25164_v53  ;;  %v20766_v50 = vld [vmem:[#allocation2 + $0x8f8] sm:$0xff] }
 0x3d2   :  { %14286 = vmatprep.subr.bf16.mxu0 %v20690_v63  ;;  %v20724_v53 = vpack.c.bf16 %v25225_v33, %v25224_v31  ;;  %v20739_v63 = vsub.f32 %v20717_v16, %v20717_v16  ;;  %v25231_v31 = vand.u32 4294901760, %v20694_v60  ;;  %v25232_v33 = vand.u32 4294901760, %v20696_v58 }
 0x3d3   :  { %v25235_v16 = vand.u32 4294901760, %v20702_v38 }
 0x3d4   :  { %25226 = vst [vmem:[#allocation33_spill] sm:$0xff] %v20724_v53  ;;  %14056 = vmatpush3.bf16.msra.mxu1 %v25166_v20  ;;  %25230 = vst [vmem:[#allocation76_spill] sm:$0xff] %v20739_v63  ;;  %v20747_v51 = vpack.c.bf16 %v25232_v33, %v25231_v31  ;;  %v25234_v20 = vand.u32 4294901760, %v20700_v19  ;;  %v20762_v31 = vld [vmem:[#allocation2 + $0x868] sm:$0xff]  ;;  %v20764_v33 = vld [vmem:[#allocation2 + $0x8f0] sm:$0xff] }
 0x3d5   :  { %14288 = vmatpush3.bf16.msra.mxu0 %v20712_v43  ;;  %14058 = vmatprep.subr.bf16.mxu1 %v25167_v7 }
 0x3d6   :  { %25233 = vst [vmem:[#allocation77_spill] sm:$0xff] %v20747_v51  ;;  %14290 = vmatprep.subr.bf16.mxu0 %v20724_v53  ;;  %v20756_v2 = vpack.c.bf16 %v25235_v16, %v25234_v20  ;;  %v25237_v16 = vand.u32 4294901760, %v20728_v5  ;;  %v25238_v20 = vand.u32 4294901760, %v20730_v32  ;;  %v20789_v5 = vld [vmem:[#allocation2 + $0x870] sm:$0xff]  ;;  %v25243_v53 = vand.u32 4294901760, %v20739_v63 }
 0x3d8   :  { %25236 = vst [vmem:[#allocation79_spill] sm:$0xff] %v20756_v2  ;;  %14060 = vmatpush3.bf16.msra.mxu1 %v25168_v12  ;;  %v20776_v43 = vpack.c.bf16 %v25238_v20, %v25237_v16  ;;  %v25240_v12 = vand.u32 4294901760, %v20732_v23  ;;  %v20791_v16 = vld [vmem:[#allocation2 + $0x878] sm:$0xff]  ;;  %v11443_v20 = vpop.f32.mrb[30].mxu0 }
 0x3d9   :  { %14292 = vmatpush3.bf16.msra.mxu0 %v20747_v51  ;;  %14062 = vmatprep.subr.bf16.mxu1 %v25171_v29  ;;  %v11444_v7 = vpop.f32.mrb[31].mxu0 }
 0x3da   :  { %25239 = vst [vmem:[#allocation31_spill] sm:$0xff] %v20776_v43  ;;  %14294 = vmatprep.subr.bf16.mxu0 %v20756_v2  ;;  %v20785_v38 = vpack.c.bf16 %v25241_v13, %v25240_v12  ;;  %v7743_v2 = vsub.f32 %v20739_v63, %v25243_v53  ;;  %v20797_v23 = vadd.f32 %v11444_v7, %v11443_v20  ;;  %v25245_v13 = vand.u32 4294901760, %v20760_v14 }
 0x3db   :  { %v25246_v12 = vand.u32 4294901760, %v20762_v31  ;;  %v20812_v53 = vsub.f32 %v20518_v28, %v25248_v36  ;;  %v25249_v7 = vand.u32 4294901760, %v20520_v6  ;;  %v25254_v28 = vand.u32 4294901760, %v20544_v18 }
 0x3dc   :  { %25242 = vst [vmem:[#allocation80_spill] sm:$0xff] %v20785_v38  ;;  %14064 = vmatpush3.bf16.msra.mxu1 %v25173_v3  ;;  %25244 = vst [vmem:[#allocation38_spill] sm:$0xff] %v20797_v23  ;;  %v25253_v3 = vand.u32 4294901760, %v20542_v56  ;;  %v25347_v23 = vld [vmem:[#allocation90_spill] sm:$0xff] }
 0x3dd   :  { %14296 = vmatpush3.bf16.msra.mxu0 %v20776_v43  ;;  %14066 = vmatprep.subr.bf16.mxu1 %v25175_v40  ;;  %v20805_v51 = vpack.c.bf16 %v25246_v12, %v25245_v13  ;;  %v20817_v20 = vsub.f32 %v20520_v6, %v25249_v7  ;;  %v25250_v40 = vand.u32 4294901760, %v20764_v33  ;;  %v25251_v13 = vand.u32 4294901760, %v20766_v50 }
 0x3de   :  { %14298 = vmatprep.subr.bf16.mxu0 %v20785_v38  ;;  %v20829_v29 = vsub.f32 %v20542_v56, %v25253_v3  ;;  %v20834_v36 = vsub.f32 %v20544_v18, %v25254_v28  ;;  %v25255_v6 = vand.u32 4294901760, %v20547_v62  ;;  %v25256_v38 = vand.u32 4294901760, %v20549_v35 }
 0x3df   :  { %25247 = vst [vmem:[#allocation67_spill] sm:$0xff] %v20805_v51  ;;  %v20824_v12 = vpack.c.bf16 %v25251_v13, %v25250_v40  ;;  %v25257_v13 = vand.u32 4294901760, %v20572_v34  ;;  %v25258_v3 = vand.u32 4294901760, %v20574_v37  ;;  %v7744_v28 = vand.u32 4294901760, %v7743_v2 }
 0x3e0   :  { %v20839_v7 = vsub.f32 %v20547_v62, %v25255_v6  ;;  %v20844_v40 = vsub.f32 %v20549_v35, %v25256_v38  ;;  %14068 = vmatpush3.bf16.msra.mxu1 %v25179_v52  ;;  %v25259_v62 = vand.u32 4294901760, %v20789_v5  ;;  %v25260_v38 = vand.u32 4294901760, %v20791_v16 }
 0x3e1   :  { %25252 = vst [vmem:[#allocation15_spill] sm:$0xff] %v20824_v12  ;;  %v20849_v56 = vsub.f32 %v20572_v34, %v25257_v13  ;;  %v20854_v18 = vsub.f32 %v20574_v37, %v25258_v3  ;;  %14300 = vmatpush3.bf16.msra.mxu0 %v20805_v51  ;;  %14070 = vmatprep.subr.bf16.mxu1 %v25180_v9  ;;  %v25262_v34 = vand.u32 4294901760, %v20085_v22  ;;  %v25263_v37 = vand.u32 4294901760, %v20090_v48 }
 0x3e2   :  { %v20863_v35 = vpack.c.bf16 %v25260_v38, %v25259_v62  ;;  %v25264_v52 = vand.u32 4294901760, %v20579_v8  ;;  %v25265_v9 = vand.u32 4294901760, %v20581_v45  ;;  %v25266_v2 = vand.u32 4294901760, %v20614_v44  ;;  %14302 = vmatprep.subr.bf16.mxu0 %v20824_v12 }
 0x3e3   :  { %v7004_v6 = vsub.f32 %v20085_v22, %v25262_v34  ;;  %v7011_v13 = vsub.f32 %v20090_v48, %v25263_v37  ;;  %v11198_v22 = vpop.f32.mrb[30].mxu1  ;;  %v14337_v48 = vpack.c.bf16 %v20817_v20, %v20812_v53  ;;  %v25267_v38 = vand.u32 4294901760, %v20616_v24 }
 0x3e4   :  { %25261 = vst [vmem:[#allocation16_spill] sm:$0xff] %v20863_v35  ;;  %v20874_v3 = vsub.f32 %v20579_v8, %v25264_v52  ;;  %v20879_v51 = vsub.f32 %v20581_v45, %v25265_v9  ;;  %v20884_v62 = vsub.f32 %v20614_v44, %v25266_v2  ;;  %v25268_v34 = vand.u32 4294901760, %v20618_v47  ;;  %v11199_v37 = vpop.f32.mrb[31].mxu1  ;;  %14072 = vmatpush3.bf16.msra.mxu1 %v25187_v27 }
 0x3e5   :  { %v20892_v8 = vsub.f32 %v20616_v24, %v25267_v38  ;;  %v25270_v44 = vand.u32 4294901760, %v20102_v54  ;;  %v25271_v9 = vand.u32 4294901760, %v20107_v61  ;;  %v25272_v12 = vand.u32 4294901760, %v20620_v4  ;;  %14304 = vmatpush3.bf16.msra.mxu0 %v20863_v35  ;;  %14074 = vmatprep.subr.bf16.mxu1 %v25190_v17 }
 0x3e6   :  { %v20897_v45 = vsub.f32 %v20618_v47, %v25268_v34  ;;  %v11200_v24 = vadd.f32 %v11199_v37, %v11198_v22  ;;  %v25274_v47 = vand.u32 4294901760, %v20112_v30  ;;  %v25275_v34 = vand.u32 4294901760, %v20117_v46  ;;  %14338 = vmatprep.subr.bf16.mxu0 %v14337_v48 }
 0x3e7   :  { %v6892_v52 = vsub.f32 %v20102_v54, %v25270_v44  ;;  %v6899_v2 = vsub.f32 %v20107_v61, %v25271_v9  ;;  %v20908_v43 = vsub.f32 %v20620_v4, %v25272_v12  ;;  %v25276_v44 = vand.u32 4294901760, %v20656_v39 }
 0x3e8   :  { %25269 = vst [vmem:[#allocation30_spill] sm:$0xff] %v20897_v45  ;;  %v7018_v38 = vsub.f32 %v20112_v30, %v25274_v47  ;;  %v7025_v54 = vsub.f32 %v20117_v46, %v25275_v34  ;;  %v14339_v27 = vpack.c.bf16 %v20834_v36, %v20829_v29  ;;  %v7005_v4 = vand.u32 4294901760, %v7004_v6  ;;  %7745 = vmatmul.mubr.f32.vlgmr.msra.gmra.mrb[44].mxu0 %v7744_v28 }
 0x3e9   :  { %25273 = vst [vmem:[#allocation39_spill] sm:$0xff] %v20908_v43  ;;  %v20920_v61 = vsub.f32 %v20656_v39, %v25276_v44  ;;  %v7012_v12 = vand.u32 4294901760, %v7011_v13  ;;  %v25278_v30 = vand.u32 4294901760, %v20658_v42  ;;  %v25280_v46 = vand.u32 4294901760, %v20665_v41  ;;  %14076 = vmatpush3.bf16.msra.mxu1 %v25200_v49  ;;  %8112 = vmatprep.mubr.f32.mxu0 %v20524_v21 }
 0x3ea   :  { %v4777_v39 = vadd.f32 %v11200_v24, %v20633_v25  ;;  %v14341_v17 = vpack.c.bf16 %v20844_v40, %v20839_v7  ;;  %v14343_v6 = vpack.c.bf16 %v20854_v18, %v20849_v56  ;;  %v6893_v13 = vand.u32 4294901760, %v6892_v52  ;;  %v25284_v24 = vld [vmem:[#allocation83_spill] sm:$0xff]  ;;  %14340 = vmatpush3.bf16.msra.mxu0 %v14339_v27  ;;  %14078 = vmatprep.subr.bf16.mxu1 %v25205_v11 }
 0x3eb   :  { %25277 = vst [vmem:[#allocation44_spill] sm:$0xff] %v20920_v61  ;;  %v20929_v22 = vsub.f32 %v20658_v42, %v25278_v30  ;;  %v20934_v37 = vsub.f32 %v20665_v41, %v25280_v46  ;;  %v6900_v9 = vand.u32 4294901760, %v6899_v2  ;;  %v25282_v47 = vand.u32 4294901760, %v20122_v0 }
 0x3ec   :  { %v7019_v41 = vand.u32 4294901760, %v7018_v38  ;;  %v7026_v34 = vand.u32 4294901760, %v7025_v54  ;;  %v25283_v25 = vand.u32 4294901760, %v20127_v26  ;;  %v20949_v44 = vadd.f32 %v25284_v24, %v4777_v39  ;;  %14342 = vmatprep.subr.bf16.mxu0 %v14341_v17  ;;  %v25295_v24 = vld [vmem:[#allocation91_spill] sm:$0xff] }
 0x3ed   :  { %25279 = vst [vmem:[#allocation41_spill] sm:$0xff] %v20929_v22  ;;  %25281 = vst [vmem:[#allocation45_spill] sm:$0xff] %v20934_v37  ;;  %v6906_v42 = vsub.f32 %v20122_v0, %v25282_v47  ;;  %v14113_v52 = vpack.c.bf16 %v7012_v12, %v7005_v4  ;;  %v25285_v2 = vand.u32 4294901760, %v20147_v1  ;;  %v25286_v28 = vand.u32 4294901760, %v20152_v57  ;;  %14080 = vmatpush3.bf16.msra.mxu1 %v25209_v59 }
 0x3ee   :  { %v6913_v48 = vsub.f32 %v20127_v26, %v25283_v25  ;;  %v25287_v38 = vand.u32 4294901760, %v20667_v55  ;;  %v25289_v26 = vand.u32 4294901760, %v20694_v60  ;;  %v25291_v4 = vand.u32 4294901760, %v20696_v58  ;;  %14344 = vmatpush3.bf16.msra.mxu0 %v14343_v6 }
 0x3ef   :  { %v7032_v0 = vsub.f32 %v20147_v1, %v25285_v2  ;;  %v7039_v49 = vsub.f32 %v20152_v57, %v25286_v28  ;;  %v14345_v1 = vpack.c.bf16 %v20879_v51, %v20874_v3  ;;  %v25293_v12 = vand.u32 4294901760, %v20157_v15  ;;  %14114 = vmatprep.subr.bf16.mxu1 %v14113_v52  ;;  %v25307_v52 = vld [vmem:[#allocation81_spill] sm:$0xff] }
 0x3f0   :  { %v20961_v54 = vsub.f32 %v20667_v55, %v25287_v38  ;;  %v20966_v27 = vsub.f32 %v20694_v60, %v25289_v26  ;;  %v20974_v57 = vsub.f32 %v20696_v58, %v25291_v4  ;;  %v14347_v55 = vpack.c.bf16 %v20892_v8, %v20884_v62  ;;  %v25297_v38 = vld [vmem:[#allocation51_spill] sm:$0xff]  ;;  %6771 = vmatmul.mubr.f32.vlgmr.msra.gmra.mrb[44].mxu1 %v25307_v52 }
 0x3f1   :  { %v6920_v30 = vsub.f32 %v20157_v15, %v25293_v12  ;;  %v25294_v60 = vand.u32 4294901760, %v20165_v10  ;;  %v14115_v46 = vpack.c.bf16 %v6900_v9, %v6893_v13  ;;  %v14117_v39 = vpack.c.bf16 %v7026_v34, %v7019_v41  ;;  %v25301_v13 = vld [vmem:[#allocation13_spill] sm:$0xff]  ;;  %14346 = vmatprep.subr.bf16.mxu0 %v14345_v1  ;;  %v25313_v1 = vld [vmem:[#allocation62_spill] sm:$0xff] }
 0x3f2   :  { %25288 = vst [vmem:[#allocation14_spill] sm:$0xff] %v20961_v54  ;;  %25290 = vst [vmem:[#allocation72_spill] sm:$0xff] %v20966_v27  ;;  %v6907_v17 = vand.u32 4294901760, %v6906_v42  ;;  %v6914_v47 = vand.u32 4294901760, %v6913_v48  ;;  %v7033_v58 = vand.u32 4294901760, %v7032_v0  ;;  %v7040_v25 = vand.u32 4294901760, %v7039_v49  ;;  %14348 = vmatpush3.bf16.msra.mxu0 %v14347_v55 }
 0x3f3   :  { %25292 = vst [vmem:[#allocation83_spill] sm:$0xff] %v20974_v57  ;;  %v6927_v11 = vsub.f32 %v20165_v10, %v25294_v60  ;;  %v25296_v2 = vand.u32 4294901760, %v25295_v24  ;;  %v25298_v15 = vand.u32 4294901760, %v25297_v38  ;;  %v25299_v10 = vand.u32 4294901760, %v20700_v19  ;;  %v25304_v42 = vld [vmem:[#allocation17_spill] sm:$0xff]  ;;  %v25310_v60 = vld [vmem:[#allocation68_spill] sm:$0xff]  ;;  %14116 = vmatpush3.bf16.msra.mxu1 %v14115_v46 }
 0x3f4   :  { %v25302_v9 = vand.u32 4294901760, %v25301_v13  ;;  %v25305_v41 = vand.u32 4294901760, %v25304_v42  ;;  %v14349_v48 = vpack.c.bf16 %v20908_v43, %v20897_v45  ;;  %v6921_v0 = vand.u32 4294901760, %v6920_v30  ;;  %14118 = vmatprep.subr.bf16.mxu1 %v14117_v39 }
 0x3f5   :  { %v7046_v28 = vsub.f32 %v25295_v24, %v25296_v2  ;;  %v7053_v26 = vsub.f32 %v25297_v38, %v25298_v15  ;;  %v20994_v59 = vsub.f32 %v20700_v19, %v25299_v10  ;;  %v6928_v49 = vand.u32 4294901760, %v6927_v11  ;;  %v25308_v19 = vld [vmem:[#allocation42_spill] sm:$0xff]  ;;  %v25312_v38 = vld [vmem:[#allocation23_spill] sm:$0xff] }
 0x3f6   :  { %v20999_v6 = vsub.f32 %v25301_v13, %v25302_v9  ;;  %v21004_v34 = vsub.f32 %v25304_v42, %v25305_v41  ;;  %v25309_v4 = vand.u32 4294901760, %v25308_v19  ;;  %v25311_v24 = vand.u32 4294901760, %v25310_v60  ;;  %7113 = vmatprep.mubr.f32.mxu1 %v25312_v38  ;;  %v25315_v9 = vld [vmem:[#allocation86_spill] sm:$0xff]  ;;  %14350 = vmatprep.subr.bf16.mxu0 %v14349_v48 }
 0x3f7   :  { %25300 = vst [vmem:[#allocation91_spill] sm:$0xff] %v20994_v59  ;;  %v14119_v15 = vpack.c.bf16 %v6914_v47, %v6907_v17  ;;  %v25314_v10 = vand.u32 4294901760, %v25313_v1  ;;  %v25316_v42 = vand.u32 4294901760, %v25315_v9  ;;  %v14351_v11 = vpack.c.bf16 %v20929_v22, %v20920_v61  ;;  %v25319_v47 = vld [vmem:[#allocation73_spill] sm:$0xff] }
 0x3f8   :  { %25303 = vst [vmem:[#allocation51_spill] sm:$0xff] %v20999_v6  ;;  %25306 = vst [vmem:[#allocation13_spill] sm:$0xff] %v21004_v34  ;;  %v6934_v12 = vsub.f32 %v25308_v19, %v25309_v4  ;;  %v6941_v2 = vsub.f32 %v25310_v60, %v25311_v24  ;;  %v14121_v41 = vpack.c.bf16 %v7040_v25, %v7033_v58  ;;  %v7047_v52 = vand.u32 4294901760, %v7046_v28  ;;  %v25322_v24 = vld [vmem:[#allocation74_spill] sm:$0xff] }
 0x3f9   :  { %v7060_v13 = vsub.f32 %v25313_v1, %v25314_v10  ;;  %v7067_v30 = vsub.f32 %v25315_v9, %v25316_v42  ;;  %v7054_v19 = vand.u32 4294901760, %v7053_v26  ;;  %v25317_v46 = vand.u32 4294901760, %v20730_v32  ;;  %14120 = vmatpush3.bf16.msra.mxu1 %v14119_v15  ;;  %v25325_v9 = vld [vmem:[#allocation78_spill] sm:$0xff]  ;;  %14352 = vmatpush3.bf16.msra.mxu0 %v14351_v11 }
 0x3fa   :  { %v25320_v4 = vand.u32 4294901760, %v25319_v47  ;;  %v25323_v1 = vand.u32 4294901760, %v25322_v24  ;;  %v14353_v39 = vpack.c.bf16 %v20961_v54, %v20934_v37  ;;  %v14123_v58 = vpack.c.bf16 %v6928_v49, %v6921_v0  ;;  %14122 = vmatprep.subr.bf16.mxu1 %v14121_v41  ;;  %v25329_v0 = vld [vmem:[#allocation48_spill] sm:$0xff] }
 0x3fb   :  { %v21027_v17 = vsub.f32 %v20730_v32, %v25317_v46  ;;  %v14355_v25 = vpack.c.bf16 %v20974_v57, %v20966_v27  ;;  %v6935_v32 = vand.u32 4294901760, %v6934_v12  ;;  %v6942_v28 = vand.u32 4294901760, %v6941_v2  ;;  %v25331_v12 = vld [vmem:[#allocation64_spill] sm:$0xff] }
 0x3fc   :  { %v21032_v60 = vsub.f32 %v25319_v47, %v25320_v4  ;;  %v21037_v55 = vsub.f32 %v25322_v24, %v25323_v1  ;;  %v7061_v26 = vand.u32 4294901760, %v7060_v13  ;;  %v7068_v10 = vand.u32 4294901760, %v7067_v30  ;;  %v25327_v47 = vld [vmem:[#allocation26_spill] sm:$0xff]  ;;  %14354 = vmatprep.subr.bf16.mxu0 %v14353_v39 }
 0x3fd   :  { %25318 = vst [vmem:[#allocation17_spill] sm:$0xff] %v21027_v17  ;;  %v25326_v42 = vand.u32 4294901760, %v25325_v9  ;;  %v25328_v4 = vand.u32 4294901760, %v25327_v47  ;;  %v14125_v24 = vpack.c.bf16 %v7054_v19, %v7047_v52  ;;  %v25330_v49 = vand.u32 4294901760, %v25329_v0  ;;  %14124 = vmatpush3.bf16.msra.mxu1 %v14123_v58  ;;  %14356 = vmatpush3.bf16.msra.mxu0 %v14355_v25 }
 0x3fe   :  { %25321 = vst [vmem:[#allocation81_spill] sm:$0xff] %v21032_v60  ;;  %25324 = vst [vmem:[#allocation42_spill] sm:$0xff] %v21037_v55  ;;  %v25332_v2 = vand.u32 4294901760, %v25331_v12  ;;  %v25333_v13 = vand.u32 4294901760, %v20760_v14  ;;  %v25337_v11 = vand.u32 4294901760, %v20764_v33  ;;  %v14357_v52 = vpack.c.bf16 %v20999_v6, %v20994_v59 }
 0x3ff   :  { %v6948_v46 = vsub.f32 %v25325_v9, %v25326_v42  ;;  %v6955_v48 = vsub.f32 %v25327_v47, %v25328_v4  ;;  %v7074_v1 = vsub.f32 %v25329_v0, %v25330_v49  ;;  %v25335_v9 = vand.u32 4294901760, %v20762_v31  ;;  %v25341_v4 = vld [vmem:[#allocation85_spill] sm:$0xff]  ;;  %v25343_v49 = vld [vmem:[#allocation75_spill] sm:$0xff]  ;;  %14126 = vmatprep.subr.bf16.mxu1 %v14125_v24 }
 0x400   :  { %v7081_v15 = vsub.f32 %v25331_v12, %v25332_v2  ;;  %v21058_v30 = vsub.f32 %v20760_v14, %v25333_v13  ;;  %v21068_v41 = vsub.f32 %v20764_v33, %v25337_v11  ;;  %v25339_v19 = vand.u32 4294901760, %v20766_v50  ;;  %14358 = vmatprep.subr.bf16.mxu0 %v14357_v52 }
 0x401   :  { %v21063_v42 = vsub.f32 %v20762_v31, %v25335_v9  ;;  %v14359_v14 = vpack.c.bf16 %v21027_v17, %v21004_v34  ;;  %v25342_v31 = vand.u32 4294901760, %v25341_v4  ;;  %v25344_v12 = vand.u32 4294901760, %v25343_v49 }
 0x402   :  { %25334 = vst [vmem:[#allocation68_spill] sm:$0xff] %v21058_v30  ;;  %25338 = vst [vmem:[#allocation86_spill] sm:$0xff] %v21068_v41  ;;  %v21075_v47 = vsub.f32 %v20766_v50, %v25339_v19  ;;  %v14127_v39 = vpack.c.bf16 %v6942_v28, %v6935_v32  ;;  %v14129_v2 = vpack.c.bf16 %v7068_v10, %v7061_v26  ;;  %v6949_v13 = vand.u32 4294901760, %v6948_v46  ;;  %v25345_v19 = vld [vmem:[#allocation49_spill] sm:$0xff]  ;;  %v11513_v26 = vpop.f32.mrb[32].mxu0 }
 0x403   :  { %25336 = vst [vmem:[#allocation62_spill] sm:$0xff] %v21063_v42  ;;  %v6962_v0 = vsub.f32 %v25341_v4, %v25342_v31  ;;  %v6969_v33 = vsub.f32 %v25343_v49, %v25344_v12  ;;  %v6956_v9 = vand.u32 4294901760, %v6955_v48  ;;  %v7075_v50 = vand.u32 4294901760, %v7074_v1  ;;  %v25353_v48 = vld [vmem:[#allocation18_spill] sm:$0xff]  ;;  %14360 = vmatpush3.bf16.msra.mxu0 %v14359_v14 }
 0x404   :  { %25340 = vst [vmem:[#allocation73_spill] sm:$0xff] %v21075_v47  ;;  %v7082_v11 = vand.u32 4294901760, %v7081_v15  ;;  %v25346_v35 = vand.u32 4294901760, %v25345_v19  ;;  %v25348_v38 = vand.u32 4294901760, %v25347_v23  ;;  %v25349_v31 = vand.u32 4294901760, %v20789_v5  ;;  %14128 = vmatpush3.bf16.msra.mxu1 %v14127_v39  ;;  %v25355_v15 = vld [vmem:[#allocation21_spill] sm:$0xff] }
 0x405   :  { %v14361_v25 = vpack.c.bf16 %v21037_v55, %v21032_v60  ;;  %v25351_v32 = vand.u32 4294901760, %v20791_v16  ;;  %v6963_v10 = vand.u32 4294901760, %v6962_v0  ;;  %v14131_v46 = vpack.c.bf16 %v6956_v9, %v6949_v13  ;;  %14130 = vmatprep.subr.bf16.mxu1 %v14129_v2  ;;  %v25358_v9 = vld [vmem:[#allocation34_spill] sm:$0xff] }
 0x406   :  { %v7088_v21 = vsub.f32 %v25345_v19, %v25346_v35  ;;  %v7095_v4 = vsub.f32 %v25347_v23, %v25348_v38  ;;  %v21094_v58 = vsub.f32 %v20789_v5, %v25349_v31  ;;  %v14363_v35 = vpack.c.bf16 %v21063_v42, %v21058_v30  ;;  %v11514_v38 = vpop.f32.mrb[33].mxu0 }
 0x407   :  { %v21101_v28 = vsub.f32 %v20791_v16, %v25351_v32  ;;  %v6970_v23 = vand.u32 4294901760, %v6969_v33  ;;  %v14365_v5 = vpack.c.bf16 %v21075_v47, %v21068_v41  ;;  %v25354_v24 = vand.u32 4294901760, %v25353_v48  ;;  %14362 = vmatprep.subr.bf16.mxu0 %v14361_v25  ;;  %v25360_v32 = vld [vmem:[#allocation28_spill] sm:$0xff] }
 0x408   :  { %25350 = vst [vmem:[#allocation74_spill] sm:$0xff] %v21094_v58  ;;  %v25356_v52 = vand.u32 4294901760, %v25355_v15  ;;  %v21113_v49 = vadd.f32 %v11514_v38, %v11513_v26  ;;  %v14133_v0 = vpack.c.bf16 %v7082_v11, %v7075_v50  ;;  %v7089_v12 = vand.u32 4294901760, %v7088_v21  ;;  %14132 = vmatpush3.bf16.msra.mxu1 %v14131_v46  ;;  %v25362_v11 = vld [vmem:[#allocation32_spill] sm:$0xff]  ;;  %v25364_v38 = vld [vmem:[#allocation50_spill] sm:$0xff]  ;;  %14364 = vmatpush3.bf16.msra.mxu0 %v14363_v35  ;;  %v11268_v46 = vpop.f32.mrb[32].mxu1 }
 0x409   :  { %25352 = vst [vmem:[#allocation78_spill] sm:$0xff] %v21101_v28  ;;  %v6976_v1 = vsub.f32 %v25353_v48, %v25354_v24  ;;  %v7096_v33 = vand.u32 4294901760, %v7095_v4  ;;  %v23493_v39 = vand.u32 4294901760, %v20812_v53  ;;  %v23488_v13 = vand.u32 4294901760, %v20817_v20  ;;  %14366 = vmatprep.subr.bf16.mxu0 %v14365_v5 }
 0x40a   :  { %v6983_v16 = vsub.f32 %v25355_v15, %v25356_v52  ;;  %25357 = vst [vmem:[#allocation26_spill] sm:$0xff] %v21113_v49  ;;  %v25359_v19 = vand.u32 4294901760, %v25358_v9  ;;  %v25361_v48 = vand.u32 4294901760, %v25360_v32  ;;  %v14135_v26 = vpack.c.bf16 %v6970_v23, %v6963_v10  ;;  %14134 = vmatprep.subr.bf16.mxu1 %v14133_v0  ;;  %v21245_v49 = vld [vmem:[#allocation2 + $0x980] sm:$0xff] }
 0x40b   :  { %v14367_v14 = vpack.c.bf16 %v21101_v28, %v21094_v58  ;;  %v23487_v21 = vand.u32 4294901760, %v20829_v29  ;;  %v6977_v2 = vand.u32 4294901760, %v6976_v1  ;;  %v25363_v4 = vand.u32 4294901760, %v25362_v11 }
 0x40c   :  { %v7102_v31 = vsub.f32 %v25358_v9, %v25359_v19  ;;  %v7109_v24 = vsub.f32 %v25360_v32, %v25361_v48  ;;  %v6984_v50 = vand.u32 4294901760, %v6983_v16  ;;  %v25365_v15 = vand.u32 4294901760, %v25364_v38  ;;  %v11269_v48 = vpop.f32.mrb[33].mxu1  ;;  %14136 = vmatpush3.bf16.msra.mxu1 %v14135_v26 }
 0x40d   :  { %v6990_v25 = vsub.f32 %v25362_v11, %v25363_v4  ;;  %v14137_v9 = vpack.c.bf16 %v7096_v33, %v7089_v12  ;;  %v23486_v10 = vand.u32 4294901760, %v20834_v36  ;;  %v23485_v23 = vand.u32 4294901760, %v20839_v7  ;;  %v25366_v11 = vld [vmem:[#allocation53_spill] sm:$0xff]  ;;  %14368 = vmatpush3.bf16.msra.mxu0 %v14367_v14 }
 0x40e   :  { %v6997_v52 = vsub.f32 %v25364_v38, %v25365_v15  ;;  %v23480_v19 = vand.u32 4294901760, %v20844_v40  ;;  %v14401_v1 = vpack.c.bf16 %v23488_v13, %v23493_v39  ;;  %v7103_v16 = vand.u32 4294901760, %v7102_v31  ;;  %v25367_v15 = vld [vmem:[#allocation20_spill] sm:$0xff] }
 0x40f   :  { %v7110_v32 = vand.u32 4294901760, %v7109_v24  ;;  %v21140_v35 = vadd.s32 2432, %v25366_v11  ;;  %v11270_v0 = vadd.f32 %v11269_v48, %v11268_v46  ;;  %v14139_v12 = vpack.c.bf16 %v6984_v50, %v6977_v2  ;;  %14138 = vmatprep.subr.bf16.mxu1 %v14137_v9  ;;  %v25368_v9 = vld [vmem:[#allocation56_spill] sm:$0xff]  ;;  %v25369_v46 = vld [vmem:[#allocation65_spill] sm:$0xff] }
 0x410   :  { %v6991_v33 = vand.u32 4294901760, %v6990_v25  ;;  %v6998_v4 = vand.u32 4294901760, %v6997_v52  ;;  %v14403_v5 = vpack.c.bf16 %v23486_v10, %v23487_v21  ;;  %v14405_v31 = vpack.c.bf16 %v23480_v19, %v23485_v23  ;;  %14402 = vmatprep.subr.bf16.mxu0 %v14401_v1  ;;  %8115 = vmatmul.mubr.f32.vlgmr.msra.gmra.mrb[46].mxu0 %v20739_v63  ;;  %v25380_v19 = vld [vmem:[#allocation58_spill] sm:$0xff]  ;;  %v11583_v63 = vpop.f32.mrb[34].mxu0  ;;  %v21276_v39 = vld [vmem:[#allocation2 + $0x998] sm:$0xff] }
 0x411   :  { %v23479_v24 = vand.u32 4294901760, %v20849_v56  ;;  %v23478_v38 = vand.u32 4294901760, %v20854_v18  ;;  %v5049_v26 = vadd.f32 %v11270_v0, %v20949_v44  ;;  %v14141_v2 = vpack.c.bf16 %v7110_v32, %v7103_v16  ;;  %14140 = vmatpush3.bf16.msra.mxu1 %v14139_v12  ;;  %8389 = vmatprep.mubr.f32.mxu0 %v25369_v46  ;;  %v25370_v12 = vld [vmem:[#allocation54_spill] sm:$0xff]  ;;  %v25420_v46 = vld [vmem:[#allocation88_spill] sm:$0xff] }
 0x412   :  { %v23475_v14 = vand.u32 4294901760, %v20874_v3  ;;  %v23474_v50 = vand.u32 4294901760, %v20879_v51  ;;  %v14143_v25 = vpack.c.bf16 %v6998_v4, %v6991_v33  ;;  %vm157_vm6 = vcmp.eq.s32.totalorder %v21140_v35, %v25368_v9  ;;  %14404 = vmatpush3.bf16.msra.mxu0 %v14403_v5  ;;  %v25371_v33 = vld [vmem:[#allocation84_spill] sm:$0xff]  ;;  %v25383_v10 = vld [vmem:[#allocation66_spill] sm:$0xff] }
 0x413   :  { %v21157_v52 = vadd.f32 %v25367_v15, %v5049_v26  ;;  %v14407_v44 = vpack.c.bf16 %v23478_v38, %v23479_v24  ;;  %v23473_v1 = vand.u32 4294901760, %v20884_v62  ;;  %v23472_v16 = vand.u32 4294901760, %v20892_v8  ;;  %14142 = vmatprep.subr.bf16.mxu1 %v14141_v2  ;;  %14406 = vmatprep.subr.bf16.mxu0 %v14405_v31  ;;  %v25372_v26 = vld [vmem:[#allocation55_spill] sm:$0xff] }
 0x414   :  { %v14409_v32 = vpack.c.bf16 %v23474_v50, %v23475_v14  ;;  %v23477_v48 = vand.u32 4294901760, %v20897_v45  ;;  %v23476_v0 = vand.u32 4294901760, %v20908_v43  ;;  %vm132_vm7 = vcmp.eq.s32.totalorder %v21140_v35, %v25370_v12  ;;  %v25376_v50 = vld [vmem:[#allocation22_spill] sm:$0xff]  ;;  %v21487_v45 = vld [vmem:[#allocation2 + $0x960] sm:$0xff] }
 0x415   :  { %vm178_vm8 = vmor %vm132_vm7, %vm157_vm6  ;;  %14144 = vmatpush3.bf16.msra.mxu1 %v14143_v25  ;;  %v14411_v4 = vpack.c.bf16 %v23472_v16, %v23473_v1  ;;  %v23482_v5 = vand.u32 4294901760, %v20920_v61  ;;  %v23481_v31 = vand.u32 4294901760, %v20929_v22  ;;  %vm203_vm9 = vcmp.eq.s32.totalorder %v21140_v35, %v25372_v26  ;;  %v25374_v16 = vld [vmem:[#allocation95_spill] sm:$0xff] }
 0x416   :  { %14408 = vmatpush3.bf16.msra.mxu0 %v14407_v44  ;;  %14178 = vmatprep.subr.bf16.mxu1 %v25371_v33  ;;  %v14413_v2 = vpack.c.bf16 %v23476_v0, %v23477_v48  ;;  %v23484_v25 = vand.u32 4294901760, %v20934_v37  ;;  %v23483_v15 = vand.u32 4294901760, %v20961_v54  ;;  %vm224_vm10 = vmor %vm178_vm8, %vm203_vm9  ;;  %v25373_v44 = vld [vmem:[#allocation57_spill] sm:$0xff]  ;;  %v25375_v1 = vld [vmem:[#allocation59_spill] sm:$0xff]  ;;  %v23490_v38 = vand.u32 4294901760, %v20966_v27 }
 0x417   :  { %14410 = vmatprep.subr.bf16.mxu0 %v14409_v32  ;;  %vm249_vm11 = vcmp.eq.s32.totalorder %v21140_v35, %v25373_v44  ;;  %vm295_vm12 = vcmp.eq.s32.totalorder %v21140_v35, %v25375_v1  ;;  %v25377_v32 = vld [vmem:[#allocation25_spill] sm:$0xff]  ;;  %v25379_v0 = vld [vmem:[#allocation19_spill] sm:$0xff]  ;;  %v14415_v48 = vpack.c.bf16 %v23481_v31, %v23482_v5  ;;  %v23489_v24 = vand.u32 4294901760, %v20974_v57 }
 0x418   :  { %7115 = vmatmul.mubr.f32.vlgmr.msra.gmra.mrb[46].mxu1 %v25374_v16  ;;  %v25378_v14 = vand.u32 4294901760, %v25377_v32  ;;  %vm270_vm13 = vmor %vm224_vm10, %vm249_vm11  ;;  %v14417_v32 = vpack.c.bf16 %v23483_v15, %v23484_v25  ;;  %vm341_vm15 = vcmp.eq.s32.totalorder %v21140_v35, %v25380_v19  ;;  %v25381_v31 = vld [vmem:[#allocation27_spill] sm:$0xff]  ;;  %v25382_v5 = vld [vmem:[#allocation93_spill] sm:$0xff]  ;;  %v23498_v15 = vand.u32 4294901760, %v21004_v34 }
 0x419   :  { %14180 = vmatpush3.bf16.msra.mxu1 %v25376_v50  ;;  %vm316_vm14 = vmor %vm270_vm13, %vm295_vm12  ;;  %v23497_v25 = vand.u32 4294901760, %v21027_v17  ;;  %v23499_v23 = vand.u32 4294901760, %v21037_v55  ;;  %v25384_v21 = vmov 0.0   ;;  %v21247_v34 = vld [vmem:[#allocation2 + $0x988] sm:$0xff] }
 0x41a   :  { %7357 = vmatprep.mubr.f32.mxu1 %v25378_v14  ;;  %14412 = vmatpush3.bf16.msra.mxu0 %v14411_v4  ;;  %v23492_v14 = vand.u32 4294901760, %v20994_v59  ;;  %v23491_v4 = vand.u32 4294901760, %v20999_v6  ;;  %vm362_vm0 = vmor %vm316_vm14, %vm341_vm15  ;;  %v25394_v55 = vld [vmem:[#allocation37_spill] sm:$0xff] }
 0x41b   :  { %14182 = vmatprep.subr.bf16.mxu1 %v25379_v0  ;;  %14414 = vmatprep.subr.bf16.mxu0 %v14413_v2  ;;  %v14419_v2 = vpack.c.bf16 %v23489_v24, %v23490_v38  ;;  %v21230_v13 = vsel %vm362_vm0, 1.0, %v25384_v21  ;;  %v25386_v24 = vld [vmem:[#allocation82_spill] sm:$0xff]  ;;  %v23509_v38 = vand.u32 4294901760, %v21058_v30 }
 0x41c   :  { %v14421_v35 = vpack.c.bf16 %v23491_v4, %v23492_v14  ;;  %25385 = vst [vmem:[#allocation48_spill] sm:$0xff] %v21230_v13  ;;  %v21308_v6 = vld [vmem:[#allocation2 + $0x9a8] sm:$0xff] }
 0x41d   :  { %14184 = vmatpush3.bf16.msra.mxu1 %v25381_v31  ;;  %v21394_v37 = vld [vmem:[#allocation2 + $0x9c8] sm:$0xff] }
 0x41e   :  { %14416 = vmatpush3.bf16.msra.mxu0 %v14415_v48  ;;  %14186 = vmatprep.subr.bf16.mxu1 %v25382_v5  ;;  %v23500_v48 = vand.u32 4294901760, %v21032_v60  ;;  %v25393_v60 = vand.u32 4294901760, %v21075_v47 }
 0x41f   :  { %14418 = vmatprep.subr.bf16.mxu0 %v14417_v32  ;;  %v14423_v32 = vpack.c.bf16 %v23497_v25, %v23498_v15  ;;  %v21251_v25 = vsub.f32 %v21230_v13, %v21230_v13  ;;  %v11584_v15 = vpop.f32.mrb[35].mxu0  ;;  %v25392_v13 = vand.u32 4294901760, %v21068_v41  ;;  %v11338_v41 = vpop.f32.mrb[34].mxu1 }
 0x420   :  { %v14425_v14 = vpack.c.bf16 %v23499_v23, %v23500_v48  ;;  %v21254_v4 = vadd.f32 %v11584_v15, %v11583_v63  ;;  %v25390_v23 = vld [vmem:[#allocation92_spill] sm:$0xff]  ;;  %v25391_v48 = vand.u32 4294901760, %v21063_v42  ;;  %v25397_v15 = vand.u32 4294901760, %v21101_v28 }
 0x421   :  { %14188 = vmatpush3.bf16.msra.mxu1 %v25383_v10  ;;  %25387 = vst [vmem:[#allocation64_spill] sm:$0xff] %v21251_v25  ;;  %v14429_v17 = vpack.c.bf16 %v25393_v60, %v25392_v13  ;;  %v25395_v60 = vld [vmem:[#allocation40_spill] sm:$0xff]  ;;  %v25396_v13 = vand.u32 4294901760, %v21094_v58  ;;  %v25401_v47 = vand.u32 4294901760, %v21251_v25  ;;  %v25405_v58 = vld [vmem:[#allocation47_spill] sm:$0xff] }
 0x422   :  { %14420 = vmatpush3.bf16.msra.mxu0 %v14419_v2  ;;  %14190 = vmatprep.subr.bf16.mxu1 %v25386_v24  ;;  %25389 = vst [vmem:[#allocation85_spill] sm:$0xff] %v21254_v4  ;;  %v14427_v2 = vpack.c.bf16 %v25391_v48, %v23509_v38  ;;  %v21271_v4 = vld [vmem:[#allocation2 + $0x908] sm:$0xff]  ;;  %v21274_v38 = vld [vmem:[#allocation2 + $0x990] sm:$0xff]  ;;  %v11339_v48 = vpop.f32.mrb[35].mxu1 }
 0x423   :  { %14422 = vmatprep.subr.bf16.mxu0 %v14421_v35  ;;  %v25388_v35 = vld [vmem:[#allocation94_spill] sm:$0xff]  ;;  %v14431_v63 = vpack.c.bf16 %v25397_v15, %v25396_v13  ;;  %v21301_v13 = vld [vmem:[#allocation2 + $0x918] sm:$0xff]  ;;  %v8599_v30 = vsub.f32 %v21251_v25, %v25401_v47  ;;  %v25407_v59 = vand.u32 4294901760, %v21271_v4 }
 0x424   :  { %v21299_v15 = vld [vmem:[#allocation2 + $0x910] sm:$0xff]  ;;  %v25418_v28 = vand.u32 4294901760, %v21301_v13 }
 0x425   :  { %14192 = vmatpush3.bf16.msra.mxu1 %v25388_v35  ;;  %v8600_v54 = vand.u32 4294901760, %v8599_v30  ;;  %v25417_v30 = vand.u32 4294901760, %v21299_v15 }
 0x426   :  { %14424 = vmatpush3.bf16.msra.mxu0 %v14423_v32  ;;  %14194 = vmatprep.subr.bf16.mxu1 %v25390_v23  ;;  %v21269_v32 = vld [vmem:[#allocation2 + $0x900] sm:$0xff] }
 0x427   :  { %14426 = vmatprep.subr.bf16.mxu0 %v14425_v14  ;;  %v21279_v14 = vadd.s32 2304, %v25366_v11  ;;  %v25398_v11 = vand.u32 4294901760, %v21245_v49  ;;  %v25406_v47 = vand.u32 4294901760, %v21269_v32 }
 0x429   :  { %14196 = vmatpush3.bf16.msra.mxu1 %v25394_v55  ;;  %vm156_vm1 = vcmp.eq.s32.totalorder %v21279_v14, %v25368_v9  ;;  %vm131_vm2 = vcmp.eq.s32.totalorder %v21279_v14, %v25370_v12  ;;  %v21325_v57 = vpack.c.bf16 %v25407_v59, %v25406_v47  ;;  %vm202_vm4 = vcmp.eq.s32.totalorder %v21279_v14, %v25372_v26  ;;  %v21345_v26 = vld [vmem:[#allocation2 + $0x9b0] sm:$0xff]  ;;  %v25416_v47 = vld [vmem:[#allocation36_spill] sm:$0xff] }
 0x42a   :  { %14428 = vmatpush3.bf16.msra.mxu0 %v14427_v2  ;;  %14198 = vmatprep.subr.bf16.mxu1 %v25395_v60  ;;  %v25399_v2 = vand.u32 4294901760, %v21247_v34  ;;  %vm21316_vm3 = vmor %vm131_vm2, %vm156_vm1  ;;  %v25410_v9 = vand.u32 4294901760, %v21276_v39  ;;  %vm248_vm6 = vcmp.eq.s32.totalorder %v21279_v14, %v25373_v44  ;;  %vm294_vm7 = vcmp.eq.s32.totalorder %v21279_v14, %v25375_v1  ;;  %v21421_v44 = vld [vmem:[#allocation2 + $0x940] sm:$0xff] }
 0x42b   :  { %14430 = vmatprep.subr.bf16.mxu0 %v14429_v17  ;;  %v21306_v17 = vld [vmem:[#allocation2 + $0x9a0] sm:$0xff]  ;;  %25408 = vst [vmem:[#allocation49_spill] sm:$0xff] %v21325_v57  ;;  %vm21351_vm5 = vmor %vm21316_vm3, %vm202_vm4  ;;  %vm340_vm10 = vcmp.eq.s32.totalorder %v21279_v14, %v25380_v19  ;;  %v25428_v14 = vand.u32 4294901760, %v21345_v26 }
 0x42c   :  { %v21295_v42 = vpack.c.bf16 %v25399_v2, %v25398_v11  ;;  %v11340_v11 = vadd.f32 %v11339_v48, %v11338_v41  ;;  %v25402_v2 = vld [vmem:[#allocation24_spill] sm:$0xff]  ;;  %v21343_v48 = vld [vmem:[#allocation2 + $0x928] sm:$0xff]  ;;  %vm269_vm8 = vmor %vm21351_vm5, %vm248_vm6  ;;  %vm15013_vm6 = vmmov 0  }
 0x42d   :  { %14200 = vmatpush3.bf16.msra.mxu1 %v25402_v2  ;;  %v21341_v41 = vld [vmem:[#allocation2 + $0x920] sm:$0xff]  ;;  %vm315_vm9 = vmor %vm269_vm8, %vm294_vm7 }
 0x42e   :  { %25400 = vst [vmem:[#allocation75_spill] sm:$0xff] %v21295_v42  ;;  %14432 = vmatpush3.bf16.msra.mxu0 %v14431_v63  ;;  %14202 = vmatprep.subr.bf16.mxu1 %v25405_v58  ;;  %v5393_v12 = vadd.f32 %v11340_v11, %v21157_v52  ;;  %v25409_v63 = vand.u32 4294901760, %v21274_v38  ;;  %v21347_v52 = vld [vmem:[#allocation2 + $0x9b8] sm:$0xff]  ;;  %v25425_v11 = vand.u32 4294901760, %v21341_v41  ;;  %vm361_vm11 = vmor %vm315_vm9, %vm340_vm10 }
 0x42f   :  { %14466 = vmatprep.subr.bf16.mxu0 %v21295_v42  ;;  %v21369_v42 = vpack.c.bf16 %v25418_v28, %v25417_v30  ;;  %v21383_v30 = vld [vmem:[#allocation2 + $0x930] sm:$0xff]  ;;  %v21385_v28 = vld [vmem:[#allocation2 + $0x938] sm:$0xff]  ;;  %v25429_v19 = vand.u32 4294901760, %v21347_v52  ;;  %v21444_v61 = vsel %vm361_vm11, 1.0, %v25384_v21  ;;  %v21461_v21 = vld [vmem:[#allocation2 + $0x9e8] sm:$0xff] }
 0x430   :  { %v21337_v27 = vpack.c.bf16 %v25410_v9, %v25409_v63  ;;  %v25414_v9 = vld [vmem:[#allocation46_spill] sm:$0xff]  ;;  %v25415_v63 = vld [vmem:[#allocation87_spill] sm:$0xff]  ;;  %v21360_v59 = vadd.f32 %v25416_v47, %v5393_v12  ;;  %v25421_v12 = vand.u32 4294901760, %v21306_v17  ;;  %v25422_v47 = vand.u32 4294901760, %v21308_v6  ;;  %25438 = vst [vmem:[#allocation20_spill] sm:$0xff] %v21444_v61  ;;  %25444 = vst [vmem:[#allocation19_spill] sm:$0xff] %v21461_v21 }
 0x431   :  { %8391 = vmatmul.mubr.f32.vlgmr.msra.gmra.mrb[48].mxu0 %v25414_v9  ;;  %14204 = vmatpush3.bf16.msra.mxu1 %v25415_v63  ;;  %25419 = vst [vmem:[#allocation18_spill] sm:$0xff] %v21369_v42  ;;  %v21392_v9 = vld [vmem:[#allocation2 + $0x9c0] sm:$0xff]  ;;  %v21417_v1 = vpack.c.bf16 %v25429_v19, %v25428_v14  ;;  %v25434_v19 = vld [vmem:[#allocation23_spill] sm:$0xff]  ;;  %v25435_v14 = vand.u32 4294901760, %v21383_v30  ;;  %v25456_v16 = vand.u32 4294901760, %v21461_v21  ;;  %v25463_v21 = vand.u32 4294901760, %v21245_v49 }
 0x432   :  { %25411 = vst [vmem:[#allocation90_spill] sm:$0xff] %v21337_v27  ;;  %14468 = vmatpush3.bf16.msra.mxu0 %v21325_v57  ;;  %8601 = vmatprep.mubr.f32.mxu0 %v8600_v54  ;;  %v21379_v57 = vpack.c.bf16 %v25422_v47, %v25421_v12  ;;  %v25424_v12 = vld [vmem:[#allocation89_spill] sm:$0xff]  ;;  %v25426_v47 = vand.u32 4294901760, %v21343_v48 }
 0x433   :  { %14206 = vmatprep.subr.bf16.mxu1 %v25420_v46  ;;  %14470 = vmatprep.subr.bf16.mxu0 %v21337_v27  ;;  %25430 = vst [vmem:[#allocation28_spill] sm:$0xff] %v21417_v1  ;;  %v21427_v27 = vld [vmem:[#allocation2 + $0x9d0] sm:$0xff] }
 0x434   :  { %25423 = vst [vmem:[#allocation21_spill] sm:$0xff] %v21379_v57  ;;  %v21408_v22 = vpack.c.bf16 %v25426_v47, %v25425_v11  ;;  %v21423_v11 = vld [vmem:[#allocation2 + $0x948] sm:$0xff]  ;;  %v25431_v47 = vld [vmem:[#allocation35_spill] sm:$0xff] }
 0x435   :  { %14208 = vmatpush3.bf16.msra.mxu1 %v25424_v12  ;;  %v25432_v54 = vand.u32 4294901760, %v25431_v47  ;;  %v21459_v47 = vld [vmem:[#allocation2 + $0x9e0] sm:$0xff] }
 0x436   :  { %14472 = vmatpush3.bf16.msra.mxu0 %v21369_v42  ;;  %14242 = vmatprep.subr.bf16.mxu1 %v25371_v33  ;;  %25427 = vst [vmem:[#allocation34_spill] sm:$0xff] %v21408_v22  ;;  %v25436_v42 = vand.u32 4294901760, %v21385_v28  ;;  %25443 = vst [vmem:[#allocation25_spill] sm:$0xff] %v21459_v47 }
 0x437   :  { %14474 = vmatprep.subr.bf16.mxu0 %v21379_v57  ;;  %v21429_v57 = vld [vmem:[#allocation2 + $0x9d8] sm:$0xff] }
 0x438   :  { %7361 = vmatmul.mubr.f32.vlgmr.msra.gmra.mrb[48].mxu1 %v25432_v54  ;;  %25433 = vst [vmem:[#allocation32_spill] sm:$0xff] %v21429_v57  ;;  %v21439_v33 = vpack.c.bf16 %v25436_v42, %v25435_v14  ;;  %v21455_v14 = vld [vmem:[#allocation2 + $0x950] sm:$0xff]  ;;  %v21457_v54 = vld [vmem:[#allocation2 + $0x958] sm:$0xff] }
 0x439   :  { %14244 = vmatpush3.bf16.msra.mxu1 %v25376_v50  ;;  %7631 = vmatprep.mubr.f32.mxu1 %v25434_v19  ;;  %v25439_v50 = vand.u32 4294901760, %v21392_v9  ;;  %v25440_v19 = vand.u32 4294901760, %v21394_v37  ;;  %25442 = vst [vmem:[#allocation22_spill] sm:$0xff] %v21455_v14 }
 0x43a   :  { %14476 = vmatpush3.bf16.msra.mxu0 %v21408_v22  ;;  %14246 = vmatprep.subr.bf16.mxu1 %v25379_v0  ;;  %25437 = vst [vmem:[#allocation50_spill] sm:$0xff] %v21439_v33  ;;  %v21493_v22 = vld [vmem:[#allocation2 + $0x9f8] sm:$0xff] }
 0x43b   :  { %14478 = vmatprep.subr.bf16.mxu0 %v21417_v1  ;;  %v21451_v0 = vpack.c.bf16 %v25440_v19, %v25439_v50  ;;  %v21466_v1 = vsub.f32 %v21444_v61, %v21444_v61  ;;  %v25446_v50 = vand.u32 4294901760, %v21421_v44  ;;  %v25447_v19 = vand.u32 4294901760, %v21423_v11 }
 0x43c   :  { %v25450_v61 = vand.u32 4294901760, %v21429_v57 }
 0x43d   :  { %25441 = vst [vmem:[#allocation84_spill] sm:$0xff] %v21451_v0  ;;  %14248 = vmatpush3.bf16.msra.mxu1 %v25381_v31  ;;  %25445 = vst [vmem:[#allocation27_spill] sm:$0xff] %v21466_v1  ;;  %v21474_v42 = vpack.c.bf16 %v25447_v19, %v25446_v50  ;;  %v25449_v31 = vand.u32 4294901760, %v21427_v27  ;;  %v21489_v50 = vld [vmem:[#allocation2 + $0x968] sm:$0xff]  ;;  %v21491_v19 = vld [vmem:[#allocation2 + $0x9f0] sm:$0xff] }
 0x43e   :  { %14480 = vmatpush3.bf16.msra.mxu0 %v21439_v33  ;;  %14250 = vmatprep.subr.bf16.mxu1 %v25382_v5 }
 0x43f   :  { %25448 = vst [vmem:[#allocation93_spill] sm:$0xff] %v21474_v42  ;;  %14482 = vmatprep.subr.bf16.mxu0 %v21451_v0  ;;  %v21483_v43 = vpack.c.bf16 %v25450_v61, %v25449_v31  ;;  %v25452_v61 = vand.u32 4294901760, %v21455_v14  ;;  %v25453_v31 = vand.u32 4294901760, %v21457_v54  ;;  %v21516_v14 = vld [vmem:[#allocation2 + $0x970] sm:$0xff]  ;;  %v25458_v0 = vand.u32 4294901760, %v21466_v1 }
 0x441   :  { %25451 = vst [vmem:[#allocation66_spill] sm:$0xff] %v21483_v43  ;;  %14252 = vmatpush3.bf16.msra.mxu1 %v25383_v10  ;;  %v21503_v33 = vpack.c.bf16 %v25453_v31, %v25452_v61  ;;  %v25455_v10 = vand.u32 4294901760, %v21459_v47  ;;  %v21518_v61 = vld [vmem:[#allocation2 + $0x978] sm:$0xff]  ;;  %v11653_v31 = vpop.f32.mrb[36].mxu0 }
 0x442   :  { %14484 = vmatpush3.bf16.msra.mxu0 %v21474_v42  ;;  %14254 = vmatprep.subr.bf16.mxu1 %v25386_v24  ;;  %v11654_v5 = vpop.f32.mrb[37].mxu0 }
 0x443   :  { %25454 = vst [vmem:[#allocation82_spill] sm:$0xff] %v21503_v33  ;;  %14486 = vmatprep.subr.bf16.mxu0 %v21483_v43  ;;  %v21512_v57 = vpack.c.bf16 %v25456_v16, %v25455_v10  ;;  %v8605_v43 = vsub.f32 %v21466_v1, %v25458_v0  ;;  %v21524_v47 = vadd.f32 %v11654_v5, %v11653_v31  ;;  %v25460_v16 = vand.u32 4294901760, %v21487_v45 }
 0x444   :  { %v25461_v10 = vand.u32 4294901760, %v21489_v50  ;;  %v21539_v0 = vsub.f32 %v21245_v49, %v25463_v21  ;;  %v25464_v5 = vand.u32 4294901760, %v21247_v34  ;;  %v25469_v49 = vand.u32 4294901760, %v21271_v4 }
 0x445   :  { %25457 = vst [vmem:[#allocation94_spill] sm:$0xff] %v21512_v57  ;;  %14256 = vmatpush3.bf16.msra.mxu1 %v25388_v35  ;;  %25459 = vst [vmem:[#allocation92_spill] sm:$0xff] %v21524_v47  ;;  %v25468_v35 = vand.u32 4294901760, %v21269_v32  ;;  %v25560_v47 = vld [vmem:[#allocation42_spill] sm:$0xff] }
 0x446   :  { %14488 = vmatpush3.bf16.msra.mxu0 %v21503_v33  ;;  %14258 = vmatprep.subr.bf16.mxu1 %v25390_v23  ;;  %v21532_v42 = vpack.c.bf16 %v25461_v10, %v25460_v16  ;;  %v21544_v31 = vsub.f32 %v21247_v34, %v25464_v5  ;;  %v25465_v23 = vand.u32 4294901760, %v21491_v19  ;;  %v25466_v16 = vand.u32 4294901760, %v21493_v22 }
 0x447   :  { %14490 = vmatprep.subr.bf16.mxu0 %v21512_v57  ;;  %v21556_v24 = vsub.f32 %v21269_v32, %v25468_v35  ;;  %v21561_v21 = vsub.f32 %v21271_v4, %v25469_v49  ;;  %v25470_v34 = vand.u32 4294901760, %v21274_v38  ;;  %v25471_v57 = vand.u32 4294901760, %v21276_v39 }
 0x448   :  { %25462 = vst [vmem:[#allocation37_spill] sm:$0xff] %v21532_v42  ;;  %v21551_v10 = vpack.c.bf16 %v25466_v16, %v25465_v23  ;;  %v25472_v16 = vand.u32 4294901760, %v21299_v15  ;;  %v25473_v35 = vand.u32 4294901760, %v21301_v13  ;;  %v8606_v49 = vand.u32 4294901760, %v8605_v43 }
 0x449   :  { %v21566_v5 = vsub.f32 %v21274_v38, %v25470_v34  ;;  %v21571_v23 = vsub.f32 %v21276_v39, %v25471_v57  ;;  %14260 = vmatpush3.bf16.msra.mxu1 %v25394_v55  ;;  %v25474_v38 = vand.u32 4294901760, %v21516_v14  ;;  %v25475_v57 = vand.u32 4294901760, %v21518_v61 }
 0x44a   :  { %25467 = vst [vmem:[#allocation40_spill] sm:$0xff] %v21551_v10  ;;  %v21576_v32 = vsub.f32 %v21299_v15, %v25472_v16  ;;  %v21581_v4 = vsub.f32 %v21301_v13, %v25473_v35  ;;  %14492 = vmatpush3.bf16.msra.mxu0 %v21532_v42  ;;  %14262 = vmatprep.subr.bf16.mxu1 %v25395_v60  ;;  %v25477_v15 = vand.u32 4294901760, %v20812_v53  ;;  %v25478_v13 = vand.u32 4294901760, %v20817_v20 }
 0x44b   :  { %v21590_v39 = vpack.c.bf16 %v25475_v57, %v25474_v38  ;;  %v25479_v55 = vand.u32 4294901760, %v21306_v17  ;;  %v25480_v60 = vand.u32 4294901760, %v21308_v6  ;;  %v25481_v43 = vand.u32 4294901760, %v21341_v41  ;;  %14494 = vmatprep.subr.bf16.mxu0 %v21551_v10 }
 0x44c   :  { %v7866_v34 = vsub.f32 %v20812_v53, %v25477_v15  ;;  %v7873_v16 = vsub.f32 %v20817_v20, %v25478_v13  ;;  %v11408_v53 = vpop.f32.mrb[36].mxu1  ;;  %v14529_v20 = vpack.c.bf16 %v21544_v31, %v21539_v0  ;;  %v25482_v57 = vand.u32 4294901760, %v21343_v48 }
 0x44d   :  { %25476 = vst [vmem:[#allocation24_spill] sm:$0xff] %v21590_v39  ;;  %v21601_v35 = vsub.f32 %v21306_v17, %v25479_v55  ;;  %v21606_v42 = vsub.f32 %v21308_v6, %v25480_v60  ;;  %v21611_v38 = vsub.f32 %v21341_v41, %v25481_v43  ;;  %v25483_v15 = vand.u32 4294901760, %v21345_v26  ;;  %v11409_v13 = vpop.f32.mrb[37].mxu1  ;;  %14264 = vmatpush3.bf16.msra.mxu1 %v25402_v2 }
 0x44e   :  { %v21619_v17 = vsub.f32 %v21343_v48, %v25482_v57  ;;  %v25484_v41 = vand.u32 4294901760, %v20829_v29  ;;  %v25485_v60 = vand.u32 4294901760, %v20834_v36  ;;  %v25486_v10 = vand.u32 4294901760, %v21347_v52  ;;  %14496 = vmatpush3.bf16.msra.mxu0 %v21590_v39  ;;  %14266 = vmatprep.subr.bf16.mxu1 %v25405_v58 }
 0x44f   :  { %v21624_v6 = vsub.f32 %v21345_v26, %v25483_v15  ;;  %v11410_v48 = vadd.f32 %v11409_v13, %v11408_v53  ;;  %v25487_v26 = vand.u32 4294901760, %v20839_v7  ;;  %v25488_v15 = vand.u32 4294901760, %v20844_v40  ;;  %14530 = vmatprep.subr.bf16.mxu0 %v14529_v20 }
 0x450   :  { %v7754_v55 = vsub.f32 %v20829_v29, %v25484_v41  ;;  %v7761_v43 = vsub.f32 %v20834_v36, %v25485_v60  ;;  %v21635_v33 = vsub.f32 %v21347_v52, %v25486_v10  ;;  %v25489_v41 = vand.u32 4294901760, %v21383_v30 }
 0x451   :  { %v7880_v57 = vsub.f32 %v20839_v7, %v25487_v26  ;;  %v7887_v29 = vsub.f32 %v20844_v40, %v25488_v15  ;;  %v14531_v2 = vpack.c.bf16 %v21561_v21, %v21556_v24  ;;  %v7867_v52 = vand.u32 4294901760, %v7866_v34  ;;  %8607 = vmatmul.mubr.f32.vlgmr.msra.gmra.mrb[50].mxu0 %v8606_v49  ;;  %14268 = vmatpush3.bf16.msra.mxu1 %v25415_v63 }
 0x452   :  { %v21647_v36 = vsub.f32 %v21383_v30, %v25489_v41  ;;  %v7874_v10 = vand.u32 4294901760, %v7873_v16  ;;  %v25491_v7 = vand.u32 4294901760, %v21385_v28  ;;  %v25493_v40 = vand.u32 4294901760, %v21392_v9  ;;  %8974 = vmatprep.mubr.f32.mxu0 %v21251_v25  ;;  %14270 = vmatprep.subr.bf16.mxu1 %v25420_v46 }
 0x453   :  { %v5639_v30 = vadd.f32 %v11410_v48, %v21360_v59  ;;  %v14533_v58 = vpack.c.bf16 %v21571_v23, %v21566_v5  ;;  %v14535_v34 = vpack.c.bf16 %v21581_v4, %v21576_v32  ;;  %v7755_v16 = vand.u32 4294901760, %v7754_v55  ;;  %v25497_v48 = vld [vmem:[#allocation38_spill] sm:$0xff]  ;;  %14532 = vmatpush3.bf16.msra.mxu0 %v14531_v2 }
 0x454   :  { %25490 = vst [vmem:[#allocation47_spill] sm:$0xff] %v21647_v36  ;;  %v21656_v53 = vsub.f32 %v21385_v28, %v25491_v7  ;;  %v21661_v13 = vsub.f32 %v21392_v9, %v25493_v40  ;;  %v7762_v60 = vand.u32 4294901760, %v7761_v43  ;;  %v25495_v26 = vand.u32 4294901760, %v20849_v56 }
 0x455   :  { %v7881_v9 = vand.u32 4294901760, %v7880_v57  ;;  %v7888_v15 = vand.u32 4294901760, %v7887_v29  ;;  %v25496_v59 = vand.u32 4294901760, %v20854_v18  ;;  %v21676_v41 = vadd.f32 %v25497_v48, %v5639_v30  ;;  %14534 = vmatprep.subr.bf16.mxu0 %v14533_v58  ;;  %14272 = vmatpush3.bf16.msra.mxu1 %v25424_v12  ;;  %v25508_v48 = vld [vmem:[#allocation30_spill] sm:$0xff] }
 0x456   :  { %25492 = vst [vmem:[#allocation87_spill] sm:$0xff] %v21656_v53  ;;  %25494 = vst [vmem:[#allocation36_spill] sm:$0xff] %v21661_v13  ;;  %v7768_v28 = vsub.f32 %v20849_v56, %v25495_v26  ;;  %v14305_v55 = vpack.c.bf16 %v7874_v10, %v7867_v52  ;;  %v25498_v43 = vand.u32 4294901760, %v20874_v3  ;;  %v25499_v49 = vand.u32 4294901760, %v20879_v51 }
 0x457   :  { %v7775_v20 = vsub.f32 %v20854_v18, %v25496_v59  ;;  %v25500_v57 = vand.u32 4294901760, %v21394_v37  ;;  %v25502_v18 = vand.u32 4294901760, %v21421_v44  ;;  %v25504_v52 = vand.u32 4294901760, %v21423_v11  ;;  %14536 = vmatpush3.bf16.msra.mxu0 %v14535_v34 }
 0x458   :  { %v7894_v56 = vsub.f32 %v20874_v3, %v25498_v43  ;;  %v7901_v63 = vsub.f32 %v20879_v51, %v25499_v49  ;;  %v14537_v3 = vpack.c.bf16 %v21606_v42, %v21601_v35  ;;  %v25506_v10 = vand.u32 4294901760, %v20884_v62  ;;  %14306 = vmatprep.subr.bf16.mxu1 %v14305_v55  ;;  %v25520_v55 = vld [vmem:[#allocation95_spill] sm:$0xff] }
 0x459   :  { %v21688_v29 = vsub.f32 %v21394_v37, %v25500_v57  ;;  %v21693_v2 = vsub.f32 %v21421_v44, %v25502_v18  ;;  %v21701_v51 = vsub.f32 %v21423_v11, %v25504_v52  ;;  %v14539_v37 = vpack.c.bf16 %v21619_v17, %v21611_v38  ;;  %v25510_v57 = vld [vmem:[#allocation39_spill] sm:$0xff]  ;;  %7633 = vmatmul.mubr.f32.vlgmr.msra.gmra.mrb[50].mxu1 %v25520_v55 }
 0x45a   :  { %v7782_v7 = vsub.f32 %v20884_v62, %v25506_v10  ;;  %v25507_v44 = vand.u32 4294901760, %v20892_v8  ;;  %v14307_v40 = vpack.c.bf16 %v7762_v60, %v7755_v16  ;;  %v14309_v30 = vpack.c.bf16 %v7888_v15, %v7881_v9  ;;  %v25514_v16 = vld [vmem:[#allocation32_spill] sm:$0xff]  ;;  %14538 = vmatprep.subr.bf16.mxu0 %v14537_v3  ;;  %v25526_v3 = vld [vmem:[#allocation45_spill] sm:$0xff] }
 0x45b   :  { %25501 = vst [vmem:[#allocation88_spill] sm:$0xff] %v21688_v29  ;;  %25503 = vst [vmem:[#allocation89_spill] sm:$0xff] %v21693_v2  ;;  %v7769_v58 = vand.u32 4294901760, %v7768_v28  ;;  %v7776_v26 = vand.u32 4294901760, %v7775_v20  ;;  %v7895_v11 = vand.u32 4294901760, %v7894_v56  ;;  %v7902_v59 = vand.u32 4294901760, %v7901_v63  ;;  %14540 = vmatpush3.bf16.msra.mxu0 %v14539_v37 }
 0x45c   :  { %25505 = vst [vmem:[#allocation35_spill] sm:$0xff] %v21701_v51  ;;  %v7789_v46 = vsub.f32 %v20892_v8, %v25507_v44  ;;  %v25509_v43 = vand.u32 4294901760, %v25508_v48  ;;  %v25511_v62 = vand.u32 4294901760, %v25510_v57  ;;  %v25512_v8 = vand.u32 4294901760, %v21427_v27  ;;  %v25517_v28 = vld [vmem:[#allocation22_spill] sm:$0xff]  ;;  %v25523_v44 = vld [vmem:[#allocation41_spill] sm:$0xff]  ;;  %14308 = vmatpush3.bf16.msra.mxu1 %v14307_v40 }
 0x45d   :  { %v25515_v60 = vand.u32 4294901760, %v25514_v16  ;;  %v25518_v9 = vand.u32 4294901760, %v25517_v28  ;;  %v14541_v20 = vpack.c.bf16 %v21635_v33, %v21624_v6  ;;  %v7783_v56 = vand.u32 4294901760, %v7782_v7  ;;  %14310 = vmatprep.subr.bf16.mxu1 %v14309_v30 }
 0x45e   :  { %v7908_v49 = vsub.f32 %v25508_v48, %v25509_v43  ;;  %v7915_v18 = vsub.f32 %v25510_v57, %v25511_v62  ;;  %v21721_v12 = vsub.f32 %v21427_v27, %v25512_v8  ;;  %v7790_v63 = vand.u32 4294901760, %v7789_v46  ;;  %v25521_v27 = vld [vmem:[#allocation44_spill] sm:$0xff]  ;;  %v25525_v57 = vld [vmem:[#allocation65_spill] sm:$0xff] }
 0x45f   :  { %v21726_v34 = vsub.f32 %v25514_v16, %v25515_v60  ;;  %v21731_v15 = vsub.f32 %v25517_v28, %v25518_v9  ;;  %v25522_v52 = vand.u32 4294901760, %v25521_v27  ;;  %v25524_v48 = vand.u32 4294901760, %v25523_v44  ;;  %7975 = vmatprep.mubr.f32.mxu1 %v25525_v57  ;;  %v25528_v60 = vld [vmem:[#allocation14_spill] sm:$0xff]  ;;  %14542 = vmatprep.subr.bf16.mxu0 %v14541_v20 }
 0x460   :  { %25513 = vst [vmem:[#allocation23_spill] sm:$0xff] %v21721_v12  ;;  %v14311_v62 = vpack.c.bf16 %v7776_v26, %v7769_v58  ;;  %v25527_v8 = vand.u32 4294901760, %v25526_v3  ;;  %v25529_v28 = vand.u32 4294901760, %v25528_v60  ;;  %v14543_v46 = vpack.c.bf16 %v21656_v53, %v21647_v36  ;;  %v25532_v26 = vld [vmem:[#allocation25_spill] sm:$0xff] }
 0x461   :  { %25516 = vst [vmem:[#allocation38_spill] sm:$0xff] %v21726_v34  ;;  %25519 = vst [vmem:[#allocation30_spill] sm:$0xff] %v21731_v15  ;;  %v7796_v10 = vsub.f32 %v25521_v27, %v25522_v52  ;;  %v7803_v43 = vsub.f32 %v25523_v44, %v25524_v48  ;;  %v14313_v9 = vpack.c.bf16 %v7902_v59, %v7895_v11  ;;  %v7909_v55 = vand.u32 4294901760, %v7908_v49  ;;  %v25535_v48 = vld [vmem:[#allocation19_spill] sm:$0xff] }
 0x462   :  { %v7922_v16 = vsub.f32 %v25526_v3, %v25527_v8  ;;  %v7929_v7 = vsub.f32 %v25528_v60, %v25529_v28  ;;  %v7916_v27 = vand.u32 4294901760, %v7915_v18  ;;  %v25530_v40 = vand.u32 4294901760, %v21457_v54  ;;  %14312 = vmatpush3.bf16.msra.mxu1 %v14311_v62  ;;  %v25538_v60 = vld [vmem:[#allocation72_spill] sm:$0xff]  ;;  %14544 = vmatpush3.bf16.msra.mxu0 %v14543_v46 }
 0x463   :  { %v25533_v52 = vand.u32 4294901760, %v25532_v26  ;;  %v25536_v3 = vand.u32 4294901760, %v25535_v48  ;;  %v14545_v30 = vpack.c.bf16 %v21688_v29, %v21661_v13  ;;  %v14315_v11 = vpack.c.bf16 %v7790_v63, %v7783_v56  ;;  %14314 = vmatprep.subr.bf16.mxu1 %v14313_v9  ;;  %v25542_v56 = vld [vmem:[#allocation91_spill] sm:$0xff] }
 0x464   :  { %v21754_v58 = vsub.f32 %v21457_v54, %v25530_v40  ;;  %v14547_v59 = vpack.c.bf16 %v21701_v51, %v21693_v2  ;;  %v7797_v54 = vand.u32 4294901760, %v7796_v10  ;;  %v7804_v49 = vand.u32 4294901760, %v7803_v43  ;;  %v25544_v10 = vld [vmem:[#allocation51_spill] sm:$0xff] }
 0x465   :  { %v21759_v44 = vsub.f32 %v25532_v26, %v25533_v52  ;;  %v21764_v37 = vsub.f32 %v25535_v48, %v25536_v3  ;;  %v7923_v18 = vand.u32 4294901760, %v7922_v16  ;;  %v7930_v8 = vand.u32 4294901760, %v7929_v7  ;;  %v25540_v26 = vld [vmem:[#allocation83_spill] sm:$0xff]  ;;  %14546 = vmatprep.subr.bf16.mxu0 %v14545_v30 }
 0x466   :  { %25531 = vst [vmem:[#allocation39_spill] sm:$0xff] %v21754_v58  ;;  %v25539_v28 = vand.u32 4294901760, %v25538_v60  ;;  %v25541_v52 = vand.u32 4294901760, %v25540_v26  ;;  %v14317_v48 = vpack.c.bf16 %v7916_v27, %v7909_v55  ;;  %v25543_v63 = vand.u32 4294901760, %v25542_v56  ;;  %14316 = vmatpush3.bf16.msra.mxu1 %v14315_v11  ;;  %14548 = vmatpush3.bf16.msra.mxu0 %v14547_v59 }
 0x467   :  { %25534 = vst [vmem:[#allocation32_spill] sm:$0xff] %v21759_v44  ;;  %25537 = vst [vmem:[#allocation22_spill] sm:$0xff] %v21764_v37  ;;  %v25545_v43 = vand.u32 4294901760, %v25544_v10  ;;  %v25546_v16 = vand.u32 4294901760, %v21487_v45  ;;  %v25550_v46 = vand.u32 4294901760, %v21491_v19  ;;  %v14549_v55 = vpack.c.bf16 %v21726_v34, %v21721_v12 }
 0x468   :  { %v7810_v40 = vsub.f32 %v25538_v60, %v25539_v28  ;;  %v7817_v20 = vsub.f32 %v25540_v26, %v25541_v52  ;;  %v7936_v3 = vsub.f32 %v25542_v56, %v25543_v63  ;;  %v25548_v60 = vand.u32 4294901760, %v21489_v50  ;;  %v25554_v52 = vld [vmem:[#allocation13_spill] sm:$0xff]  ;;  %14318 = vmatprep.subr.bf16.mxu1 %v14317_v48 }
 0x469   :  { %v7943_v62 = vsub.f32 %v25544_v10, %v25545_v43  ;;  %v21785_v7 = vsub.f32 %v21487_v45, %v25546_v16  ;;  %v21795_v9 = vsub.f32 %v21491_v19, %v25550_v46  ;;  %v25552_v27 = vand.u32 4294901760, %v21493_v22  ;;  %v25556_v63 = vld [vmem:[#allocation17_spill] sm:$0xff]  ;;  %14550 = vmatprep.subr.bf16.mxu0 %v14549_v55 }
 0x46a   :  { %v21790_v28 = vsub.f32 %v21489_v50, %v25548_v60  ;;  %v14551_v45 = vpack.c.bf16 %v21754_v58, %v21731_v15  ;;  %v25555_v50 = vand.u32 4294901760, %v25554_v52  ;;  %v25557_v10 = vand.u32 4294901760, %v25556_v63 }
 0x46b   :  { %25547 = vst [vmem:[#allocation95_spill] sm:$0xff] %v21785_v7  ;;  %25551 = vst [vmem:[#allocation41_spill] sm:$0xff] %v21795_v9  ;;  %v21802_v26 = vsub.f32 %v21493_v22, %v25552_v27  ;;  %v14319_v30 = vpack.c.bf16 %v7804_v49, %v7797_v54  ;;  %v14321_v43 = vpack.c.bf16 %v7930_v8, %v7923_v18  ;;  %v7811_v16 = vand.u32 4294901760, %v7810_v40  ;;  %v25558_v27 = vld [vmem:[#allocation81_spill] sm:$0xff]  ;;  %v11723_v18 = vpop.f32.mrb[38].mxu0 }
 0x46c   :  { %25549 = vst [vmem:[#allocation44_spill] sm:$0xff] %v21790_v28  ;;  %v7824_v56 = vsub.f32 %v25554_v52, %v25555_v50  ;;  %v7831_v19 = vsub.f32 %v25556_v63, %v25557_v10  ;;  %v7818_v60 = vand.u32 4294901760, %v7817_v20  ;;  %v7937_v22 = vand.u32 4294901760, %v7936_v3  ;;  %v25566_v20 = vld [vmem:[#allocation68_spill] sm:$0xff]  ;;  %14552 = vmatpush3.bf16.msra.mxu0 %v14551_v45 }
 0x46d   :  { %25553 = vst [vmem:[#allocation45_spill] sm:$0xff] %v21802_v26  ;;  %v7944_v46 = vand.u32 4294901760, %v7943_v62  ;;  %v25559_v39 = vand.u32 4294901760, %v25558_v27  ;;  %v25561_v57 = vand.u32 4294901760, %v25560_v47  ;;  %v25562_v50 = vand.u32 4294901760, %v21516_v14  ;;  %14320 = vmatpush3.bf16.msra.mxu1 %v14319_v30  ;;  %v25568_v62 = vld [vmem:[#allocation62_spill] sm:$0xff] }
 0x46e   :  { %v14553_v59 = vpack.c.bf16 %v21764_v37, %v21759_v44  ;;  %v25564_v54 = vand.u32 4294901760, %v21518_v61  ;;  %v7825_v8 = vand.u32 4294901760, %v7824_v56  ;;  %v14323_v40 = vpack.c.bf16 %v7818_v60, %v7811_v16  ;;  %14322 = vmatprep.subr.bf16.mxu1 %v14321_v43  ;;  %v25571_v60 = vld [vmem:[#allocation86_spill] sm:$0xff] }
 0x46f   :  { %v7950_v25 = vsub.f32 %v25558_v27, %v25559_v39  ;;  %v7957_v52 = vsub.f32 %v25560_v47, %v25561_v57  ;;  %v21821_v11 = vsub.f32 %v21516_v14, %v25562_v50  ;;  %v14555_v39 = vpack.c.bf16 %v21790_v28, %v21785_v7  ;;  %v11724_v57 = vpop.f32.mrb[39].mxu0 }
 0x470   :  { %v21828_v49 = vsub.f32 %v21518_v61, %v25564_v54  ;;  %v7832_v47 = vand.u32 4294901760, %v7831_v19  ;;  %v14557_v14 = vpack.c.bf16 %v21802_v26, %v21795_v9  ;;  %v25567_v48 = vand.u32 4294901760, %v25566_v20  ;;  %14554 = vmatprep.subr.bf16.mxu0 %v14553_v59  ;;  %v25573_v54 = vld [vmem:[#allocation73_spill] sm:$0xff] }
 0x471   :  { %25563 = vst [vmem:[#allocation14_spill] sm:$0xff] %v21821_v11  ;;  %v25569_v55 = vand.u32 4294901760, %v25568_v62  ;;  %v21840_v63 = vadd.f32 %v11724_v57, %v11723_v18  ;;  %v14325_v56 = vpack.c.bf16 %v7944_v46, %v7937_v22  ;;  %v7951_v10 = vand.u32 4294901760, %v7950_v25  ;;  %14324 = vmatpush3.bf16.msra.mxu1 %v14323_v40  ;;  %v25575_v46 = vld [vmem:[#allocation74_spill] sm:$0xff]  ;;  %14556 = vmatpush3.bf16.msra.mxu0 %v14555_v39  ;;  %v11478_v40 = vpop.f32.mrb[38].mxu1 }
 0x472   :  { %25565 = vst [vmem:[#allocation25_spill] sm:$0xff] %v21828_v49  ;;  %v7838_v3 = vsub.f32 %v25566_v20, %v25567_v48  ;;  %v7958_v19 = vand.u32 4294901760, %v7957_v52  ;;  %v23622_v30 = vand.u32 4294901760, %v21539_v0  ;;  %v23619_v16 = vand.u32 4294901760, %v21544_v31  ;;  %v25577_v57 = vld [vmem:[#allocation78_spill] sm:$0xff]  ;;  %14558 = vmatprep.subr.bf16.mxu0 %v14557_v14 }
 0x473   :  { %v7845_v61 = vsub.f32 %v25568_v62, %v25569_v55  ;;  %25570 = vst [vmem:[#allocation19_spill] sm:$0xff] %v21840_v63  ;;  %v25572_v27 = vand.u32 4294901760, %v25571_v60  ;;  %v25574_v20 = vand.u32 4294901760, %v25573_v54  ;;  %v14327_v18 = vpack.c.bf16 %v7832_v47, %v7825_v8  ;;  %14326 = vmatprep.subr.bf16.mxu1 %v14325_v56  ;;  %v25603_v63 = vld [vmem:[#allocation31_spill] sm:$0xff] }
 0x474   :  { %v14559_v45 = vpack.c.bf16 %v21828_v49, %v21821_v11  ;;  %v23616_v25 = vand.u32 4294901760, %v21556_v24  ;;  %v7839_v43 = vand.u32 4294901760, %v7838_v3  ;;  %v25576_v52 = vand.u32 4294901760, %v25575_v46 }
 0x475   :  { %v7964_v50 = vsub.f32 %v25571_v60, %v25572_v27  ;;  %v7971_v48 = vsub.f32 %v25573_v54, %v25574_v20  ;;  %v7846_v22 = vand.u32 4294901760, %v7845_v61  ;;  %v25578_v62 = vand.u32 4294901760, %v25577_v57  ;;  %v11479_v20 = vpop.f32.mrb[39].mxu1  ;;  %14328 = vmatpush3.bf16.msra.mxu1 %v14327_v18 }
 0x476   :  { %v7852_v59 = vsub.f32 %v25575_v46, %v25576_v52  ;;  %v14329_v60 = vpack.c.bf16 %v7958_v19, %v7951_v10  ;;  %v23615_v8 = vand.u32 4294901760, %v21561_v21  ;;  %v23610_v47 = vand.u32 4294901760, %v21566_v5  ;;  %14560 = vmatpush3.bf16.msra.mxu0 %v14559_v45 }
 0x477   :  { %v7859_v55 = vsub.f32 %v25577_v57, %v25578_v62  ;;  %v23609_v27 = vand.u32 4294901760, %v21571_v23  ;;  %v14593_v3 = vpack.c.bf16 %v23619_v16, %v23622_v30  ;;  %v7965_v61 = vand.u32 4294901760, %v7964_v50  ;;  %v25580_v62 = vld [vmem:[#allocation48_spill] sm:$0xff]  ;;  %v25599_v30 = vld [vmem:[#allocation55_spill] sm:$0xff] }
 0x478   :  { %v7972_v54 = vand.u32 4294901760, %v7971_v48  ;;  %v11480_v46 = vadd.f32 %v11479_v20, %v11478_v40  ;;  %v14331_v39 = vpack.c.bf16 %v7846_v22, %v7839_v43  ;;  %v7853_v56 = vand.u32 4294901760, %v7852_v59  ;;  %14330 = vmatprep.subr.bf16.mxu1 %v14329_v60  ;;  %v25579_v59 = vld [vmem:[#allocation26_spill] sm:$0xff] }
 0x479   :  { %v7860_v10 = vand.u32 4294901760, %v7859_v55  ;;  %v14595_v14 = vpack.c.bf16 %v23615_v8, %v23616_v25  ;;  %v14597_v19 = vpack.c.bf16 %v23609_v27, %v23610_v47  ;;  %v23608_v50 = vand.u32 4294901760, %v21576_v32  ;;  %14594 = vmatprep.subr.bf16.mxu0 %v14593_v3  ;;  %8977 = vmatmul.mubr.f32.vlgmr.msra.gmra.mrb[52].mxu0 %v21466_v1  ;;  %v25592_v47 = vld [vmem:[#allocation43_spill] sm:$0xff]  ;;  %v25597_v8 = vld [vmem:[#allocation77_spill] sm:$0xff] }
 0x47a   :  { %v23607_v48 = vand.u32 4294901760, %v21581_v4  ;;  %v5911_v18 = vadd.f32 %v11480_v46, %v21676_v41  ;;  %v14333_v43 = vpack.c.bf16 %v7972_v54, %v7965_v61  ;;  %v23606_v45 = vand.u32 4294901760, %v21601_v35  ;;  %14332 = vmatpush3.bf16.msra.mxu1 %v14331_v39  ;;  %9251 = vmatprep.mubr.f32.mxu0 %v25580_v62  ;;  %v25581_v54 = vld [vmem:[#allocation63_spill] sm:$0xff] }
 0x47b   :  { %v23601_v22 = vand.u32 4294901760, %v21606_v42  ;;  %v14335_v52 = vpack.c.bf16 %v7860_v10, %v7853_v56  ;;  %14596 = vmatpush3.bf16.msra.mxu0 %v14595_v14  ;;  %v23600_v55 = vand.u32 4294901760, %v21611_v38  ;;  %v23595_v60 = vand.u32 4294901760, %v21619_v17  ;;  %v25598_v25 = vld [vmem:[#allocation79_spill] sm:$0xff] }
 0x47c   :  { %v21881_v57 = vadd.f32 %v25579_v59, %v5911_v18  ;;  %v14599_v41 = vpack.c.bf16 %v23607_v48, %v23608_v50  ;;  %14334 = vmatprep.subr.bf16.mxu1 %v14333_v43  ;;  %14598 = vmatprep.subr.bf16.mxu0 %v14597_v19  ;;  %v23594_v3 = vand.u32 4294901760, %v21624_v6  ;;  %v23593_v61 = vand.u32 4294901760, %v21635_v33  ;;  %v25582_v19 = vld [vmem:[#allocation46_spill] sm:$0xff]  ;;  %v25583_v18 = vld [vmem:[#allocation29_spill] sm:$0xff]  ;;  %v11793_v50 = vpop.f32.mrb[40].mxu0  ;;  %v741_v62 = vld [vmem:[#allocation2 + $0xa78] sm:$0xff] }
 0x47d   :  { %v14601_v40 = vpack.c.bf16 %v23601_v22, %v23606_v45  ;;  %v14603_v20 = vpack.c.bf16 %v23595_v60, %v23600_v55  ;;  %v23597_v46 = vand.u32 4294901760, %v21647_v36  ;;  %v23596_v39 = vand.u32 4294901760, %v21656_v53  ;;  %v25584_v43 = vld [vmem:[#allocation69_spill] sm:$0xff]  ;;  %v25588_v60 = vld [vmem:[#allocation71_spill] sm:$0xff]  ;;  %v25589_v55 = vld [vmem:[#allocation60_spill] sm:$0xff]  ;;  %v11794_v27 = vpop.f32.mrb[41].mxu0 }
 0x47e   :  { %14336 = vmatpush3.bf16.msra.mxu1 %v14335_v52  ;;  %v14605_v56 = vpack.c.bf16 %v23593_v61, %v23594_v3  ;;  %v23599_v10 = vand.u32 4294901760, %v21661_v13  ;;  %v23598_v14 = vand.u32 4294901760, %v21688_v29  ;;  %v25585_v52 = vand.u32 4294901760, %v25584_v43  ;;  %v25586_v59 = vld [vmem:[#allocation61_spill] sm:$0xff]  ;;  %v25590_v22 = vld [vmem:[#allocation52_spill] sm:$0xff] }
 0x47f   :  { %14600 = vmatpush3.bf16.msra.mxu0 %v14599_v41  ;;  %14370 = vmatprep.subr.bf16.mxu1 %v25581_v54  ;;  %v14607_v41 = vpack.c.bf16 %v23596_v39, %v23597_v46  ;;  %v23602_v61 = vand.u32 4294901760, %v21701_v51  ;;  %v23605_v43 = vand.u32 4294901760, %v21721_v12  ;;  %v23611_v46 = vand.u32 4294901760, %v21754_v58  ;;  %v25591_v45 = vld [vmem:[#allocation53_spill] sm:$0xff]  ;;  %v25620_v12 = vld [vmem:[#allocation76_spill] sm:$0xff] }
 0x480   :  { %14602 = vmatprep.subr.bf16.mxu0 %v14601_v40  ;;  %v23603_v40 = vand.u32 4294901760, %v21693_v2  ;;  %v14609_v3 = vpack.c.bf16 %v23598_v14, %v23599_v10  ;;  %v23614_v10 = vand.u32 4294901760, %v21759_v44  ;;  %v109_v48 = vadd.s32 2560, %v25591_v45 }
 0x481   :  { %7977 = vmatmul.mubr.f32.vlgmr.msra.gmra.mrb[52].mxu1 %v25582_v19  ;;  %v23626_v45 = vand.u32 4294901760, %v21828_v49  ;;  %v11548_v16 = vpop.f32.mrb[40].mxu1  ;;  %v25604_v49 = vld [vmem:[#allocation59_spill] sm:$0xff] }
 0x482   :  { %14372 = vmatpush3.bf16.msra.mxu1 %v25583_v18  ;;  %8219 = vmatprep.mubr.f32.mxu1 %v25585_v52  ;;  %v25587_v52 = vld [vmem:[#allocation70_spill] sm:$0xff]  ;;  %v14611_v39 = vpack.c.bf16 %v23602_v61, %v23603_v40  ;;  %v23617_v40 = vand.u32 4294901760, %v21790_v28  ;;  %vm204_vm15 = vcmp.eq.s32.totalorder %v109_v48, %v25599_v30  ;;  %vm296_vm2 = vcmp.eq.s32.totalorder %v109_v48, %v25604_v49 }
 0x483   :  { %14604 = vmatpush3.bf16.msra.mxu0 %v14603_v20  ;;  %14374 = vmatprep.subr.bf16.mxu1 %v25586_v59  ;;  %v23604_v20 = vand.u32 4294901760, %v21726_v34  ;;  %v735_v34 = vld [vmem:[#allocation2 + $0xa48] sm:$0xff]  ;;  %v25621_v49 = vand.u32 4294901760, %v25620_v12 }
 0x484   :  { %14606 = vmatprep.subr.bf16.mxu0 %v14605_v56  ;;  %v23612_v56 = vand.u32 4294901760, %v21731_v15  ;;  %v734_v15 = vld [vmem:[#allocation2 + $0xa40] sm:$0xff] }
 0x485   :  { %v14613_v14 = vpack.c.bf16 %v23604_v20, %v23605_v43  ;;  %v23621_v43 = vand.u32 4294901760, %v21795_v9  ;;  %v21990_v9 = vld [vmem:[#allocation2 + $0xa20] sm:$0xff]  ;;  %v9387_v12 = vand.u32 4294901760, %v734_v15 }
 0x486   :  { %14376 = vmatpush3.bf16.msra.mxu1 %v25587_v52  ;;  %v14615_v61 = vpack.c.bf16 %v23611_v46, %v23612_v56  ;;  %v25593_v46 = vld [vmem:[#allocation56_spill] sm:$0xff]  ;;  %v21957_v56 = vadd.f32 %v11794_v27, %v11793_v50  ;;  %v727_v50 = vld [vmem:[#allocation2 + $0xa08] sm:$0xff]  ;;  %v9375_v1 = vand.u32 4294901760, %v21990_v9 }
 0x487   :  { %14608 = vmatpush3.bf16.msra.mxu0 %v14607_v41  ;;  %14378 = vmatprep.subr.bf16.mxu1 %v25588_v60  ;;  %v23613_v41 = vand.u32 4294901760, %v21764_v37  ;;  %vm158_vm12 = vcmp.eq.s32.totalorder %v109_v48, %v25593_v46  ;;  %v726_v27 = vld [vmem:[#allocation2 + $0xa00] sm:$0xff]  ;;  %v25615_v37 = vmov 0.0|0.0  }
 0x488   :  { %14610 = vmatprep.subr.bf16.mxu0 %v14609_v3  ;;  %v23618_v3 = vand.u32 4294901760, %v21785_v7  ;;  %25594 = vst [vmem:[#allocation72_spill] sm:$0xff] %v21957_v56  ;;  %v22075_v19 = vsub.f32 %v21990_v9, %v9375_v1 }
 0x489   :  { %v14617_v20 = vpack.c.bf16 %v23613_v41, %v23614_v10  ;;  %v23627_v10 = vand.u32 4294901760, %v21821_v11 }
 0x48a   :  { %14380 = vmatpush3.bf16.msra.mxu1 %v25589_v55  ;;  %v14619_v41 = vpack.c.bf16 %v23617_v40, %v23618_v3  ;;  %v9363_v40 = vand.u32 4294901760, %v726_v27  ;;  %v9366_v3 = vand.u32 4294901760, %v727_v50 }
 0x48b   :  { %14612 = vmatpush3.bf16.msra.mxu0 %v14611_v39  ;;  %14382 = vmatprep.subr.bf16.mxu1 %v25590_v22  ;;  %v23620_v39 = vand.u32 4294901760, %v21802_v26  ;;  %v23634_v26 = vmov 0.0|0.0  }
 0x48c   :  { %14614 = vmatprep.subr.bf16.mxu0 %v14613_v14  ;;  %v25595_v14 = vld [vmem:[#allocation33_spill] sm:$0xff]  ;;  %v22028_v51 = vsub.f32 %v726_v27, %v9363_v40  ;;  %v22036_v2 = vsub.f32 %v727_v50, %v9366_v3  ;;  %v737_v27 = vld [vmem:[#allocation2 + $0xa58] sm:$0xff] }
 0x48d   :  { %v14621_v46 = vpack.c.bf16 %v23620_v39, %v23621_v43  ;;  %v728_v39 = vld [vmem:[#allocation2 + $0xa10] sm:$0xff]  ;;  %v729_v43 = vld [vmem:[#allocation2 + $0xa18] sm:$0xff] }
 0x48e   :  { %14384 = vmatpush3.bf16.msra.mxu1 %v25592_v47  ;;  %v9372_v11 = vand.u32 4294901760, %v729_v43  ;;  %25622 = vst [vmem:[#allocation17_spill] sm:$0xff] %v22028_v51  ;;  %25625 = vst [vmem:[#allocation42_spill] sm:$0xff] %v22036_v2 }
 0x48f   :  { %14616 = vmatpush3.bf16.msra.mxu0 %v14615_v61  ;;  %14386 = vmatprep.subr.bf16.mxu1 %v25595_v14  ;;  %v25596_v61 = vld [vmem:[#allocation54_spill] sm:$0xff] }
 0x490   :  { %14618 = vmatprep.subr.bf16.mxu0 %v14617_v20  ;;  %vm133_vm13 = vcmp.eq.s32.totalorder %v109_v48, %v25596_v61  ;;  %v14623_v20 = vpack.c.bf16 %v23626_v45, %v23627_v10  ;;  %v11549_v61 = vpop.f32.mrb[41].mxu1  ;;  %v25605_v45 = vld [vmem:[#allocation80_spill] sm:$0xff]  ;;  %v9369_v10 = vand.u32 4294901760, %v728_v39 }
 0x491   :  { %vm179_vm14 = vmor %vm133_vm13, %vm158_vm12  ;;  %v11550_v56 = vadd.f32 %v11549_v61, %v11548_v16  ;;  %v25609_v16 = vld [vmem:[#allocation58_spill] sm:$0xff]  ;;  %v25611_v61 = vld [vmem:[#allocation67_spill] sm:$0xff] }
 0x492   :  { %14388 = vmatpush3.bf16.msra.mxu1 %v25597_v8  ;;  %vm21978_vm0 = vmor %vm179_vm14, %vm204_vm15  ;;  %vm342_vm5 = vcmp.eq.s32.totalorder %v109_v48, %v25609_v16  ;;  %v22008_v28 = vpack.c.bf16 %v9372_v11, %v9369_v10  ;;  %v733_v16 = vld [vmem:[#allocation2 + $0xa38] sm:$0xff]  ;;  %v22042_v13 = vsub.f32 %v728_v39, %v9369_v10 }
 0x493   :  { %14620 = vmatpush3.bf16.msra.mxu0 %v14619_v41  ;;  %14390 = vmatprep.subr.bf16.mxu1 %v25598_v25  ;;  %v25602_v41 = vld [vmem:[#allocation57_spill] sm:$0xff]  ;;  %v6255_v30 = vadd.f32 %v11550_v56, %v21881_v57  ;;  %v9384_v44 = vand.u32 4294901760, %v733_v16 }
 0x494   :  { %14622 = vmatprep.subr.bf16.mxu0 %v14621_v46  ;;  %vm250_vm1 = vcmp.eq.s32.totalorder %v109_v48, %v25602_v41  ;;  %v21986_v46 = vpack.c.bf16 %v9366_v3, %v9363_v40  ;;  %v21992_v41 = vld [vmem:[#allocation2 + $0xa28] sm:$0xff]  ;;  %25614 = vst [vmem:[#allocation91_spill] sm:$0xff] %v22008_v28  ;;  %v732_v48 = vld [vmem:[#allocation2 + $0xa30] sm:$0xff]  ;;  %25627 = vst [vmem:[#allocation62_spill] sm:$0xff] %v22042_v13  ;;  %v9396_v3 = vand.u32 4294901760, %v737_v27 }
 0x495   :  { %vm271_vm3 = vmor %vm21978_vm0, %vm250_vm1  ;;  %v25612_v57 = vld [vmem:[#allocation85_spill] sm:$0xff]  ;;  %v9378_v7 = vand.u32 4294901760, %v21992_v41  ;;  %v736_v40 = vld [vmem:[#allocation2 + $0xa50] sm:$0xff]  ;;  %v22089_v36 = vsub.f32 %v733_v16, %v9384_v44 }
 0x496   :  { %14392 = vmatpush3.bf16.msra.mxu1 %v25603_v63  ;;  %25606 = vst [vmem:[#allocation83_spill] sm:$0xff] %v21986_v46  ;;  %vm21996_vm4 = vmor %vm271_vm3, %vm296_vm2  ;;  %v22004_v56 = vadd.f32 %v25612_v57, %v6255_v30  ;;  %v25617_v30 = vld [vmem:[#allocation16_spill] sm:$0xff] }
 0x497   :  { %14624 = vmatpush3.bf16.msra.mxu0 %v14623_v20  ;;  %14394 = vmatprep.subr.bf16.mxu1 %v25605_v45  ;;  %v25610_v20 = vld [vmem:[#allocation20_spill] sm:$0xff]  ;;  %vm363_vm7 = vmor %vm21996_vm4, %vm342_vm5  ;;  %v22020_v57 = vpack.c.bf16 %v9378_v7, %v9375_v1 }
 0x498   :  { %14657 = vmatprep.subr.bf16.mxu0 %v23634_v26  ;;  %v25613_v26 = vld [vmem:[#allocation15_spill] sm:$0xff] }
 0x499   :  { %25618 = vst [vmem:[#allocation51_spill] sm:$0xff] %v22020_v57 }
 0x49a   :  { %9253 = vmatmul.mubr.f32.vlgmr.msra.gmra.mrb[54].mxu0 %v25610_v20  ;;  %14396 = vmatpush3.bf16.msra.mxu1 %v25611_v61  ;;  %v25616_v20 = vmov 0.0  }
 0x49b   :  { %14659 = vmatpush3.bf16.msra.mxu0 %v21986_v46  ;;  %14398 = vmatprep.subr.bf16.mxu1 %v25613_v26  ;;  %v9381_v46 = vand.u32 4294901760, %v732_v48  ;;  %v22023_v58 = vsel %vm363_vm7, 1.0, %v25616_v20 }
 0x49c   :  { %14660 = vmatprep.subr.bf16.mxu0 %v25615_v37  ;;  %12489 = vmatprep.mubr.msk.f32.mxu0 %vm15013_vm6, %v25616_v20  ;;  %25619 = vst [vmem:[#allocation13_spill] sm:$0xff] %v22023_v58 }
 0x49d   :  { %v22040_v29 = vpack.c.bf16 %v9384_v44, %v9381_v46 }
 0x49e   :  { %14400 = vmatpush3.bf16.msra.mxu1 %v25617_v30 }
 0x49f   :  { %14662 = vmatpush3.bf16.msra.mxu0 %v22008_v28  ;;  %14434 = vmatprep.subr.bf16.mxu1 %v25581_v54  ;;  %v25623_v28 = vld [vmem:[#allocation65_spill] sm:$0xff]  ;;  %v22034_v54 = vsub.f32 %v22023_v58, %v22023_v58  ;;  %25626 = vst [vmem:[#allocation68_spill] sm:$0xff] %v22040_v29  ;;  %v740_v58 = vld [vmem:[#allocation2 + $0xa70] sm:$0xff] }
 0x4a0   :  { %14663 = vmatprep.subr.bf16.mxu0 %v25615_v37  ;;  %v9405_v1 = vand.u32 4294901760, %v740_v58 }
 0x4a1   :  { %8223 = vmatmul.mubr.f32.vlgmr.msra.gmra.mrb[54].mxu1 %v25621_v49  ;;  %25624 = vst [vmem:[#allocation81_spill] sm:$0xff] %v22034_v54  ;;  %v9390_v49 = vand.u32 4294901760, %v735_v34 }
 0x4a2   :  { %14436 = vmatpush3.bf16.msra.mxu1 %v25583_v18  ;;  %8493 = vmatprep.mubr.f32.mxu1 %v25623_v28  ;;  %v22044_v18 = vsub.f32 %v729_v43, %v9372_v11  ;;  %v9393_v28 = vand.u32 4294901760, %v736_v40  ;;  %v738_v11 = vld [vmem:[#allocation2 + $0xa60] sm:$0xff]  ;;  %v739_v43 = vld [vmem:[#allocation2 + $0xa68] sm:$0xff] }
 0x4a3   :  { %14665 = vmatpush3.bf16.msra.mxu0 %v22020_v57  ;;  %14438 = vmatprep.subr.bf16.mxu1 %v25586_v59  ;;  %v22051_v59 = vpack.c.bf16 %v9390_v49, %v9387_v12  ;;  %v9399_v10 = vand.u32 4294901760, %v738_v11  ;;  %v9402_v57 = vand.u32 4294901760, %v739_v43  ;;  %v22093_v9 = vsub.f32 %v735_v34, %v9390_v49 }
 0x4a4   :  { %14666 = vmatprep.subr.bf16.mxu0 %v25615_v37  ;;  %v22059_v50 = vpack.c.bf16 %v9396_v3, %v9393_v28  ;;  %v22113_v49 = vsub.f32 %v736_v40, %v9393_v28  ;;  %v25637_v28 = vand.u32 4294901760, %v21561_v21 }
 0x4a5   :  { %25628 = vst [vmem:[#allocation86_spill] sm:$0xff] %v22051_v59  ;;  %v22106_v34 = vpack.c.bf16 %v9402_v57, %v9399_v10 }
 0x4a6   :  { %14440 = vmatpush3.bf16.msra.mxu1 %v25587_v52  ;;  %v25630_v52 = vand.u32 4294901760, %v22028_v51 }
 0x4a7   :  { %14668 = vmatpush3.bf16.msra.mxu0 %v22040_v29  ;;  %14442 = vmatprep.subr.bf16.mxu1 %v25588_v60  ;;  %v25629_v60 = vand.u32 4294901760, %v22034_v54 }
 0x4a8   :  { %14669 = vmatprep.subr.bf16.mxu0 %v25615_v37  ;;  %v9457_v39 = vsub.f32 %v22028_v51, %v25630_v52  ;;  %v22087_v51 = vsub.f32 %v732_v48, %v9381_v46 }
 0x4a9   :  { %v22064_v29 = vsub.f32 %v22034_v54, %v25629_v60  ;;  %v22078_v60 = vsub.f32 %v21992_v41, %v9378_v7  ;;  %v25633_v54 = vand.u32 4294901760, %v22044_v18  ;;  %v11863_v7 = vpop.f32.mrb[42].mxu0 }
 0x4aa   :  { %14444 = vmatpush3.bf16.msra.mxu1 %v25589_v55  ;;  %v25631_v55 = vand.u32 4294901760, %v22036_v2  ;;  %v11864_v41 = vpop.f32.mrb[43].mxu0 }
 0x4ab   :  { %14671 = vmatpush3.bf16.msra.mxu0 %v22051_v59  ;;  %14446 = vmatprep.subr.bf16.mxu1 %v25590_v22  ;;  %v25632_v22 = vand.u32 4294901760, %v22042_v13  ;;  %v9478_v52 = vsub.f32 %v22044_v18, %v25633_v54  ;;  %v25635_v54 = vand.u32 4294901760, %v21544_v31  ;;  %v22102_v44 = vadd.f32 %v11864_v41, %v11863_v7 }
 0x4ac   :  { %v9464_v53 = vsub.f32 %v22036_v2, %v25631_v55  ;;  %14672 = vmatprep.subr.bf16.mxu0 %v25615_v37  ;;  %v22091_v55 = vsub.f32 %v734_v15, %v9387_v12  ;;  %v9408_v2 = vand.u32 4294901760, %v741_v62  ;;  %v9458_v15 = vand.u32 4294901760, %v9457_v39 }
 0x4ad   :  { %v9471_v59 = vsub.f32 %v22042_v13, %v25632_v22  ;;  %v25634_v22 = vand.u32 4294901760, %v21539_v0  ;;  %v8735_v46 = vsub.f32 %v21544_v31, %v25635_v54  ;;  %v9479_v16 = vand.u32 4294901760, %v9478_v52 }
 0x4ae   :  { %14448 = vmatpush3.bf16.msra.mxu1 %v25592_v47  ;;  %v9465_v47 = vand.u32 4294901760, %v9464_v53  ;;  %v9484_v31 = vand.u32 4294901760, %v22075_v19  ;;  %v22115_v7 = vsub.f32 %v737_v27, %v9396_v3  ;;  %v22117_v41 = vsub.f32 %v738_v11, %v9399_v10 }
 0x4af   :  { %v8728_v13 = vsub.f32 %v21539_v0, %v25634_v22  ;;  %14674 = vmatpush3.bf16.msra.mxu0 %v22059_v50  ;;  %14450 = vmatprep.subr.bf16.mxu1 %v25595_v14  ;;  %v9472_v48 = vand.u32 4294901760, %v9471_v59  ;;  %v25636_v0 = vand.u32 4294901760, %v21556_v24  ;;  %v9491_v14 = vand.u32 4294901760, %v22078_v60 }
 0x4b0   :  { %14675 = vmatprep.subr.bf16.mxu0 %v25615_v37  ;;  %v22121_v53 = vsub.f32 %v739_v43, %v9402_v57  ;;  %v22123_v59 = vpack.c.bf16 %v9408_v2, %v9405_v1  ;;  %v8736_v52 = vand.u32 4294901760, %v8735_v46  ;;  %v22129_v40 = vsub.f32 %v741_v62, %v9408_v2  ;;  %v11618_v57 = vpop.f32.mrb[42].mxu1 }
 0x4b1   :  { %v8616_v12 = vsub.f32 %v21556_v24, %v25636_v0  ;;  %v8729_v39 = vand.u32 4294901760, %v8728_v13  ;;  %v22127_v24 = vsub.f32 %v740_v58, %v9405_v1  ;;  %v9447_v27 = vand.u32 4294901760, %v22064_v29  ;;  %v11619_v58 = vpop.f32.mrb[43].mxu1 }
 0x4b2   :  { %14452 = vmatpush3.bf16.msra.mxu1 %v25597_v8  ;;  %v8623_v8 = vsub.f32 %v21561_v21, %v25637_v28  ;;  %v14682_v3 = vpack.c.bf16 %v9465_v47, %v9458_v15  ;;  %v14685_v13 = vpack.c.bf16 %v9479_v16, %v9472_v48  ;;  %v9492_v2 = vsub.f32 %v22078_v60, %v9491_v14 }
 0x4b3   :  { %14677 = vmatpush3.bf16.msra.mxu0 %v22106_v34  ;;  %14454 = vmatprep.subr.bf16.mxu1 %v25598_v25  ;;  %v8617_v10 = vand.u32 4294901760, %v8616_v12  ;;  %v9485_v25 = vsub.f32 %v22075_v19, %v9484_v31  ;;  %v25638_v29 = vand.u32 4294901760, %v21566_v5  ;;  %v9498_v21 = vand.u32 4294901760, %v22087_v51 }
 0x4b4   :  { %14678 = vmatprep.subr.bf16.mxu0 %v25615_v37  ;;  %v9505_v11 = vand.u32 4294901760, %v22089_v36  ;;  %v11620_v43 = vadd.f32 %v11619_v58, %v11618_v57  ;;  %v14497_v1 = vpack.c.bf16 %v8736_v52, %v8729_v39  ;;  %v25639_v22 = vand.u32 4294901760, %v21571_v23  ;;  %v25646_v58 = vld [vmem:[#allocation92_spill] sm:$0xff] }
 0x4b5   :  { %v8742_v62 = vsub.f32 %v21566_v5, %v25638_v29  ;;  %v25640_v46 = vand.u32 4294901760, %v21576_v32  ;;  %v8624_v5 = vand.u32 4294901760, %v8623_v8  ;;  %v25641_v47 = vand.u32 4294901760, %v21581_v4 }
 0x4b6   :  { %14456 = vmatpush3.bf16.msra.mxu1 %v25603_v63  ;;  %v8749_v54 = vsub.f32 %v21571_v23, %v25639_v22  ;;  %v25642_v63 = vand.u32 4294901760, %v21601_v35  ;;  %v25643_v0 = vand.u32 4294901760, %v21606_v42  ;;  %v6501_v12 = vadd.f32 %v11620_v43, %v22004_v56 }
 0x4b7   :  { %v8630_v15 = vsub.f32 %v21576_v32, %v25640_v46  ;;  %14680 = vmatpush3.bf16.msra.mxu0 %v22123_v59  ;;  %14458 = vmatprep.subr.bf16.mxu1 %v25605_v45  ;;  %v8637_v48 = vsub.f32 %v21581_v4, %v25641_v47  ;;  %v9486_v32 = vand.u32 4294901760, %v9485_v25  ;;  %v9512_v45 = vand.u32 4294901760, %v22091_v55 }
 0x4b8   :  { %v8756_v16 = vsub.f32 %v21601_v35, %v25642_v63  ;;  %v8763_v23 = vsub.f32 %v21606_v42, %v25643_v0  ;;  %14681 = vmatprep.subr.bf16.mxu0 %v25615_v37  ;;  %v9519_v39 = vand.u32 4294901760, %v22093_v9  ;;  %v9499_v4 = vsub.f32 %v22087_v51, %v9498_v21 }
 0x4b9   :  { %v9506_v35 = vsub.f32 %v22089_v36, %v9505_v11  ;;  %v25644_v52 = vand.u32 4294901760, %v21611_v38  ;;  %v25645_v56 = vand.u32 4294901760, %v21619_v17  ;;  %v9493_v8 = vand.u32 4294901760, %v9492_v2 }
 0x4ba   :  { %12490 = vmatmul.mubr.f32.vlgmr.msra.gmra.mrb[56].mxu0 %v9447_v27  ;;  %14460 = vmatpush3.bf16.msra.mxu1 %v25611_v61  ;;  %v8743_v57 = vand.u32 4294901760, %v8742_v62  ;;  %v8750_v25 = vand.u32 4294901760, %v8749_v54  ;;  %v22183_v29 = vadd.f32 %v25646_v58, %v6501_v12  ;;  %v8631_v43 = vand.u32 4294901760, %v8630_v15 }
 0x4bb   :  { %v8644_v42 = vsub.f32 %v21611_v38, %v25644_v52  ;;  %v8651_v28 = vsub.f32 %v21619_v17, %v25645_v56  ;;  %14683 = vmatpush3.bf16.msra.mxu0 %v14682_v3  ;;  %14462 = vmatprep.subr.bf16.mxu1 %v25613_v26  ;;  %v8638_v22 = vand.u32 4294901760, %v8637_v48  ;;  %v8757_v46 = vand.u32 4294901760, %v8756_v16 }
 0x4bc   :  { %v8764_v38 = vand.u32 4294901760, %v8763_v23  ;;  %14684 = vmatprep.subr.bf16.mxu0 %v25615_v37  ;;  %v14499_v47 = vpack.c.bf16 %v8624_v5, %v8617_v10  ;;  %v9513_v17 = vsub.f32 %v22091_v55, %v9512_v45  ;;  %v9520_v61 = vsub.f32 %v22093_v9, %v9519_v39  ;;  %12524 = vmatprep.mubr.msk.f32.mxu0 %vm15013_vm6, %v25616_v20 }
 0x4bd   :  { %v9500_v27 = vand.u32 4294901760, %v9499_v4  ;;  %v9507_v26 = vand.u32 4294901760, %v9506_v35  ;;  %v8645_v3 = vand.u32 4294901760, %v8644_v42  ;;  %v8652_v2 = vand.u32 4294901760, %v8651_v28 }
 0x4be   :  { %14464 = vmatpush3.bf16.msra.mxu1 %v25617_v30  ;;  %v14688_v62 = vpack.c.bf16 %v9493_v8, %v9486_v32  ;;  %v25647_v10 = vand.u32 4294901760, %v21624_v6  ;;  %v25648_v15 = vand.u32 4294901760, %v21635_v33  ;;  %v9526_v48 = vand.u32 4294901760, %v22113_v49  ;;  %v25649_v32 = vld [vmem:[#allocation47_spill] sm:$0xff]  ;;  %v25654_v8 = vld [vmem:[#allocation48_spill] sm:$0xff] }
 0x4bf   :  { %14686 = vmatpush3.bf16.msra.mxu0 %v14685_v13  ;;  %14498 = vmatprep.subr.bf16.mxu1 %v14497_v1  ;;  %v14501_v63 = vpack.c.bf16 %v8750_v25, %v8743_v57  ;;  %v14503_v16 = vpack.c.bf16 %v8638_v22, %v8631_v43  ;;  %v14505_v0 = vpack.c.bf16 %v8764_v38, %v8757_v46  ;;  %v9533_v23 = vand.u32 4294901760, %v22115_v7  ;;  %v25652_v1 = vld [vmem:[#allocation87_spill] sm:$0xff]  ;;  %v25655_v43 = vld [vmem:[#allocation36_spill] sm:$0xff] }
 0x4c0   :  { %v8770_v54 = vsub.f32 %v21624_v6, %v25647_v10  ;;  %v8777_v5 = vsub.f32 %v21635_v33, %v25648_v15  ;;  %14687 = vmatprep.subr.bf16.mxu0 %v25615_v37  ;;  %v9514_v30 = vand.u32 4294901760, %v9513_v17  ;;  %v9521_v12 = vand.u32 4294901760, %v9520_v61  ;;  %v25651_v33 = vld [vmem:[#allocation46_spill] sm:$0xff]  ;;  %v25657_v17 = vld [vmem:[#allocation88_spill] sm:$0xff] }
 0x4c1   :  { %v25650_v4 = vand.u32 4294901760, %v25649_v32  ;;  %v9540_v35 = vand.u32 4294901760, %v22117_v41  ;;  %8495 = vmatmul.mubr.f32.vlgmr.msra.gmra.mrb[56].mxu1 %v25651_v33  ;;  %v14691_v52 = vpack.c.bf16 %v9507_v26, %v9500_v27  ;;  %v14507_v13 = vpack.c.bf16 %v8652_v2, %v8645_v3  ;;  %v25659_v27 = vld [vmem:[#allocation89_spill] sm:$0xff] }
 0x4c2   :  { %v25653_v42 = vand.u32 4294901760, %v25652_v1  ;;  %v9547_v28 = vand.u32 4294901760, %v22121_v53  ;;  %14500 = vmatpush3.bf16.msra.mxu1 %v14499_v47  ;;  %8837 = vmatprep.mubr.f32.mxu1 %v25654_v8  ;;  %v8771_v57 = vand.u32 4294901760, %v8770_v54  ;;  %v8778_v25 = vand.u32 4294901760, %v8777_v5  ;;  %v25661_v54 = vld [vmem:[#allocation35_spill] sm:$0xff] }
 0x4c3   :  { %v8658_v6 = vsub.f32 %v25649_v32, %v25650_v4  ;;  %v9527_v58 = vsub.f32 %v22113_v49, %v9526_v48  ;;  %v25656_v22 = vand.u32 4294901760, %v25655_v43  ;;  %14689 = vmatpush3.bf16.msra.mxu0 %v14688_v62  ;;  %14502 = vmatprep.subr.bf16.mxu1 %v14501_v63  ;;  %v9534_v38 = vsub.f32 %v22115_v7, %v9533_v23  ;;  %v25663_v32 = vld [vmem:[#allocation23_spill] sm:$0xff] }
 0x4c4   :  { %v8665_v56 = vsub.f32 %v25652_v1, %v25653_v42  ;;  %v25658_v47 = vand.u32 4294901760, %v25657_v17  ;;  %v25660_v26 = vand.u32 4294901760, %v25659_v27  ;;  %14690 = vmatprep.subr.bf16.mxu0 %v25615_v37  ;;  %v14694_v2 = vpack.c.bf16 %v9521_v12, %v9514_v30  ;;  %v25665_v1 = vld [vmem:[#allocation38_spill] sm:$0xff] }
 0x4c5   :  { %v8784_v46 = vsub.f32 %v25655_v43, %v25656_v22  ;;  %v8659_v10 = vand.u32 4294901760, %v8658_v6  ;;  %v25662_v15 = vand.u32 4294901760, %v25661_v54  ;;  %v9541_v5 = vsub.f32 %v22117_v41, %v9540_v35 }
 0x4c6   :  { %v8791_v61 = vsub.f32 %v25657_v17, %v25658_v47  ;;  %v8672_v3 = vsub.f32 %v25659_v27, %v25660_v26  ;;  %v9548_v63 = vsub.f32 %v22121_v53, %v9547_v28  ;;  %v25664_v4 = vand.u32 4294901760, %v25663_v32  ;;  %14504 = vmatpush3.bf16.msra.mxu1 %v14503_v16  ;;  %v25669_v16 = vld [vmem:[#allocation39_spill] sm:$0xff] }
 0x4c7   :  { %v8679_v62 = vsub.f32 %v25661_v54, %v25662_v15  ;;  %v25666_v42 = vand.u32 4294901760, %v25665_v1  ;;  %v23685_v12 = vand.u32 4294901760, %v22127_v24  ;;  %v14509_v6 = vpack.c.bf16 %v8778_v25, %v8771_v57  ;;  %14692 = vmatpush3.bf16.msra.mxu0 %v14691_v52  ;;  %14506 = vmatprep.subr.bf16.mxu1 %v14505_v0 }
 0x4c8   :  { %v8798_v33 = vsub.f32 %v25663_v32, %v25664_v4  ;;  %v8666_v43 = vand.u32 4294901760, %v8665_v56  ;;  %v8785_v22 = vand.u32 4294901760, %v8784_v46  ;;  %v23684_v17 = vand.u32 4294901760, %v22129_v40  ;;  %14693 = vmatprep.subr.bf16.mxu0 %v25615_v37  ;;  %v25667_v4 = vld [vmem:[#allocation30_spill] sm:$0xff] }
 0x4c9   :  { %v8805_v30 = vsub.f32 %v25665_v1, %v25666_v42  ;;  %v9528_v47 = vand.u32 4294901760, %v9527_v58  ;;  %v9535_v27 = vand.u32 4294901760, %v9534_v38  ;;  %v8792_v26 = vand.u32 4294901760, %v8791_v61  ;;  %v25671_v61 = vld [vmem:[#allocation32_spill] sm:$0xff] }
 0x4ca   :  { %v8673_v54 = vand.u32 4294901760, %v8672_v3  ;;  %v8680_v15 = vand.u32 4294901760, %v8679_v62  ;;  %v9542_v32 = vand.u32 4294901760, %v9541_v5  ;;  %v25668_v1 = vand.u32 4294901760, %v25667_v4  ;;  %14508 = vmatpush3.bf16.msra.mxu1 %v14507_v13 }
 0x4cb   :  { %v25670_v57 = vand.u32 4294901760, %v25669_v16  ;;  %v9549_v25 = vand.u32 4294901760, %v9548_v63  ;;  %v8799_v46 = vand.u32 4294901760, %v8798_v33  ;;  %v8806_v52 = vand.u32 4294901760, %v8805_v30  ;;  %14695 = vmatpush3.bf16.msra.mxu0 %v14694_v2  ;;  %14510 = vmatprep.subr.bf16.mxu1 %v14509_v6  ;;  %v25673_v33 = vld [vmem:[#allocation22_spill] sm:$0xff]  ;;  %v25675_v6 = vld [vmem:[#allocation95_spill] sm:$0xff] }
 0x4cc   :  { %v8686_v42 = vsub.f32 %v25667_v4, %v25668_v1  ;;  %v9555_v0 = vsub.f32 %v22127_v24, %v23685_v12  ;;  %v14511_v58 = vpack.c.bf16 %v8666_v43, %v8659_v10  ;;  %v9562_v38 = vsub.f32 %v22129_v40, %v23684_v17  ;;  %14696 = vmatprep.subr.bf16.mxu0 %v25615_v37  ;;  %v11933_v43 = vpop.f32.mrb[44].mxu0 }
 0x4cd   :  { %v8693_v56 = vsub.f32 %v25669_v16, %v25670_v57  ;;  %v25672_v3 = vand.u32 4294901760, %v25671_v61  ;;  %v14697_v5 = vpack.c.bf16 %v9535_v27, %v9528_v47  ;;  %v14513_v63 = vpack.c.bf16 %v8792_v26, %v8785_v22  ;;  %v11934_v12 = vpop.f32.mrb[45].mxu0  ;;  %v25677_v27 = vld [vmem:[#allocation44_spill] sm:$0xff] }
 0x4ce   :  { %v25674_v30 = vand.u32 4294901760, %v25673_v33  ;;  %v14515_v13 = vpack.c.bf16 %v8680_v15, %v8673_v54  ;;  %v8687_v10 = vand.u32 4294901760, %v8686_v42  ;;  %v14700_v1 = vpack.c.bf16 %v9549_v25, %v9542_v32  ;;  %14512 = vmatpush3.bf16.msra.mxu1 %v14511_v58  ;;  %v25679_v15 = vld [vmem:[#allocation41_spill] sm:$0xff] }
 0x4cf   :  { %v8812_v62 = vsub.f32 %v25671_v61, %v25672_v3  ;;  %v14517_v16 = vpack.c.bf16 %v8806_v52, %v8799_v46  ;;  %v8694_v57 = vand.u32 4294901760, %v8693_v56  ;;  %v9556_v17 = vand.u32 4294901760, %v9555_v0  ;;  %14698 = vmatpush3.bf16.msra.mxu0 %v14697_v5  ;;  %14514 = vmatprep.subr.bf16.mxu1 %v14513_v63  ;;  %v25681_v56 = vld [vmem:[#allocation45_spill] sm:$0xff] }
 0x4d0   :  { %v8819_v4 = vsub.f32 %v25673_v33, %v25674_v30  ;;  %v9563_v61 = vand.u32 4294901760, %v9562_v38  ;;  %v25676_v47 = vand.u32 4294901760, %v25675_v6  ;;  %v25678_v26 = vand.u32 4294901760, %v25677_v27  ;;  %14699 = vmatprep.subr.bf16.mxu0 %v25615_v37  ;;  %v25683_v38 = vld [vmem:[#allocation14_spill] sm:$0xff]  ;;  %v25685_v5 = vld [vmem:[#allocation25_spill] sm:$0xff] }
 0x4d1   :  { %v8813_v2 = vand.u32 4294901760, %v8812_v62  ;;  %v22274_v33 = vadd.f32 %v11934_v12, %v11933_v43  ;;  %v25680_v32 = vand.u32 4294901760, %v25679_v15  ;;  %v25682_v25 = vand.u32 4294901760, %v25681_v56 }
 0x4d2   :  { %v8700_v22 = vsub.f32 %v25675_v6, %v25676_v47  ;;  %v8707_v3 = vsub.f32 %v25677_v27, %v25678_v26  ;;  %v8820_v54 = vand.u32 4294901760, %v8819_v4  ;;  %v14519_v52 = vpack.c.bf16 %v8694_v57, %v8687_v10  ;;  %14516 = vmatpush3.bf16.msra.mxu1 %v14515_v13  ;;  %v11688_v27 = vpop.f32.mrb[44].mxu1 }
 0x4d3   :  { %v8826_v42 = vsub.f32 %v25679_v15, %v25680_v32  ;;  %v8833_v46 = vsub.f32 %v25681_v56, %v25682_v25  ;;  %v25684_v12 = vand.u32 4294901760, %v25683_v38  ;;  %v25686_v63 = vand.u32 4294901760, %v25685_v5  ;;  %14701 = vmatpush3.bf16.msra.mxu0 %v14700_v1  ;;  %14518 = vmatprep.subr.bf16.mxu1 %v14517_v16  ;;  %v11689_v13 = vpop.f32.mrb[45].mxu1  ;;  %v25688_v15 = vld [vmem:[#allocation42_spill] sm:$0xff]  ;;  %v25689_v16 = vld [vmem:[#allocation13_spill] sm:$0xff] }
 0x4d4   :  { %v8701_v0 = vand.u32 4294901760, %v8700_v22  ;;  %v8708_v58 = vand.u32 4294901760, %v8707_v3  ;;  %v14703_v4 = vpack.c.bf16 %v9563_v61, %v9556_v17  ;;  %v14521_v43 = vpack.c.bf16 %v8820_v54, %v8813_v2  ;;  %14702 = vmatprep.subr.bf16.mxu0 %v25615_v37  ;;  %v25687_v3 = vld [vmem:[#allocation17_spill] sm:$0xff]  ;;  %v25690_v2 = vld [vmem:[#allocation19_spill] sm:$0xff] }
 0x4d5   :  { %v8714_v62 = vsub.f32 %v25683_v38, %v25684_v12  ;;  %v8721_v30 = vsub.f32 %v25685_v5, %v25686_v63  ;;  %v8827_v6 = vand.u32 4294901760, %v8826_v42  ;;  %v8834_v47 = vand.u32 4294901760, %v8833_v46  ;;  %v25691_v42 = vld [vmem:[#allocation62_spill] sm:$0xff]  ;;  %v25693_v46 = vld [vmem:[#allocation20_spill] sm:$0xff]  ;;  %v25699_v5 = vld [vmem:[#allocation21_spill] sm:$0xff] }
 0x4d6   :  { %v11690_v10 = vadd.f32 %v11689_v13, %v11688_v27  ;;  %14520 = vmatpush3.bf16.msra.mxu1 %v14519_v52  ;;  %v14523_v57 = vpack.c.bf16 %v8708_v58, %v8701_v0  ;;  %v14706_v32 = vpack.c.bf16 %v25688_v15, %v25687_v3  ;;  %v14709_v56 = vpack.c.bf16 %v22044_v18, %v25691_v42  ;;  %v25694_v52 = vld [vmem:[#allocation49_spill] sm:$0xff]  ;;  %v25695_v0 = vld [vmem:[#allocation64_spill] sm:$0xff]  ;;  %v25697_v38 = vld [vmem:[#allocation90_spill] sm:$0xff] }
 0x4d7   :  { %v8715_v22 = vand.u32 4294901760, %v8714_v62  ;;  %v8722_v26 = vand.u32 4294901760, %v8721_v30  ;;  %14704 = vmatpush3.bf16.msra.mxu0 %v14703_v4  ;;  %14522 = vmatprep.subr.bf16.mxu1 %v14521_v43  ;;  %v14525_v1 = vpack.c.bf16 %v8834_v47, %v8827_v6  ;;  %v14712_v25 = vpack.c.bf16 %v22078_v60, %v22075_v19  ;;  %v25698_v62 = vld [vmem:[#allocation18_spill] sm:$0xff]  ;;  %v25701_v4 = vld [vmem:[#allocation28_spill] sm:$0xff] }
 0x4d8   :  { %v6773_v17 = vadd.f32 %v11690_v10, %v22183_v29  ;;  %14705 = vmatprep.subr.bf16.mxu0 %v25615_v37  ;;  %v25692_v29 = vld [vmem:[#allocation75_spill] sm:$0xff]  ;;  %v25696_v58 = vand.u32 4294901760, %v25695_v0  ;;  %v14715_v12 = vpack.c.bf16 %v22089_v36, %v22087_v51  ;;  %v14718_v63 = vpack.c.bf16 %v22093_v9, %v22091_v55  ;;  %v25700_v30 = vld [vmem:[#allocation34_spill] sm:$0xff]  ;;  %v25703_v10 = vld [vmem:[#allocation84_spill] sm:$0xff] }
 0x4d9   :  { %v14527_v61 = vpack.c.bf16 %v8722_v26, %v8715_v22  ;;  %v14721_v43 = vpack.c.bf16 %v22115_v7, %v22113_v49  ;;  %v25702_v27 = vld [vmem:[#allocation50_spill] sm:$0xff]  ;;  %v25704_v22 = vld [vmem:[#allocation93_spill] sm:$0xff]  ;;  %v14766_v19 = vpack.c.bf16 %v9519_v39, %v9512_v45  ;;  %v14769_v60 = vpack.c.bf16 %v9533_v23, %v9526_v48 }
 0x4da   :  { %12525 = vmatmul.mubr.f32.vlgmr.msra.gmra.mrb[56].mxu0 %v25689_v16  ;;  %14524 = vmatpush3.bf16.msra.mxu1 %v14523_v57  ;;  %v6885_v54 = vadd.f32 %v25690_v2, %v6773_v17  ;;  %v14724_v57 = vpack.c.bf16 %v22121_v53, %v22117_v41  ;;  %v25705_v26 = vld [vmem:[#allocation66_spill] sm:$0xff]  ;;  %v25708_v0 = vld [vmem:[#allocation81_spill] sm:$0xff]  ;;  %v14772_v55 = vpack.c.bf16 %v9547_v28, %v9540_v35  ;;  %v25725_v9 = vand.u32 4294901760, %v22127_v24 }
 0x4db   :  { %14707 = vmatpush3.bf16.msra.mxu0 %v14706_v32  ;;  %14526 = vmatprep.subr.bf16.mxu1 %v14525_v1  ;;  %v14727_v32 = vpack.c.bf16 %v22129_v40, %v22127_v24  ;;  %v25706_v2 = vld [vmem:[#allocation82_spill] sm:$0xff]  ;;  %v25726_v49 = vand.u32 4294901760, %v22129_v40 }
 0x4dc   :  { %14708 = vmatprep.subr.bf16.mxu0 %v25615_v37  ;;  %12559 = vmatprep.mubr.msk.f32.mxu0 %vm15013_vm6, %v25616_v20 }
 0x4dd   :  { %v14775_v7 = vpack.c.bf16 %v25726_v49, %v25725_v9 }
 0x4de   :  { %14528 = vmatpush3.bf16.msra.mxu1 %v14527_v61 }
 0x4df   :  { %14710 = vmatpush3.bf16.msra.mxu0 %v14709_v56  ;;  %14562 = vmatprep.subr.bf16.mxu1 %v25692_v29  ;;  %v25707_v56 = vld [vmem:[#allocation94_spill] sm:$0xff] }
 0x4e0   :  { %14711 = vmatprep.subr.bf16.mxu0 %v25615_v37 }
 0x4e1   :  { %8839 = vmatmul.mubr.f32.vlgmr.msra.gmra.mrb[58].mxu1 %v25693_v46 }
 0x4e2   :  { %14564 = vmatpush3.bf16.msra.mxu1 %v25694_v52  ;;  %9081 = vmatprep.mubr.f32.mxu1 %v25696_v58  ;;  %v25709_v58 = vld [vmem:[#allocation37_spill] sm:$0xff] }
 0x4e3   :  { %14713 = vmatpush3.bf16.msra.mxu0 %v14712_v25  ;;  %14566 = vmatprep.subr.bf16.mxu1 %v25697_v38  ;;  %v12003_v6 = vpop.f32.mrb[46].mxu0 }
 0x4e4   :  { %14714 = vmatprep.subr.bf16.mxu0 %v25615_v37  ;;  %v12004_v47 = vpop.f32.mrb[47].mxu0 }
 0x4e5   :  { %v22324_v13 = vadd.f32 %v12004_v47, %v12003_v6  ;;  %v25712_v6 = vld [vmem:[#allocation40_spill] sm:$0xff] }
 0x4e6   :  { %14568 = vmatpush3.bf16.msra.mxu1 %v25698_v62  ;;  %v25713_v47 = vld [vmem:[#allocation24_spill] sm:$0xff] }
 0x4e7   :  { %14716 = vmatpush3.bf16.msra.mxu0 %v14715_v12  ;;  %14570 = vmatprep.subr.bf16.mxu1 %v25699_v5  ;;  %v25710_v12 = vld [vmem:[#allocation72_spill] sm:$0xff] }
 0x4e8   :  { %14717 = vmatprep.subr.bf16.mxu0 %v25615_v37 }
 0x4ea   :  { %14572 = vmatpush3.bf16.msra.mxu1 %v25700_v30 }
 0x4eb   :  { %14719 = vmatpush3.bf16.msra.mxu0 %v14718_v63  ;;  %14574 = vmatprep.subr.bf16.mxu1 %v25701_v4  ;;  %v11758_v1 = vpop.f32.mrb[46].mxu1 }
 0x4ec   :  { %14720 = vmatprep.subr.bf16.mxu0 %v25615_v37  ;;  %v11759_v17 = vpop.f32.mrb[47].mxu1 }
 0x4ed   :  { %v11760_v61 = vadd.f32 %v11759_v17, %v11758_v1  ;;  %v25717_v1 = vld [vmem:[#allocation51_spill] sm:$0xff]  ;;  %v25718_v17 = vld [vmem:[#allocation68_spill] sm:$0xff] }
 0x4ee   :  { %14576 = vmatpush3.bf16.msra.mxu1 %v25702_v27 }
 0x4ef   :  { %14722 = vmatpush3.bf16.msra.mxu0 %v14721_v43  ;;  %14578 = vmatprep.subr.bf16.mxu1 %v25703_v10  ;;  %v7117_v25 = vadd.f32 %v11760_v61, %v6885_v54  ;;  %v25711_v43 = vld [vmem:[#allocation83_spill] sm:$0xff] }
 0x4f0   :  { %14723 = vmatprep.subr.bf16.mxu0 %v25615_v37  ;;  %v25714_v54 = vld [vmem:[#allocation91_spill] sm:$0xff] }
 0x4f1   :  { %v7255_v63 = vadd.f32 %v25710_v12, %v7117_v25 }
 0x4f2   :  { %14580 = vmatpush3.bf16.msra.mxu1 %v25704_v22 }
 0x4f3   :  { %14725 = vmatpush3.bf16.msra.mxu0 %v14724_v57  ;;  %14582 = vmatprep.subr.bf16.mxu1 %v25705_v26  ;;  %v25715_v57 = vld [vmem:[#allocation27_spill] sm:$0xff] }
 0x4f4   :  { %14726 = vmatprep.subr.bf16.mxu0 %v25615_v37 }
 0x4f6   :  { %14584 = vmatpush3.bf16.msra.mxu1 %v25706_v2 }
 0x4f7   :  { %14728 = vmatpush3.bf16.msra.mxu0 %v14727_v32  ;;  %14586 = vmatprep.subr.bf16.mxu1 %v25707_v56  ;;  %v25716_v32 = vand.u32 4294901760, %v25715_v57  ;;  %v10010_v57 = vld [vmem:[#allocation4 + $0x38] sm:$0xff] }
 0x4f8   :  { %14729 = vmatprep.subr.bf16.mxu0 %v25615_v37 }
 0x4fa   :  { %12560 = vmatmul.mubr.f32.vlgmr.msra.gmra.mrb[56].mxu0 %v25708_v0  ;;  %14588 = vmatpush3.bf16.msra.mxu1 %v25709_v58 }
 0x4fb   :  { %14731 = vmatpush3.bf16.msra.mxu0 %v25711_v43  ;;  %14590 = vmatprep.subr.bf16.mxu1 %v25712_v6 }
 0x4fc   :  { %14732 = vmatprep.subr.bf16.mxu0 %v25615_v37  ;;  %12594 = vmatprep.mubr.msk.f32.mxu0 %vm15013_vm6, %v25616_v20 }
 0x4fe   :  { %14592 = vmatpush3.bf16.msra.mxu1 %v25713_v47 }
 0x4ff   :  { %14734 = vmatpush3.bf16.msra.mxu0 %v25714_v54  ;;  %14626 = vmatprep.subr.bf16.mxu1 %v25692_v29  ;;  %v25719_v29 = vld [vmem:[#allocation86_spill] sm:$0xff] }
 0x500   :  { %14735 = vmatprep.subr.bf16.mxu0 %v25615_v37 }
 0x501   :  { %9085 = vmatmul.mubr.f32.vlgmr.msra.gmra.mrb[60].mxu1 %v25716_v32 }
 0x502   :  { %14628 = vmatpush3.bf16.msra.mxu1 %v25694_v52  ;;  %9355 = vmatprep.mubr.f32.mxu1 %v25654_v8 }
 0x503   :  { %14737 = vmatpush3.bf16.msra.mxu0 %v25717_v1  ;;  %14630 = vmatprep.subr.bf16.mxu1 %v25697_v38 }
 0x504   :  { %14738 = vmatprep.subr.bf16.mxu0 %v25615_v37  ;;  %v12073_v8 = vpop.f32.mrb[48].mxu0 }
 0x505   :  { %v12074_v52 = vpop.f32.mrb[49].mxu0 }
 0x506   :  { %14632 = vmatpush3.bf16.msra.mxu1 %v25698_v62  ;;  %v22366_v38 = vadd.f32 %v12074_v52, %v12073_v8  ;;  %v10013_v8 = vld [vmem:[#allocation4 + $0x50] sm:$0xff]  ;;  %v10014_v52 = vld [vmem:[#allocation4 + $0x58] sm:$0xff] }
 0x507   :  { %14740 = vmatpush3.bf16.msra.mxu0 %v25718_v17  ;;  %14634 = vmatprep.subr.bf16.mxu1 %v25699_v5 }
 0x508   :  { %14741 = vmatprep.subr.bf16.mxu0 %v25615_v37 }
 0x50a   :  { %14636 = vmatpush3.bf16.msra.mxu1 %v25700_v30 }
 0x50b   :  { %14743 = vmatpush3.bf16.msra.mxu0 %v25719_v29  ;;  %14638 = vmatprep.subr.bf16.mxu1 %v25701_v4  ;;  %v11828_v62 = vpop.f32.mrb[48].mxu1  ;;  %v25720_v4 = vand.u32 4294901760, %v25687_v3  ;;  %v25724_v3 = vand.u32 4294901760, %v22044_v18  ;;  %v14763_v18 = vpack.c.bf16 %v9505_v11, %v9498_v21 }
 0x50c   :  { %14744 = vmatprep.subr.bf16.mxu0 %v25615_v37  ;;  %v11829_v5 = vpop.f32.mrb[49].mxu1 }
 0x50d   :  { %v11830_v30 = vadd.f32 %v11829_v5, %v11828_v62  ;;  %v10015_v62 = vld [vmem:[#allocation4 + $0x60] sm:$0xff]  ;;  %v10016_v5 = vld [vmem:[#allocation4 + $0x68] sm:$0xff] }
 0x50e   :  { %14640 = vmatpush3.bf16.msra.mxu1 %v25702_v27  ;;  %v25721_v27 = vand.u32 4294901760, %v25688_v15 }
 0x50f   :  { %14746 = vmatpush3.bf16.msra.mxu0 %v22059_v50  ;;  %14642 = vmatprep.subr.bf16.mxu1 %v25703_v10 }
 0x510   :  { %14747 = vmatprep.subr.bf16.mxu0 %v25615_v37  ;;  %v14754_v10 = vpack.c.bf16 %v25721_v27, %v25720_v4 }
 0x512   :  { %14644 = vmatpush3.bf16.msra.mxu1 %v25704_v22  ;;  %v7363_v22 = vadd.f32 %v11830_v30, %v7255_v63  ;;  %v10006_v63 = vld [vmem:[#allocation4 + $0x18] sm:$0xff]  ;;  %v14820_v30 = vpack.c.bf16 %v10016_v5, %v10015_v62 }
 0x513   :  { %14749 = vmatpush3.bf16.msra.mxu0 %v22106_v34  ;;  %14646 = vmatprep.subr.bf16.mxu1 %v25705_v26  ;;  %v25722_v26 = vand.u32 4294901760, %v25708_v0  ;;  %v10003_v0 = vld [vmem:[#allocation4] sm:$0xff] }
 0x514   :  { %14750 = vmatprep.subr.bf16.mxu0 %v25615_v37  ;;  %v7531_v61 = vadd.f32 %v22102_v44, %v7363_v22  ;;  %v14760_v44 = vpack.c.bf16 %v9491_v14, %v9484_v31 }
 0x516   :  { %14648 = vmatpush3.bf16.msra.mxu1 %v25706_v2  ;;  %v25723_v2 = vand.u32 4294901760, %v25691_v42 }
 0x517   :  { %14752 = vmatpush3.bf16.msra.mxu0 %v22123_v59  ;;  %14650 = vmatprep.subr.bf16.mxu1 %v25707_v56 }
 0x518   :  { %14753 = vmatprep.subr.bf16.mxu0 %v25615_v37  ;;  %v14757_v56 = vpack.c.bf16 %v25724_v3, %v25723_v2  ;;  %v10018_v2 = vld [vmem:[#allocation4 + $0x78] sm:$0xff] }
 0x51a   :  { %12595 = vmatmul.mubr.f32.vlgmr.msra.gmra.mrb[56].mxu0 %v25722_v26  ;;  %14652 = vmatpush3.bf16.msra.mxu1 %v25709_v58  ;;  %v10005_v58 = vld [vmem:[#allocation4 + $0x10] sm:$0xff] }
 0x51b   :  { %14755 = vmatpush3.bf16.msra.mxu0 %v14754_v10  ;;  %14654 = vmatprep.subr.bf16.mxu1 %v25712_v6  ;;  %v14805_v6 = vpack.c.bf16 %v10006_v63, %v10005_v58  ;;  %v10110_v63 = vld [vmem:[#allocation7 + $0x68] sm:$0xff] }
 0x51c   :  { %14756 = vmatprep.subr.bf16.mxu0 %v25615_v37  ;;  %12629 = vmatprep.mubr.msk.f32.mxu0 %vm15013_vm6, %v25616_v20 }
 0x51e   :  { %14656 = vmatpush3.bf16.msra.mxu1 %v25713_v47 }
 0x51f   :  { %14758 = vmatpush3.bf16.msra.mxu0 %v14757_v56  ;;  %14801 = vmatprep.subr.bf16.mxu1 %v25615_v37 }
 0x520   :  { %14759 = vmatprep.subr.bf16.mxu0 %v25615_v37 }
 0x521   :  { %9357 = vmatmul.mubr.f32.vlgmr.msra.gmra.mrb[62].mxu1 %v25693_v46 }
 0x522   :  { %12699 = vmatprep.mubr.msk.f32.mxu1 %vm15013_vm6, %v25616_v20 }
 0x523   :  { %14761 = vmatpush3.bf16.msra.mxu0 %v14760_v44 }
 0x524   :  { %14762 = vmatprep.subr.bf16.mxu0 %v25615_v37  ;;  %v12143_v36 = vpop.f32.mrb[50].mxu0 }
 0x525   :  { %v12144_v51 = vpop.f32.mrb[51].mxu0 }
 0x526   :  { %v22420_v31 = vadd.f32 %v12144_v51, %v12143_v36 }
 0x527   :  { %14764 = vmatpush3.bf16.msra.mxu0 %v14763_v18 }
 0x528   :  { %14765 = vmatprep.subr.bf16.mxu0 %v25615_v37 }
 0x52b   :  { %14767 = vmatpush3.bf16.msra.mxu0 %v14766_v19 }
 0x52c   :  { %14768 = vmatprep.subr.bf16.mxu0 %v25615_v37  ;;  %v11898_v14 = vpop.f32.mrb[50].mxu1 }
 0x52d   :  { %v11899_v21 = vpop.f32.mrb[51].mxu1 }
 0x52e   :  { %v11900_v11 = vadd.f32 %v11899_v21, %v11898_v14 }
 0x52f   :  { %14770 = vmatpush3.bf16.msra.mxu0 %v14769_v60 }
 0x530   :  { %14771 = vmatprep.subr.bf16.mxu0 %v25615_v37  ;;  %v7635_v45 = vadd.f32 %v11900_v11, %v7531_v61  ;;  %v10017_v61 = vld [vmem:[#allocation4 + $0x70] sm:$0xff]  ;;  %v10097_v11 = vld [vmem:[#allocation7] sm:$0xff] }
 0x531   :  { %v14823_v3 = vpack.c.bf16 %v10018_v2, %v10017_v61 }
 0x532   :  { %v7747_v41 = vadd.f32 %v22274_v33, %v7635_v45  ;;  %v10098_v45 = vld [vmem:[#allocation7 + $0x8] sm:$0xff] }
 0x533   :  { %14773 = vmatpush3.bf16.msra.mxu0 %v14772_v55 }
 0x534   :  { %14774 = vmatprep.subr.bf16.mxu0 %v25615_v37 }
 0x537   :  { %14776 = vmatpush3.bf16.msra.mxu0 %v14775_v7 }
 0x538   :  { %14777 = vmatprep.subr.bf16.mxu0 %v25615_v37 }
 0x53a   :  { %12630 = vmatmul.mubr.f32.vlgmr.msra.gmra.mrb[56].mxu0 %v25689_v16 }
 0x53b   :  { %14779 = vmatpush3.bf16.msra.mxu0 %v25711_v43  ;;  %12664 = vmatprep.mubr.msk.f32.mxu0 %vm15013_vm6, %v25616_v20 }
 0x53c   :  { %14780 = vmatprep.subr.bf16.mxu0 %v25615_v37 }
 0x53f   :  { %14782 = vmatpush3.bf16.msra.mxu0 %v25714_v54  ;;  %v10009_v54 = vld [vmem:[#allocation4 + $0x30] sm:$0xff] }
 0x540   :  { %14783 = vmatprep.subr.bf16.mxu0 %v25615_v37  ;;  %v14811_v32 = vpack.c.bf16 %v10010_v57, %v10009_v54 }
 0x543   :  { %14785 = vmatpush3.bf16.msra.mxu0 %v25717_v1  ;;  %v10011_v1 = vld [vmem:[#allocation4 + $0x40] sm:$0xff] }
 0x544   :  { %14786 = vmatprep.subr.bf16.mxu0 %v25615_v37 }
 0x547   :  { %14788 = vmatpush3.bf16.msra.mxu0 %v25718_v17  ;;  %v10012_v17 = vld [vmem:[#allocation4 + $0x48] sm:$0xff] }
 0x548   :  { %14789 = vmatprep.subr.bf16.mxu0 %v25615_v37 }
 0x54b   :  { %14791 = vmatpush3.bf16.msra.mxu0 %v25719_v29  ;;  %v14814_v29 = vpack.c.bf16 %v10012_v17, %v10011_v1  ;;  %v10220_v1 = vld [vmem:[#allocation9] ss:$0 sm:$0xff] }
 0x54c   :  { %14792 = vmatprep.subr.bf16.mxu0 %v25615_v37  ;;  %v12213_v53 = vpop.f32.mrb[52].mxu0 }
 0x54d   :  { %v12214_v24 = vpop.f32.mrb[53].mxu0 }
 0x54e   :  { %v22447_v40 = vadd.f32 %v12214_v24, %v12213_v53  ;;  %v14826_v53 = vpack.c.bf16 %v10098_v45, %v10097_v11 }
 0x54f   :  { %14794 = vmatpush3.bf16.msra.mxu0 %v22059_v50 }
 0x550   :  { %14795 = vmatprep.subr.bf16.mxu0 %v25615_v37 }
 0x553   :  { %14797 = vmatpush3.bf16.msra.mxu0 %v22106_v34  ;;  %v10004_v34 = vld [vmem:[#allocation4 + $0x8] sm:$0xff] }
 0x554   :  { %v11968_v39 = vpop.f32.mrb[52].mxu1  ;;  %14798 = vmatprep.subr.bf16.mxu0 %v25615_v37  ;;  %v14802_v12 = vpack.c.bf16 %v10004_v34, %v10003_v0  ;;  %v10108_v34 = vld [vmem:[#allocation7 + $0x58] sm:$0xff] }
 0x555   :  { %v11969_v48 = vpop.f32.mrb[53].mxu1 }
 0x556   :  { %v11970_v23 = vadd.f32 %v11969_v48, %v11968_v39  ;;  %14803 = vmatpush3.bf16.msra.mxu1 %v14802_v12  ;;  %v10099_v48 = vld [vmem:[#allocation7 + $0x10] sm:$0xff]  ;;  %v10109_v12 = vld [vmem:[#allocation7 + $0x60] sm:$0xff] }
 0x557   :  { %14800 = vmatpush3.bf16.msra.mxu0 %v22123_v59  ;;  %14804 = vmatprep.subr.bf16.mxu1 %v25615_v37 }
 0x558   :  { %v7979_v35 = vadd.f32 %v11970_v23, %v7747_v41  ;;  %v10100_v23 = vld [vmem:[#allocation7 + $0x18] sm:$0xff] }
 0x55a   :  { %12665 = vmatmul.mubr.f32.vlgmr.msra.gmra.mrb[56].mxu0 %v25689_v16  ;;  %v8117_v28 = vadd.f32 %v22324_v13, %v7979_v35  ;;  %v10007_v16 = vld [vmem:[#allocation4 + $0x20] sm:$0xff]  ;;  %v10008_v13 = vld [vmem:[#allocation4 + $0x28] sm:$0xff]  ;;  %14806 = vmatpush3.bf16.msra.mxu1 %v14805_v6  ;;  %v10111_v6 = vld [vmem:[#allocation7 + $0x70] sm:$0xff] }
 0x55b   :  { %v14808_v47 = vpack.c.bf16 %v10008_v13, %v10007_v16  ;;  %14807 = vmatprep.subr.bf16.mxu1 %v25615_v37  ;;  %v10101_v35 = vld [vmem:[#allocation7 + $0x20] sm:$0xff]  ;;  %v10219_v13 = vld [vmem:[#allocation6] ss:$0 sm:$0xff] }
 0x55e   :  { %14809 = vmatpush3.bf16.msra.mxu1 %v14808_v47 }
 0x55f   :  { %14810 = vmatprep.subr.bf16.mxu1 %v25615_v37 }
 0x562   :  { %14812 = vmatpush3.bf16.msra.mxu1 %v14811_v32 }
 0x563   :  { %14813 = vmatprep.subr.bf16.mxu1 %v25615_v37 }
 0x566   :  { %14815 = vmatpush3.bf16.msra.mxu1 %v14814_v29 }
 0x567   :  { %14816 = vmatprep.subr.bf16.mxu1 %v25615_v37 }
 0x56d   :  { %v12283_v33 = vpop.f32.mrb[54].mxu0 }
 0x56e   :  { %v12284_v15 = vpop.f32.mrb[55].mxu0 }
 0x56f   :  { %v12285_v42 = vadd.f32 %v12284_v15, %v12283_v33  ;;  %v10103_v15 = vld [vmem:[#allocation7 + $0x30] sm:$0xff] }
 0x574   :  { %v12038_v50 = vpop.f32.mrb[54].mxu1 }
 0x575   :  { %v12039_v46 = vpop.f32.mrb[55].mxu1 }
 0x576   :  { %v12040_v25 = vadd.f32 %v12039_v46, %v12038_v50  ;;  %v10105_v46 = vld [vmem:[#allocation7 + $0x40] sm:$0xff] }
 0x578   :  { %v8225_v43 = vadd.f32 %v12040_v25, %v8117_v28  ;;  %v10102_v28 = vld [vmem:[#allocation7 + $0x28] sm:$0xff] }
 0x579   :  { %v14832_v33 = vpack.c.bf16 %v10102_v28, %v10101_v35  ;;  %v10106_v25 = vld [vmem:[#allocation7 + $0x48] sm:$0xff] }
 0x57a   :  { %v8393_v59 = vadd.f32 %v22366_v38, %v8225_v43  ;;  %v14817_v38 = vpack.c.bf16 %v10014_v52, %v10013_v8  ;;  %v14838_v0 = vpack.c.bf16 %v10106_v25, %v10105_v46  ;;  %v14844_v43 = vpack.c.bf16 %v10110_v63, %v10109_v12 }
 0x57c   :  { %14818 = vmatpush3.bf16.msra.mxu1 %v14817_v38 }
 0x57d   :  { %14819 = vmatprep.subr.bf16.mxu1 %v25615_v37 }
 0x580   :  { %14821 = vmatpush3.bf16.msra.mxu1 %v14820_v30 }
 0x581   :  { %14822 = vmatprep.subr.bf16.mxu1 %v25615_v37 }
 0x584   :  { %14824 = vmatpush3.bf16.msra.mxu1 %v14823_v3 }
 0x585   :  { %14825 = vmatprep.subr.bf16.mxu1 %v25615_v37 }
 0x594   :  { %v12108_v4 = vpop.f32.mrb[56].mxu1 }
 0x595   :  { %v12109_v27 = vpop.f32.mrb[57].mxu1 }
 0x596   :  { %v12110_v10 = vadd.f32 %v12109_v27, %v12108_v4 }
 0x598   :  { %v8497_v22 = vadd.f32 %v12110_v10, %v8393_v59  ;;  %v10112_v59 = vld [vmem:[#allocation7 + $0x78] sm:$0xff] }
 0x599   :  { %v14847_v16 = vpack.c.bf16 %v10112_v59, %v10111_v6 }
 0x59a   :  { %v8609_v26 = vadd.f32 %v22420_v31, %v8497_v22 }
 0x5b4   :  { %v12178_v56 = vpop.f32.mrb[58].mxu1 }
 0x5b5   :  { %v12179_v44 = vpop.f32.mrb[59].mxu1 }
 0x5b6   :  { %v12180_v18 = vadd.f32 %v12179_v44, %v12178_v56 }
 0x5b8   :  { %v8841_v19 = vadd.f32 %v12180_v18, %v8609_v26 }
 0x5ba   :  { %v8979_v60 = vadd.f32 %v22447_v40, %v8841_v19  ;;  %v14829_v40 = vpack.c.bf16 %v10100_v23, %v10099_v48 }
 0x5d4   :  { %v12248_v36 = vpop.f32.mrb[60].mxu1 }
 0x5d5   :  { %v12249_v51 = vpop.f32.mrb[61].mxu1 }
 0x5d6   :  { %v12250_v55 = vadd.f32 %v12249_v51, %v12248_v36 }
 0x5d8   :  { %v9087_v9 = vadd.f32 %v12250_v55, %v8979_v60 }
 0x5da   :  { %v9255_v49 = vadd.f32 %v12285_v42, %v9087_v9  ;;  %v10104_v42 = vld [vmem:[#allocation7 + $0x38] sm:$0xff] }
 0x5db   :  { %v14835_v50 = vpack.c.bf16 %v10104_v42, %v10103_v15 }
 0x5f4   :  { %v12318_v7 = vpop.f32.mrb[62].mxu1 }
 0x5f5   :  { %v12319_v14 = vpop.f32.mrb[63].mxu1 }
 0x5f6   :  { %v12320_v31 = vadd.f32 %v12319_v14, %v12318_v7 }
 0x5f8   :  { %v9359_v21 = vadd.f32 %v12320_v31, %v9255_v49 }
 0x62d   :  { %v9999_v41 = vpop.f32.mrb[56].mxu0 }
 0x62e   :  { %v14849_v24 = vadd.f32 %v9999_v41, %v9359_v21  ;;  %v12666_v39 = vpop.f32.mrb[57].mxu0 }
 0x630   :  { %12700 = vmatmul.mubr.f32.vlgmr.msra.gmra.mrb[64].mxu1 %v14849_v24 }
 0x631   :  { %14827 = vmatpush3.bf16.msra.mxu1 %v14826_v53  ;;  %12734 = vmatprep.mubr.msk.f32.mxu1 %vm15013_vm6, %v25616_v20  ;;  %v10107_v20 = vld [vmem:[#allocation7 + $0x50] sm:$0xff] }
 0x632   :  { %14828 = vmatprep.subr.bf16.mxu1 %v25615_v37  ;;  %v14841_v58 = vpack.c.bf16 %v10108_v34, %v10107_v20 }
 0x635   :  { %14830 = vmatpush3.bf16.msra.mxu1 %v14829_v40 }
 0x636   :  { %14831 = vmatprep.subr.bf16.mxu1 %v25615_v37 }
 0x639   :  { %14833 = vmatpush3.bf16.msra.mxu1 %v14832_v33 }
 0x63a   :  { %14834 = vmatprep.subr.bf16.mxu1 %v25615_v37 }
 0x63d   :  { %14836 = vmatpush3.bf16.msra.mxu1 %v14835_v50 }
 0x63e   :  { %14837 = vmatprep.subr.bf16.mxu1 %v25615_v37 }
 0x641   :  { %14839 = vmatpush3.bf16.msra.mxu1 %v14838_v0 }
 0x642   :  { %14840 = vmatprep.subr.bf16.mxu1 %v25615_v37 }
 0x645   :  { %14842 = vmatpush3.bf16.msra.mxu1 %v14841_v58 }
 0x646   :  { %14843 = vmatprep.subr.bf16.mxu1 %v25615_v37 }
 0x649   :  { %14845 = vmatpush3.bf16.msra.mxu1 %v14844_v43 }
 0x64a   :  { %14846 = vmatprep.subr.bf16.mxu1 %v25615_v37 }
 0x64d   :  { %14848 = vmatpush3.bf16.msra.mxu1 %v14847_v16 }
 0x703   :  { %v10092_v47 = vpop.f32.mrb[64].mxu1 }
 0x704   :  { %v10093_v54 = vadd.f32 %v10219_v13, %v10092_v47  ;;  %v12701_v57 = vpop.f32.mrb[65].mxu1 }
 0x706   :  { %v10096_v32 = vmax.f32 %v10093_v54, 0.0 }
 0x708   :  { %12735 = vmatmul.mubr.f32.vlgmr.msra.gmra.mrb[66].mxu1 %v10096_v32 }
 0x7db   :  { %v10186_v17 = vpop.f32.mrb[66].mxu1 }
 0x7dc   :  { %v10187_v29 = vadd.f32 %v10220_v1, %v10186_v17  ;;  %v12736_v8 = vpop.f32.mrb[67].mxu1 }
 0x7de   :  { %10190 = vst [vmem:[%s22485_s6] sm:$0xff] %v10187_v29 }
 0x7df   :  { %10195 = vsyncpa [#allocation3], 1 }
 0x7e0   :  { %10196 = vsyncpa [#allocation5], 1 }
 0x7e1   :  { %10197 = vsyncpa [#allocation8], 1 }

</bundles_post_ra>
